<compile_context>
chip_gen: v7x
topology: tpu7x:2x2x1
jax: 0.10.0
libtpu: 0.0.40
codegen_flags: <defaults>
</compile_context>

<pallas_src>
import functools

import jax
import jax.numpy as jnp
from jax.experimental import pallas as pl
from jax.experimental.pallas import tpu as pltpu

EPS = 1e-5


def _default_vmem_limit():
    # Generation-aware scoped-VMEM limit: ~3/4 of physical, capped at 100 MiB
    # (v5e/v6e: 128 MiB -> 96 MiB; v7x: 64 MiB -> 48 MiB).
    try:
        cap = pltpu.get_tpu_info().vmem_capacity_bytes
        return int(min(cap * 3 // 4, 100 * 1024 * 1024))
    except Exception:
        return 32 * 1024 * 1024


_VMEM_LIMIT = _default_vmem_limit()


def _cparams(*sems):
    return pltpu.CompilerParams(dimension_semantics=sems,
                                vmem_limit_bytes=_VMEM_LIMIT)


def _pick_stripe(h):
    """Largest convenient H-stripe that divides H (prod: 32-64 rows)."""
    for cand in (64, 32, 16, 8):
        if h % cand == 0:
            return cand
    return h


# ----------------------------------------------------------------------------
# In-kernel helpers
# ----------------------------------------------------------------------------
def _fill_window(scr_ref, ch0, main_ref, top_ref, bot_ref):
    """Pack one activation stripe (+ clamped 1-row halos) into the W-padded
    VMEM conv window at channel offset ch0.

    scr layout: rows [0, TB+2) = halo_above | stripe | halo_below;
    columns: [0,8) zeros, [8, 8+W) data, [8+W, 16+W) zeros.  All stores are
    sublane/lane aligned, so no relayout copies here.
    """
    tb = main_ref.shape[1]
    w = main_ref.shape[2]
    cin = main_ref.shape[3]
    s = pl.program_id(1)
    top = jnp.where(s > 0, top_ref[0], jnp.zeros_like(top_ref[0]))
    bot = jnp.where(s < pl.num_programs(1) - 1, bot_ref[0],
                    jnp.zeros_like(bot_ref[0]))
    cs = slice(ch0, ch0 + cin)
    scr_ref[0:1, 8:8 + w, cs] = top
    scr_ref[1:1 + tb, 8:8 + w, cs] = main_ref[0]
    scr_ref[1 + tb:2 + tb, 8:8 + w, cs] = bot
    # Conv left/right zero padding (columns 7 and W+8 are the ones read).
    scr_ref[:, 0:8, cs] = jnp.zeros((tb + 2, 8, cin), scr_ref.dtype)
    scr_ref[:, 8 + w:16 + w, cs] = jnp.zeros((tb + 2, 8, cin), scr_ref.dtype)


def _conv3x3_scratch(scr_ref, w_ref, b_ref):
    """9-tap 3x3 'same' conv on a packed stripe window.

    scr_ref: (TB+2, W+16, Cin) bf16; w_ref: (3, 3, Cin, Cout) bf16;
    b_ref: (1, Cout) f32.  Returns (TB*W, Cout) f32 with the bias folded in.

    Only one realigning load per dx (not per tap); the dy taps are free
    outer-dim slices of the loaded value, and the (TB,W)->(TB*W) merge is
    free when W % 8 == 0.
    """
    tb = scr_ref.shape[0] - 2
    w = scr_ref.shape[1] - 16
    cin = scr_ref.shape[2]
    cout = w_ref.shape[3]
    acc = jnp.broadcast_to(b_ref[...], (tb * w, cout))
    for dx in range(3):
        a = scr_ref[:, 7 + dx:7 + dx + w, :]          # one realign per dx
        for dy in range(3):
            flat = a[dy:dy + tb, :, :].reshape(tb * w, cin)
            acc = acc + jnp.dot(flat, w_ref[dy, dx],
                                preferred_element_type=jnp.float32)
    return acc


# ----------------------------------------------------------------------------
# Pallas kernels
# ----------------------------------------------------------------------------
def _matmul_bias_kernel(p_ref, w_ref, b_ref, o_ref, *, relu):
    """im2col 3x3 conv stripe as one MXU matmul (small-Cin convs).

    p_ref: (1, TB, W, K=9*Cin) bf16  w_ref: (K, Cout) bf16  b_ref: (1, Cout) f32
    """
    tb, w, k = p_ref.shape[1], p_ref.shape[2], p_ref.shape[3]
    cout = w_ref.shape[1]
    acc = jnp.dot(p_ref[0].reshape(tb * w, k), w_ref[...],
                  preferred_element_type=jnp.float32)
    acc = acc + b_ref[...]
    if relu:
        acc = jnp.maximum(acc, 0.0)
    o_ref[0] = acc.reshape(tb, w, cout).astype(o_ref.dtype)


def _moment_kernel(x_ref, sum_ref, sq_ref, *, per_sample):
    """Accumulate per-channel sum / sum-of-squares over the (N, H-stripe) grid."""
    s = pl.program_id(1)
    first = (s == 0) if per_sample else jnp.logical_and(
        pl.program_id(0) == 0, s == 0)

    @pl.when(first)
    def _():
        sum_ref[...] = jnp.zeros_like(sum_ref)
        sq_ref[...] = jnp.zeros_like(sq_ref)

    x = x_ref[0].astype(jnp.float32)                      # (TB, W, C)
    sum_ref[...] += jnp.sum(x, axis=(0, 1), keepdims=True)
    sq_ref[...] += jnp.sum(x * x, axis=(0, 1), keepdims=True)


def _spade_apply_kernel(x_ref, act_ref, top_ref, bot_ref, w_ref, b_ref,
                        mean_ref, rstd_ref, o_ref, scr_ref, *, relu):
    """Fused LightSPADE stripe: BN-normalize(x) * (1 + conv_g(act)) + conv_b(act), ReLU."""
    tb, w, c = x_ref.shape[1], x_ref.shape[2], x_ref.shape[3]
    _fill_window(scr_ref, 0, act_ref, top_ref, bot_ref)
    gb = _conv3x3_scratch(scr_ref, w_ref, b_ref)          # (TB*W, 2C) f32
    gamma = gb[:, :c].reshape(tb, w, c)
    beta = gb[:, c:].reshape(tb, w, c)
    xn = (x_ref[0].astype(jnp.float32) - mean_ref[...]) * rstd_ref[...]
    out = xn * (1.0 + gamma) + beta
    if relu:
        out = jnp.maximum(out, 0.0)
    o_ref[0] = out.astype(o_ref.dtype)


def _final_blend_kernel(x_ref, mid_ref, mtop_ref, mbot_ref,
                        act_ref, atop_ref, abot_ref,
                        w_ref, b_ref, mean_ref, rstd_ref, o_ref, scr_ref):
    """Fused final stripe: InstanceNorm(x) + alpha-folded gamma/beta conv over
    [middle ; semantic activation] (single K=256 contraction) + modulation."""
    tb, w, c = x_ref.shape[1], x_ref.shape[2], x_ref.shape[3]
    cm = mid_ref.shape[3]
    _fill_window(scr_ref, 0, mid_ref, mtop_ref, mbot_ref)
    _fill_window(scr_ref, cm, act_ref, atop_ref, abot_ref)
    gb = _conv3x3_scratch(scr_ref, w_ref, b_ref)          # (TB*W, 2C) f32
    gamma = gb[:, :c].reshape(tb, w, c)
    beta = gb[:, c:].reshape(tb, w, c)
    xn = (x_ref[0].astype(jnp.float32) - mean_ref[...]) * rstd_ref[...]
    o_ref[0] = (xn * (1.0 + gamma) + beta).astype(o_ref.dtype)


# ----------------------------------------------------------------------------
# Pallas wrappers
# ----------------------------------------------------------------------------
def _stripe_with_halo_specs(stripe, h, w, cin, c_block):
    """Main stripe spec + 1-row top/bottom halo specs (clamped at the image
    edge; the kernel zeroes them at the boundary)."""
    main = pl.BlockSpec((1, stripe, w, cin), lambda n, s: (n, s, 0, c_block))
    top = pl.BlockSpec(
        (1, 1, w, cin),
        lambda n, s: (n, jnp.maximum(s * stripe - 1, 0), 0, c_block))
    bot = pl.BlockSpec(
        (1, 1, w, cin),
        lambda n, s: (n, jnp.minimum((s + 1) * stripe, h - 1), 0, c_block))
    return main, top, bot


def matmul_conv_pl(patches, w, b, *, stripe, relu=False, out_dtype=jnp.float32):
    n, h, wd, k = patches.shape
    cout = w.shape[1]
    kern = functools.partial(_matmul_bias_kernel, relu=relu)
    return pl.pallas_call(
        kern,
        out_shape=jax.ShapeDtypeStruct((n, h, wd, cout), out_dtype),
        grid=(n, h // stripe),
        in_specs=[
            pl.BlockSpec((1, stripe, wd, k), lambda i, s: (i, s, 0, 0)),
            pl.BlockSpec((k, cout), lambda i, s: (0, 0)),
            pl.BlockSpec((1, cout), lambda i, s: (0, 0)),
        ],
        out_specs=pl.BlockSpec((1, stripe, wd, cout), lambda i, s: (i, s, 0, 0)),
        compiler_params=_cparams("parallel", "parallel"),
    )(patches, w, b)


def moments_pl(x, *, per_sample, stripe):
    """Per-channel mean / rstd.  per_sample=True -> InstanceNorm stats (reduce
    H,W per sample); False -> training-mode (Sync)BatchNorm stats (reduce N,H,W)."""
    n, h, wd, c = x.shape
    on = n if per_sample else 1
    if per_sample:
        out_map = lambda i, s: (i, 0, 0)
        sems = ("parallel", "arbitrary")
    else:
        out_map = lambda i, s: (0, 0, 0)
        sems = ("arbitrary", "arbitrary")
    kern = functools.partial(_moment_kernel, per_sample=per_sample)
    ssum, ssq = pl.pallas_call(
        kern,
        out_shape=(jax.ShapeDtypeStruct((on, 1, c), jnp.float32),
                   jax.ShapeDtypeStruct((on, 1, c), jnp.float32)),
        grid=(n, h // stripe),
        in_specs=[pl.BlockSpec((1, stripe, wd, c), lambda i, s: (i, s, 0, 0))],
        out_specs=(pl.BlockSpec((1, 1, c), out_map),
                   pl.BlockSpec((1, 1, c), out_map)),
        compiler_params=_cparams(*sems),
    )(x)
    cnt = float(h * wd if per_sample else n * h * wd)
    mean = ssum / cnt
    # TODO(synk): two-pass / Welford for very large N*H*W (f32 cancellation).
    var = jnp.maximum(ssq / cnt - mean * mean, 0.0)
    rstd = jax.lax.rsqrt(var + EPS)
    return mean, rstd


def spade_apply_pl(x, act, w, b, mean, rstd, *, c_block, stripe, relu=True,
                   out_dtype=jnp.float32):
    n, h, wd, c = x.shape
    cin = w.shape[2]
    cout2 = w.shape[3]
    amain, atop, abot = _stripe_with_halo_specs(stripe, h, wd, cin, c_block)
    kern = functools.partial(_spade_apply_kernel, relu=relu)
    return pl.pallas_call(
        kern,
        out_shape=jax.ShapeDtypeStruct((n, h, wd, c), out_dtype),
        grid=(n, h // stripe),
        in_specs=[
            pl.BlockSpec((1, stripe, wd, c), lambda i, s: (i, s, 0, 0)),   # x
            amain, atop, abot,                                             # act
            pl.BlockSpec((3, 3, cin, cout2), lambda i, s: (0, 0, 0, 0)),
            pl.BlockSpec((1, cout2), lambda i, s: (0, 0)),
            pl.BlockSpec((1, 1, c), lambda i, s: (0, 0, 0)),               # mean
            pl.BlockSpec((1, 1, c), lambda i, s: (0, 0, 0)),               # rstd
        ],
        out_specs=pl.BlockSpec((1, stripe, wd, c), lambda i, s: (i, s, 0, 0)),
        scratch_shapes=[pltpu.VMEM((stripe + 2, wd + 16, cin), jnp.bfloat16)],
        compiler_params=_cparams("parallel", "parallel"),
    )(x, act, act, act, w, b, mean, rstd)


def final_blend_pl(x, mid, act, w, b, mean, rstd, *, c_block, stripe):
    n, h, wd, c = x.shape
    cm = mid.shape[3]
    ca = w.shape[2] - cm
    cout2 = w.shape[3]
    mmain, mtop, mbot = _stripe_with_halo_specs(stripe, h, wd, cm, 0)
    amain, atop, abot = _stripe_with_halo_specs(stripe, h, wd, ca, c_block)
    return pl.pallas_call(
        _final_blend_kernel,
        out_shape=jax.ShapeDtypeStruct((n, h, wd, c), jnp.float32),
        grid=(n, h // stripe),
        in_specs=[
            pl.BlockSpec((1, stripe, wd, c), lambda i, s: (i, s, 0, 0)),   # x
            mmain, mtop, mbot,                                             # middle
            amain, atop, abot,                                             # semantic act
            pl.BlockSpec((3, 3, cm + ca, cout2), lambda i, s: (0, 0, 0, 0)),
            pl.BlockSpec((1, cout2), lambda i, s: (0, 0)),
            pl.BlockSpec((1, 1, c), lambda i, s: (i, 0, 0)),               # inst mean
            pl.BlockSpec((1, 1, c), lambda i, s: (i, 0, 0)),               # inst rstd
        ],
        out_specs=pl.BlockSpec((1, stripe, wd, c), lambda i, s: (i, s, 0, 0)),
        scratch_shapes=[pltpu.VMEM((stripe + 2, wd + 16, cm + ca), jnp.bfloat16)],
        compiler_params=_cparams("parallel", "parallel"),
    )(x, mid, mid, mid, act, act, act, w, b, mean, rstd)


# ----------------------------------------------------------------------------
# Wrapper-side glue
# ----------------------------------------------------------------------------
def im2col_3x3(x):
    """(N,H,W,C) -> (N,H,W,9C) 3x3 'same' patches (tap order dy, dx, cin)."""
    n, h, w, c = x.shape
    xp = jnp.pad(x, ((0, 0), (1, 1), (1, 1), (0, 0)))
    cols = [xp[:, dy:dy + h, dx:dx + w, :] for dy in range(3) for dx in range(3)]
    return jnp.concatenate(cols, axis=-1)


def torch_nearest_resize_nhwc(x, h, w):
    # PyTorch F.interpolate(mode='nearest'): src = floor(dst * in / out).
    hs, ws = x.shape[1], x.shape[2]
    iy = jnp.clip((jnp.arange(h) * hs) // h, 0, hs - 1)
    ix = jnp.clip((jnp.arange(w) * ws) // w, 0, ws - 1)
    return x[:, iy][:, :, ix]


def prepare_fused_params(p):
    """Concatenated / alpha-folded weights for the fused kernels (bf16 MXU inputs)."""
    def mat(w):                       # HWIO (3,3,Cin,Cout) -> (9*Cin, Cout) bf16
        return w.reshape(-1, w.shape[-1]).astype(jnp.bfloat16)

    def vec(*bs):
        return jnp.concatenate(bs).reshape(1, -1).astype(jnp.float32)

    f = {}
    # One conv over seg for spade1/spade2/mlp 'shared' branches (Cout = 3*128).
    f["w_seg"] = mat(jnp.concatenate(
        [p["s1_shared_w"], p["s2_shared_w"], p["mlp_shared_w"]], axis=3))
    f["b_seg"] = vec(p["s1_shared_b"], p["s2_shared_b"], p["mlp_shared_b"])
    f["w_conv3"] = mat(p["conv3_w"])
    f["b_conv3"] = vec(p["conv3_b"])
    # gamma/beta conv pairs fused along Cout.
    f["w_gb1"] = jnp.concatenate([p["s1_gamma_w"], p["s1_beta_w"]],
                                 axis=3).astype(jnp.bfloat16)
    f["b_gb1"] = vec(p["s1_gamma_b"], p["s1_beta_b"])
    f["w_gb2"] = jnp.concatenate([p["s2_gamma_w"], p["s2_beta_w"]],
                                 axis=3).astype(jnp.bfloat16)
    f["b_gb2"] = vec(p["s2_gamma_b"], p["s2_beta_b"])
    # Final gamma/beta: sigmoid alpha blend folded into weights/biases, style
    # and semantic branches stacked along Cin (single K=256 contraction).
    ga = jax.nn.sigmoid(p["blending_gamma"])
    ba = jax.nn.sigmoid(p["blending_beta"])
    gamma_w = jnp.concatenate([ga * p["conv_gamma_w"],
                               (1.0 - ga) * p["mlp_gamma_w"]], axis=2)
    beta_w = jnp.concatenate([ba * p["conv_beta_w"],
                              (1.0 - ba) * p["mlp_beta_w"]], axis=2)
    f["w_blend"] = jnp.concatenate([gamma_w, beta_w], axis=3).astype(jnp.bfloat16)
    f["b_blend"] = vec(ga * p["conv_gamma_b"] + (1.0 - ga) * p["mlp_gamma_b"],
                       ba * p["conv_beta_b"] + (1.0 - ba) * p["mlp_beta_b"])
    return f


# ----------------------------------------------------------------------------
# Forward passes
# ----------------------------------------------------------------------------
def sin_spade_forward_pallas(params, x_nchw, seg_nchw, ret_nchw, *,
                             stripe_rows=None):
    n, c, h, w = x_nchw.shape
    x = jnp.transpose(x_nchw, (0, 2, 3, 1))
    seg = jnp.transpose(seg_nchw, (0, 2, 3, 1))
    ret = jnp.transpose(ret_nchw, (0, 2, 3, 1))

    # F.interpolate glue (bilinear align_corners=False / torch-style nearest).
    ret = jax.image.resize(ret, (n, h, w, ret.shape[-1]), method="bilinear")
    seg = torch_nearest_resize_nhwc(seg, h, w)

    stripe = _pick_stripe(h) if stripe_rows is None else stripe_rows
    if h % stripe:
        stripe = h

    f = prepare_fused_params(params)

    # Shared seg activation for spade1/spade2/mlp branches (+ReLU), produced as
    # an unpadded NHWC bf16 tensor; seg is cast to bf16 BEFORE the 9x im2col.
    shared_act = matmul_conv_pl(im2col_3x3(seg.astype(jnp.bfloat16)),
                                f["w_seg"], f["b_seg"], stripe=stripe,
                                relu=True, out_dtype=jnp.bfloat16)  # (N,H,W,384)

    # spade1 (LightSPADE on retrieval) + relu1, fused.
    m1, r1 = moments_pl(ret, per_sample=False, stripe=stripe)
    sp1 = spade_apply_pl(ret, shared_act, f["w_gb1"], f["b_gb1"], m1, r1,
                         c_block=0, stripe=stripe, relu=True)

    # spade2 (LightSPADE on spade1) + relu2, fused; sp2 only feeds conv3 -> bf16.
    m2, r2 = moments_pl(sp1, per_sample=False, stripe=stripe)
    sp2 = spade_apply_pl(sp1, shared_act, f["w_gb2"], f["b_gb2"], m2, r2,
                         c_block=1, stripe=stripe, relu=True,
                         out_dtype=jnp.bfloat16)

    # Style branch: conv3 (im2col, Cin=3 -> Cout=128), kept bf16.
    middle = matmul_conv_pl(im2col_3x3(sp2), f["w_conv3"], f["b_conv3"],
                            stripe=stripe, relu=False, out_dtype=jnp.bfloat16)

    # InstanceNorm stats for x, hoisted out of the final kernel so H-striping
    # stays correct.
    mi, ri = moments_pl(x, per_sample=True, stripe=stripe)

    # Fused final stage: InstanceNorm(x) + alpha-folded gamma/beta conv over
    # [middle ; semantic activation] + modulation.
    out = final_blend_pl(x, middle, shared_act, f["w_blend"], f["b_blend"],
                         mi, ri, c_block=2, stripe=stripe)
    # TODO(synk): for small norm_nc consider writing NCHW (lane-dense W)
    # directly from the final kernel to avoid masked stores + this transpose.
    return jnp.transpose(out, (0, 3, 1, 2))


# ---- pure-JAX reference (module semantics, unfused, f32) --------------------
def _conv3x3_ref(x, w, b, relu=False):
    y = jax.lax.conv_general_dilated(
        x, w, window_strides=(1, 1), padding="SAME",
        dimension_numbers=("NHWC", "HWIO", "NHWC")) + b
    return jnp.maximum(y, 0.0) if relu else y


def _instance_norm_ref(x):
    mean = jnp.mean(x, axis=(1, 2), keepdims=True)
    var = jnp.mean((x - mean) ** 2, axis=(1, 2), keepdims=True)
    return (x - mean) * jax.lax.rsqrt(var + EPS)


def _batch_norm_ref(x):
    mean = jnp.mean(x, axis=(0, 1, 2), keepdims=True)
    var = jnp.mean((x - mean) ** 2, axis=(0, 1, 2), keepdims=True)
    return (x - mean) * jax.lax.rsqrt(var + EPS)


def sin_spade_forward_ref(params, x_nchw, seg_nchw, ret_nchw):
    p = params
    n, c, h, w = x_nchw.shape
    x = jnp.transpose(x_nchw, (0, 2, 3, 1))
    seg = jnp.transpose(seg_nchw, (0, 2, 3, 1))
    ret = jnp.transpose(ret_nchw, (0, 2, 3, 1))
    ret = jax.image.resize(ret, (n, h, w, ret.shape[-1]), method="bilinear")
    seg = torch_nearest_resize_nhwc(seg, h, w)

    normalized = _instance_norm_ref(x)

    n1 = _batch_norm_ref(ret)
    a1 = _conv3x3_ref(seg, p["s1_shared_w"], p["s1_shared_b"], relu=True)
    g1 = _conv3x3_ref(a1, p["s1_gamma_w"], p["s1_gamma_b"])
    b1 = _conv3x3_ref(a1, p["s1_beta_w"], p["s1_beta_b"])
    sp1 = jnp.maximum(n1 * (1.0 + g1) + b1, 0.0)

    n2 = _batch_norm_ref(sp1)
    a2 = _conv3x3_ref(seg, p["s2_shared_w"], p["s2_shared_b"], relu=True)
    g2 = _conv3x3_ref(a2, p["s2_gamma_w"], p["s2_gamma_b"])
    b2 = _conv3x3_ref(a2, p["s2_beta_w"], p["s2_beta_b"])
    sp2 = jnp.maximum(n2 * (1.0 + g2) + b2, 0.0)

    middle = _conv3x3_ref(sp2, p["conv3_w"], p["conv3_b"])
    gamma_avg = _conv3x3_ref(middle, p["conv_gamma_w"], p["conv_gamma_b"])
    beta_avg = _conv3x3_ref(middle, p["conv_beta_w"], p["conv_beta_b"])

    active = _conv3x3_ref(seg, p["mlp_shared_w"], p["mlp_shared_b"], relu=True)
    gamma_spade = _conv3x3_ref(active, p["mlp_gamma_w"], p["mlp_gamma_b"])
    beta_spade = _conv3x3_ref(active, p["mlp_beta_w"], p["mlp_beta_b"])

    ga = jax.nn.sigmoid(p["blending_gamma"])[0]
    ba = jax.nn.sigmoid(p["blending_beta"])[0]
    gamma = ga * gamma_avg + (1.0 - ga) * gamma_spade
    beta = ba * beta_avg + (1.0 - ba) * beta_spade
    out = normalized * (1.0 + gamma) + beta
    return jnp.transpose(out, (0, 3, 1, 2))


# ----------------------------------------------------------------------------
# Deterministic parameter init (shapes from SIN_SPADE.__init__, HWIO weights)
# ----------------------------------------------------------------------------
def init_params(key, norm_nc, label_nc, nhidden=128, style_len=128, scale=0.02):
    shapes = {
        "s1_shared_w": (3, 3, label_nc, nhidden), "s1_shared_b": (nhidden,),
        "s1_gamma_w": (3, 3, nhidden, 3), "s1_gamma_b": (3,),
        "s1_beta_w": (3, 3, nhidden, 3), "s1_beta_b": (3,),
        "s2_shared_w": (3, 3, label_nc, nhidden), "s2_shared_b": (nhidden,),
        "s2_gamma_w": (3, 3, nhidden, 3), "s2_gamma_b": (3,),
        "s2_beta_w": (3, 3, nhidden, 3), "s2_beta_b": (3,),
        "conv3_w": (3, 3, 3, nhidden), "conv3_b": (nhidden,),
        "conv_gamma_w": (3, 3, style_len, norm_nc), "conv_gamma_b": (norm_nc,),
        "conv_beta_w": (3, 3, style_len, norm_nc), "conv_beta_b": (norm_nc,),
        "mlp_shared_w": (3, 3, label_nc, nhidden), "mlp_shared_b": (nhidden,),
        "mlp_gamma_w": (3, 3, nhidden, norm_nc), "mlp_gamma_b": (norm_nc,),
        "mlp_beta_w": (3, 3, nhidden, norm_nc), "mlp_beta_b": (norm_nc,),
    }
    params = {}
    keys = jax.random.split(key, len(shapes))
    for k, (name, shp) in zip(keys, sorted(shapes.items())):
        params[name] = (scale * jax.random.normal(k, shp)).astype(jnp.float32)
    params["blending_gamma"] = jnp.zeros((1,), jnp.float32)
    params["blending_beta"] = jnp.zeros((1,), jnp.float32)
    return params


# ----------------------------------------------------------------------------
if __name__ == "__main__":
    key = jax.random.PRNGKey(0)
    k_p, k_x, k_s, k_r = jax.random.split(key, 4)

    N, norm_nc, label_nc, H, W = 2, 4, 4, 16, 16
    params = init_params(k_p, norm_nc, label_nc)

    x = jax.random.normal(k_x, (N, norm_nc, H, W), jnp.float32)          # NCHW
    seg_map = jax.random.normal(k_s, (N, label_nc, H, W), jnp.float32)   # NCHW
    retrieval = jax.random.normal(k_r, (N, 3, H, W), jnp.float32)        # NCHW

    # stripe_rows=8 exercises the multi-stripe + halo path (H=16 -> 2 stripes).
    fwd = jax.jit(functools.partial(sin_spade_forward_pallas, stripe_rows=8))
    out = jax.block_until_ready(fwd(params, x, seg_map, retrieval))

    ref = jax.block_until_ready(
        sin_spade_forward_ref(params, x, seg_map, retrieval))

    max_err = float(jnp.max(jnp.abs(out - ref)))
    assert out.shape == (N, norm_nc, H, W), out.shape
    # bf16 MXU inputs (f32 accumulation) -> expected drift vs f32 reference is
    # ~1e-3; tolerance relaxed accordingly.
    assert max_err < 2e-2, f"mismatch vs reference: {max_err}"
    print("KERNEL_OK")
</pallas_src>

<mosaic_0001>
module attributes {stable_mosaic.version = 11 : i64} {
  func.func @_matmul_bias_kernel(%arg0: i32, %arg1: i32, %arg2: memref<1x8x16x36xbf16, #tpu.memory_space<vmem>>, %arg3: memref<36x384xbf16, #tpu.memory_space<vmem>>, %arg4: memref<1x384xf32, #tpu.memory_space<vmem>>, %arg5: memref<1x8x16x384xbf16, #tpu.memory_space<vmem>>) attributes {dimension_semantics = [#tpu.dimension_semantics<parallel>, #tpu.dimension_semantics<parallel>], iteration_bounds = array<i64: 2, 2>, scalar_prefetch = 0 : i64, scratch_operands = 0 : i64, tpu.core_type = #tpu.core_type<tc>, window_params = [{transform_indices = @transform_0, window_bounds = array<i64: 1, 8, 16, 36>}, {pipeline_mode = #tpu.pipeline_mode<synchronous>, transform_indices = @transform_1, window_bounds = array<i64: 36, 384>}, {pipeline_mode = #tpu.pipeline_mode<synchronous>, transform_indices = @transform_2, window_bounds = array<i64: 1, 384>}, {transform_indices = @transform_3, window_bounds = array<i64: 1, 8, 16, 384>}]} {
    %c0 = arith.constant 0 : index
    %c0_0 = arith.constant 0 : index
    %c0_1 = arith.constant 0 : index
    %c0_2 = arith.constant 0 : index
    %0 = vector.load %arg2[%c0, %c0_0, %c0_1, %c0_2] : memref<1x8x16x36xbf16, #tpu.memory_space<vmem>>, vector<1x8x16x36xbf16>
    %1 = vector.shape_cast %0 : vector<1x8x16x36xbf16> to vector<8x16x36xbf16>
    %2 = vector.shape_cast %1 : vector<8x16x36xbf16> to vector<128x36xbf16>
    %c0_3 = arith.constant 0 : index
    %c0_4 = arith.constant 0 : index
    %3 = vector.load %arg3[%c0_3, %c0_4] : memref<36x384xbf16, #tpu.memory_space<vmem>>, vector<36x384xbf16>
    %cst = arith.constant dense<0.000000e+00> : vector<128x384xf32>
    %4 = tpu.matmul %2, %3, %cst {dimension_numbers = #tpu.dot_dimension_numbers<[1], [0], [0], [1], [0, 0, 1, 1], [], []>} : vector<128x36xbf16>, vector<36x384xbf16>, vector<128x384xf32> -> vector<128x384xf32>
    %c0_5 = arith.constant 0 : index
    %c0_6 = arith.constant 0 : index
    %5 = vector.load %arg4[%c0_5, %c0_6] : memref<1x384xf32, #tpu.memory_space<vmem>>, vector<1x384xf32>
    %6 = vector.broadcast %5 : vector<1x384xf32> to vector<128x384xf32>
    %7 = arith.addf %4, %6 : vector<128x384xf32>
    %cst_7 = arith.constant 0.000000e+00 : f32
    %8 = vector.broadcast %cst_7 : f32 to vector<128x384xf32>
    %9 = arith.maximumf %7, %8 : vector<128x384xf32>
    %10 = vector.shape_cast %9 : vector<128x384xf32> to vector<8x16x384xf32>
    %11 = arith.truncf %10 : vector<8x16x384xf32> to vector<8x16x384xbf16>
    %c0_8 = arith.constant 0 : index
    %c0_9 = arith.constant 0 : index
    %c0_10 = arith.constant 0 : index
    %c0_11 = arith.constant 0 : index
    %12 = vector.load %arg5[%c0_8, %c0_9, %c0_10, %c0_11] : memref<1x8x16x384xbf16, #tpu.memory_space<vmem>>, vector<1x8x16x384xbf16>
    %13 = vector.shape_cast %12 : vector<1x8x16x384xbf16> to vector<8x16x384xbf16>
    %14 = vector.shape_cast %11 : vector<8x16x384xbf16> to vector<1x8x16x384xbf16>
    tpu.vector_store %arg5[%c0_8, %c0_9, %c0_10, %c0_11], %14 {strides = array<i32>} : memref<1x8x16x384xbf16, #tpu.memory_space<vmem>>, vector<1x8x16x384xbf16>,
    return
  }
  func.func @transform_0(%arg0: i32, %arg1: i32) -> (i32, i32, i32, i32) {
    %c0_i32 = arith.constant 0 : i32
    %c0_i32_0 = arith.constant 0 : i32
    %c0_i32_1 = arith.constant 0 : i32
    return %arg0, %arg1, %c0_i32, %c0_i32_0 : i32, i32, i32, i32
  }
  func.func @transform_1(%arg0: i32, %arg1: i32) -> (i32, i32) {
    %c0_i32 = arith.constant 0 : i32
    %c0_i32_0 = arith.constant 0 : i32
    %c0_i32_1 = arith.constant 0 : i32
    return %c0_i32, %c0_i32_0 : i32, i32
  }
  func.func @transform_2(%arg0: i32, %arg1: i32) -> (i32, i32) {
    %c0_i32 = arith.constant 0 : i32
    %c0_i32_0 = arith.constant 0 : i32
    %c0_i32_1 = arith.constant 0 : i32
    return %c0_i32, %c0_i32_0 : i32, i32
  }
  func.func @transform_3(%arg0: i32, %arg1: i32) -> (i32, i32, i32, i32) {
    %c0_i32 = arith.constant 0 : i32
    %c0_i32_0 = arith.constant 0 : i32
    %c0_i32_1 = arith.constant 0 : i32
    return %arg0, %arg1, %c0_i32, %c0_i32_0 : i32, i32, i32, i32
  }
}

module attributes {stable_mosaic.version = 11 : i64} {
  func.func @_moment_kernel(%arg0: i32, %arg1: i32, %arg2: memref<1x8x16x3xf32, #tpu.memory_space<vmem>>, %arg3: memref<1x1x3xf32, #tpu.memory_space<vmem>>, %arg4: memref<1x1x3xf32, #tpu.memory_space<vmem>>) attributes {dimension_semantics = [#tpu.dimension_semantics<arbitrary>, #tpu.dimension_semantics<arbitrary>], iteration_bounds = array<i64: 2, 2>, scalar_prefetch = 0 : i64, scratch_operands = 0 : i64, tpu.core_type = #tpu.core_type<tc>, window_params = [{transform_indices = @transform_0, window_bounds = array<i64: 1, 8, 16, 3>}, {pipeline_mode = #tpu.pipeline_mode<synchronous>, transform_indices = @transform_1, window_bounds = array<i64: 1, 1, 3>}, {pipeline_mode = #tpu.pipeline_mode<synchronous>, transform_indices = @transform_2, window_bounds = array<i64: 1, 1, 3>}]} {
    %c0_i32 = arith.constant 0 : i32
    %0 = arith.cmpi eq, %arg0, %c0_i32 : i32
    %c0_i32_0 = arith.constant 0 : i32
    %1 = arith.cmpi eq, %arg1, %c0_i32_0 : i32
    %2 = arith.andi %0, %1 : i1
    %3 = arith.extui %2 : i1 to i32
    %c0_i32_1 = arith.constant 0 : i32
    %4 = arith.cmpi ne, %3, %c0_i32_1 : i32
    scf.if %4 {
      %cst_18 = arith.constant 0.000000e+00 : f32
      %18 = vector.broadcast %cst_18 : f32 to vector<1x1x3xf32>
      %c0_19 = arith.constant 0 : index
      %c0_20 = arith.constant 0 : index
      %c0_21 = arith.constant 0 : index
      %19 = vector.load %arg3[%c0_19, %c0_20, %c0_21] : memref<1x1x3xf32, #tpu.memory_space<vmem>>, vector<1x1x3xf32>
      tpu.vector_store %arg3[%c0_19, %c0_20, %c0_21], %18 {strides = array<i32>} : memref<1x1x3xf32, #tpu.memory_space<vmem>>, vector<1x1x3xf32>,
      %cst_22 = arith.constant 0.000000e+00 : f32
      %20 = vector.broadcast %cst_22 : f32 to vector<1x1x3xf32>
      %c0_23 = arith.constant 0 : index
      %c0_24 = arith.constant 0 : index
      %c0_25 = arith.constant 0 : index
      %21 = vector.load %arg4[%c0_23, %c0_24, %c0_25] : memref<1x1x3xf32, #tpu.memory_space<vmem>>, vector<1x1x3xf32>
      tpu.vector_store %arg4[%c0_23, %c0_24, %c0_25], %20 {strides = array<i32>} : memref<1x1x3xf32, #tpu.memory_space<vmem>>, vector<1x1x3xf32>,
    } else {
    }
    %c0 = arith.constant 0 : index
    %c0_2 = arith.constant 0 : index
    %c0_3 = arith.constant 0 : index
    %c0_4 = arith.constant 0 : index
    %5 = vector.load %arg2[%c0, %c0_2, %c0_3, %c0_4] : memref<1x8x16x3xf32, #tpu.memory_space<vmem>>, vector<1x8x16x3xf32>
    %6 = vector.shape_cast %5 : vector<1x8x16x3xf32> to vector<8x16x3xf32>
    %c0_5 = arith.constant 0 : index
    %c0_6 = arith.constant 0 : index
    %c0_7 = arith.constant 0 : index
    %7 = vector.load %arg3[%c0_5, %c0_6, %c0_7] : memref<1x1x3xf32, #tpu.memory_space<vmem>>, vector<1x1x3xf32>
    %cst = arith.constant dense<0.000000e+00> : vector<3xf32>
    %8 = vector.multi_reduction <add>, %6, %cst [0, 1] : vector<8x16x3xf32> to vector<3xf32>
    %9 = vector.shape_cast %8 : vector<3xf32> to vector<1x1x3xf32>
    %10 = arith.addf %7, %9 : vector<1x1x3xf32>
    %c0_8 = arith.constant 0 : index
    %c0_9 = arith.constant 0 : index
    %c0_10 = arith.constant 0 : index
    %11 = vector.load %arg3[%c0_8, %c0_9, %c0_10] : memref<1x1x3xf32, #tpu.memory_space<vmem>>, vector<1x1x3xf32>
    tpu.vector_store %arg3[%c0_8, %c0_9, %c0_10], %10 {strides = array<i32>} : memref<1x1x3xf32, #tpu.memory_space<vmem>>, vector<1x1x3xf32>,
    %c0_11 = arith.constant 0 : index
    %c0_12 = arith.constant 0 : index
    %c0_13 = arith.constant 0 : index
    %12 = vector.load %arg4[%c0_11, %c0_12, %c0_13] : memref<1x1x3xf32, #tpu.memory_space<vmem>>, vector<1x1x3xf32>
    %13 = arith.mulf %6, %6 : vector<8x16x3xf32>
    %cst_14 = arith.constant dense<0.000000e+00> : vector<3xf32>
    %14 = vector.multi_reduction <add>, %13, %cst_14 [0, 1] : vector<8x16x3xf32> to vector<3xf32>
    %15 = vector.shape_cast %14 : vector<3xf32> to vector<1x1x3xf32>
    %16 = arith.addf %12, %15 : vector<1x1x3xf32>
    %c0_15 = arith.constant 0 : index
    %c0_16 = arith.constant 0 : index
    %c0_17 = arith.constant 0 : index
    %17 = vector.load %arg4[%c0_15, %c0_16, %c0_17] : memref<1x1x3xf32, #tpu.memory_space<vmem>>, vector<1x1x3xf32>
    tpu.vector_store %arg4[%c0_15, %c0_16, %c0_17], %16 {strides = array<i32>} : memref<1x1x3xf32, #tpu.memory_space<vmem>>, vector<1x1x3xf32>,
    return
  }
  func.func @transform_0(%arg0: i32, %arg1: i32) -> (i32, i32, i32, i32) {
    %c0_i32 = arith.constant 0 : i32
    %c0_i32_0 = arith.constant 0 : i32
    %c0_i32_1 = arith.constant 0 : i32
    return %arg0, %arg1, %c0_i32, %c0_i32_0 : i32, i32, i32, i32
  }
  func.func @transform_1(%arg0: i32, %arg1: i32) -> (i32, i32, i32) {
    %c0_i32 = arith.constant 0 : i32
    %c0_i32_0 = arith.constant 0 : i32
    %c0_i32_1 = arith.constant 0 : i32
    %c0_i32_2 = arith.constant 0 : i32
    return %c0_i32, %c0_i32_0, %c0_i32_1 : i32, i32, i32
  }
  func.func @transform_2(%arg0: i32, %arg1: i32) -> (i32, i32, i32) {
    %c0_i32 = arith.constant 0 : i32
    %c0_i32_0 = arith.constant 0 : i32
    %c0_i32_1 = arith.constant 0 : i32
    %c0_i32_2 = arith.constant 0 : i32
    return %c0_i32, %c0_i32_0, %c0_i32_1 : i32, i32, i32
  }
}

module attributes {stable_mosaic.version = 11 : i64} {
  func.func @_spade_apply_kernel(%arg0: i32, %arg1: i32, %arg2: memref<1x8x16x3xf32, #tpu.memory_space<vmem>>, %arg3: memref<1x8x16x128xbf16, #tpu.memory_space<vmem>>, %arg4: memref<1x1x16x128xbf16, #tpu.memory_space<vmem>>, %arg5: memref<1x1x16x128xbf16, #tpu.memory_space<vmem>>, %arg6: memref<3x3x128x6xbf16, #tpu.memory_space<vmem>>, %arg7: memref<1x6xf32, #tpu.memory_space<vmem>>, %arg8: memref<1x1x3xf32, #tpu.memory_space<vmem>>, %arg9: memref<1x1x3xf32, #tpu.memory_space<vmem>>, %arg10: memref<1x8x16x3xbf16, #tpu.memory_space<vmem>>, %arg11: memref<10x32x128xbf16, #tpu.memory_space<vmem>>) attributes {dimension_semantics = [#tpu.dimension_semantics<parallel>, #tpu.dimension_semantics<parallel>], iteration_bounds = array<i64: 2, 2>, scalar_prefetch = 0 : i64, scratch_operands = 1 : i64, tpu.core_type = #tpu.core_type<tc>, window_params = [{transform_indices = @transform_0, window_bounds = array<i64: 1, 8, 16, 3>}, {transform_indices = @transform_1, window_bounds = array<i64: 1, 8, 16, 128>}, {transform_indices = @transform_2, window_bounds = array<i64: 1, 1, 16, 128>}, {transform_indices = @transform_3, window_bounds = array<i64: 1, 1, 16, 128>}, {pipeline_mode = #tpu.pipeline_mode<synchronous>, transform_indices = @transform_4, window_bounds = array<i64: 3, 3, 128, 6>}, {pipeline_mode = #tpu.pipeline_mode<synchronous>, transform_indices = @transform_5, window_bounds = array<i64: 1, 6>}, {pipeline_mode = #tpu.pipeline_mode<synchronous>, transform_indices = @transform_6, window_bounds = array<i64: 1, 1, 3>}, {pipeline_mode = #tpu.pipeline_mode<synchronous>, transform_indices = @transform_7, window_bounds = array<i64: 1, 1, 3>}, {transform_indices = @transform_8, window_bounds = array<i64: 1, 8, 16, 3>}]} {
    %c0_i32 = arith.constant 0 : i32
    %0 = arith.cmpi sgt, %arg1, %c0_i32 : i32
    %c0 = arith.constant 0 : index
    %c0_0 = arith.constant 0 : index
    %c0_1 = arith.constant 0 : index
    %c0_2 = arith.constant 0 : index
    %1 = vector.load %arg4[%c0, %c0_0, %c0_1, %c0_2] : memref<1x1x16x128xbf16, #tpu.memory_space<vmem>>, vector<1x1x16x128xbf16>
    %2 = vector.shape_cast %1 : vector<1x1x16x128xbf16> to vector<1x16x128xbf16>
    %cst = arith.constant 0.000000e+00 : bf16
    %3 = vector.broadcast %cst : bf16 to vector<1x16x128xbf16>
    %4 = arith.select %0, %2, %3 : vector<1x16x128xbf16>
    %c1_i32 = arith.constant 1 : i32
    %5 = arith.cmpi slt, %arg1, %c1_i32 : i32
    %c0_3 = arith.constant 0 : index
    %c0_4 = arith.constant 0 : index
    %c0_5 = arith.constant 0 : index
    %c0_6 = arith.constant 0 : index
    %6 = vector.load %arg5[%c0_3, %c0_4, %c0_5, %c0_6] : memref<1x1x16x128xbf16, #tpu.memory_space<vmem>>, vector<1x1x16x128xbf16>
    %7 = vector.shape_cast %6 : vector<1x1x16x128xbf16> to vector<1x16x128xbf16>
    %cst_7 = arith.constant 0.000000e+00 : bf16
    %8 = vector.broadcast %cst_7 : bf16 to vector<1x16x128xbf16>
    %9 = arith.select %5, %7, %8 : vector<1x16x128xbf16>
    %c0_8 = arith.constant 0 : index
    %c8 = arith.constant 8 : index
    %c0_9 = arith.constant 0 : index
    %10 = vector.load %arg11[%c0_8, %c8, %c0_9] : memref<10x32x128xbf16, #tpu.memory_space<vmem>>, vector<1x16x128xbf16>
    tpu.vector_store %arg11[%c0_8, %c8, %c0_9], %4 {strides = array<i32>} : memref<10x32x128xbf16, #tpu.memory_space<vmem>>, vector<1x16x128xbf16>,
    %c0_10 = arith.constant 0 : index
    %c0_11 = arith.constant 0 : index
    %c0_12 = arith.constant 0 : index
    %c0_13 = arith.constant 0 : index
    %11 = vector.load %arg3[%c0_10, %c0_11, %c0_12, %c0_13] : memref<1x8x16x128xbf16, #tpu.memory_space<vmem>>, vector<1x8x16x128xbf16>
    %12 = vector.shape_cast %11 : vector<1x8x16x128xbf16> to vector<8x16x128xbf16>
    %c1 = arith.constant 1 : index
    %c8_14 = arith.constant 8 : index
    %c0_15 = arith.constant 0 : index
    %13 = vector.load %arg11[%c1, %c8_14, %c0_15] : memref<10x32x128xbf16, #tpu.memory_space<vmem>>, vector<8x16x128xbf16>
    tpu.vector_store %arg11[%c1, %c8_14, %c0_15], %12 {strides = array<i32>} : memref<10x32x128xbf16, #tpu.memory_space<vmem>>, vector<8x16x128xbf16>,
    %c9 = arith.constant 9 : index
    %c8_16 = arith.constant 8 : index
    %c0_17 = arith.constant 0 : index
    %14 = vector.load %arg11[%c9, %c8_16, %c0_17] : memref<10x32x128xbf16, #tpu.memory_space<vmem>>, vector<1x16x128xbf16>
    tpu.vector_store %arg11[%c9, %c8_16, %c0_17], %9 {strides = array<i32>} : memref<10x32x128xbf16, #tpu.memory_space<vmem>>, vector<1x16x128xbf16>,
    %cst_18 = arith.constant 0.000000e+00 : bf16
    %15 = vector.broadcast %cst_18 : bf16 to vector<10x8x128xbf16>
    %c0_19 = arith.constant 0 : index
    %c0_20 = arith.constant 0 : index
    %c0_21 = arith.constant 0 : index
    %16 = vector.load %arg11[%c0_19, %c0_20, %c0_21] : memref<10x32x128xbf16, #tpu.memory_space<vmem>>, vector<10x8x128xbf16>
    tpu.vector_store %arg11[%c0_19, %c0_20, %c0_21], %15 {strides = array<i32>} : memref<10x32x128xbf16, #tpu.memory_space<vmem>>, vector<10x8x128xbf16>,
    %cst_22 = arith.constant 0.000000e+00 : bf16
    %17 = vector.broadcast %cst_22 : bf16 to vector<10x8x128xbf16>
    %c0_23 = arith.constant 0 : index
    %c24 = arith.constant 24 : index
    %c0_24 = arith.constant 0 : index
    %18 = vector.load %arg11[%c0_23, %c24, %c0_24] : memref<10x32x128xbf16, #tpu.memory_space<vmem>>, vector<10x8x128xbf16>
    tpu.vector_store %arg11[%c0_23, %c24, %c0_24], %17 {strides = array<i32>} : memref<10x32x128xbf16, #tpu.memory_space<vmem>>, vector<10x8x128xbf16>,
    %c0_25 = arith.constant 0 : index
    %c0_26 = arith.constant 0 : index
    %19 = vector.load %arg7[%c0_25, %c0_26] : memref<1x6xf32, #tpu.memory_space<vmem>>, vector<1x6xf32>
    %20 = vector.shape_cast %19 : vector<1x6xf32> to vector<1x6xf32>
    %21 = vector.broadcast %20 : vector<1x6xf32> to vector<128x6xf32>
    %c0_27 = arith.constant 0 : index
    %c7 = arith.constant 7 : index
    %c0_28 = arith.constant 0 : index
    %22 = vector.load %arg11[%c0_27, %c7, %c0_28] : memref<10x32x128xbf16, #tpu.memory_space<vmem>>, vector<10x16x128xbf16>
    %23 = vector.extract_strided_slice %22 {offsets = [0, 0, 0], sizes = [8, 16, 128], strides = [1, 1, 1]} : vector<10x16x128xbf16> to vector<8x16x128xbf16>
    %24 = vector.shape_cast %23 : vector<8x16x128xbf16> to vector<128x128xbf16>
    %c0_29 = arith.constant 0 : index
    %c0_30 = arith.constant 0 : index
    %c0_31 = arith.constant 0 : index
    %c0_32 = arith.constant 0 : index
    %25 = vector.load %arg6[%c0_29, %c0_30, %c0_31, %c0_32] : memref<3x3x128x6xbf16, #tpu.memory_space<vmem>>, vector<1x1x128x6xbf16>
    %26 = vector.shape_cast %25 : vector<1x1x128x6xbf16> to vector<128x6xbf16>
    %cst_33 = arith.constant dense<0.000000e+00> : vector<128x6xf32>
    %27 = tpu.matmul %24, %26, %cst_33 {dimension_numbers = #tpu.dot_dimension_numbers<[1], [0], [0], [1], [0, 0, 1, 1], [], []>} : vector<128x128xbf16>, vector<128x6xbf16>, vector<128x6xf32> -> vector<128x6xf32>
    %28 = arith.addf %21, %27 : vector<128x6xf32>
    %29 = vector.extract_strided_slice %22 {offsets = [1, 0, 0], sizes = [8, 16, 128], strides = [1, 1, 1]} : vector<10x16x128xbf16> to vector<8x16x128xbf16>
    %30 = vector.shape_cast %29 : vector<8x16x128xbf16> to vector<128x128xbf16>
    %c1_34 = arith.constant 1 : index
    %c0_35 = arith.constant 0 : index
    %c0_36 = arith.constant 0 : index
    %c0_37 = arith.constant 0 : index
    %31 = vector.load %arg6[%c1_34, %c0_35, %c0_36, %c0_37] : memref<3x3x128x6xbf16, #tpu.memory_space<vmem>>, vector<1x1x128x6xbf16>
    %32 = vector.shape_cast %31 : vector<1x1x128x6xbf16> to vector<128x6xbf16>
    %cst_38 = arith.constant dense<0.000000e+00> : vector<128x6xf32>
    %33 = tpu.matmul %30, %32, %cst_38 {dimension_numbers = #tpu.dot_dimension_numbers<[1], [0], [0], [1], [0, 0, 1, 1], [], []>} : vector<128x128xbf16>, vector<128x6xbf16>, vector<128x6xf32> -> vector<128x6xf32>
    %34 = arith.addf %28, %33 : vector<128x6xf32>
    %35 = vector.extract_strided_slice %22 {offsets = [2, 0, 0], sizes = [8, 16, 128], strides = [1, 1, 1]} : vector<10x16x128xbf16> to vector<8x16x128xbf16>
    %36 = vector.shape_cast %35 : vector<8x16x128xbf16> to vector<128x128xbf16>
    %c2 = arith.constant 2 : index
    %c0_39 = arith.constant 0 : index
    %c0_40 = arith.constant 0 : index
    %c0_41 = arith.constant 0 : index
    %37 = vector.load %arg6[%c2, %c0_39, %c0_40, %c0_41] : memref<3x3x128x6xbf16, #tpu.memory_space<vmem>>, vector<1x1x128x6xbf16>
    %38 = vector.shape_cast %37 : vector<1x1x128x6xbf16> to vector<128x6xbf16>
    %cst_42 = arith.constant dense<0.000000e+00> : vector<128x6xf32>
    %39 = tpu.matmul %36, %38, %cst_42 {dimension_numbers = #tpu.dot_dimension_numbers<[1], [0], [0], [1], [0, 0, 1, 1], [], []>} : vector<128x128xbf16>, vector<128x6xbf16>, vector<128x6xf32> -> vector<128x6xf32>
    %40 = arith.addf %34, %39 : vector<128x6xf32>
    %c0_43 = arith.constant 0 : index
    %c8_44 = arith.constant 8 : index
    %c0_45 = arith.constant 0 : index
    %41 = vector.load %arg11[%c0_43, %c8_44, %c0_45] : memref<10x32x128xbf16, #tpu.memory_space<vmem>>, vector<10x16x128xbf16>
    %42 = vector.extract_strided_slice %41 {offsets = [0, 0, 0], sizes = [8, 16, 128], strides = [1, 1, 1]} : vector<10x16x128xbf16> to vector<8x16x128xbf16>
    %43 = vector.shape_cast %42 : vector<8x16x128xbf16> to vector<128x128xbf16>
    %c0_46 = arith.constant 0 : index
    %c1_47 = arith.constant 1 : index
    %c0_48 = arith.constant 0 : index
    %c0_49 = arith.constant 0 : index
    %44 = vector.load %arg6[%c0_46, %c1_47, %c0_48, %c0_49] : memref<3x3x128x6xbf16, #tpu.memory_space<vmem>>, vector<1x1x128x6xbf16>
    %45 = vector.shape_cast %44 : vector<1x1x128x6xbf16> to vector<128x6xbf16>
    %cst_50 = arith.constant dense<0.000000e+00> : vector<128x6xf32>
    %46 = tpu.matmul %43, %45, %cst_50 {dimension_numbers = #tpu.dot_dimension_numbers<[1], [0], [0], [1], [0, 0, 1, 1], [], []>} : vector<128x128xbf16>, vector<128x6xbf16>, vector<128x6xf32> -> vector<128x6xf32>
    %47 = arith.addf %40, %46 : vector<128x6xf32>
    %48 = vector.extract_strided_slice %41 {offsets = [1, 0, 0], sizes = [8, 16, 128], strides = [1, 1, 1]} : vector<10x16x128xbf16> to vector<8x16x128xbf16>
    %49 = vector.shape_cast %48 : vector<8x16x128xbf16> to vector<128x128xbf16>
    %c1_51 = arith.constant 1 : index
    %c1_52 = arith.constant 1 : index
    %c0_53 = arith.constant 0 : index
    %c0_54 = arith.constant 0 : index
    %50 = vector.load %arg6[%c1_51, %c1_52, %c0_53, %c0_54] : memref<3x3x128x6xbf16, #tpu.memory_space<vmem>>, vector<1x1x128x6xbf16>
    %51 = vector.shape_cast %50 : vector<1x1x128x6xbf16> to vector<128x6xbf16>
    %cst_55 = arith.constant dense<0.000000e+00> : vector<128x6xf32>
    %52 = tpu.matmul %49, %51, %cst_55 {dimension_numbers = #tpu.dot_dimension_numbers<[1], [0], [0], [1], [0, 0, 1, 1], [], []>} : vector<128x128xbf16>, vector<128x6xbf16>, vector<128x6xf32> -> vector<128x6xf32>
    %53 = arith.addf %47, %52 : vector<128x6xf32>
    %54 = vector.extract_strided_slice %41 {offsets = [2, 0, 0], sizes = [8, 16, 128], strides = [1, 1, 1]} : vector<10x16x128xbf16> to vector<8x16x128xbf16>
    %55 = vector.shape_cast %54 : vector<8x16x128xbf16> to vector<128x128xbf16>
    %c2_56 = arith.constant 2 : index
    %c1_57 = arith.constant 1 : index
    %c0_58 = arith.constant 0 : index
    %c0_59 = arith.constant 0 : index
    %56 = vector.load %arg6[%c2_56, %c1_57, %c0_58, %c0_59] : memref<3x3x128x6xbf16, #tpu.memory_space<vmem>>, vector<1x1x128x6xbf16>
    %57 = vector.shape_cast %56 : vector<1x1x128x6xbf16> to vector<128x6xbf16>
    %cst_60 = arith.constant dense<0.000000e+00> : vector<128x6xf32>
    %58 = tpu.matmul %55, %57, %cst_60 {dimension_numbers = #tpu.dot_dimension_numbers<[1], [0], [0], [1], [0, 0, 1, 1], [], []>} : vector<128x128xbf16>, vector<128x6xbf16>, vector<128x6xf32> -> vector<128x6xf32>
    %59 = arith.addf %53, %58 : vector<128x6xf32>
    %c0_61 = arith.constant 0 : index
    %c9_62 = arith.constant 9 : index
    %c0_63 = arith.constant 0 : index
    %60 = vector.load %arg11[%c0_61, %c9_62, %c0_63] : memref<10x32x128xbf16, #tpu.memory_space<vmem>>, vector<10x16x128xbf16>
    %61 = vector.extract_strided_slice %60 {offsets = [0, 0, 0], sizes = [8, 16, 128], strides = [1, 1, 1]} : vector<10x16x128xbf16> to vector<8x16x128xbf16>
    %62 = vector.shape_cast %61 : vector<8x16x128xbf16> to vector<128x128xbf16>
    %c0_64 = arith.constant 0 : index
    %c2_65 = arith.constant 2 : index
    %c0_66 = arith.constant 0 : index
    %c0_67 = arith.constant 0 : index
    %63 = vector.load %arg6[%c0_64, %c2_65, %c0_66, %c0_67] : memref<3x3x128x6xbf16, #tpu.memory_space<vmem>>, vector<1x1x128x6xbf16>
    %64 = vector.shape_cast %63 : vector<1x1x128x6xbf16> to vector<128x6xbf16>
    %cst_68 = arith.constant dense<0.000000e+00> : vector<128x6xf32>
    %65 = tpu.matmul %62, %64, %cst_68 {dimension_numbers = #tpu.dot_dimension_numbers<[1], [0], [0], [1], [0, 0, 1, 1], [], []>} : vector<128x128xbf16>, vector<128x6xbf16>, vector<128x6xf32> -> vector<128x6xf32>
    %66 = arith.addf %59, %65 : vector<128x6xf32>
    %67 = vector.extract_strided_slice %60 {offsets = [1, 0, 0], sizes = [8, 16, 128], strides = [1, 1, 1]} : vector<10x16x128xbf16> to vector<8x16x128xbf16>
    %68 = vector.shape_cast %67 : vector<8x16x128xbf16> to vector<128x128xbf16>
    %c1_69 = arith.constant 1 : index
    %c2_70 = arith.constant 2 : index
    %c0_71 = arith.constant 0 : index
    %c0_72 = arith.constant 0 : index
    %69 = vector.load %arg6[%c1_69, %c2_70, %c0_71, %c0_72] : memref<3x3x128x6xbf16, #tpu.memory_space<vmem>>, vector<1x1x128x6xbf16>
    %70 = vector.shape_cast %69 : vector<1x1x128x6xbf16> to vector<128x6xbf16>
    %cst_73 = arith.constant dense<0.000000e+00> : vector<128x6xf32>
    %71 = tpu.matmul %68, %70, %cst_73 {dimension_numbers = #tpu.dot_dimension_numbers<[1], [0], [0], [1], [0, 0, 1, 1], [], []>} : vector<128x128xbf16>, vector<128x6xbf16>, vector<128x6xf32> -> vector<128x6xf32>
    %72 = arith.addf %66, %71 : vector<128x6xf32>
    %73 = vector.extract_strided_slice %60 {offsets = [2, 0, 0], sizes = [8, 16, 128], strides = [1, 1, 1]} : vector<10x16x128xbf16> to vector<8x16x128xbf16>
    %74 = vector.shape_cast %73 : vector<8x16x128xbf16> to vector<128x128xbf16>
    %c2_74 = arith.constant 2 : index
    %c2_75 = arith.constant 2 : index
    %c0_76 = arith.constant 0 : index
    %c0_77 = arith.constant 0 : index
    %75 = vector.load %arg6[%c2_74, %c2_75, %c0_76, %c0_77] : memref<3x3x128x6xbf16, #tpu.memory_space<vmem>>, vector<1x1x128x6xbf16>
    %76 = vector.shape_cast %75 : vector<1x1x128x6xbf16> to vector<128x6xbf16>
    %cst_78 = arith.constant dense<0.000000e+00> : vector<128x6xf32>
    %77 = tpu.matmul %74, %76, %cst_78 {dimension_numbers = #tpu.dot_dimension_numbers<[1], [0], [0], [1], [0, 0, 1, 1], [], []>} : vector<128x128xbf16>, vector<128x6xbf16>, vector<128x6xf32> -> vector<128x6xf32>
    %78 = arith.addf %72, %77 : vector<128x6xf32>
    %79 = vector.extract_strided_slice %78 {offsets = [0, 0], sizes = [128, 3], strides = [1, 1]} : vector<128x6xf32> to vector<128x3xf32>
    %80 = vector.shape_cast %79 : vector<128x3xf32> to vector<8x16x3xf32>
    %81 = vector.extract_strided_slice %78 {offsets = [0, 3], sizes = [128, 3], strides = [1, 1]} : vector<128x6xf32> to vector<128x3xf32>
    %82 = vector.shape_cast %81 : vector<128x3xf32> to vector<8x16x3xf32>
    %c0_79 = arith.constant 0 : index
    %c0_80 = arith.constant 0 : index
    %c0_81 = arith.constant 0 : index
    %c0_82 = arith.constant 0 : index
    %83 = vector.load %arg2[%c0_79, %c0_80, %c0_81, %c0_82] : memref<1x8x16x3xf32, #tpu.memory_space<vmem>>, vector<1x8x16x3xf32>
    %84 = vector.shape_cast %83 : vector<1x8x16x3xf32> to vector<8x16x3xf32>
    %c0_83 = arith.constant 0 : index
    %c0_84 = arith.constant 0 : index
    %c0_85 = arith.constant 0 : index
    %85 = vector.load %arg8[%c0_83, %c0_84, %c0_85] : memref<1x1x3xf32, #tpu.memory_space<vmem>>, vector<1x1x3xf32>
    %86 = vector.broadcast %85 : vector<1x1x3xf32> to vector<8x16x3xf32>
    %87 = arith.subf %84, %86 : vector<8x16x3xf32>
    %c0_86 = arith.constant 0 : index
    %c0_87 = arith.constant 0 : index
    %c0_88 = arith.constant 0 : index
    %88 = vector.load %arg9[%c0_86, %c0_87, %c0_88] : memref<1x1x3xf32, #tpu.memory_space<vmem>>, vector<1x1x3xf32>
    %89 = vector.broadcast %88 : vector<1x1x3xf32> to vector<8x16x3xf32>
    %90 = arith.mulf %87, %89 : vector<8x16x3xf32>
    %cst_89 = arith.constant 1.000000e+00 : f32
    %91 = vector.broadcast %cst_89 : f32 to vector<8x16x3xf32>
    %92 = arith.addf %91, %80 : vector<8x16x3xf32>
    %93 = arith.mulf %90, %92 : vector<8x16x3xf32>
    %94 = arith.addf %93, %82 : vector<8x16x3xf32>
    %cst_90 = arith.constant 0.000000e+00 : f32
    %95 = vector.broadcast %cst_90 : f32 to vector<8x16x3xf32>
    %96 = arith.maximumf %94, %95 : vector<8x16x3xf32>
    %97 = arith.truncf %96 : vector<8x16x3xf32> to vector<8x16x3xbf16>
    %c0_91 = arith.constant 0 : index
    %c0_92 = arith.constant 0 : index
    %c0_93 = arith.constant 0 : index
    %c0_94 = arith.constant 0 : index
    %98 = vector.load %arg10[%c0_91, %c0_92, %c0_93, %c0_94] : memref<1x8x16x3xbf16, #tpu.memory_space<vmem>>, vector<1x8x16x3xbf16>
    %99 = vector.shape_cast %98 : vector<1x8x16x3xbf16> to vector<8x16x3xbf16>
    %100 = vector.shape_cast %97 : vector<8x16x3xbf16> to vector<1x8x16x3xbf16>
    tpu.vector_store %arg10[%c0_91, %c0_92, %c0_93, %c0_94], %100 {strides = array<i32>} : memref<1x8x16x3xbf16, #tpu.memory_space<vmem>>, vector<1x8x16x3xbf16>,
    return
  }
  func.func @transform_0(%arg0: i32, %arg1: i32) -> (i32, i32, i32, i32) {
    %c0_i32 = arith.constant 0 : i32
    %c0_i32_0 = arith.constant 0 : i32
    %c0_i32_1 = arith.constant 0 : i32
    return %arg0, %arg1, %c0_i32, %c0_i32_0 : i32, i32, i32, i32
  }
  func.func @transform_1(%arg0: i32, %arg1: i32) -> (i32, i32, i32, i32) {
    %c0_i32 = arith.constant 0 : i32
    %c1_i32 = arith.constant 1 : i32
    %c0_i32_0 = arith.constant 0 : i32
    return %arg0, %arg1, %c0_i32, %c1_i32 : i32, i32, i32, i32
  }
  func.func @transform_2(%arg0: i32, %arg1: i32) -> (i32, i32, i32, i32) {
    %c8_i32 = arith.constant 8 : i32
    %0 = arith.muli %arg1, %c8_i32 : i32
    %c1_i32 = arith.constant 1 : i32
    %1 = arith.subi %0, %c1_i32 : i32
    %c0_i32 = arith.constant 0 : i32
    %2 = arith.maxsi %1, %c0_i32 : i32
    %c0_i32_0 = arith.constant 0 : i32
    %c1_i32_1 = arith.constant 1 : i32
    %c0_i32_2 = arith.constant 0 : i32
    return %arg0, %2, %c0_i32_0, %c1_i32_1 : i32, i32, i32, i32
  }
  func.func @transform_3(%arg0: i32, %arg1: i32) -> (i32, i32, i32, i32) {
    %c1_i32 = arith.constant 1 : i32
    %0 = arith.addi %arg1, %c1_i32 : i32
    %c8_i32 = arith.constant 8 : i32
    %1 = arith.muli %0, %c8_i32 : i32
    %c15_i32 = arith.constant 15 : i32
    %2 = arith.minsi %1, %c15_i32 : i32
    %c0_i32 = arith.constant 0 : i32
    %c1_i32_0 = arith.constant 1 : i32
    %c0_i32_1 = arith.constant 0 : i32
    return %arg0, %2, %c0_i32, %c1_i32_0 : i32, i32, i32, i32
  }
  func.func @transform_4(%arg0: i32, %arg1: i32) -> (i32, i32, i32, i32) {
    %c0_i32 = arith.constant 0 : i32
    %c0_i32_0 = arith.constant 0 : i32
    %c0_i32_1 = arith.constant 0 : i32
    %c0_i32_2 = arith.constant 0 : i32
    %c0_i32_3 = arith.constant 0 : i32
    return %c0_i32, %c0_i32_0, %c0_i32_1, %c0_i32_2 : i32, i32, i32, i32
  }
  func.func @transform_5(%arg0: i32, %arg1: i32) -> (i32, i32) {
    %c0_i32 = arith.constant 0 : i32
    %c0_i32_0 = arith.constant 0 : i32
    %c0_i32_1 = arith.constant 0 : i32
    return %c0_i32, %c0_i32_0 : i32, i32
  }
  func.func @transform_6(%arg0: i32, %arg1: i32) -> (i32, i32, i32) {
    %c0_i32 = arith.constant 0 : i32
    %c0_i32_0 = arith.constant 0 : i32
    %c0_i32_1 = arith.constant 0 : i32
    %c0_i32_2 = arith.constant 0 : i32
    return %c0_i32, %c0_i32_0, %c0_i32_1 : i32, i32, i32
  }
  func.func @transform_7(%arg0: i32, %arg1: i32) -> (i32, i32, i32) {
    %c0_i32 = arith.constant 0 : i32
    %c0_i32_0 = arith.constant 0 : i32
    %c0_i32_1 = arith.constant 0 : i32
    %c0_i32_2 = arith.constant 0 : i32
    return %c0_i32, %c0_i32_0, %c0_i32_1 : i32, i32, i32
  }
  func.func @transform_8(%arg0: i32, %arg1: i32) -> (i32, i32, i32, i32) {
    %c0_i32 = arith.constant 0 : i32
    %c0_i32_0 = arith.constant 0 : i32
    %c0_i32_1 = arith.constant 0 : i32
    return %arg0, %arg1, %c0_i32, %c0_i32_0 : i32, i32, i32, i32
  }
}

module attributes {stable_mosaic.version = 11 : i64} {
  func.func @_spade_apply_kernel(%arg0: i32, %arg1: i32, %arg2: memref<1x8x16x3xf32, #tpu.memory_space<vmem>>, %arg3: memref<1x8x16x128xbf16, #tpu.memory_space<vmem>>, %arg4: memref<1x1x16x128xbf16, #tpu.memory_space<vmem>>, %arg5: memref<1x1x16x128xbf16, #tpu.memory_space<vmem>>, %arg6: memref<3x3x128x6xbf16, #tpu.memory_space<vmem>>, %arg7: memref<1x6xf32, #tpu.memory_space<vmem>>, %arg8: memref<1x1x3xf32, #tpu.memory_space<vmem>>, %arg9: memref<1x1x3xf32, #tpu.memory_space<vmem>>, %arg10: memref<1x8x16x3xf32, #tpu.memory_space<vmem>>, %arg11: memref<10x32x128xbf16, #tpu.memory_space<vmem>>) attributes {dimension_semantics = [#tpu.dimension_semantics<parallel>, #tpu.dimension_semantics<parallel>], iteration_bounds = array<i64: 2, 2>, scalar_prefetch = 0 : i64, scratch_operands = 1 : i64, tpu.core_type = #tpu.core_type<tc>, window_params = [{transform_indices = @transform_0, window_bounds = array<i64: 1, 8, 16, 3>}, {transform_indices = @transform_1, window_bounds = array<i64: 1, 8, 16, 128>}, {transform_indices = @transform_2, window_bounds = array<i64: 1, 1, 16, 128>}, {transform_indices = @transform_3, window_bounds = array<i64: 1, 1, 16, 128>}, {pipeline_mode = #tpu.pipeline_mode<synchronous>, transform_indices = @transform_4, window_bounds = array<i64: 3, 3, 128, 6>}, {pipeline_mode = #tpu.pipeline_mode<synchronous>, transform_indices = @transform_5, window_bounds = array<i64: 1, 6>}, {pipeline_mode = #tpu.pipeline_mode<synchronous>, transform_indices = @transform_6, window_bounds = array<i64: 1, 1, 3>}, {pipeline_mode = #tpu.pipeline_mode<synchronous>, transform_indices = @transform_7, window_bounds = array<i64: 1, 1, 3>}, {transform_indices = @transform_8, window_bounds = array<i64: 1, 8, 16, 3>}]} {
    %c0_i32 = arith.constant 0 : i32
    %0 = arith.cmpi sgt, %arg1, %c0_i32 : i32
    %c0 = arith.constant 0 : index
    %c0_0 = arith.constant 0 : index
    %c0_1 = arith.constant 0 : index
    %c0_2 = arith.constant 0 : index
    %1 = vector.load %arg4[%c0, %c0_0, %c0_1, %c0_2] : memref<1x1x16x128xbf16, #tpu.memory_space<vmem>>, vector<1x1x16x128xbf16>
    %2 = vector.shape_cast %1 : vector<1x1x16x128xbf16> to vector<1x16x128xbf16>
    %cst = arith.constant 0.000000e+00 : bf16
    %3 = vector.broadcast %cst : bf16 to vector<1x16x128xbf16>
    %4 = arith.select %0, %2, %3 : vector<1x16x128xbf16>
    %c1_i32 = arith.constant 1 : i32
    %5 = arith.cmpi slt, %arg1, %c1_i32 : i32
    %c0_3 = arith.constant 0 : index
    %c0_4 = arith.constant 0 : index
    %c0_5 = arith.constant 0 : index
    %c0_6 = arith.constant 0 : index
    %6 = vector.load %arg5[%c0_3, %c0_4, %c0_5, %c0_6] : memref<1x1x16x128xbf16, #tpu.memory_space<vmem>>, vector<1x1x16x128xbf16>
    %7 = vector.shape_cast %6 : vector<1x1x16x128xbf16> to vector<1x16x128xbf16>
    %cst_7 = arith.constant 0.000000e+00 : bf16
    %8 = vector.broadcast %cst_7 : bf16 to vector<1x16x128xbf16>
    %9 = arith.select %5, %7, %8 : vector<1x16x128xbf16>
    %c0_8 = arith.constant 0 : index
    %c8 = arith.constant 8 : index
    %c0_9 = arith.constant 0 : index
    %10 = vector.load %arg11[%c0_8, %c8, %c0_9] : memref<10x32x128xbf16, #tpu.memory_space<vmem>>, vector<1x16x128xbf16>
    tpu.vector_store %arg11[%c0_8, %c8, %c0_9], %4 {strides = array<i32>} : memref<10x32x128xbf16, #tpu.memory_space<vmem>>, vector<1x16x128xbf16>,
    %c0_10 = arith.constant 0 : index
    %c0_11 = arith.constant 0 : index
    %c0_12 = arith.constant 0 : index
    %c0_13 = arith.constant 0 : index
    %11 = vector.load %arg3[%c0_10, %c0_11, %c0_12, %c0_13] : memref<1x8x16x128xbf16, #tpu.memory_space<vmem>>, vector<1x8x16x128xbf16>
    %12 = vector.shape_cast %11 : vector<1x8x16x128xbf16> to vector<8x16x128xbf16>
    %c1 = arith.constant 1 : index
    %c8_14 = arith.constant 8 : index
    %c0_15 = arith.constant 0 : index
    %13 = vector.load %arg11[%c1, %c8_14, %c0_15] : memref<10x32x128xbf16, #tpu.memory_space<vmem>>, vector<8x16x128xbf16>
    tpu.vector_store %arg11[%c1, %c8_14, %c0_15], %12 {strides = array<i32>} : memref<10x32x128xbf16, #tpu.memory_space<vmem>>, vector<8x16x128xbf16>,
    %c9 = arith.constant 9 : index
    %c8_16 = arith.constant 8 : index
    %c0_17 = arith.constant 0 : index
    %14 = vector.load %arg11[%c9, %c8_16, %c0_17] : memref<10x32x128xbf16, #tpu.memory_space<vmem>>, vector<1x16x128xbf16>
    tpu.vector_store %arg11[%c9, %c8_16, %c0_17], %9 {strides = array<i32>} : memref<10x32x128xbf16, #tpu.memory_space<vmem>>, vector<1x16x128xbf16>,
    %cst_18 = arith.constant 0.000000e+00 : bf16
    %15 = vector.broadcast %cst_18 : bf16 to vector<10x8x128xbf16>
    %c0_19 = arith.constant 0 : index
    %c0_20 = arith.constant 0 : index
    %c0_21 = arith.constant 0 : index
    %16 = vector.load %arg11[%c0_19, %c0_20, %c0_21] : memref<10x32x128xbf16, #tpu.memory_space<vmem>>, vector<10x8x128xbf16>
    tpu.vector_store %arg11[%c0_19, %c0_20, %c0_21], %15 {strides = array<i32>} : memref<10x32x128xbf16, #tpu.memory_space<vmem>>, vector<10x8x128xbf16>,
    %cst_22 = arith.constant 0.000000e+00 : bf16
    %17 = vector.broadcast %cst_22 : bf16 to vector<10x8x128xbf16>
    %c0_23 = arith.constant 0 : index
    %c24 = arith.constant 24 : index
    %c0_24 = arith.constant 0 : index
    %18 = vector.load %arg11[%c0_23, %c24, %c0_24] : memref<10x32x128xbf16, #tpu.memory_space<vmem>>, vector<10x8x128xbf16>
    tpu.vector_store %arg11[%c0_23, %c24, %c0_24], %17 {strides = array<i32>} : memref<10x32x128xbf16, #tpu.memory_space<vmem>>, vector<10x8x128xbf16>,
    %c0_25 = arith.constant 0 : index
    %c0_26 = arith.constant 0 : index
    %19 = vector.load %arg7[%c0_25, %c0_26] : memref<1x6xf32, #tpu.memory_space<vmem>>, vector<1x6xf32>
    %20 = vector.shape_cast %19 : vector<1x6xf32> to vector<1x6xf32>
    %21 = vector.broadcast %20 : vector<1x6xf32> to vector<128x6xf32>
    %c0_27 = arith.constant 0 : index
    %c7 = arith.constant 7 : index
    %c0_28 = arith.constant 0 : index
    %22 = vector.load %arg11[%c0_27, %c7, %c0_28] : memref<10x32x128xbf16, #tpu.memory_space<vmem>>, vector<10x16x128xbf16>
    %23 = vector.extract_strided_slice %22 {offsets = [0, 0, 0], sizes = [8, 16, 128], strides = [1, 1, 1]} : vector<10x16x128xbf16> to vector<8x16x128xbf16>
    %24 = vector.shape_cast %23 : vector<8x16x128xbf16> to vector<128x128xbf16>
    %c0_29 = arith.constant 0 : index
    %c0_30 = arith.constant 0 : index
    %c0_31 = arith.constant 0 : index
    %c0_32 = arith.constant 0 : index
    %25 = vector.load %arg6[%c0_29, %c0_30, %c0_31, %c0_32] : memref<3x3x128x6xbf16, #tpu.memory_space<vmem>>, vector<1x1x128x6xbf16>
    %26 = vector.shape_cast %25 : vector<1x1x128x6xbf16> to vector<128x6xbf16>
    %cst_33 = arith.constant dense<0.000000e+00> : vector<128x6xf32>
    %27 = tpu.matmul %24, %26, %cst_33 {dimension_numbers = #tpu.dot_dimension_numbers<[1], [0], [0], [1], [0, 0, 1, 1], [], []>} : vector<128x128xbf16>, vector<128x6xbf16>, vector<128x6xf32> -> vector<128x6xf32>
    %28 = arith.addf %21, %27 : vector<128x6xf32>
    %29 = vector.extract_strided_slice %22 {offsets = [1, 0, 0], sizes = [8, 16, 128], strides = [1, 1, 1]} : vector<10x16x128xbf16> to vector<8x16x128xbf16>
    %30 = vector.shape_cast %29 : vector<8x16x128xbf16> to vector<128x128xbf16>
    %c1_34 = arith.constant 1 : index
    %c0_35 = arith.constant 0 : index
    %c0_36 = arith.constant 0 : index
    %c0_37 = arith.constant 0 : index
    %31 = vector.load %arg6[%c1_34, %c0_35, %c0_36, %c0_37] : memref<3x3x128x6xbf16, #tpu.memory_space<vmem>>, vector<1x1x128x6xbf16>
    %32 = vector.shape_cast %31 : vector<1x1x128x6xbf16> to vector<128x6xbf16>
    %cst_38 = arith.constant dense<0.000000e+00> : vector<128x6xf32>
    %33 = tpu.matmul %30, %32, %cst_38 {dimension_numbers = #tpu.dot_dimension_numbers<[1], [0], [0], [1], [0, 0, 1, 1], [], []>} : vector<128x128xbf16>, vector<128x6xbf16>, vector<128x6xf32> -> vector<128x6xf32>
    %34 = arith.addf %28, %33 : vector<128x6xf32>
    %35 = vector.extract_strided_slice %22 {offsets = [2, 0, 0], sizes = [8, 16, 128], strides = [1, 1, 1]} : vector<10x16x128xbf16> to vector<8x16x128xbf16>
    %36 = vector.shape_cast %35 : vector<8x16x128xbf16> to vector<128x128xbf16>
    %c2 = arith.constant 2 : index
    %c0_39 = arith.constant 0 : index
    %c0_40 = arith.constant 0 : index
    %c0_41 = arith.constant 0 : index
    %37 = vector.load %arg6[%c2, %c0_39, %c0_40, %c0_41] : memref<3x3x128x6xbf16, #tpu.memory_space<vmem>>, vector<1x1x128x6xbf16>
    %38 = vector.shape_cast %37 : vector<1x1x128x6xbf16> to vector<128x6xbf16>
    %cst_42 = arith.constant dense<0.000000e+00> : vector<128x6xf32>
    %39 = tpu.matmul %36, %38, %cst_42 {dimension_numbers = #tpu.dot_dimension_numbers<[1], [0], [0], [1], [0, 0, 1, 1], [], []>} : vector<128x128xbf16>, vector<128x6xbf16>, vector<128x6xf32> -> vector<128x6xf32>
    %40 = arith.addf %34, %39 : vector<128x6xf32>
    %c0_43 = arith.constant 0 : index
    %c8_44 = arith.constant 8 : index
    %c0_45 = arith.constant 0 : index
    %41 = vector.load %arg11[%c0_43, %c8_44, %c0_45] : memref<10x32x128xbf16, #tpu.memory_space<vmem>>, vector<10x16x128xbf16>
    %42 = vector.extract_strided_slice %41 {offsets = [0, 0, 0], sizes = [8, 16, 128], strides = [1, 1, 1]} : vector<10x16x128xbf16> to vector<8x16x128xbf16>
    %43 = vector.shape_cast %42 : vector<8x16x128xbf16> to vector<128x128xbf16>
    %c0_46 = arith.constant 0 : index
    %c1_47 = arith.constant 1 : index
    %c0_48 = arith.constant 0 : index
    %c0_49 = arith.constant 0 : index
    %44 = vector.load %arg6[%c0_46, %c1_47, %c0_48, %c0_49] : memref<3x3x128x6xbf16, #tpu.memory_space<vmem>>, vector<1x1x128x6xbf16>
    %45 = vector.shape_cast %44 : vector<1x1x128x6xbf16> to vector<128x6xbf16>
    %cst_50 = arith.constant dense<0.000000e+00> : vector<128x6xf32>
    %46 = tpu.matmul %43, %45, %cst_50 {dimension_numbers = #tpu.dot_dimension_numbers<[1], [0], [0], [1], [0, 0, 1, 1], [], []>} : vector<128x128xbf16>, vector<128x6xbf16>, vector<128x6xf32> -> vector<128x6xf32>
    %47 = arith.addf %40, %46 : vector<128x6xf32>
    %48 = vector.extract_strided_slice %41 {offsets = [1, 0, 0], sizes = [8, 16, 128], strides = [1, 1, 1]} : vector<10x16x128xbf16> to vector<8x16x128xbf16>
    %49 = vector.shape_cast %48 : vector<8x16x128xbf16> to vector<128x128xbf16>
    %c1_51 = arith.constant 1 : index
    %c1_52 = arith.constant 1 : index
    %c0_53 = arith.constant 0 : index
    %c0_54 = arith.constant 0 : index
    %50 = vector.load %arg6[%c1_51, %c1_52, %c0_53, %c0_54] : memref<3x3x128x6xbf16, #tpu.memory_space<vmem>>, vector<1x1x128x6xbf16>
    %51 = vector.shape_cast %50 : vector<1x1x128x6xbf16> to vector<128x6xbf16>
    %cst_55 = arith.constant dense<0.000000e+00> : vector<128x6xf32>
    %52 = tpu.matmul %49, %51, %cst_55 {dimension_numbers = #tpu.dot_dimension_numbers<[1], [0], [0], [1], [0, 0, 1, 1], [], []>} : vector<128x128xbf16>, vector<128x6xbf16>, vector<128x6xf32> -> vector<128x6xf32>
    %53 = arith.addf %47, %52 : vector<128x6xf32>
    %54 = vector.extract_strided_slice %41 {offsets = [2, 0, 0], sizes = [8, 16, 128], strides = [1, 1, 1]} : vector<10x16x128xbf16> to vector<8x16x128xbf16>
    %55 = vector.shape_cast %54 : vector<8x16x128xbf16> to vector<128x128xbf16>
    %c2_56 = arith.constant 2 : index
    %c1_57 = arith.constant 1 : index
    %c0_58 = arith.constant 0 : index
    %c0_59 = arith.constant 0 : index
    %56 = vector.load %arg6[%c2_56, %c1_57, %c0_58, %c0_59] : memref<3x3x128x6xbf16, #tpu.memory_space<vmem>>, vector<1x1x128x6xbf16>
    %57 = vector.shape_cast %56 : vector<1x1x128x6xbf16> to vector<128x6xbf16>
    %cst_60 = arith.constant dense<0.000000e+00> : vector<128x6xf32>
    %58 = tpu.matmul %55, %57, %cst_60 {dimension_numbers = #tpu.dot_dimension_numbers<[1], [0], [0], [1], [0, 0, 1, 1], [], []>} : vector<128x128xbf16>, vector<128x6xbf16>, vector<128x6xf32> -> vector<128x6xf32>
    %59 = arith.addf %53, %58 : vector<128x6xf32>
    %c0_61 = arith.constant 0 : index
    %c9_62 = arith.constant 9 : index
    %c0_63 = arith.constant 0 : index
    %60 = vector.load %arg11[%c0_61, %c9_62, %c0_63] : memref<10x32x128xbf16, #tpu.memory_space<vmem>>, vector<10x16x128xbf16>
    %61 = vector.extract_strided_slice %60 {offsets = [0, 0, 0], sizes = [8, 16, 128], strides = [1, 1, 1]} : vector<10x16x128xbf16> to vector<8x16x128xbf16>
    %62 = vector.shape_cast %61 : vector<8x16x128xbf16> to vector<128x128xbf16>
    %c0_64 = arith.constant 0 : index
    %c2_65 = arith.constant 2 : index
    %c0_66 = arith.constant 0 : index
    %c0_67 = arith.constant 0 : index
    %63 = vector.load %arg6[%c0_64, %c2_65, %c0_66, %c0_67] : memref<3x3x128x6xbf16, #tpu.memory_space<vmem>>, vector<1x1x128x6xbf16>
    %64 = vector.shape_cast %63 : vector<1x1x128x6xbf16> to vector<128x6xbf16>
    %cst_68 = arith.constant dense<0.000000e+00> : vector<128x6xf32>
    %65 = tpu.matmul %62, %64, %cst_68 {dimension_numbers = #tpu.dot_dimension_numbers<[1], [0], [0], [1], [0, 0, 1, 1], [], []>} : vector<128x128xbf16>, vector<128x6xbf16>, vector<128x6xf32> -> vector<128x6xf32>
    %66 = arith.addf %59, %65 : vector<128x6xf32>
    %67 = vector.extract_strided_slice %60 {offsets = [1, 0, 0], sizes = [8, 16, 128], strides = [1, 1, 1]} : vector<10x16x128xbf16> to vector<8x16x128xbf16>
    %68 = vector.shape_cast %67 : vector<8x16x128xbf16> to vector<128x128xbf16>
    %c1_69 = arith.constant 1 : index
    %c2_70 = arith.constant 2 : index
    %c0_71 = arith.constant 0 : index
    %c0_72 = arith.constant 0 : index
    %69 = vector.load %arg6[%c1_69, %c2_70, %c0_71, %c0_72] : memref<3x3x128x6xbf16, #tpu.memory_space<vmem>>, vector<1x1x128x6xbf16>
    %70 = vector.shape_cast %69 : vector<1x1x128x6xbf16> to vector<128x6xbf16>
    %cst_73 = arith.constant dense<0.000000e+00> : vector<128x6xf32>
    %71 = tpu.matmul %68, %70, %cst_73 {dimension_numbers = #tpu.dot_dimension_numbers<[1], [0], [0], [1], [0, 0, 1, 1], [], []>} : vector<128x128xbf16>, vector<128x6xbf16>, vector<128x6xf32> -> vector<128x6xf32>
    %72 = arith.addf %66, %71 : vector<128x6xf32>
    %73 = vector.extract_strided_slice %60 {offsets = [2, 0, 0], sizes = [8, 16, 128], strides = [1, 1, 1]} : vector<10x16x128xbf16> to vector<8x16x128xbf16>
    %74 = vector.shape_cast %73 : vector<8x16x128xbf16> to vector<128x128xbf16>
    %c2_74 = arith.constant 2 : index
    %c2_75 = arith.constant 2 : index
    %c0_76 = arith.constant 0 : index
    %c0_77 = arith.constant 0 : index
    %75 = vector.load %arg6[%c2_74, %c2_75, %c0_76, %c0_77] : memref<3x3x128x6xbf16, #tpu.memory_space<vmem>>, vector<1x1x128x6xbf16>
    %76 = vector.shape_cast %75 : vector<1x1x128x6xbf16> to vector<128x6xbf16>
    %cst_78 = arith.constant dense<0.000000e+00> : vector<128x6xf32>
    %77 = tpu.matmul %74, %76, %cst_78 {dimension_numbers = #tpu.dot_dimension_numbers<[1], [0], [0], [1], [0, 0, 1, 1], [], []>} : vector<128x128xbf16>, vector<128x6xbf16>, vector<128x6xf32> -> vector<128x6xf32>
    %78 = arith.addf %72, %77 : vector<128x6xf32>
    %79 = vector.extract_strided_slice %78 {offsets = [0, 0], sizes = [128, 3], strides = [1, 1]} : vector<128x6xf32> to vector<128x3xf32>
    %80 = vector.shape_cast %79 : vector<128x3xf32> to vector<8x16x3xf32>
    %81 = vector.extract_strided_slice %78 {offsets = [0, 3], sizes = [128, 3], strides = [1, 1]} : vector<128x6xf32> to vector<128x3xf32>
    %82 = vector.shape_cast %81 : vector<128x3xf32> to vector<8x16x3xf32>
    %c0_79 = arith.constant 0 : index
    %c0_80 = arith.constant 0 : index
    %c0_81 = arith.constant 0 : index
    %c0_82 = arith.constant 0 : index
    %83 = vector.load %arg2[%c0_79, %c0_80, %c0_81, %c0_82] : memref<1x8x16x3xf32, #tpu.memory_space<vmem>>, vector<1x8x16x3xf32>
    %84 = vector.shape_cast %83 : vector<1x8x16x3xf32> to vector<8x16x3xf32>
    %c0_83 = arith.constant 0 : index
    %c0_84 = arith.constant 0 : index
    %c0_85 = arith.constant 0 : index
    %85 = vector.load %arg8[%c0_83, %c0_84, %c0_85] : memref<1x1x3xf32, #tpu.memory_space<vmem>>, vector<1x1x3xf32>
    %86 = vector.broadcast %85 : vector<1x1x3xf32> to vector<8x16x3xf32>
    %87 = arith.subf %84, %86 : vector<8x16x3xf32>
    %c0_86 = arith.constant 0 : index
    %c0_87 = arith.constant 0 : index
    %c0_88 = arith.constant 0 : index
    %88 = vector.load %arg9[%c0_86, %c0_87, %c0_88] : memref<1x1x3xf32, #tpu.memory_space<vmem>>, vector<1x1x3xf32>
    %89 = vector.broadcast %88 : vector<1x1x3xf32> to vector<8x16x3xf32>
    %90 = arith.mulf %87, %89 : vector<8x16x3xf32>
    %cst_89 = arith.constant 1.000000e+00 : f32
    %91 = vector.broadcast %cst_89 : f32 to vector<8x16x3xf32>
    %92 = arith.addf %91, %80 : vector<8x16x3xf32>
    %93 = arith.mulf %90, %92 : vector<8x16x3xf32>
    %94 = arith.addf %93, %82 : vector<8x16x3xf32>
    %cst_90 = arith.constant 0.000000e+00 : f32
    %95 = vector.broadcast %cst_90 : f32 to vector<8x16x3xf32>
    %96 = arith.maximumf %94, %95 : vector<8x16x3xf32>
    %c0_91 = arith.constant 0 : index
    %c0_92 = arith.constant 0 : index
    %c0_93 = arith.constant 0 : index
    %c0_94 = arith.constant 0 : index
    %97 = vector.load %arg10[%c0_91, %c0_92, %c0_93, %c0_94] : memref<1x8x16x3xf32, #tpu.memory_space<vmem>>, vector<1x8x16x3xf32>
    %98 = vector.shape_cast %97 : vector<1x8x16x3xf32> to vector<8x16x3xf32>
    %99 = vector.shape_cast %96 : vector<8x16x3xf32> to vector<1x8x16x3xf32>
    tpu.vector_store %arg10[%c0_91, %c0_92, %c0_93, %c0_94], %99 {strides = array<i32>} : memref<1x8x16x3xf32, #tpu.memory_space<vmem>>, vector<1x8x16x3xf32>,
    return
  }
  func.func @transform_0(%arg0: i32, %arg1: i32) -> (i32, i32, i32, i32) {
    %c0_i32 = arith.constant 0 : i32
    %c0_i32_0 = arith.constant 0 : i32
    %c0_i32_1 = arith.constant 0 : i32
    return %arg0, %arg1, %c0_i32, %c0_i32_0 : i32, i32, i32, i32
  }
  func.func @transform_1(%arg0: i32, %arg1: i32) -> (i32, i32, i32, i32) {
    %c0_i32 = arith.constant 0 : i32
    %c0_i32_0 = arith.constant 0 : i32
    %c0_i32_1 = arith.constant 0 : i32
    return %arg0, %arg1, %c0_i32, %c0_i32_0 : i32, i32, i32, i32
  }
  func.func @transform_2(%arg0: i32, %arg1: i32) -> (i32, i32, i32, i32) {
    %c8_i32 = arith.constant 8 : i32
    %0 = arith.muli %arg1, %c8_i32 : i32
    %c1_i32 = arith.constant 1 : i32
    %1 = arith.subi %0, %c1_i32 : i32
    %c0_i32 = arith.constant 0 : i32
    %2 = arith.maxsi %1, %c0_i32 : i32
    %c0_i32_0 = arith.constant 0 : i32
    %c0_i32_1 = arith.constant 0 : i32
    %c0_i32_2 = arith.constant 0 : i32
    return %arg0, %2, %c0_i32_0, %c0_i32_1 : i32, i32, i32, i32
  }
  func.func @transform_3(%arg0: i32, %arg1: i32) -> (i32, i32, i32, i32) {
    %c1_i32 = arith.constant 1 : i32
    %0 = arith.addi %arg1, %c1_i32 : i32
    %c8_i32 = arith.constant 8 : i32
    %1 = arith.muli %0, %c8_i32 : i32
    %c15_i32 = arith.constant 15 : i32
    %2 = arith.minsi %1, %c15_i32 : i32
    %c0_i32 = arith.constant 0 : i32
    %c0_i32_0 = arith.constant 0 : i32
    %c0_i32_1 = arith.constant 0 : i32
    return %arg0, %2, %c0_i32, %c0_i32_0 : i32, i32, i32, i32
  }
  func.func @transform_4(%arg0: i32, %arg1: i32) -> (i32, i32, i32, i32) {
    %c0_i32 = arith.constant 0 : i32
    %c0_i32_0 = arith.constant 0 : i32
    %c0_i32_1 = arith.constant 0 : i32
    %c0_i32_2 = arith.constant 0 : i32
    %c0_i32_3 = arith.constant 0 : i32
    return %c0_i32, %c0_i32_0, %c0_i32_1, %c0_i32_2 : i32, i32, i32, i32
  }
  func.func @transform_5(%arg0: i32, %arg1: i32) -> (i32, i32) {
    %c0_i32 = arith.constant 0 : i32
    %c0_i32_0 = arith.constant 0 : i32
    %c0_i32_1 = arith.constant 0 : i32
    return %c0_i32, %c0_i32_0 : i32, i32
  }
  func.func @transform_6(%arg0: i32, %arg1: i32) -> (i32, i32, i32) {
    %c0_i32 = arith.constant 0 : i32
    %c0_i32_0 = arith.constant 0 : i32
    %c0_i32_1 = arith.constant 0 : i32
    %c0_i32_2 = arith.constant 0 : i32
    return %c0_i32, %c0_i32_0, %c0_i32_1 : i32, i32, i32
  }
  func.func @transform_7(%arg0: i32, %arg1: i32) -> (i32, i32, i32) {
    %c0_i32 = arith.constant 0 : i32
    %c0_i32_0 = arith.constant 0 : i32
    %c0_i32_1 = arith.constant 0 : i32
    %c0_i32_2 = arith.constant 0 : i32
    return %c0_i32, %c0_i32_0, %c0_i32_1 : i32, i32, i32
  }
  func.func @transform_8(%arg0: i32, %arg1: i32) -> (i32, i32, i32, i32) {
    %c0_i32 = arith.constant 0 : i32
    %c0_i32_0 = arith.constant 0 : i32
    %c0_i32_1 = arith.constant 0 : i32
    return %arg0, %arg1, %c0_i32, %c0_i32_0 : i32, i32, i32, i32
  }
}

module attributes {stable_mosaic.version = 11 : i64} {
  func.func @_matmul_bias_kernel(%arg0: i32, %arg1: i32, %arg2: memref<1x8x16x27xbf16, #tpu.memory_space<vmem>>, %arg3: memref<27x128xbf16, #tpu.memory_space<vmem>>, %arg4: memref<1x128xf32, #tpu.memory_space<vmem>>, %arg5: memref<1x8x16x128xbf16, #tpu.memory_space<vmem>>) attributes {dimension_semantics = [#tpu.dimension_semantics<parallel>, #tpu.dimension_semantics<parallel>], iteration_bounds = array<i64: 2, 2>, scalar_prefetch = 0 : i64, scratch_operands = 0 : i64, tpu.core_type = #tpu.core_type<tc>, window_params = [{transform_indices = @transform_0, window_bounds = array<i64: 1, 8, 16, 27>}, {pipeline_mode = #tpu.pipeline_mode<synchronous>, transform_indices = @transform_1, window_bounds = array<i64: 27, 128>}, {pipeline_mode = #tpu.pipeline_mode<synchronous>, transform_indices = @transform_2, window_bounds = array<i64: 1, 128>}, {transform_indices = @transform_3, window_bounds = array<i64: 1, 8, 16, 128>}]} {
    %c0 = arith.constant 0 : index
    %c0_0 = arith.constant 0 : index
    %c0_1 = arith.constant 0 : index
    %c0_2 = arith.constant 0 : index
    %0 = vector.load %arg2[%c0, %c0_0, %c0_1, %c0_2] : memref<1x8x16x27xbf16, #tpu.memory_space<vmem>>, vector<1x8x16x27xbf16>
    %1 = vector.shape_cast %0 : vector<1x8x16x27xbf16> to vector<8x16x27xbf16>
    %2 = vector.shape_cast %1 : vector<8x16x27xbf16> to vector<128x27xbf16>
    %c0_3 = arith.constant 0 : index
    %c0_4 = arith.constant 0 : index
    %3 = vector.load %arg3[%c0_3, %c0_4] : memref<27x128xbf16, #tpu.memory_space<vmem>>, vector<27x128xbf16>
    %cst = arith.constant dense<0.000000e+00> : vector<128x128xf32>
    %4 = tpu.matmul %2, %3, %cst {dimension_numbers = #tpu.dot_dimension_numbers<[1], [0], [0], [1], [0, 0, 1, 1], [], []>} : vector<128x27xbf16>, vector<27x128xbf16>, vector<128x128xf32> -> vector<128x128xf32>
    %c0_5 = arith.constant 0 : index
    %c0_6 = arith.constant 0 : index
    %5 = vector.load %arg4[%c0_5, %c0_6] : memref<1x128xf32, #tpu.memory_space<vmem>>, vector<1x128xf32>
    %6 = vector.broadcast %5 : vector<1x128xf32> to vector<128x128xf32>
    %7 = arith.addf %4, %6 : vector<128x128xf32>
    %8 = vector.shape_cast %7 : vector<128x128xf32> to vector<8x16x128xf32>
    %9 = arith.truncf %8 : vector<8x16x128xf32> to vector<8x16x128xbf16>
    %c0_7 = arith.constant 0 : index
    %c0_8 = arith.constant 0 : index
    %c0_9 = arith.constant 0 : index
    %c0_10 = arith.constant 0 : index
    %10 = vector.load %arg5[%c0_7, %c0_8, %c0_9, %c0_10] : memref<1x8x16x128xbf16, #tpu.memory_space<vmem>>, vector<1x8x16x128xbf16>
    %11 = vector.shape_cast %10 : vector<1x8x16x128xbf16> to vector<8x16x128xbf16>
    %12 = vector.shape_cast %9 : vector<8x16x128xbf16> to vector<1x8x16x128xbf16>
    tpu.vector_store %arg5[%c0_7, %c0_8, %c0_9, %c0_10], %12 {strides = array<i32>} : memref<1x8x16x128xbf16, #tpu.memory_space<vmem>>, vector<1x8x16x128xbf16>,
    return
  }
  func.func @transform_0(%arg0: i32, %arg1: i32) -> (i32, i32, i32, i32) {
    %c0_i32 = arith.constant 0 : i32
    %c0_i32_0 = arith.constant 0 : i32
    %c0_i32_1 = arith.constant 0 : i32
    return %arg0, %arg1, %c0_i32, %c0_i32_0 : i32, i32, i32, i32
  }
  func.func @transform_1(%arg0: i32, %arg1: i32) -> (i32, i32) {
    %c0_i32 = arith.constant 0 : i32
    %c0_i32_0 = arith.constant 0 : i32
    %c0_i32_1 = arith.constant 0 : i32
    return %c0_i32, %c0_i32_0 : i32, i32
  }
  func.func @transform_2(%arg0: i32, %arg1: i32) -> (i32, i32) {
    %c0_i32 = arith.constant 0 : i32
    %c0_i32_0 = arith.constant 0 : i32
    %c0_i32_1 = arith.constant 0 : i32
    return %c0_i32, %c0_i32_0 : i32, i32
  }
  func.func @transform_3(%arg0: i32, %arg1: i32) -> (i32, i32, i32, i32) {
    %c0_i32 = arith.constant 0 : i32
    %c0_i32_0 = arith.constant 0 : i32
    %c0_i32_1 = arith.constant 0 : i32
    return %arg0, %arg1, %c0_i32, %c0_i32_0 : i32, i32, i32, i32
  }
}

module attributes {stable_mosaic.version = 11 : i64} {
  func.func @_moment_kernel(%arg0: i32, %arg1: i32, %arg2: memref<1x8x16x4xf32, #tpu.memory_space<vmem>>, %arg3: memref<1x1x4xf32, #tpu.memory_space<vmem>>, %arg4: memref<1x1x4xf32, #tpu.memory_space<vmem>>) attributes {dimension_semantics = [#tpu.dimension_semantics<parallel>, #tpu.dimension_semantics<arbitrary>], iteration_bounds = array<i64: 2, 2>, scalar_prefetch = 0 : i64, scratch_operands = 0 : i64, tpu.core_type = #tpu.core_type<tc>, window_params = [{transform_indices = @transform_0, window_bounds = array<i64: 1, 8, 16, 4>}, {transform_indices = @transform_1, window_bounds = array<i64: 1, 1, 4>}, {transform_indices = @transform_2, window_bounds = array<i64: 1, 1, 4>}]} {
    %c0_i32 = arith.constant 0 : i32
    %0 = arith.cmpi eq, %arg1, %c0_i32 : i32
    %1 = arith.extui %0 : i1 to i32
    %c0_i32_0 = arith.constant 0 : i32
    %2 = arith.cmpi ne, %1, %c0_i32_0 : i32
    scf.if %2 {
      %cst_17 = arith.constant 0.000000e+00 : f32
      %16 = vector.broadcast %cst_17 : f32 to vector<1x1x4xf32>
      %c0_18 = arith.constant 0 : index
      %c0_19 = arith.constant 0 : index
      %c0_20 = arith.constant 0 : index
      %17 = vector.load %arg3[%c0_18, %c0_19, %c0_20] : memref<1x1x4xf32, #tpu.memory_space<vmem>>, vector<1x1x4xf32>
      tpu.vector_store %arg3[%c0_18, %c0_19, %c0_20], %16 {strides = array<i32>} : memref<1x1x4xf32, #tpu.memory_space<vmem>>, vector<1x1x4xf32>,
      %cst_21 = arith.constant 0.000000e+00 : f32
      %18 = vector.broadcast %cst_21 : f32 to vector<1x1x4xf32>
      %c0_22 = arith.constant 0 : index
      %c0_23 = arith.constant 0 : index
      %c0_24 = arith.constant 0 : index
      %19 = vector.load %arg4[%c0_22, %c0_23, %c0_24] : memref<1x1x4xf32, #tpu.memory_space<vmem>>, vector<1x1x4xf32>
      tpu.vector_store %arg4[%c0_22, %c0_23, %c0_24], %18 {strides = array<i32>} : memref<1x1x4xf32, #tpu.memory_space<vmem>>, vector<1x1x4xf32>,
    } else {
    }
    %c0 = arith.constant 0 : index
    %c0_1 = arith.constant 0 : index
    %c0_2 = arith.constant 0 : index
    %c0_3 = arith.constant 0 : index
    %3 = vector.load %arg2[%c0, %c0_1, %c0_2, %c0_3] : memref<1x8x16x4xf32, #tpu.memory_space<vmem>>, vector<1x8x16x4xf32>
    %4 = vector.shape_cast %3 : vector<1x8x16x4xf32> to vector<8x16x4xf32>
    %c0_4 = arith.constant 0 : index
    %c0_5 = arith.constant 0 : index
    %c0_6 = arith.constant 0 : index
    %5 = vector.load %arg3[%c0_4, %c0_5, %c0_6] : memref<1x1x4xf32, #tpu.memory_space<vmem>>, vector<1x1x4xf32>
    %cst = arith.constant dense<0.000000e+00> : vector<4xf32>
    %6 = vector.multi_reduction <add>, %4, %cst [0, 1] : vector<8x16x4xf32> to vector<4xf32>
    %7 = vector.shape_cast %6 : vector<4xf32> to vector<1x1x4xf32>
    %8 = arith.addf %5, %7 : vector<1x1x4xf32>
    %c0_7 = arith.constant 0 : index
    %c0_8 = arith.constant 0 : index
    %c0_9 = arith.constant 0 : index
    %9 = vector.load %arg3[%c0_7, %c0_8, %c0_9] : memref<1x1x4xf32, #tpu.memory_space<vmem>>, vector<1x1x4xf32>
    tpu.vector_store %arg3[%c0_7, %c0_8, %c0_9], %8 {strides = array<i32>} : memref<1x1x4xf32, #tpu.memory_space<vmem>>, vector<1x1x4xf32>,
    %c0_10 = arith.constant 0 : index
    %c0_11 = arith.constant 0 : index
    %c0_12 = arith.constant 0 : index
    %10 = vector.load %arg4[%c0_10, %c0_11, %c0_12] : memref<1x1x4xf32, #tpu.memory_space<vmem>>, vector<1x1x4xf32>
    %11 = arith.mulf %4, %4 : vector<8x16x4xf32>
    %cst_13 = arith.constant dense<0.000000e+00> : vector<4xf32>
    %12 = vector.multi_reduction <add>, %11, %cst_13 [0, 1] : vector<8x16x4xf32> to vector<4xf32>
    %13 = vector.shape_cast %12 : vector<4xf32> to vector<1x1x4xf32>
    %14 = arith.addf %10, %13 : vector<1x1x4xf32>
    %c0_14 = arith.constant 0 : index
    %c0_15 = arith.constant 0 : index
    %c0_16 = arith.constant 0 : index
    %15 = vector.load %arg4[%c0_14, %c0_15, %c0_16] : memref<1x1x4xf32, #tpu.memory_space<vmem>>, vector<1x1x4xf32>
    tpu.vector_store %arg4[%c0_14, %c0_15, %c0_16], %14 {strides = array<i32>} : memref<1x1x4xf32, #tpu.memory_space<vmem>>, vector<1x1x4xf32>,
    return
  }
  func.func @transform_0(%arg0: i32, %arg1: i32) -> (i32, i32, i32, i32) {
    %c0_i32 = arith.constant 0 : i32
    %c0_i32_0 = arith.constant 0 : i32
    %c0_i32_1 = arith.constant 0 : i32
    return %arg0, %arg1, %c0_i32, %c0_i32_0 : i32, i32, i32, i32
  }
  func.func @transform_1(%arg0: i32, %arg1: i32) -> (i32, i32, i32) {
    %c0_i32 = arith.constant 0 : i32
    %c0_i32_0 = arith.constant 0 : i32
    %c0_i32_1 = arith.constant 0 : i32
    return %arg0, %c0_i32, %c0_i32_0 : i32, i32, i32
  }
  func.func @transform_2(%arg0: i32, %arg1: i32) -> (i32, i32, i32) {
    %c0_i32 = arith.constant 0 : i32
    %c0_i32_0 = arith.constant 0 : i32
    %c0_i32_1 = arith.constant 0 : i32
    return %arg0, %c0_i32, %c0_i32_0 : i32, i32, i32
  }
}

module attributes {stable_mosaic.version = 11 : i64} {
  func.func @_final_blend_kernel(%arg0: i32, %arg1: i32, %arg2: memref<1x8x16x4xf32, #tpu.memory_space<vmem>>, %arg3: memref<1x8x16x128xbf16, #tpu.memory_space<vmem>>, %arg4: memref<1x1x16x128xbf16, #tpu.memory_space<vmem>>, %arg5: memref<1x1x16x128xbf16, #tpu.memory_space<vmem>>, %arg6: memref<1x8x16x128xbf16, #tpu.memory_space<vmem>>, %arg7: memref<1x1x16x128xbf16, #tpu.memory_space<vmem>>, %arg8: memref<1x1x16x128xbf16, #tpu.memory_space<vmem>>, %arg9: memref<3x3x256x8xbf16, #tpu.memory_space<vmem>>, %arg10: memref<1x8xf32, #tpu.memory_space<vmem>>, %arg11: memref<1x1x4xf32, #tpu.memory_space<vmem>>, %arg12: memref<1x1x4xf32, #tpu.memory_space<vmem>>, %arg13: memref<1x8x16x4xf32, #tpu.memory_space<vmem>>, %arg14: memref<10x32x256xbf16, #tpu.memory_space<vmem>>) attributes {dimension_semantics = [#tpu.dimension_semantics<parallel>, #tpu.dimension_semantics<parallel>], iteration_bounds = array<i64: 2, 2>, scalar_prefetch = 0 : i64, scratch_operands = 1 : i64, tpu.core_type = #tpu.core_type<tc>, window_params = [{transform_indices = @transform_0, window_bounds = array<i64: 1, 8, 16, 4>}, {transform_indices = @transform_1, window_bounds = array<i64: 1, 8, 16, 128>}, {transform_indices = @transform_2, window_bounds = array<i64: 1, 1, 16, 128>}, {transform_indices = @transform_3, window_bounds = array<i64: 1, 1, 16, 128>}, {transform_indices = @transform_4, window_bounds = array<i64: 1, 8, 16, 128>}, {transform_indices = @transform_5, window_bounds = array<i64: 1, 1, 16, 128>}, {transform_indices = @transform_6, window_bounds = array<i64: 1, 1, 16, 128>}, {pipeline_mode = #tpu.pipeline_mode<synchronous>, transform_indices = @transform_7, window_bounds = array<i64: 3, 3, 256, 8>}, {pipeline_mode = #tpu.pipeline_mode<synchronous>, transform_indices = @transform_8, window_bounds = array<i64: 1, 8>}, {transform_indices = @transform_9, window_bounds = array<i64: 1, 1, 4>}, {transform_indices = @transform_10, window_bounds = array<i64: 1, 1, 4>}, {transform_indices = @transform_11, window_bounds = array<i64: 1, 8, 16, 4>}]} {
    %c0_i32 = arith.constant 0 : i32
    %0 = arith.cmpi sgt, %arg1, %c0_i32 : i32
    %c0 = arith.constant 0 : index
    %c0_0 = arith.constant 0 : index
    %c0_1 = arith.constant 0 : index
    %c0_2 = arith.constant 0 : index
    %1 = vector.load %arg4[%c0, %c0_0, %c0_1, %c0_2] : memref<1x1x16x128xbf16, #tpu.memory_space<vmem>>, vector<1x1x16x128xbf16>
    %2 = vector.shape_cast %1 : vector<1x1x16x128xbf16> to vector<1x16x128xbf16>
    %cst = arith.constant 0.000000e+00 : bf16
    %3 = vector.broadcast %cst : bf16 to vector<1x16x128xbf16>
    %4 = arith.select %0, %2, %3 : vector<1x16x128xbf16>
    %c1_i32 = arith.constant 1 : i32
    %5 = arith.cmpi slt, %arg1, %c1_i32 : i32
    %c0_3 = arith.constant 0 : index
    %c0_4 = arith.constant 0 : index
    %c0_5 = arith.constant 0 : index
    %c0_6 = arith.constant 0 : index
    %6 = vector.load %arg5[%c0_3, %c0_4, %c0_5, %c0_6] : memref<1x1x16x128xbf16, #tpu.memory_space<vmem>>, vector<1x1x16x128xbf16>
    %7 = vector.shape_cast %6 : vector<1x1x16x128xbf16> to vector<1x16x128xbf16>
    %cst_7 = arith.constant 0.000000e+00 : bf16
    %8 = vector.broadcast %cst_7 : bf16 to vector<1x16x128xbf16>
    %9 = arith.select %5, %7, %8 : vector<1x16x128xbf16>
    %c0_8 = arith.constant 0 : index
    %c8 = arith.constant 8 : index
    %c0_9 = arith.constant 0 : index
    %10 = vector.load %arg14[%c0_8, %c8, %c0_9] : memref<10x32x256xbf16, #tpu.memory_space<vmem>>, vector<1x16x128xbf16>
    tpu.vector_store %arg14[%c0_8, %c8, %c0_9], %4 {strides = array<i32>} : memref<10x32x256xbf16, #tpu.memory_space<vmem>>, vector<1x16x128xbf16>,
    %c0_10 = arith.constant 0 : index
    %c0_11 = arith.constant 0 : index
    %c0_12 = arith.constant 0 : index
    %c0_13 = arith.constant 0 : index
    %11 = vector.load %arg3[%c0_10, %c0_11, %c0_12, %c0_13] : memref<1x8x16x128xbf16, #tpu.memory_space<vmem>>, vector<1x8x16x128xbf16>
    %12 = vector.shape_cast %11 : vector<1x8x16x128xbf16> to vector<8x16x128xbf16>
    %c1 = arith.constant 1 : index
    %c8_14 = arith.constant 8 : index
    %c0_15 = arith.constant 0 : index
    %13 = vector.load %arg14[%c1, %c8_14, %c0_15] : memref<10x32x256xbf16, #tpu.memory_space<vmem>>, vector<8x16x128xbf16>
    tpu.vector_store %arg14[%c1, %c8_14, %c0_15], %12 {strides = array<i32>} : memref<10x32x256xbf16, #tpu.memory_space<vmem>>, vector<8x16x128xbf16>,
    %c9 = arith.constant 9 : index
    %c8_16 = arith.constant 8 : index
    %c0_17 = arith.constant 0 : index
    %14 = vector.load %arg14[%c9, %c8_16, %c0_17] : memref<10x32x256xbf16, #tpu.memory_space<vmem>>, vector<1x16x128xbf16>
    tpu.vector_store %arg14[%c9, %c8_16, %c0_17], %9 {strides = array<i32>} : memref<10x32x256xbf16, #tpu.memory_space<vmem>>, vector<1x16x128xbf16>,
    %cst_18 = arith.constant 0.000000e+00 : bf16
    %15 = vector.broadcast %cst_18 : bf16 to vector<10x8x128xbf16>
    %c0_19 = arith.constant 0 : index
    %c0_20 = arith.constant 0 : index
    %c0_21 = arith.constant 0 : index
    %16 = vector.load %arg14[%c0_19, %c0_20, %c0_21] : memref<10x32x256xbf16, #tpu.memory_space<vmem>>, vector<10x8x128xbf16>
    tpu.vector_store %arg14[%c0_19, %c0_20, %c0_21], %15 {strides = array<i32>} : memref<10x32x256xbf16, #tpu.memory_space<vmem>>, vector<10x8x128xbf16>,
    %cst_22 = arith.constant 0.000000e+00 : bf16
    %17 = vector.broadcast %cst_22 : bf16 to vector<10x8x128xbf16>
    %c0_23 = arith.constant 0 : index
    %c24 = arith.constant 24 : index
    %c0_24 = arith.constant 0 : index
    %18 = vector.load %arg14[%c0_23, %c24, %c0_24] : memref<10x32x256xbf16, #tpu.memory_space<vmem>>, vector<10x8x128xbf16>
    tpu.vector_store %arg14[%c0_23, %c24, %c0_24], %17 {strides = array<i32>} : memref<10x32x256xbf16, #tpu.memory_space<vmem>>, vector<10x8x128xbf16>,
    %c0_i32_25 = arith.constant 0 : i32
    %19 = arith.cmpi sgt, %arg1, %c0_i32_25 : i32
    %c0_26 = arith.constant 0 : index
    %c0_27 = arith.constant 0 : index
    %c0_28 = arith.constant 0 : index
    %c0_29 = arith.constant 0 : index
    %20 = vector.load %arg7[%c0_26, %c0_27, %c0_28, %c0_29] : memref<1x1x16x128xbf16, #tpu.memory_space<vmem>>, vector<1x1x16x128xbf16>
    %21 = vector.shape_cast %20 : vector<1x1x16x128xbf16> to vector<1x16x128xbf16>
    %cst_30 = arith.constant 0.000000e+00 : bf16
    %22 = vector.broadcast %cst_30 : bf16 to vector<1x16x128xbf16>
    %23 = arith.select %19, %21, %22 : vector<1x16x128xbf16>
    %c1_i32_31 = arith.constant 1 : i32
    %24 = arith.cmpi slt, %arg1, %c1_i32_31 : i32
    %c0_32 = arith.constant 0 : index
    %c0_33 = arith.constant 0 : index
    %c0_34 = arith.constant 0 : index
    %c0_35 = arith.constant 0 : index
    %25 = vector.load %arg8[%c0_32, %c0_33, %c0_34, %c0_35] : memref<1x1x16x128xbf16, #tpu.memory_space<vmem>>, vector<1x1x16x128xbf16>
    %26 = vector.shape_cast %25 : vector<1x1x16x128xbf16> to vector<1x16x128xbf16>
    %cst_36 = arith.constant 0.000000e+00 : bf16
    %27 = vector.broadcast %cst_36 : bf16 to vector<1x16x128xbf16>
    %28 = arith.select %24, %26, %27 : vector<1x16x128xbf16>
    %c0_37 = arith.constant 0 : index
    %c8_38 = arith.constant 8 : index
    %c128 = arith.constant 128 : index
    %29 = vector.load %arg14[%c0_37, %c8_38, %c128] : memref<10x32x256xbf16, #tpu.memory_space<vmem>>, vector<1x16x128xbf16>
    tpu.vector_store %arg14[%c0_37, %c8_38, %c128], %23 {strides = array<i32>} : memref<10x32x256xbf16, #tpu.memory_space<vmem>>, vector<1x16x128xbf16>,
    %c0_39 = arith.constant 0 : index
    %c0_40 = arith.constant 0 : index
    %c0_41 = arith.constant 0 : index
    %c0_42 = arith.constant 0 : index
    %30 = vector.load %arg6[%c0_39, %c0_40, %c0_41, %c0_42] : memref<1x8x16x128xbf16, #tpu.memory_space<vmem>>, vector<1x8x16x128xbf16>
    %31 = vector.shape_cast %30 : vector<1x8x16x128xbf16> to vector<8x16x128xbf16>
    %c1_43 = arith.constant 1 : index
    %c8_44 = arith.constant 8 : index
    %c128_45 = arith.constant 128 : index
    %32 = vector.load %arg14[%c1_43, %c8_44, %c128_45] : memref<10x32x256xbf16, #tpu.memory_space<vmem>>, vector<8x16x128xbf16>
    tpu.vector_store %arg14[%c1_43, %c8_44, %c128_45], %31 {strides = array<i32>} : memref<10x32x256xbf16, #tpu.memory_space<vmem>>, vector<8x16x128xbf16>,
    %c9_46 = arith.constant 9 : index
    %c8_47 = arith.constant 8 : index
    %c128_48 = arith.constant 128 : index
    %33 = vector.load %arg14[%c9_46, %c8_47, %c128_48] : memref<10x32x256xbf16, #tpu.memory_space<vmem>>, vector<1x16x128xbf16>
    tpu.vector_store %arg14[%c9_46, %c8_47, %c128_48], %28 {strides = array<i32>} : memref<10x32x256xbf16, #tpu.memory_space<vmem>>, vector<1x16x128xbf16>,
    %cst_49 = arith.constant 0.000000e+00 : bf16
    %34 = vector.broadcast %cst_49 : bf16 to vector<10x8x128xbf16>
    %c0_50 = arith.constant 0 : index
    %c0_51 = arith.constant 0 : index
    %c128_52 = arith.constant 128 : index
    %35 = vector.load %arg14[%c0_50, %c0_51, %c128_52] : memref<10x32x256xbf16, #tpu.memory_space<vmem>>, vector<10x8x128xbf16>
    tpu.vector_store %arg14[%c0_50, %c0_51, %c128_52], %34 {strides = array<i32>} : memref<10x32x256xbf16, #tpu.memory_space<vmem>>, vector<10x8x128xbf16>,
    %cst_53 = arith.constant 0.000000e+00 : bf16
    %36 = vector.broadcast %cst_53 : bf16 to vector<10x8x128xbf16>
    %c0_54 = arith.constant 0 : index
    %c24_55 = arith.constant 24 : index
    %c128_56 = arith.constant 128 : index
    %37 = vector.load %arg14[%c0_54, %c24_55, %c128_56] : memref<10x32x256xbf16, #tpu.memory_space<vmem>>, vector<10x8x128xbf16>
    tpu.vector_store %arg14[%c0_54, %c24_55, %c128_56], %36 {strides = array<i32>} : memref<10x32x256xbf16, #tpu.memory_space<vmem>>, vector<10x8x128xbf16>,
    %c0_57 = arith.constant 0 : index
    %c0_58 = arith.constant 0 : index
    %38 = vector.load %arg10[%c0_57, %c0_58] : memref<1x8xf32, #tpu.memory_space<vmem>>, vector<1x8xf32>
    %39 = vector.shape_cast %38 : vector<1x8xf32> to vector<1x8xf32>
    %40 = vector.broadcast %39 : vector<1x8xf32> to vector<128x8xf32>
    %c0_59 = arith.constant 0 : index
    %c7 = arith.constant 7 : index
    %c0_60 = arith.constant 0 : index
    %41 = vector.load %arg14[%c0_59, %c7, %c0_60] : memref<10x32x256xbf16, #tpu.memory_space<vmem>>, vector<10x16x256xbf16>
    %42 = vector.extract_strided_slice %41 {offsets = [0, 0, 0], sizes = [8, 16, 256], strides = [1, 1, 1]} : vector<10x16x256xbf16> to vector<8x16x256xbf16>
    %43 = vector.shape_cast %42 : vector<8x16x256xbf16> to vector<128x256xbf16>
    %c0_61 = arith.constant 0 : index
    %c0_62 = arith.constant 0 : index
    %c0_63 = arith.constant 0 : index
    %c0_64 = arith.constant 0 : index
    %44 = vector.load %arg9[%c0_61, %c0_62, %c0_63, %c0_64] : memref<3x3x256x8xbf16, #tpu.memory_space<vmem>>, vector<1x1x256x8xbf16>
    %45 = vector.shape_cast %44 : vector<1x1x256x8xbf16> to vector<256x8xbf16>
    %cst_65 = arith.constant dense<0.000000e+00> : vector<128x8xf32>
    %46 = tpu.matmul %43, %45, %cst_65 {dimension_numbers = #tpu.dot_dimension_numbers<[1], [0], [0], [1], [0, 0, 1, 1], [], []>} : vector<128x256xbf16>, vector<256x8xbf16>, vector<128x8xf32> -> vector<128x8xf32>
    %47 = arith.addf %40, %46 : vector<128x8xf32>
    %48 = vector.extract_strided_slice %41 {offsets = [1, 0, 0], sizes = [8, 16, 256], strides = [1, 1, 1]} : vector<10x16x256xbf16> to vector<8x16x256xbf16>
    %49 = vector.shape_cast %48 : vector<8x16x256xbf16> to vector<128x256xbf16>
    %c1_66 = arith.constant 1 : index
    %c0_67 = arith.constant 0 : index
    %c0_68 = arith.constant 0 : index
    %c0_69 = arith.constant 0 : index
    %50 = vector.load %arg9[%c1_66, %c0_67, %c0_68, %c0_69] : memref<3x3x256x8xbf16, #tpu.memory_space<vmem>>, vector<1x1x256x8xbf16>
    %51 = vector.shape_cast %50 : vector<1x1x256x8xbf16> to vector<256x8xbf16>
    %cst_70 = arith.constant dense<0.000000e+00> : vector<128x8xf32>
    %52 = tpu.matmul %49, %51, %cst_70 {dimension_numbers = #tpu.dot_dimension_numbers<[1], [0], [0], [1], [0, 0, 1, 1], [], []>} : vector<128x256xbf16>, vector<256x8xbf16>, vector<128x8xf32> -> vector<128x8xf32>
    %53 = arith.addf %47, %52 : vector<128x8xf32>
    %54 = vector.extract_strided_slice %41 {offsets = [2, 0, 0], sizes = [8, 16, 256], strides = [1, 1, 1]} : vector<10x16x256xbf16> to vector<8x16x256xbf16>
    %55 = vector.shape_cast %54 : vector<8x16x256xbf16> to vector<128x256xbf16>
    %c2 = arith.constant 2 : index
    %c0_71 = arith.constant 0 : index
    %c0_72 = arith.constant 0 : index
    %c0_73 = arith.constant 0 : index
    %56 = vector.load %arg9[%c2, %c0_71, %c0_72, %c0_73] : memref<3x3x256x8xbf16, #tpu.memory_space<vmem>>, vector<1x1x256x8xbf16>
    %57 = vector.shape_cast %56 : vector<1x1x256x8xbf16> to vector<256x8xbf16>
    %cst_74 = arith.constant dense<0.000000e+00> : vector<128x8xf32>
    %58 = tpu.matmul %55, %57, %cst_74 {dimension_numbers = #tpu.dot_dimension_numbers<[1], [0], [0], [1], [0, 0, 1, 1], [], []>} : vector<128x256xbf16>, vector<256x8xbf16>, vector<128x8xf32> -> vector<128x8xf32>
    %59 = arith.addf %53, %58 : vector<128x8xf32>
    %c0_75 = arith.constant 0 : index
    %c8_76 = arith.constant 8 : index
    %c0_77 = arith.constant 0 : index
    %60 = vector.load %arg14[%c0_75, %c8_76, %c0_77] : memref<10x32x256xbf16, #tpu.memory_space<vmem>>, vector<10x16x256xbf16>
    %61 = vector.extract_strided_slice %60 {offsets = [0, 0, 0], sizes = [8, 16, 256], strides = [1, 1, 1]} : vector<10x16x256xbf16> to vector<8x16x256xbf16>
    %62 = vector.shape_cast %61 : vector<8x16x256xbf16> to vector<128x256xbf16>
    %c0_78 = arith.constant 0 : index
    %c1_79 = arith.constant 1 : index
    %c0_80 = arith.constant 0 : index
    %c0_81 = arith.constant 0 : index
    %63 = vector.load %arg9[%c0_78, %c1_79, %c0_80, %c0_81] : memref<3x3x256x8xbf16, #tpu.memory_space<vmem>>, vector<1x1x256x8xbf16>
    %64 = vector.shape_cast %63 : vector<1x1x256x8xbf16> to vector<256x8xbf16>
    %cst_82 = arith.constant dense<0.000000e+00> : vector<128x8xf32>
    %65 = tpu.matmul %62, %64, %cst_82 {dimension_numbers = #tpu.dot_dimension_numbers<[1], [0], [0], [1], [0, 0, 1, 1], [], []>} : vector<128x256xbf16>, vector<256x8xbf16>, vector<128x8xf32> -> vector<128x8xf32>
    %66 = arith.addf %59, %65 : vector<128x8xf32>
    %67 = vector.extract_strided_slice %60 {offsets = [1, 0, 0], sizes = [8, 16, 256], strides = [1, 1, 1]} : vector<10x16x256xbf16> to vector<8x16x256xbf16>
    %68 = vector.shape_cast %67 : vector<8x16x256xbf16> to vector<128x256xbf16>
    %c1_83 = arith.constant 1 : index
    %c1_84 = arith.constant 1 : index
    %c0_85 = arith.constant 0 : index
    %c0_86 = arith.constant 0 : index
    %69 = vector.load %arg9[%c1_83, %c1_84, %c0_85, %c0_86] : memref<3x3x256x8xbf16, #tpu.memory_space<vmem>>, vector<1x1x256x8xbf16>
    %70 = vector.shape_cast %69 : vector<1x1x256x8xbf16> to vector<256x8xbf16>
    %cst_87 = arith.constant dense<0.000000e+00> : vector<128x8xf32>
    %71 = tpu.matmul %68, %70, %cst_87 {dimension_numbers = #tpu.dot_dimension_numbers<[1], [0], [0], [1], [0, 0, 1, 1], [], []>} : vector<128x256xbf16>, vector<256x8xbf16>, vector<128x8xf32> -> vector<128x8xf32>
    %72 = arith.addf %66, %71 : vector<128x8xf32>
    %73 = vector.extract_strided_slice %60 {offsets = [2, 0, 0], sizes = [8, 16, 256], strides = [1, 1, 1]} : vector<10x16x256xbf16> to vector<8x16x256xbf16>
    %74 = vector.shape_cast %73 : vector<8x16x256xbf16> to vector<128x256xbf16>
    %c2_88 = arith.constant 2 : index
    %c1_89 = arith.constant 1 : index
    %c0_90 = arith.constant 0 : index
    %c0_91 = arith.constant 0 : index
    %75 = vector.load %arg9[%c2_88, %c1_89, %c0_90, %c0_91] : memref<3x3x256x8xbf16, #tpu.memory_space<vmem>>, vector<1x1x256x8xbf16>
    %76 = vector.shape_cast %75 : vector<1x1x256x8xbf16> to vector<256x8xbf16>
    %cst_92 = arith.constant dense<0.000000e+00> : vector<128x8xf32>
    %77 = tpu.matmul %74, %76, %cst_92 {dimension_numbers = #tpu.dot_dimension_numbers<[1], [0], [0], [1], [0, 0, 1, 1], [], []>} : vector<128x256xbf16>, vector<256x8xbf16>, vector<128x8xf32> -> vector<128x8xf32>
    %78 = arith.addf %72, %77 : vector<128x8xf32>
    %c0_93 = arith.constant 0 : index
    %c9_94 = arith.constant 9 : index
    %c0_95 = arith.constant 0 : index
    %79 = vector.load %arg14[%c0_93, %c9_94, %c0_95] : memref<10x32x256xbf16, #tpu.memory_space<vmem>>, vector<10x16x256xbf16>
    %80 = vector.extract_strided_slice %79 {offsets = [0, 0, 0], sizes = [8, 16, 256], strides = [1, 1, 1]} : vector<10x16x256xbf16> to vector<8x16x256xbf16>
    %81 = vector.shape_cast %80 : vector<8x16x256xbf16> to vector<128x256xbf16>
    %c0_96 = arith.constant 0 : index
    %c2_97 = arith.constant 2 : index
    %c0_98 = arith.constant 0 : index
    %c0_99 = arith.constant 0 : index
    %82 = vector.load %arg9[%c0_96, %c2_97, %c0_98, %c0_99] : memref<3x3x256x8xbf16, #tpu.memory_space<vmem>>, vector<1x1x256x8xbf16>
    %83 = vector.shape_cast %82 : vector<1x1x256x8xbf16> to vector<256x8xbf16>
    %cst_100 = arith.constant dense<0.000000e+00> : vector<128x8xf32>
    %84 = tpu.matmul %81, %83, %cst_100 {dimension_numbers = #tpu.dot_dimension_numbers<[1], [0], [0], [1], [0, 0, 1, 1], [], []>} : vector<128x256xbf16>, vector<256x8xbf16>, vector<128x8xf32> -> vector<128x8xf32>
    %85 = arith.addf %78, %84 : vector<128x8xf32>
    %86 = vector.extract_strided_slice %79 {offsets = [1, 0, 0], sizes = [8, 16, 256], strides = [1, 1, 1]} : vector<10x16x256xbf16> to vector<8x16x256xbf16>
    %87 = vector.shape_cast %86 : vector<8x16x256xbf16> to vector<128x256xbf16>
    %c1_101 = arith.constant 1 : index
    %c2_102 = arith.constant 2 : index
    %c0_103 = arith.constant 0 : index
    %c0_104 = arith.constant 0 : index
    %88 = vector.load %arg9[%c1_101, %c2_102, %c0_103, %c0_104] : memref<3x3x256x8xbf16, #tpu.memory_space<vmem>>, vector<1x1x256x8xbf16>
    %89 = vector.shape_cast %88 : vector<1x1x256x8xbf16> to vector<256x8xbf16>
    %cst_105 = arith.constant dense<0.000000e+00> : vector<128x8xf32>
    %90 = tpu.matmul %87, %89, %cst_105 {dimension_numbers = #tpu.dot_dimension_numbers<[1], [0], [0], [1], [0, 0, 1, 1], [], []>} : vector<128x256xbf16>, vector<256x8xbf16>, vector<128x8xf32> -> vector<128x8xf32>
    %91 = arith.addf %85, %90 : vector<128x8xf32>
    %92 = vector.extract_strided_slice %79 {offsets = [2, 0, 0], sizes = [8, 16, 256], strides = [1, 1, 1]} : vector<10x16x256xbf16> to vector<8x16x256xbf16>
    %93 = vector.shape_cast %92 : vector<8x16x256xbf16> to vector<128x256xbf16>
    %c2_106 = arith.constant 2 : index
    %c2_107 = arith.constant 2 : index
    %c0_108 = arith.constant 0 : index
    %c0_109 = arith.constant 0 : index
    %94 = vector.load %arg9[%c2_106, %c2_107, %c0_108, %c0_109] : memref<3x3x256x8xbf16, #tpu.memory_space<vmem>>, vector<1x1x256x8xbf16>
    %95 = vector.shape_cast %94 : vector<1x1x256x8xbf16> to vector<256x8xbf16>
    %cst_110 = arith.constant dense<0.000000e+00> : vector<128x8xf32>
    %96 = tpu.matmul %93, %95, %cst_110 {dimension_numbers = #tpu.dot_dimension_numbers<[1], [0], [0], [1], [0, 0, 1, 1], [], []>} : vector<128x256xbf16>, vector<256x8xbf16>, vector<128x8xf32> -> vector<128x8xf32>
    %97 = arith.addf %91, %96 : vector<128x8xf32>
    %98 = vector.extract_strided_slice %97 {offsets = [0, 0], sizes = [128, 4], strides = [1, 1]} : vector<128x8xf32> to vector<128x4xf32>
    %99 = vector.shape_cast %98 : vector<128x4xf32> to vector<8x16x4xf32>
    %100 = vector.extract_strided_slice %97 {offsets = [0, 4], sizes = [128, 4], strides = [1, 1]} : vector<128x8xf32> to vector<128x4xf32>
    %101 = vector.shape_cast %100 : vector<128x4xf32> to vector<8x16x4xf32>
    %c0_111 = arith.constant 0 : index
    %c0_112 = arith.constant 0 : index
    %c0_113 = arith.constant 0 : index
    %c0_114 = arith.constant 0 : index
    %102 = vector.load %arg2[%c0_111, %c0_112, %c0_113, %c0_114] : memref<1x8x16x4xf32, #tpu.memory_space<vmem>>, vector<1x8x16x4xf32>
    %103 = vector.shape_cast %102 : vector<1x8x16x4xf32> to vector<8x16x4xf32>
    %c0_115 = arith.constant 0 : index
    %c0_116 = arith.constant 0 : index
    %c0_117 = arith.constant 0 : index
    %104 = vector.load %arg11[%c0_115, %c0_116, %c0_117] : memref<1x1x4xf32, #tpu.memory_space<vmem>>, vector<1x1x4xf32>
    %105 = vector.broadcast %104 : vector<1x1x4xf32> to vector<8x16x4xf32>
    %106 = arith.subf %103, %105 : vector<8x16x4xf32>
    %c0_118 = arith.constant 0 : index
    %c0_119 = arith.constant 0 : index
    %c0_120 = arith.constant 0 : index
    %107 = vector.load %arg12[%c0_118, %c0_119, %c0_120] : memref<1x1x4xf32, #tpu.memory_space<vmem>>, vector<1x1x4xf32>
    %108 = vector.broadcast %107 : vector<1x1x4xf32> to vector<8x16x4xf32>
    %109 = arith.mulf %106, %108 : vector<8x16x4xf32>
    %cst_121 = arith.constant 1.000000e+00 : f32
    %110 = vector.broadcast %cst_121 : f32 to vector<8x16x4xf32>
    %111 = arith.addf %110, %99 : vector<8x16x4xf32>
    %112 = arith.mulf %109, %111 : vector<8x16x4xf32>
    %113 = arith.addf %112, %101 : vector<8x16x4xf32>
    %c0_122 = arith.constant 0 : index
    %c0_123 = arith.constant 0 : index
    %c0_124 = arith.constant 0 : index
    %c0_125 = arith.constant 0 : index
    %114 = vector.load %arg13[%c0_122, %c0_123, %c0_124, %c0_125] : memref<1x8x16x4xf32, #tpu.memory_space<vmem>>, vector<1x8x16x4xf32>
    %115 = vector.shape_cast %114 : vector<1x8x16x4xf32> to vector<8x16x4xf32>
    %116 = vector.shape_cast %113 : vector<8x16x4xf32> to vector<1x8x16x4xf32>
    tpu.vector_store %arg13[%c0_122, %c0_123, %c0_124, %c0_125], %116 {strides = array<i32>} : memref<1x8x16x4xf32, #tpu.memory_space<vmem>>, vector<1x8x16x4xf32>,
    return
  }
  func.func @transform_0(%arg0: i32, %arg1: i32) -> (i32, i32, i32, i32) {
    %c0_i32 = arith.constant 0 : i32
    %c0_i32_0 = arith.constant 0 : i32
    %c0_i32_1 = arith.constant 0 : i32
    return %arg0, %arg1, %c0_i32, %c0_i32_0 : i32, i32, i32, i32
  }
  func.func @transform_1(%arg0: i32, %arg1: i32) -> (i32, i32, i32, i32) {
    %c0_i32 = arith.constant 0 : i32
    %c0_i32_0 = arith.constant 0 : i32
    %c0_i32_1 = arith.constant 0 : i32
    return %arg0, %arg1, %c0_i32, %c0_i32_0 : i32, i32, i32, i32
  }
  func.func @transform_2(%arg0: i32, %arg1: i32) -> (i32, i32, i32, i32) {
    %c8_i32 = arith.constant 8 : i32
    %0 = arith.muli %arg1, %c8_i32 : i32
    %c1_i32 = arith.constant 1 : i32
    %1 = arith.subi %0, %c1_i32 : i32
    %c0_i32 = arith.constant 0 : i32
    %2 = arith.maxsi %1, %c0_i32 : i32
    %c0_i32_0 = arith.constant 0 : i32
    %c0_i32_1 = arith.constant 0 : i32
    %c0_i32_2 = arith.constant 0 : i32
    return %arg0, %2, %c0_i32_0, %c0_i32_1 : i32, i32, i32, i32
  }
  func.func @transform_3(%arg0: i32, %arg1: i32) -> (i32, i32, i32, i32) {
    %c1_i32 = arith.constant 1 : i32
    %0 = arith.addi %arg1, %c1_i32 : i32
    %c8_i32 = arith.constant 8 : i32
    %1 = arith.muli %0, %c8_i32 : i32
    %c15_i32 = arith.constant 15 : i32
    %2 = arith.minsi %1, %c15_i32 : i32
    %c0_i32 = arith.constant 0 : i32
    %c0_i32_0 = arith.constant 0 : i32
    %c0_i32_1 = arith.constant 0 : i32
    return %arg0, %2, %c0_i32, %c0_i32_0 : i32, i32, i32, i32
  }
  func.func @transform_4(%arg0: i32, %arg1: i32) -> (i32, i32, i32, i32) {
    %c0_i32 = arith.constant 0 : i32
    %c2_i32 = arith.constant 2 : i32
    %c0_i32_0 = arith.constant 0 : i32
    return %arg0, %arg1, %c0_i32, %c2_i32 : i32, i32, i32, i32
  }
  func.func @transform_5(%arg0: i32, %arg1: i32) -> (i32, i32, i32, i32) {
    %c8_i32 = arith.constant 8 : i32
    %0 = arith.muli %arg1, %c8_i32 : i32
    %c1_i32 = arith.constant 1 : i32
    %1 = arith.subi %0, %c1_i32 : i32
    %c0_i32 = arith.constant 0 : i32
    %2 = arith.maxsi %1, %c0_i32 : i32
    %c0_i32_0 = arith.constant 0 : i32
    %c2_i32 = arith.constant 2 : i32
    %c0_i32_1 = arith.constant 0 : i32
    return %arg0, %2, %c0_i32_0, %c2_i32 : i32, i32, i32, i32
  }
  func.func @transform_6(%arg0: i32, %arg1: i32) -> (i32, i32, i32, i32) {
    %c1_i32 = arith.constant 1 : i32
    %0 = arith.addi %arg1, %c1_i32 : i32
    %c8_i32 = arith.constant 8 : i32
    %1 = arith.muli %0, %c8_i32 : i32
    %c15_i32 = arith.constant 15 : i32
    %2 = arith.minsi %1, %c15_i32 : i32
    %c0_i32 = arith.constant 0 : i32
    %c2_i32 = arith.constant 2 : i32
    %c0_i32_0 = arith.constant 0 : i32
    return %arg0, %2, %c0_i32, %c2_i32 : i32, i32, i32, i32
  }
  func.func @transform_7(%arg0: i32, %arg1: i32) -> (i32, i32, i32, i32) {
    %c0_i32 = arith.constant 0 : i32
    %c0_i32_0 = arith.constant 0 : i32
    %c0_i32_1 = arith.constant 0 : i32
    %c0_i32_2 = arith.constant 0 : i32
    %c0_i32_3 = arith.constant 0 : i32
    return %c0_i32, %c0_i32_0, %c0_i32_1, %c0_i32_2 : i32, i32, i32, i32
  }
  func.func @transform_8(%arg0: i32, %arg1: i32) -> (i32, i32) {
    %c0_i32 = arith.constant 0 : i32
    %c0_i32_0 = arith.constant 0 : i32
    %c0_i32_1 = arith.constant 0 : i32
    return %c0_i32, %c0_i32_0 : i32, i32
  }
  func.func @transform_9(%arg0: i32, %arg1: i32) -> (i32, i32, i32) {
    %c0_i32 = arith.constant 0 : i32
    %c0_i32_0 = arith.constant 0 : i32
    %c0_i32_1 = arith.constant 0 : i32
    return %arg0, %c0_i32, %c0_i32_0 : i32, i32, i32
  }
  func.func @transform_10(%arg0: i32, %arg1: i32) -> (i32, i32, i32) {
    %c0_i32 = arith.constant 0 : i32
    %c0_i32_0 = arith.constant 0 : i32
    %c0_i32_1 = arith.constant 0 : i32
    return %arg0, %c0_i32, %c0_i32_0 : i32, i32, i32
  }
  func.func @transform_11(%arg0: i32, %arg1: i32) -> (i32, i32, i32, i32) {
    %c0_i32 = arith.constant 0 : i32
    %c0_i32_0 = arith.constant 0 : i32
    %c0_i32_1 = arith.constant 0 : i32
    return %arg0, %arg1, %c0_i32, %c0_i32_0 : i32, i32, i32, i32
  }
}

</mosaic_0001>

<bundles_post_ra>
// kernel: sin_spade_forward_pallas.8
= control target key start
LH: loop header
LB: loop body
LE: loop exit
PB: predicated region body
PF: predicated region fallthrough
CT: control target
= control target key end

     0   :  { %s1197_s12 = smov 0   ;;  %s1199_s13 = smov 0   ;;  %s1418_s0 = inlined_call_operand.vmem [shape: bf16[2,16,16,36], index: 0, kind: input, shape index: {}]   ;;  %s1419_s1 = inlined_call_operand.vmem [shape: bf16[36,384], index: 1, kind: input, shape index: {}]   ;;  %s1420_s2 = inlined_call_operand.vmem [shape: f32[1,384], index: 2, kind: input, shape index: {}]   ;;  %s1421_s3 = inlined_call_operand.vmem [shape: bf16[2,16,16,384], index: 3, kind: output, shape index: {}]  }
   0x1   :  { %s1201_s14 = smov 0   ;;  %s1203_s15 = smov 0  }
   0x2   :  { %s1205_s16 = smov 0  }
   0x3 LB: > { %s22_s17 = sadd.s32 1, %s1166_s14  ;;  %s25_s18 = sadd.s32 1, %s1170_s15  ;;  %s1174_s16 = sphi %s1205_s16, %s13_s16   ;;  %s1170_s15 = sphi %s1203_s15, %s1425_s15   ;;  %s1166_s14 = sphi %s1201_s14, %s1424_s14   ;;  %s1162_s13 = sphi %s1199_s13, %s1423_s13   ;;  %s1158_s12 = sphi %s1197_s12, %s1422_s12  }
   0x4   : > { %p23_p0 = scmp.ge.s32.totalorder %s22_s17, 2  ;;  %p927_p1 = scmp.ge.s32.totalorder %s1174_s16, 1 }
   0x5   : > { %p159_p2 = scmp.lt.s32.totalorder %s1174_s16, 5 }
   0x6   : > { %s1427_s17 = smov (%p23_p0, %s22_s17), 0  ;;  %s1429_s18 = smov (!%p23_p0, %s25_s18), %s1170_s15 }
   0x7   : > { %p160_p3 = pnand %p927_p1, %p159_p2  ;;  %p27_p4 = scmp.ge.s32.totalorder %s1429_s18, 2 }
   0x8   : > { %v1117_v0 = vld [vmem:[%s1419_s1 + $0x4] ss:$12 sps:$4 sm:$0xff] (!%p160_p3)   ;;  %v1119_v1 = vld [vmem:[%s1419_s1] ss:$12 sps:$4 sm:$0xff] (!%p160_p3)   ;;  %v1176_v2 = vmov (!%p160_p3), 0   ;;  %s928_s23 = sshll.u32 (!%p160_p3), %s1158_s12, 3  ;;  %v244_v21 = vlaneseq (!%p160_p3) }
   0x9   : > { %s1431_s18 = smov (%p27_p4, %s1429_s18), 0  ;;  %163 = sbr.rel (%p160_p3) target bundleno = 285 (0x11d), region = 32 }
   0xa   : > { %406 = vmatprep.mubr.bf16.mxu0 (!%p160_p3), %v1176_v2  ;;  %466 = vmatprep.mubr.bf16.mxu1 (!%p160_p3), %v1176_v2  ;;  %p194_p5 = scmp.lt.s32.totalorder (!%p160_p3), %s1162_s13, 1  ;;  %v1120_v3 = vld [vmem:[%s1419_s1 + $0x1c] ss:$12 sps:$4 sm:$0xff] (!%p160_p3)   ;;  %v1122_v4 = vld [vmem:[%s1419_s1 + $0x18] ss:$12 sps:$4 sm:$0xff] (!%p160_p3)   ;;  %p196_p6 = scmp.lt.s32.totalorder (!%p160_p3), %s928_s23, 15 }
   0xb   : > { %374 = vmatprep.subr.bf16.mxu0 (!%p160_p3), %v1117_v0  ;;  %1067 = vmatprep.subr.bf16.mxu1 (!%p160_p3), %v1117_v0  ;;  %v240_v5 = vld [vmem:[%s1419_s1 + $0x30] sm:$0x33] (!%p160_p3)  ;;  %vm364_vm0 = vcmask (!%p160_p3), 1041408   ;;  %vm339_vm1 = vcmask (!%p160_p3), 293888   ;;  %v1128_v10 = vld [vmem:[%s1419_s1 + $0x20] ss:$12 sps:$4 sm:$0xff] (!%p160_p3)  }
   0xc   : > { %375 = vmatpush1.bf16.msra.mxu0 (!%p160_p3), %v1119_v1  ;;  %1070 = vmatpush1.bf16.msra.mxu1 (!%p160_p3), %v1119_v1  ;;  %v949_v6 = vcombine.high (!%p160_p3), %v240_v5, %v240_v5  ;;  %v948_v7 = vcombine.low (!%p160_p3), %v240_v5, %v240_v5  ;;  %v1127_v9 = vld [vmem:[%s1419_s1 + $0x8] ss:$12 sps:$4 sm:$0xff] (!%p160_p3)   ;;  %v1131_v13 = vld [vmem:[%s1419_s1 + $0x38] ss:$0 sps:$4 sm:$0x33] (!%p160_p3)   ;;  %v1298_v22 = vshrl.u32 (!%p160_p3), %v244_v21, 7 }
   0xd   : > { %376 = vmatprep.subr.bf16.mxu0 (!%p160_p3), %v1120_v3  ;;  %1068 = vmatprep.subr.bf16.mxu1 (!%p160_p3), %v1120_v3  ;;  %v372_v16 = vsel (!%p160_p3), %vm364_vm0, %v1131_v13, 0  ;;  %v1304_v24 = vld [vmem:[%s1420_s2] sm:$0x7] (!%p160_p3) }
   0xe   : > { %v366_v8 = vsel (!%p160_p3), %vm364_vm0, %v948_v7, 0  ;;  %v246_v23 = vsub.s32 (!%p160_p3), 0, %v1298_v22  ;;  %v250_v25 = vsub.s32 (!%p160_p3), 1, %v1298_v22  ;;  %v254_v0 = vsub.s32 (!%p160_p3), 2, %v1298_v22 }
  0x10   : > { %s1433_s13 = smov (!%p194_p5, %s1162_s13), 1  ;;  %s1435_s23 = smov (!%p196_p6, %s928_s23), 15  ;;  %377 = vmatpush1.bf16.msra.mxu0 %v1122_v4  ;;  %1071 = vmatpush1.bf16.msra.mxu1 %v1122_v4  ;;  %v1308_v26 = vrot.slane %v1304_v24, %v246_v23  ;;  %v1311_v27 = vrot.slane %v1304_v24, %v250_v25 }
  0x11   : > { %s930_s30 = sshll.u32 %s1433_s13, 5  ;;  %s1075_s4 = smul.u32 96, %s1433_s13  ;;  %951 = vmatprep.subr.msk.bf16.mxu0 %vm364_vm0, %v949_v6  ;;  %1069 = vmatprep.subr.msk.bf16.mxu1 %vm364_vm0, %v949_v6 }
  0x12   : > { %s929_s5 = sshll.u32 %s1435_s23, 1  ;;  %s1074_s6 = smul.u32 6, %s1435_s23 }
  0x13   : > { %s200_s9 = sadd.s32 %s930_s30, %s929_s5 }
  0x14   : > { %s931_s10 = sshll.u32 %s200_s9, 2  ;;  %s1253_s11 = sadd.s32 %s1075_s4, %s1074_s6  ;;  %379 = vmatpush1.bf16.msra.mxu0 %v366_v8  ;;  %1072 = vmatpush1.bf16.msra.mxu1 %v366_v8 }
  0x15   : > { %s1258_s19 = scalar_lea.vmem %s1418_s0, %s931_s10  ;;  %1045 = vmatprep.subr.bf16.mxu1 %v1127_v9  ;;  %s933_s26 = sshll.u32 %s1253_s11, 2 }
  0x16   : > { %v1125_v11 = vld [vmem:[%s1258_s19] sm:$0xff]   ;;  %v1126_v12 = vld [vmem:[%s1258_s19 + $0x30] sm:$0xff]   ;;  %v1129_v14 = vld [vmem:[%s1258_s19 + $0x8] sm:$0xff]   ;;  %s1324_s29 = scalar_lea.vmem %s1421_s3, %s933_s26 }
  0x17   : > { %952 = vmatmul.mubr.msk.bf16.vlgmr.msra.gmra.mrb[0].mxu0 %vm339_vm1, %v1125_v11  ;;  %958 = vmatmul.mubr.msk.bf16.vlgmr.msra.gmra.mrb[0].mxu1 %vm339_vm1, %v1126_v12  ;;  %v1130_v15 = vld [vmem:[%s1258_s19 + $0x38] sm:$0xff]   ;;  %v1132_v17 = vld [vmem:[%s1258_s19 + $0x10] sm:$0xff]   ;;  %v1134_v19 = vld [vmem:[%s1258_s19 + $0x20] sm:$0xff]  }
  0x18   : > { %416 = vmatprep.mubr.bf16.mxu0 %v1176_v2  ;;  %1046 = vmatpush3.bf16.msra.mxu1 %v1127_v9  ;;  %v1133_v18 = vld [vmem:[%s1258_s19 + $0x18] sm:$0xff]   ;;  %v1135_v20 = vld [vmem:[%s1258_s19 + $0x28] sm:$0xff]  }
  0x19   : > { %476 = vmatprep.mubr.bf16.mxu1 %v1176_v2  ;;  %1047 = vmatprep.subr.bf16.mxu1 %v1128_v10 }
  0x1c   : > { %1048 = vmatpush3.bf16.msra.mxu1 %v1128_v10 }
  0x1d   : > { %1073 = vmatprep.subr.msk.bf16.mxu1 %vm364_vm0, %v1131_v13 }
  0x1f   : > { %953 = vmatmul.mubr.msk.bf16.gmra.mrb[4].mxu0 %vm339_vm1, %v1129_v14  ;;  %959 = vmatmul.mubr.msk.bf16.gmra.mrb[4].mxu1 %vm339_vm1, %v1130_v15 }
  0x20   : > { %426 = vmatprep.mubr.bf16.mxu0 %v1176_v2  ;;  %1050 = vmatpush3.bf16.msra.mxu1 %v372_v16 }
  0x21   : > { %1051 = vmatprep.mubr.msk.bf16.mxu1 %vm339_vm1, %v1125_v11 }
  0x27   : > { %954 = vmatmul.mubr.msk.bf16.gmra.mrb[8].mxu0 %vm339_vm1, %v1132_v17  ;;  %1052 = vmatmul.mubr.msk.bf16.vlgmr.msra.gmra.mrb[8].mxu1 %vm339_vm1, %v1129_v14 }
  0x28   : > { %436 = vmatprep.mubr.bf16.mxu0 %v1176_v2  ;;  %1055 = vmatprep.mubr.msk.bf16.mxu1 %vm339_vm1, %v1132_v17  ;;  %v1341_v17 = vrot.slane %v1304_v24, %v254_v0 }
  0x2f   : > { %955 = vmatmul.mubr.msk.bf16.gmra.mrb[12].mxu0 %vm339_vm1, %v1133_v18  ;;  %1056 = vmatmul.mubr.msk.bf16.gmra.mrb[12].mxu1 %vm339_vm1, %v1133_v18 }
  0x30   : > { %446 = vmatprep.mubr.bf16.mxu0 %v1176_v2  ;;  %1059 = vmatprep.mubr.msk.bf16.mxu1 %vm339_vm1, %v1134_v19 }
  0x37   : > { %956 = vmatmul.mubr.msk.bf16.gmra.mrb[16].mxu0 %vm339_vm1, %v1134_v19  ;;  %1060 = vmatmul.mubr.msk.bf16.gmra.mrb[16].mxu1 %vm339_vm1, %v1135_v20 }
  0x38   : > { %456 = vmatprep.mubr.bf16.mxu0 %v1176_v2  ;;  %1063 = vmatprep.mubr.msk.bf16.mxu1 %vm339_vm1, %v1126_v12 }
  0x3f   : > { %957 = vmatmul.mubr.msk.bf16.gmra.mrb[20].mxu0 %vm339_vm1, %v1135_v20  ;;  %1064 = vmatmul.mubr.msk.bf16.gmra.mrb[20].mxu1 %vm339_vm1, %v1130_v15 }
  0xea   : > { %v408_v28 = vpop.f32.mrb[0].mxu0  ;;  %v468_v30 = vpop.f32.mrb[0].mxu1 }
  0xeb   : > { %v409_v29 = vadd.f32 %v408_v28, %v1308_v26  ;;  %v410_v31 = vpop.f32.mrb[1].mxu0  ;;  %v469_v32 = vadd.f32 %v468_v30, %v1308_v26  ;;  %v470_v34 = vpop.f32.mrb[1].mxu1 }
  0xec   : > { %v411_v33 = vadd.f32 %v410_v31, %v1311_v27  ;;  %v412_v35 = vpop.f32.mrb[2].mxu0  ;;  %v471_v37 = vadd.f32 %v470_v34, %v1311_v27  ;;  %v472_v39 = vpop.f32.mrb[2].mxu1 }
  0xed   : > { %v584_v36 = vmax.f32 %v409_v29, 0.0  ;;  %v413_v38 = vadd.f32 %v412_v35, %v1308_v26  ;;  %v414_v40 = vpop.f32.mrb[3].mxu0  ;;  %v620_v41 = vmax.f32 %v469_v32, 0.0  ;;  %v473_v43 = vadd.f32 %v472_v39, %v1308_v26  ;;  %v474_v45 = vpop.f32.mrb[3].mxu1 }
  0xee   : > { %v585_v42 = vmax.f32 %v411_v33, 0.0  ;;  %v415_v44 = vadd.f32 %v414_v40, %v1311_v27  ;;  %v621_v46 = vmax.f32 %v471_v37, 0.0  ;;  %v475_v48 = vadd.f32 %v474_v45, %v1311_v27 }
  0xef   : > { %v587_v47 = vmax.f32 %v413_v38, 0.0  ;;  %v623_v50 = vmax.f32 %v473_v43, 0.0 }
  0xf0   : > { %v1002_v49 = vpack.c.bf16 %v585_v42, %v584_v36  ;;  %v588_v51 = vmax.f32 %v415_v44, 0.0  ;;  %v1026_v52 = vpack.c.bf16 %v621_v46, %v620_v41  ;;  %v624_v53 = vmax.f32 %v475_v48, 0.0 }
  0xf2   : > { %792 = vst [vmem:[%s1324_s29] sm:$0xff] %v1002_v49  ;;  %v1004_v54 = vpack.c.bf16 %v588_v51, %v587_v47  ;;  %v418_v55 = vpop.f32.mrb[4].mxu0  ;;  %816 = vst [vmem:[%s1324_s29 + $0x90] sm:$0xff] %v1026_v52  ;;  %v1028_v56 = vpack.c.bf16 %v624_v53, %v623_v50  ;;  %v478_v58 = vpop.f32.mrb[4].mxu1 }
  0xf3   : > { %v419_v57 = vadd.f32 %v418_v55, %v1308_v26  ;;  %v420_v59 = vpop.f32.mrb[5].mxu0  ;;  %v479_v60 = vadd.f32 %v478_v58, %v1308_v26  ;;  %v480_v62 = vpop.f32.mrb[5].mxu1 }
  0xf4   : > { %794 = vst [vmem:[%s1324_s29 + $0xc] sm:$0xff] %v1004_v54  ;;  %v421_v61 = vadd.f32 %v420_v59, %v1311_v27  ;;  %v422_v63 = vpop.f32.mrb[6].mxu0  ;;  %818 = vst [vmem:[%s1324_s29 + $0x9c] sm:$0xff] %v1028_v56  ;;  %v481_v2 = vadd.f32 %v480_v62, %v1311_v27  ;;  %v482_v4 = vpop.f32.mrb[6].mxu1 }
  0xf5   : > { %v590_v1 = vmax.f32 %v419_v57, 0.0  ;;  %v423_v3 = vadd.f32 %v422_v63, %v1308_v26  ;;  %v424_v5 = vpop.f32.mrb[7].mxu0  ;;  %v626_v6 = vmax.f32 %v479_v60, 0.0  ;;  %v483_v8 = vadd.f32 %v482_v4, %v1308_v26  ;;  %v484_v10 = vpop.f32.mrb[7].mxu1 }
  0xf6   : > { %v591_v7 = vmax.f32 %v421_v61, 0.0  ;;  %v425_v9 = vadd.f32 %v424_v5, %v1311_v27  ;;  %v627_v11 = vmax.f32 %v481_v2, 0.0  ;;  %v485_v13 = vadd.f32 %v484_v10, %v1311_v27 }
  0xf7   : > { %v593_v12 = vmax.f32 %v423_v3, 0.0  ;;  %v629_v15 = vmax.f32 %v483_v8, 0.0 }
  0xf8   : > { %v1006_v14 = vpack.c.bf16 %v591_v7, %v590_v1  ;;  %v594_v16 = vmax.f32 %v425_v9, 0.0  ;;  %v1030_v18 = vpack.c.bf16 %v627_v11, %v626_v6  ;;  %v630_v19 = vmax.f32 %v485_v13, 0.0 }
  0xfa   : > { %796 = vst [vmem:[%s1324_s29 + $0x18] sm:$0xff] %v1006_v14  ;;  %v1008_v20 = vpack.c.bf16 %v594_v16, %v593_v12  ;;  %v428_v21 = vpop.f32.mrb[8].mxu0  ;;  %820 = vst [vmem:[%s1324_s29 + $0xa8] sm:$0xff] %v1030_v18  ;;  %v1032_v22 = vpack.c.bf16 %v630_v19, %v629_v15  ;;  %v1053_v25 = vpop.f32.mrb[8].mxu1 }
  0xfb   : > { %v429_v23 = vadd.f32 %v428_v21, %v1308_v26  ;;  %v430_v28 = vpop.f32.mrb[9].mxu0  ;;  %v530_v29 = vadd.f32 %v1053_v25, %v1341_v17  ;;  %v521_v31 = vpop.f32.mrb[9].mxu1 }
  0xfc   : > { %798 = vst [vmem:[%s1324_s29 + $0x24] sm:$0xff] %v1008_v20  ;;  %v431_v30 = vadd.f32 %v430_v28, %v1311_v27  ;;  %v432_v24 = vpop.f32.mrb[10].mxu0  ;;  %822 = vst [vmem:[%s1324_s29 + $0xb4] sm:$0xff] %v1032_v22  ;;  %v522_v33 = vadd.f32 %v521_v31, %v1341_v17  ;;  %v1054_v35 = vpop.f32.mrb[10].mxu1 }
  0xfd   : > { %v596_v32 = vmax.f32 %v429_v23, 0.0  ;;  %v433_v34 = vadd.f32 %v432_v24, %v1308_v26  ;;  %v434_v36 = vpop.f32.mrb[11].mxu0  ;;  %v592_v37 = vmax.f32 %v530_v29, 0.0  ;;  %v533_v39 = vadd.f32 %v1054_v35, %v1341_v17  ;;  %v524_v41 = vpop.f32.mrb[11].mxu1 }
  0xfe   : > { %v597_v38 = vmax.f32 %v431_v30, 0.0  ;;  %v435_v40 = vadd.f32 %v434_v36, %v1311_v27  ;;  %v586_v42 = vmax.f32 %v522_v33, 0.0  ;;  %v525_v44 = vadd.f32 %v524_v41, %v1341_v17 }
  0xff   : > { %v599_v43 = vmax.f32 %v433_v34, 0.0  ;;  %v1007_v45 = vpack.c.bf16 %v592_v37, %v592_v37  ;;  %v595_v47 = vmax.f32 %v533_v39, 0.0 }
 0x100   : > { %v1010_v46 = vpack.c.bf16 %v597_v38, %v596_v32  ;;  %v600_v48 = vmax.f32 %v435_v40, 0.0  ;;  %v1003_v49 = vpack.c.bf16 %v586_v42, %v586_v42  ;;  %v589_v50 = vmax.f32 %v525_v44, 0.0 }
 0x101   : > { %797 = vst [vmem:[%s1324_s29 + $0x20] sm:$0xf] %v1007_v45  ;;  %v1009_v51 = vpack.c.bf16 %v595_v47, %v595_v47 }
 0x102   : > { %800 = vst [vmem:[%s1324_s29 + $0x30] sm:$0xff] %v1010_v46  ;;  %v1012_v52 = vpack.c.bf16 %v600_v48, %v599_v43  ;;  %v438_v53 = vpop.f32.mrb[12].mxu0  ;;  %793 = vst [vmem:[%s1324_s29 + $0x8] sm:$0xf] %v1003_v49  ;;  %v1005_v54 = vpack.c.bf16 %v589_v50, %v589_v50  ;;  %v1057_v56 = vpop.f32.mrb[12].mxu1 }
 0x103   : > { %v439_v55 = vadd.f32 %v438_v53, %v1308_v26  ;;  %v440_v57 = vpop.f32.mrb[13].mxu0  ;;  %799 = vst [vmem:[%s1324_s29 + $0x2c] sm:$0xf] %v1009_v51  ;;  %v546_v58 = vadd.f32 %v1057_v56, %v1341_v17  ;;  %v537_v60 = vpop.f32.mrb[13].mxu1 }
 0x104   : > { %802 = vst [vmem:[%s1324_s29 + $0x3c] sm:$0xff] %v1012_v52  ;;  %v441_v59 = vadd.f32 %v440_v57, %v1311_v27  ;;  %v442_v61 = vpop.f32.mrb[14].mxu0  ;;  %795 = vst [vmem:[%s1324_s29 + $0x14] sm:$0xf] %v1005_v54  ;;  %v538_v63 = vadd.f32 %v537_v60, %v1341_v17  ;;  %v1058_v1 = vpop.f32.mrb[14].mxu1 }
 0x105   : > { %v602_v62 = vmax.f32 %v439_v55, 0.0  ;;  %v443_v0 = vadd.f32 %v442_v61, %v1308_v26  ;;  %v444_v2 = vpop.f32.mrb[15].mxu0  ;;  %v604_v3 = vmax.f32 %v546_v58, 0.0  ;;  %v549_v5 = vadd.f32 %v1058_v1, %v1341_v17  ;;  %v540_v7 = vpop.f32.mrb[15].mxu1 }
 0x106   : > { %v603_v4 = vmax.f32 %v441_v59, 0.0  ;;  %v445_v6 = vadd.f32 %v444_v2, %v1311_v27  ;;  %v598_v8 = vmax.f32 %v538_v63, 0.0  ;;  %v541_v10 = vadd.f32 %v540_v7, %v1341_v17 }
 0x107   : > { %v605_v9 = vmax.f32 %v443_v0, 0.0  ;;  %v1015_v11 = vpack.c.bf16 %v604_v3, %v604_v3  ;;  %v607_v13 = vmax.f32 %v549_v5, 0.0 }
 0x108   : > { %v1014_v12 = vpack.c.bf16 %v603_v4, %v602_v62  ;;  %v606_v14 = vmax.f32 %v445_v6, 0.0  ;;  %v1011_v15 = vpack.c.bf16 %v598_v8, %v598_v8  ;;  %v601_v16 = vmax.f32 %v541_v10, 0.0 }
 0x109   : > { %805 = vst [vmem:[%s1324_s29 + $0x50] sm:$0xf] %v1015_v11  ;;  %v1017_v18 = vpack.c.bf16 %v607_v13, %v607_v13 }
 0x10a   : > { %804 = vst [vmem:[%s1324_s29 + $0x48] sm:$0xff] %v1014_v12  ;;  %v1016_v19 = vpack.c.bf16 %v606_v14, %v605_v9  ;;  %v448_v20 = vpop.f32.mrb[16].mxu0  ;;  %801 = vst [vmem:[%s1324_s29 + $0x38] sm:$0xf] %v1011_v15  ;;  %v1013_v21 = vpack.c.bf16 %v601_v16, %v601_v16  ;;  %v1061_v23 = vpop.f32.mrb[16].mxu1 }
 0x10b   : > { %v449_v22 = vadd.f32 %v448_v20, %v1308_v26  ;;  %v450_v25 = vpop.f32.mrb[17].mxu0  ;;  %807 = vst [vmem:[%s1324_s29 + $0x5c] sm:$0xf] %v1017_v18  ;;  %v562_v28 = vadd.f32 %v1061_v23, %v1341_v17  ;;  %v553_v30 = vpop.f32.mrb[17].mxu1 }
 0x10c   : > { %806 = vst [vmem:[%s1324_s29 + $0x54] sm:$0xff] %v1016_v19  ;;  %v451_v29 = vadd.f32 %v450_v25, %v1311_v27  ;;  %v452_v31 = vpop.f32.mrb[18].mxu0  ;;  %803 = vst [vmem:[%s1324_s29 + $0x44] sm:$0xf] %v1013_v21  ;;  %v554_v32 = vadd.f32 %v553_v30, %v1341_v17  ;;  %v1062_v34 = vpop.f32.mrb[18].mxu1 }
 0x10d   : > { %v608_v24 = vmax.f32 %v449_v22, 0.0  ;;  %v453_v33 = vadd.f32 %v452_v31, %v1308_v26  ;;  %v454_v35 = vpop.f32.mrb[19].mxu0  ;;  %v616_v36 = vmax.f32 %v562_v28, 0.0  ;;  %v565_v38 = vadd.f32 %v1062_v34, %v1341_v17  ;;  %v556_v40 = vpop.f32.mrb[19].mxu1 }
 0x10e   : > { %v609_v37 = vmax.f32 %v451_v29, 0.0  ;;  %v455_v39 = vadd.f32 %v454_v35, %v1311_v27  ;;  %v610_v41 = vmax.f32 %v554_v32, 0.0  ;;  %v557_v43 = vadd.f32 %v556_v40, %v1341_v17 }
 0x10f   : > { %v611_v42 = vmax.f32 %v453_v33, 0.0  ;;  %v1023_v44 = vpack.c.bf16 %v616_v36, %v616_v36  ;;  %v619_v46 = vmax.f32 %v565_v38, 0.0 }
 0x110   : > { %v1018_v45 = vpack.c.bf16 %v609_v37, %v608_v24  ;;  %v612_v47 = vmax.f32 %v455_v39, 0.0  ;;  %v1019_v48 = vpack.c.bf16 %v610_v41, %v610_v41  ;;  %v613_v49 = vmax.f32 %v557_v43, 0.0 }
 0x111   : > { %813 = vst [vmem:[%s1324_s29 + $0x80] sm:$0xf] %v1023_v44  ;;  %v1025_v50 = vpack.c.bf16 %v619_v46, %v619_v46 }
 0x112   : > { %808 = vst [vmem:[%s1324_s29 + $0x60] sm:$0xff] %v1018_v45  ;;  %v1020_v51 = vpack.c.bf16 %v612_v47, %v611_v42  ;;  %v458_v52 = vpop.f32.mrb[20].mxu0  ;;  %809 = vst [vmem:[%s1324_s29 + $0x68] sm:$0xf] %v1019_v48  ;;  %v1021_v53 = vpack.c.bf16 %v613_v49, %v613_v49  ;;  %v1065_v55 = vpop.f32.mrb[20].mxu1 }
 0x113   : > { %v459_v54 = vadd.f32 %v458_v52, %v1308_v26  ;;  %v460_v56 = vpop.f32.mrb[21].mxu0  ;;  %815 = vst [vmem:[%s1324_s29 + $0x8c] sm:$0xf] %v1025_v50  ;;  %v578_v57 = vadd.f32 %v1065_v55, %v1341_v17  ;;  %v569_v59 = vpop.f32.mrb[21].mxu1 }
 0x114   : > { %810 = vst [vmem:[%s1324_s29 + $0x6c] sm:$0xff] %v1020_v51  ;;  %v461_v58 = vadd.f32 %v460_v56, %v1311_v27  ;;  %v462_v60 = vpop.f32.mrb[22].mxu0  ;;  %811 = vst [vmem:[%s1324_s29 + $0x74] sm:$0xf] %v1021_v53  ;;  %v570_v62 = vadd.f32 %v569_v59, %v1341_v17  ;;  %v1066_v0 = vpop.f32.mrb[22].mxu1 }
 0x115   : > { %v614_v61 = vmax.f32 %v459_v54, 0.0  ;;  %v463_v63 = vadd.f32 %v462_v60, %v1308_v26  ;;  %v464_v1 = vpop.f32.mrb[23].mxu0  ;;  %v628_v2 = vmax.f32 %v578_v57, 0.0  ;;  %v581_v4 = vadd.f32 %v1066_v0, %v1341_v17  ;;  %v572_v6 = vpop.f32.mrb[23].mxu1 }
 0x116   : > { %v615_v3 = vmax.f32 %v461_v58, 0.0  ;;  %v465_v5 = vadd.f32 %v464_v1, %v1311_v27  ;;  %v622_v7 = vmax.f32 %v570_v62, 0.0  ;;  %v573_v9 = vadd.f32 %v572_v6, %v1341_v17 }
 0x117   : > { %v617_v8 = vmax.f32 %v463_v63, 0.0  ;;  %v1031_v26 = vpack.c.bf16 %v628_v2, %v628_v2  ;;  %v631_v11 = vmax.f32 %v581_v4, 0.0 }
 0x118   : > { %v1022_v10 = vpack.c.bf16 %v615_v3, %v614_v61  ;;  %v618_v12 = vmax.f32 %v465_v5, 0.0  ;;  %v1027_v13 = vpack.c.bf16 %v622_v7, %v622_v7  ;;  %v625_v14 = vmax.f32 %v573_v9, 0.0 }
 0x119   : > { %821 = vst [vmem:[%s1324_s29 + $0xb0] sm:$0xf] %v1031_v26  ;;  %v1033_v15 = vpack.c.bf16 %v631_v11, %v631_v11 }
 0x11a   : > { %812 = vst [vmem:[%s1324_s29 + $0x78] sm:$0xff] %v1022_v10  ;;  %v1024_v16 = vpack.c.bf16 %v618_v12, %v617_v8  ;;  %817 = vst [vmem:[%s1324_s29 + $0x98] sm:$0xf] %v1027_v13  ;;  %v1029_v27 = vpack.c.bf16 %v625_v14, %v625_v14 }
 0x11b   : > { %823 = vst [vmem:[%s1324_s29 + $0xbc] sm:$0xf] %v1033_v15 }
 0x11c   : > { %814 = vst [vmem:[%s1324_s29 + $0x84] sm:$0xff] %v1024_v16  ;;  %819 = vst [vmem:[%s1324_s29 + $0xa4] sm:$0xf] %v1029_v27 }
 0x11d PF: > { %s13_s16 = sadd.s32 1, %s1174_s16   ;;  %s1422_s12 = smov %s1166_s14 }
 0x11e   : > { %p10_p7 = scmp.ge.s32.totalorder %s13_s16, 6   ;;  %s1423_s13 = smov %s1170_s15 }
 0x11f   : > { %s1424_s14 = smov %s1427_s17  ;;  %s1425_s15 = smov %s1431_s18 }
 0x120   :  { %12 = sbr.rel (!%p10_p7) target bundleno = 3 (0x3), region = 62 }

// kernel: sin_spade_forward_pallas.9
= control target key start
LH: loop header
LB: loop body
LE: loop exit
PB: predicated region body
PF: predicated region fallthrough
CT: control target
= control target key end

     0   :  { %s442_s9 = smov 0   ;;  %s444_s10 = smov 0   ;;  %s558_s0 = inlined_call_operand.vmem [shape: f32[2,16,16,3], index: 0, kind: input, shape index: {}]   ;;  %s559_s1 = inlined_call_operand.vmem [shape: f32[1,1,3], index: 1, kind: output, shape index: {0}]   ;;  %s560_s2 = inlined_call_operand.vmem [shape: f32[1,1,3], index: 2, kind: output, shape index: {1}]  }
   0x1   :  { %s446_s11 = smov 0   ;;  %s448_s12 = smov 0  }
   0x2   :  { %s450_s13 = smov 0  }
   0x3 LB: > { %s22_s14 = sadd.s32 1, %s416_s11  ;;  %s25_s15 = sadd.s32 1, %s420_s12  ;;  %s424_s13 = sphi %s450_s13, %s13_s13   ;;  %s420_s12 = sphi %s448_s12, %s564_s12   ;;  %s416_s11 = sphi %s446_s11, %s563_s11   ;;  %s412_s10 = sphi %s444_s10, %s562_s10   ;;  %s408_s9 = sphi %s442_s9, %s561_s9  }
   0x4   : > { %p23_p0 = scmp.ge.s32.totalorder %s22_s14, 2  ;;  %p338_p1 = scmp.ge.s32.totalorder %s424_s13, 1 }
   0x5   : > { %p125_p2 = scmp.lt.s32.totalorder %s424_s13, 5 }
   0x6   : > { %s566_s14 = smov (%p23_p0, %s22_s14), 0  ;;  %s568_s15 = smov (!%p23_p0, %s25_s15), %s420_s12 }
   0x7   : > { %p126_p3 = pnand %p338_p1, %p125_p2  ;;  %p27_p4 = scmp.ge.s32.totalorder %s568_s15, 2 }
   0x8   : > { %s339_s16 = sshll.u32 (!%p126_p3), %s408_s9, 3  ;;  %p148_p5 = scmp.lt.s32.totalorder (!%p126_p3), %s412_s10, 1 }
   0x9   : > { %s570_s15 = smov (%p27_p4, %s568_s15), 0  ;;  %129 = sbr.rel (%p126_p3) target bundleno = 75 (0x4b), region = 24 }
   0xa   : > { %p150_p6 = scmp.lt.s32.totalorder (!%p126_p3), %s339_s16, 15  ;;  %p158_p7 = scmp.eq.s32.totalorder (!%p126_p3), %s412_s10, 0 }
   0xb   : > { %p159_p8 = scmp.eq.s32.totalorder (!%p126_p3), %s408_s9, 0 }
   0xd   : > { %p160_p9 = pnand (!%p126_p3), %p159_p8, %p158_p7 }
  0x10   : > { %s572_s10 = smov (!%p148_p5, %s412_s10), 1  ;;  %s574_s16 = smov (!%p150_p6, %s339_s16), 15 }
  0x11   : > { %s341_s17 = sshll.u32 %s572_s10, 5  ;;  %s340_s18 = sshll.u32 %s574_s16, 1  ;;  %vm164_vm0 = vcmask (!%p160_p9), 16384   ;;  %v426_v0 = vmov (!%p160_p9), 0.0  }
  0x12   : > { %s154_s19 = sadd.s32 %s341_s17, %s340_s18  ;;  %163 = sbr.rel (%p160_p9) target bundleno = 25 (0x19), region = 28  ;;  %165 = vst.msk [vmem:[%s559_s1] sm:$0x1] (!%p160_p9), %vm164_vm0, %v426_v0  ;;  %166 = vst.msk [vmem:[%s560_s2] sm:$0x1] (!%p160_p9), %vm164_vm0, %v426_v0 }
  0x13   : > { %s342_s20 = sshll.u32 %s154_s19, 3 }
  0x14   : > { %s475_s23 = scalar_lea.vmem %s558_s0, %s342_s20 }
  0x19 PF: > { %v167_v1 = vld [vmem:[%s475_s23] sm:$0xff]  ;;  %v168_v2 = vld [vmem:[%s475_s23 + $0x8] sm:$0xff]  ;;  %v169_v3 = vld [vmem:[%s475_s23 + $0x10] sm:$0xff]  ;;  %vm184_vm1 = vcmask 23552   ;;  %vm223_vm2 = vcmask 16384  }
  0x1a   : > { %v185_v4 = vsel %vm184_vm1, %v167_v1, 0.0  ;;  %v186_v5 = vsel %vm184_vm1, %v168_v2, 0.0  ;;  %v188_v6 = vsel %vm184_vm1, %v169_v3, 0.0  ;;  %v170_v7 = vld [vmem:[%s475_s23 + $0x18] sm:$0xff]  ;;  %v171_v10 = vld [vmem:[%s475_s23 + $0x20] sm:$0xff]  ;;  %v172_v13 = vld [vmem:[%s475_s23 + $0x28] sm:$0xff]  ;;  %v226_v15 = vmul.f32 %v167_v1, %v167_v1 }
  0x1b   : > { %v187_v8 = vadd.f32 %v186_v5, %v185_v4  ;;  %v190_v9 = vsel %vm184_vm1, %v170_v7, 0.0  ;;  %v192_v12 = vsel %vm184_vm1, %v171_v10, 0.0  ;;  %v227_v16 = vmul.f32 %v168_v2, %v168_v2  ;;  %v173_v19 = vld [vmem:[%s475_s23 + $0x30] sm:$0xff]  ;;  %v174_v24 = vld [vmem:[%s475_s23 + $0x38] sm:$0xff]  ;;  %v175_v31 = vld [vmem:[%s475_s23 + $0x40] sm:$0xff] }
  0x1c   : > { %v228_v17 = vmul.f32 %v169_v3, %v169_v3  ;;  %v194_v18 = vsel %vm184_vm1, %v172_v13, 0.0  ;;  %v229_v21 = vmul.f32 %v170_v7, %v170_v7  ;;  %v196_v22 = vsel %vm184_vm1, %v173_v19, 0.0  ;;  %v176_v37 = vld [vmem:[%s475_s23 + $0x48] sm:$0xff]  ;;  %v177_v43 = vld [vmem:[%s475_s23 + $0x50] sm:$0xff]  ;;  %v178_v49 = vld [vmem:[%s475_s23 + $0x58] sm:$0xff] }
  0x1d   : > { %v189_v11 = vadd.f32 %v188_v6, %v187_v8  ;;  %v230_v23 = vmul.f32 %v171_v10, %v171_v10  ;;  %v242_v26 = vsel %vm184_vm1, %v226_v15, 0.0  ;;  %v243_v27 = vsel %vm184_vm1, %v227_v16, 0.0  ;;  %v179_v55 = vld [vmem:[%s475_s23 + $0x60] sm:$0xff]  ;;  %v180_v61 = vld [vmem:[%s475_s23 + $0x68] sm:$0xff]  ;;  %v181_v3 = vld [vmem:[%s475_s23 + $0x70] sm:$0xff] }
  0x1e   : > { %v245_v28 = vsel %vm184_vm1, %v228_v17, 0.0  ;;  %v198_v29 = vsel %vm184_vm1, %v174_v24, 0.0  ;;  %v244_v30 = vadd.f32 %v243_v27, %v242_v26  ;;  %v231_v33 = vmul.f32 %v172_v13, %v172_v13 }
  0x1f   : > { %v191_v14 = vadd.f32 %v190_v9, %v189_v11  ;;  %v247_v34 = vsel %vm184_vm1, %v229_v21, 0.0  ;;  %v200_v35 = vsel %vm184_vm1, %v175_v31, 0.0  ;;  %v232_v39 = vmul.f32 %v173_v19, %v173_v19  ;;  %v182_v9 = vld [vmem:[%s475_s23 + $0x78] sm:$0xff] }
  0x20   : > { %v246_v36 = vadd.f32 %v245_v28, %v244_v30  ;;  %v249_v40 = vsel %vm184_vm1, %v230_v23, 0.0  ;;  %v202_v41 = vsel %vm184_vm1, %v176_v37, 0.0  ;;  %v233_v45 = vmul.f32 %v174_v24, %v174_v24 }
  0x21   : > { %v193_v20 = vadd.f32 %v192_v12, %v191_v14  ;;  %v251_v46 = vsel %vm184_vm1, %v231_v33, 0.0  ;;  %v204_v47 = vsel %vm184_vm1, %v177_v43, 0.0  ;;  %v234_v51 = vmul.f32 %v175_v31, %v175_v31 }
  0x22   : > { %v248_v42 = vadd.f32 %v247_v34, %v246_v36  ;;  %v253_v52 = vsel %vm184_vm1, %v232_v39, 0.0  ;;  %v206_v53 = vsel %vm184_vm1, %v178_v49, 0.0  ;;  %v235_v57 = vmul.f32 %v176_v37, %v176_v37  ;;  %v183_v36 = vld [vmem:[%s559_s1] sm:$0x1] }
  0x23   : > { %v195_v25 = vadd.f32 %v194_v18, %v193_v20  ;;  %v255_v58 = vsel %vm184_vm1, %v233_v45, 0.0  ;;  %v208_v59 = vsel %vm184_vm1, %v179_v55, 0.0  ;;  %v236_v63 = vmul.f32 %v177_v43, %v177_v43 }
  0x24   : > { %v250_v48 = vadd.f32 %v249_v40, %v248_v42  ;;  %v257_v0 = vsel %vm184_vm1, %v234_v51, 0.0  ;;  %v210_v1 = vsel %vm184_vm1, %v180_v61, 0.0  ;;  %v237_v5 = vmul.f32 %v178_v49, %v178_v49 }
  0x25   : > { %v197_v32 = vadd.f32 %v196_v22, %v195_v25  ;;  %v259_v6 = vsel %vm184_vm1, %v235_v57, 0.0  ;;  %v212_v7 = vsel %vm184_vm1, %v181_v3, 0.0  ;;  %v238_v11 = vmul.f32 %v179_v55, %v179_v55 }
  0x26   : > { %v252_v54 = vadd.f32 %v251_v46, %v250_v48  ;;  %v261_v12 = vsel %vm184_vm1, %v236_v63, 0.0  ;;  %v214_v13 = vsel %vm184_vm1, %v182_v9, 0.0  ;;  %v239_v16 = vmul.f32 %v180_v61, %v180_v61 }
  0x27   : > { %v199_v38 = vadd.f32 %v198_v29, %v197_v32  ;;  %v263_v17 = vsel %vm184_vm1, %v237_v5, 0.0  ;;  %v240_v20 = vmul.f32 %v181_v3, %v181_v3  ;;  %v265_v21 = vsel %vm184_vm1, %v238_v11, 0.0 }
  0x28   : > { %v254_v60 = vadd.f32 %v253_v52, %v252_v54  ;;  %v241_v24 = vmul.f32 %v182_v9, %v182_v9  ;;  %v267_v25 = vsel %vm184_vm1, %v239_v16, 0.0 }
  0x29   : > { %v201_v44 = vadd.f32 %v200_v35, %v199_v38  ;;  %v269_v28 = vsel %vm184_vm1, %v240_v20, 0.0 }
  0x2a   : > { %v256_v2 = vadd.f32 %v255_v58, %v254_v60  ;;  %v271_v31 = vsel %vm184_vm1, %v241_v24, 0.0 }
  0x2b   : > { %v203_v50 = vadd.f32 %v202_v41, %v201_v44  ;;  %v225_v44 = vld [vmem:[%s560_s2] sm:$0x1] }
  0x2c   : > { %v258_v8 = vadd.f32 %v257_v0, %v256_v2 }
  0x2d   : > { %v205_v56 = vadd.f32 %v204_v47, %v203_v50 }
  0x2e   : > { %v260_v14 = vadd.f32 %v259_v6, %v258_v8 }
  0x2f   : > { %v207_v62 = vadd.f32 %v206_v53, %v205_v56 }
  0x30   : > { %v262_v18 = vadd.f32 %v261_v12, %v260_v14 }
  0x31   : > { %v209_v4 = vadd.f32 %v208_v59, %v207_v62 }
  0x32   : > { %v264_v22 = vadd.f32 %v263_v17, %v262_v18 }
  0x33   : > { %v211_v10 = vadd.f32 %v210_v1, %v209_v4 }
  0x34   : > { %v266_v26 = vadd.f32 %v265_v21, %v264_v22 }
  0x35   : > { %v213_v15 = vadd.f32 %v212_v7, %v211_v10 }
  0x36   : > { %v268_v29 = vadd.f32 %v267_v25, %v266_v26 }
  0x37   : > { %v215_v19 = vadd.f32 %v214_v13, %v213_v15 }
  0x38   : > { %v270_v32 = vadd.f32 %v269_v28, %v268_v29 }
  0x39   : > { %v216_v23 = vrot.slane %v215_v19, 4 }
  0x3a   : > { %v272_v34 = vadd.f32 %v271_v31, %v270_v32 }
  0x3b   : > { %v217_v27 = vadd.f32 %v216_v23, %v215_v19 }
  0x3c   : > { %v273_v37 = vrot.slane %v272_v34, 4 }
  0x3d   : > { %v218_v30 = vrot.slane %v217_v27, 2 }
  0x3e   : > { %v274_v39 = vadd.f32 %v273_v37, %v272_v34 }
  0x3f   : > { %v219_v33 = vadd.f32 %v218_v30, %v217_v27 }
  0x40   : > { %v275_v41 = vrot.slane %v274_v39, 2 }
  0x41   : > { %v220_v35 = vrot.slane %v219_v33, 1 }
  0x42   : > { %v276_v42 = vadd.f32 %v275_v41, %v274_v39 }
  0x43   : > { %v221_v38 = vadd.f32 %v220_v35, %v219_v33 }
  0x44   : > { %v277_v43 = vrot.slane %v276_v42, 1 }
  0x45   : > { %v222_v40 = vadd.f32 %v221_v38, %v183_v36 }
  0x46   : > { %v278_v45 = vadd.f32 %v277_v43, %v276_v42 }
  0x47   : > { %224 = vst.msk [vmem:[%s559_s1] sm:$0x1] %vm223_vm2, %v222_v40 }
  0x48   : > { %v279_v46 = vadd.f32 %v278_v45, %v225_v44 }
  0x4a   : > { %280 = vst.msk [vmem:[%s560_s2] sm:$0x1] %vm223_vm2, %v279_v46 }
  0x4b PF: > { %s13_s13 = sadd.s32 1, %s424_s13   ;;  %s561_s9 = smov %s416_s11 }
  0x4c   : > { %p10_p10 = scmp.ge.s32.totalorder %s13_s13, 6   ;;  %s562_s10 = smov %s420_s12 }
  0x4d   : > { %s563_s11 = smov %s566_s14  ;;  %s564_s12 = smov %s570_s15 }
  0x4e   :  { %12 = sbr.rel (!%p10_p10) target bundleno = 3 (0x3), region = 62 }

// kernel: sin_spade_forward_pallas.10
= control target key start
LH: loop header
LB: loop body
LE: loop exit
PB: predicated region body
PF: predicated region fallthrough
CT: control target
= control target key end

     0   :  { %s5301_s0 = inlined_call_operand.vmem [shape: f32[2,16,16,3], index: 0, kind: input, shape index: {}]   ;;  %s5302_s1 = inlined_call_operand.vmem [shape: bf16[2,16,16,384], index: 1, kind: input, shape index: {}, may-alias: {1,2,3}]   ;;  %s5303_s2 = inlined_call_operand.vmem [shape: bf16[2,16,16,384], index: 2, kind: input, shape index: {}, may-alias: {1,2,3}]   ;;  %s5304_s3 = inlined_call_operand.vmem [shape: bf16[2,16,16,384], index: 3, kind: input, shape index: {}, may-alias: {1,2,3}]   ;;  %s5305_s4 = inlined_call_operand.vmem [shape: bf16[3,3,128,6], index: 4, kind: input, shape index: {}]   ;;  %s5306_s5 = inlined_call_operand.vmem [shape: f32[1,6], index: 5, kind: input, shape index: {}]   ;;  %s5307_s6 = inlined_call_operand.vmem [shape: f32[1,1,3], index: 6, kind: input, shape index: {}]   ;;  %s5308_s7 = inlined_call_operand.vmem [shape: f32[1,1,3], index: 7, kind: input, shape index: {}]   ;;  %s5309_s8 = inlined_call_operand.vmem [shape: f32[2,16,16,3], index: 8, kind: output, shape index: {}]  }
   0x1   :  { %5313 = sst [smem:[#allocation11_spill]] %s5301_s0 }
   0x2   :  { %5314 = sst [smem:[#allocation12_spill]] %s5307_s6 }
   0x3   :  { %5315 = sst [smem:[#allocation13_spill]] %s5308_s7 }
   0x4   :  { %5316 = sst [smem:[#allocation14_spill]] %s5309_s8 }
   0x5   :  { %s4421_s27 = smov 0   ;;  %s4423_s28 = smov 0  }
   0x6   :  { %s4425_s29 = smov 0   ;;  %s4427_s30 = smov 0  }
   0x7   :  { %s4429_s9 = smov 0   ;;  %s4431_s10 = smov 0  }
   0x8   :  { %s4433_s11 = smov 0   ;;  %s4435_s12 = smov 0  }
   0x9   :  { %s4437_s13 = smov 0   ;;  %s4439_s14 = smov 0  }
   0xa   :  { %s4441_s15 = smov 0  }
   0xb LB: > { %5317 = sst [smem:[#allocation6_spill]] %s4360_s12  ;;  %s27_s16 = sadd.s32 1, %s4364_s13  ;;  %s4372_s15 = sphi %s4441_s15, %s18_s15   ;;  %s4368_s14 = sphi %s4439_s14, %s5343_s14   ;;  %s4364_s13 = sphi %s4437_s13, %s5342_s13   ;;  %s4360_s12 = sphi %s4435_s12, %s5341_s12   ;;  %s4356_s11 = sphi %s4433_s11, %s5340_s11   ;;  %s4352_s10 = sphi %s4431_s10, %s5339_s10   ;;  %s4348_s9 = sphi %s4429_s9, %s5338_s9   ;;  %s4344_s30 = sphi %s4427_s30, %s5337_s30   ;;  %s4340_s29 = sphi %s4425_s29, %s5336_s29   ;;  %s4336_s28 = sphi %s4423_s28, %s5335_s28   ;;  %s4332_s27 = sphi %s4421_s27, %s5334_s27  }
   0xc   : > { %s30_s17 = sadd.s32 1, %s4368_s14  ;;  %p28_p0 = scmp.ge.s32.totalorder %s27_s16, 2 }
   0xd   : > { %s67_s18 = sadd.s32 1, %s4352_s10  ;;  %p74_p1 = scmp.ne.s32.totalorder %s4352_s10, %s4348_s9 }
   0xe   : > { %p75_p2 = scmp.eq.s32.totalorder %s4372_s15, 0  ;;  %s5345_s16 = smov (%p28_p0, %s27_s16), 0 }
   0xf   : > { %5318 = sst [smem:[#allocation7_spill]] %s5345_s16  ;;  %s5347_s17 = smov (!%p28_p0, %s30_s17), %s4368_s14 }
  0x10   : > { %s63_s19 = ssub.s32 %s4364_s13, %s5345_s16  ;;  %p4489_p3 = por %p75_p2, %p74_p1 }
  0x11   : > { %p32_p4 = scmp.ge.s32.totalorder %s5347_s17, 2  ;;  %s3247_s21 = sshll.u32 %s4364_s13, 3 }
  0x12   : > { %s3248_s22 = sadd.s32 4294967295, %s3247_s21  ;;  %s3249_s23 = sshll.u32 %s5345_s16, 3 }
  0x13   : > { %s5349_s17 = smov (%p32_p4, %s5347_s17), 0  ;;  %p92_p5 = scmp.gt.s32.totalorder %s3248_s22, 0 }
  0x14   : > { %5320 = sst [smem:[#allocation8_spill]] %s5349_s17  ;;  %s3250_s24 = sadd.s32 4294967295, %s3249_s23 }
  0x15   : > { %s62_s25 = ssub.s32 %s4368_s14, %s5349_s17  ;;  %p96_p6 = scmp.gt.s32.totalorder %s3250_s24, 0 }
  0x16   : > { %s64_s26 = sor.u32 %s63_s19, %s62_s25  ;;  %s103_s8 = sadd.s32 1, %s4344_s30 }
  0x17   : > { %p65_p7 = scmp.eq.s32.totalorder %s64_s26, 0  ;;  %p110_p8 = scmp.ne.s32.totalorder %s4344_s30, %s4340_s29 }
  0x18   : > { %s5351_s22 = smov (!%p92_p5, %s3248_s22), 0  ;;  %s5353_s24 = smov (!%p96_p6, %s3250_s24), 0 }
  0x19   : > { %s4505_s7 = scalar_select %p65_p7, %s4352_s10, %s67_s18  }
  0x1a   : > { %p4509_p9 = por %p110_p8, %p75_p2  ;;  %s3504_s19 = sadd.s32 8, %s3247_s21 }
  0x1b   : > { %5321 = sst [smem:[#allocation9_spill]] %s4505_s7  ;;  %s99_s17 = ssub.s32 %s5351_s22, %s5353_s24 }
  0x1c   : > { %p128_p10 = scmp.lt.s32.totalorder %s3504_s19, 15  ;;  %s100_s26 = sor.u32 %s99_s17, %s62_s25 }
  0x1d   : > { %s3506_s6 = sadd.s32 8, %s3249_s23  ;;  %p101_p11 = scmp.eq.s32.totalorder %s100_s26, 0 }
  0x1e   : > { %p132_p12 = scmp.lt.s32.totalorder %s3506_s6, 15  ;;  %s5355_s19 = smov (!%p128_p10, %s3504_s19), 15 }
  0x1f   : > { %s4517_s18 = scalar_select %p101_p11, %s4344_s30, %s103_s8  }
  0x20   : > { %s5357_s6 = smov (!%p132_p12, %s3506_s6), 15  ;;  %p146_p13 = scmp.ne.s32.totalorder %s4336_s28, %s4332_s27 }
  0x21   : > { %5323 = sst [smem:[#allocation10_spill]] %s4517_s18  ;;  %s135_s7 = ssub.s32 %s5355_s19, %s5357_s6 }
  0x22   : > { %s139_s0 = sadd.s32 1, %s4336_s28  ;;  %s136_s12 = sor.u32 %s135_s7, %s62_s25 }
  0x23   : > { %p4525_p0 = por %p146_p13, %p75_p2  ;;  %p137_p1 = scmp.eq.s32.totalorder %s136_s12, 0 }
  0x24   : > { %p3254_p4 = scmp.ge.s32.totalorder %s4372_s15, 4 }
  0x25   : > { %s4530_s17 = scalar_select %p137_p1, %s4336_s28, %s139_s0  }
  0x26   : > { %296 = sbr.rel (%p3254_p4) target bundleno = 81 (0x51), region = 32 }
  0x2d   : > { %313 = sbr.rel (!%p4489_p3) target bundleno = 63 (0x3f), region = 40  ;;  %s315_s6 = sand.u32 (%p4489_p3), 1, %s4352_s10  }
  0x2e   : > { %s4101_s8 = smul.u32 (%p4489_p3), 48, %s4364_s13  ;;  %s3255_s7 = sshll.u32 (%p4489_p3), %s315_s6, 6 }
  0x2f   : > { %s4102_s23 = smul.u32 (%p4489_p3), 96, %s4368_s14  ;;  %s317_s12 = scalar_lea.vmem (%p4489_p3), [#allocation3], %s3255_s7 }
  0x31   : > { %s321_s24 = sadd.s32 (%p4489_p3), %s4102_s23, %s4101_s8 }
  0x32   : > { %s3258_s25 = sshll.u32 (%p4489_p3), %s321_s24, 2 }
  0x33   : > { %s4541_s0 = scalar_lea.vmem (%p4489_p3), %s5302_s1, %s3258_s25 }
  0x34   : > { %v339_v0 = vld [vmem:[%s4541_s0] sm:$0xf]  ;;  %v341_v1 = vld [vmem:[%s4541_s0 + $0xc] sm:$0xf]  ;;  %v343_v2 = vld [vmem:[%s4541_s0 + $0x18] sm:$0xf] }
  0x35   : > { %340 = vst [vmem:[%s317_s12] sm:$0xf] %v339_v0  ;;  %342 = vst [vmem:[%s317_s12 + $0x4] sm:$0xf] %v341_v1  ;;  %v345_v3 = vld [vmem:[%s4541_s0 + $0x24] sm:$0xf] }
  0x36   : > { %344 = vst [vmem:[%s317_s12 + $0x8] sm:$0xf] %v343_v2  ;;  %v347_v4 = vld [vmem:[%s4541_s0 + $0x30] sm:$0xf]  ;;  %v349_v5 = vld [vmem:[%s4541_s0 + $0x3c] sm:$0xf] }
  0x37   : > { %346 = vst [vmem:[%s317_s12 + $0xc] sm:$0xf] %v345_v3  ;;  %348 = vst [vmem:[%s317_s12 + $0x10] sm:$0xf] %v347_v4  ;;  %v351_v6 = vld [vmem:[%s4541_s0 + $0x48] sm:$0xf] }
  0x38   : > { %350 = vst [vmem:[%s317_s12 + $0x14] sm:$0xf] %v349_v5  ;;  %v353_v7 = vld [vmem:[%s4541_s0 + $0x54] sm:$0xf]  ;;  %v355_v8 = vld [vmem:[%s4541_s0 + $0x60] sm:$0xf] }
  0x39   : > { %352 = vst [vmem:[%s317_s12 + $0x18] sm:$0xf] %v351_v6  ;;  %354 = vst [vmem:[%s317_s12 + $0x1c] sm:$0xf] %v353_v7  ;;  %v357_v9 = vld [vmem:[%s4541_s0 + $0x6c] sm:$0xf] }
  0x3a   : > { %356 = vst [vmem:[%s317_s12 + $0x20] sm:$0xf] %v355_v8  ;;  %v359_v10 = vld [vmem:[%s4541_s0 + $0x78] sm:$0xf]  ;;  %v361_v11 = vld [vmem:[%s4541_s0 + $0x84] sm:$0xf] }
  0x3b   : > { %358 = vst [vmem:[%s317_s12 + $0x24] sm:$0xf] %v357_v9  ;;  %360 = vst [vmem:[%s317_s12 + $0x28] sm:$0xf] %v359_v10  ;;  %v363_v12 = vld [vmem:[%s4541_s0 + $0x90] sm:$0xf] }
  0x3c   : > { %362 = vst [vmem:[%s317_s12 + $0x2c] sm:$0xf] %v361_v11  ;;  %v365_v13 = vld [vmem:[%s4541_s0 + $0x9c] sm:$0xf]  ;;  %v367_v14 = vld [vmem:[%s4541_s0 + $0xa8] sm:$0xf] }
  0x3d   : > { %364 = vst [vmem:[%s317_s12 + $0x30] sm:$0xf] %v363_v12  ;;  %366 = vst [vmem:[%s317_s12 + $0x34] sm:$0xf] %v365_v13  ;;  %v369_v15 = vld [vmem:[%s4541_s0 + $0xb4] sm:$0xf] }
  0x3e   : > { %368 = vst [vmem:[%s317_s12 + $0x38] sm:$0xf] %v367_v14  ;;  %370 = vst [vmem:[%s317_s12 + $0x3c] sm:$0xf] %v369_v15 }
  0x3f PF: > { %425 = sbr.rel (!%p4509_p9) target bundleno = 72 (0x48), region = 81  ;;  %s427_s20 = sand.u32 (%p4509_p9), 1, %s4344_s30  }
  0x40   : > { %s4103_s18 = smul.u32 (%p4509_p9), 6, %s5351_s22  ;;  %s3259_s6 = sshll.u32 (%p4509_p9), %s427_s20, 3 }
  0x41   : > { %s4104_s8 = smul.u32 (%p4509_p9), 96, %s4368_s14  ;;  %s429_s0 = scalar_lea.vmem (%p4509_p9), [#allocation4], %s3259_s6 }
  0x43   : > { %s436_s7 = sadd.s32 (%p4509_p9), %s4104_s8, %s4103_s18 }
  0x44   : > { %s3262_s23 = sshll.u32 (%p4509_p9), %s436_s7, 2 }
  0x45   : > { %s438_s26 = scalar_lea.vmem (%p4509_p9), %s5303_s2, %s3262_s23 }
  0x46   : > { %v454_v16 = vld [vmem:[%s438_s26] sm:$0xf]  ;;  %v456_v17 = vld [vmem:[%s438_s26 + $0xc] sm:$0xf] }
  0x47   : > { %455 = vst [vmem:[%s429_s0] sm:$0xf] %v454_v16  ;;  %457 = vst [vmem:[%s429_s0 + $0x4] sm:$0xf] %v456_v17 }
  0x48 PF: > { %484 = sbr.rel (!%p4525_p0) target bundleno = 81 (0x51), region = 122  ;;  %s486_s16 = sand.u32 (%p4525_p0), 1, %s4336_s28  }
  0x49   : > { %s4105_s22 = smul.u32 (%p4525_p0), 6, %s5355_s19  ;;  %s3263_s12 = sshll.u32 (%p4525_p0), %s486_s16, 3 }
  0x4a   : > { %s4106_s20 = smul.u32 (%p4525_p0), 96, %s4368_s14  ;;  %s488_s6 = scalar_lea.vmem (%p4525_p0), [#allocation5], %s3263_s12 }
  0x4c   : > { %s495_s18 = sadd.s32 (%p4525_p0), %s4106_s20, %s4105_s22 }
  0x4d   : > { %s3265_s8 = sshll.u32 (%p4525_p0), %s495_s18, 2 }
  0x4e   : > { %s497_s24 = scalar_lea.vmem (%p4525_p0), %s5304_s3, %s3265_s8 }
  0x4f   : > { %v513_v18 = vld [vmem:[%s497_s24] sm:$0xf]  ;;  %v515_v19 = vld [vmem:[%s497_s24 + $0xc] sm:$0xf] }
  0x50   : > { %514 = vst [vmem:[%s488_s6] sm:$0xf] %v513_v18  ;;  %516 = vst [vmem:[%s488_s6 + $0x4] sm:$0xf] %v515_v19 }
  0x51 PF: > { %p3266_p2 = scmp.ge.s32.totalorder %s4372_s15, 1  ;;  %p542_p3 = scmp.lt.s32.totalorder %s4372_s15, 5 }
  0x53   : > { %p543_p5 = pnand %p3266_p2, %p542_p3 }
  0x54   : > { %v4197_v20 = vld [vmem:[%s5305_s4] sm:$0xff] (!%p543_p5)   ;;  %v4199_v22 = vld [vmem:[%s5305_s4 + $0x8] sm:$0xff] (!%p543_p5)   ;;  %v4201_v24 = vld [vmem:[%s5305_s4 + $0x10] sm:$0xff] (!%p543_p5)   ;;  %v4374_v26 = vmov (!%p543_p5), 0   ;;  %s556_s23 = sand.u32 (!%p543_p5), 1, %s4340_s29   ;;  %s549_s25 = sand.u32 (!%p543_p5), 1, %s4348_s9  }
  0x55   : > { %546 = sbr.rel (%p543_p5) target bundleno = 615 (0x267), region = 163  ;;  %v4198_v21 = vld [vmem:[%s5305_s4 + $0x100] sm:$0xff] (!%p543_p5)   ;;  %3653 = vmatprep.subr.bf16.mxu1 (!%p543_p5), %v4197_v20  ;;  %v4200_v23 = vld [vmem:[%s5305_s4 + $0x108] sm:$0xff] (!%p543_p5)   ;;  %v4202_v25 = vld [vmem:[%s5305_s4 + $0x110] sm:$0xff] (!%p543_p5)   ;;  %785 = vst [vmem:[#allocation2] sm:$0xf] (!%p543_p5), %v4374_v26 }
  0x56   : > { %3781 = vmatprep.subr.bf16.mxu0 (!%p543_p5), %v4198_v21  ;;  %3654 = vmatpush3.bf16.msra.mxu1 (!%p543_p5), %v4197_v20  ;;  %786 = vst [vmem:[#allocation2 + $0x10] sm:$0xf] (!%p543_p5), %v4374_v26  ;;  %787 = vst [vmem:[#allocation2 + $0x20] sm:$0xf] (!%p543_p5), %v4374_v26  ;;  %v4203_v27 = vld [vmem:[%s5305_s4 + $0x18] sm:$0xff] (!%p543_p5)   ;;  %s3268_s26 = sshll.u32 (!%p543_p5), %s556_s23, 3 }
  0x57   : > { %3782 = vmatpush3.bf16.msra.mxu0 (!%p543_p5), %v4198_v21  ;;  %3655 = vmatprep.subr.bf16.mxu1 (!%p543_p5), %v4199_v22  ;;  %788 = vst [vmem:[#allocation2 + $0x30] sm:$0xf] (!%p543_p5), %v4374_v26  ;;  %789 = vst [vmem:[#allocation2 + $0x40] sm:$0xf] (!%p543_p5), %v4374_v26  ;;  %v4204_v28 = vld [vmem:[%s5305_s4 + $0x118] sm:$0xff] (!%p543_p5)   ;;  %p651_p6 = scmp.gt.s32.totalorder (!%p543_p5), %s4356_s11, 0 }
  0x58   : > { %3783 = vmatprep.subr.bf16.mxu0 (!%p543_p5), %v4200_v23  ;;  %790 = vst [vmem:[#allocation2 + $0x50] sm:$0xf] (!%p543_p5), %v4374_v26  ;;  %791 = vst [vmem:[#allocation2 + $0x60] sm:$0xf] (!%p543_p5), %v4374_v26  ;;  %v4205_v29 = vld [vmem:[%s5305_s4 + $0x20] sm:$0xff] (!%p543_p5)   ;;  %s3267_s16 = sshll.u32 (!%p543_p5), %s549_s25, 6 }
  0x59   : > { %792 = vst [vmem:[#allocation2 + $0x70] sm:$0xf] (!%p543_p5), %v4374_v26  ;;  %793 = vst [vmem:[#allocation2 + $0x80] sm:$0xf] (!%p543_p5), %v4374_v26  ;;  %v4206_v30 = vld [vmem:[%s5305_s4 + $0x120] sm:$0xff] (!%p543_p5)   ;;  %v4207_v31 = vld [vmem:[%s5305_s4 + $0x28] sm:$0xff] (!%p543_p5)  }
  0x5a   : > { %794 = vst [vmem:[#allocation2 + $0x90] sm:$0xf] (!%p543_p5), %v4374_v26  ;;  %795 = vst [vmem:[#allocation2 + $0x8] sm:$0xf0] (!%p543_p5), %v4374_v26  ;;  %3656 = vmatpush3.bf16.msra.mxu1 (!%p543_p5), %v4199_v22  ;;  %v4208_v32 = vld [vmem:[%s5305_s4 + $0x128] sm:$0xff] (!%p543_p5)   ;;  %s558_s7 = scalar_lea.vmem (!%p543_p5), [#allocation4], %s3268_s26 }
  0x5b   : > { %796 = vst [vmem:[#allocation2 + $0x18] sm:$0xf0] (!%p543_p5), %v4374_v26  ;;  %797 = vst [vmem:[#allocation2 + $0x28] sm:$0xf0] (!%p543_p5), %v4374_v26  ;;  %3784 = vmatpush3.bf16.msra.mxu0 (!%p543_p5), %v4200_v23  ;;  %3657 = vmatprep.subr.bf16.mxu1 (!%p543_p5), %v4201_v24  ;;  %v652_v33 = vld [vmem:[%s558_s7] sm:$0xf] (!%p543_p5) }
  0x5c   : > { %798 = vst [vmem:[#allocation2 + $0x38] sm:$0xf0] %v4374_v26  ;;  %799 = vst [vmem:[#allocation2 + $0x48] sm:$0xf0] %v4374_v26  ;;  %3785 = vmatprep.subr.bf16.mxu0 %v4202_v25  ;;  %s654_s23 = scalar_select %p651_p6, 1, 0 }
  0x5d   : > { %800 = vst [vmem:[#allocation2 + $0x58] sm:$0xf0] %v4374_v26  ;;  %801 = vst [vmem:[#allocation2 + $0x68] sm:$0xf0] %v4374_v26  ;;  %v653_v34 = vld [vmem:[%s558_s7 + $0x4] sm:$0xf] }
  0x5e   : > { %802 = vst [vmem:[#allocation2 + $0x78] sm:$0xf0] %v4374_v26  ;;  %803 = vst [vmem:[#allocation2 + $0x88] sm:$0xf0] %v4374_v26  ;;  %3658 = vmatpush3.bf16.msra.mxu1 %v4201_v24  ;;  %s4618_s24 = scalar_lea.vmem [#allocation3], %s3267_s16  ;;  %v4209_v35 = vld [vmem:[%s5305_s4 + $0x30] sm:$0xff]   ;;  %v655_v36 = vstv %s654_s23 }
  0x5f   : > { %804 = vst [vmem:[#allocation2 + $0x98] sm:$0xf0] %v4374_v26  ;;  %3786 = vmatpush3.bf16.msra.mxu0 %v4202_v25  ;;  %3659 = vmatprep.subr.bf16.mxu1 %v4203_v27  ;;  %v4213_v37 = vld [vmem:[%s4618_s24] ss:$0 sps:$4 sm:$0xff]   ;;  %v4214_v38 = vld [vmem:[%s4618_s24 + $0x4] ss:$0 sps:$4 sm:$0xff]  }
  0x60   : > { %3787 = vmatprep.subr.bf16.mxu0 %v4204_v28  ;;  %v4210_v39 = vld [vmem:[%s5305_s4 + $0x130] sm:$0xff]   ;;  %vm656_vm0 = vcmp.eq.s32.totalorder %v655_v36, 1  ;;  %758 = vst [vmem:[#allocation2 + $0x10] sm:$0xf0] %v4213_v37  ;;  %759 = vst [vmem:[#allocation2 + $0x18] sm:$0xf] %v4214_v38 }
  0x61   : > { %v657_v40 = vsel %vm656_vm0, %v652_v33, 0  ;;  %v658_v41 = vsel %vm656_vm0, %v653_v34, 0  ;;  %v4216_v42 = vld [vmem:[%s4618_s24 + $0x8] ss:$0 sps:$4 sm:$0xff]   ;;  %v4217_v45 = vld [vmem:[%s4618_s24 + $0xc] ss:$0 sps:$4 sm:$0xff]  }
  0x62   : > { %3660 = vmatpush3.bf16.msra.mxu1 %v4203_v27  ;;  %v3278_v43 = vcombine.low %v657_v40, %v657_v40  ;;  %v3279_v44 = vcombine.low %v658_v41, %v658_v41  ;;  %760 = vst [vmem:[#allocation2 + $0x20] sm:$0xf0] %v4216_v42  ;;  %v4211_v46 = vld [vmem:[%s5305_s4 + $0x38] sm:$0xff]   ;;  %761 = vst [vmem:[#allocation2 + $0x28] sm:$0xf] %v4217_v45  ;;  %vm1572_vm1 = vcmask 1043456  }
  0x63   : > { %3788 = vmatpush3.bf16.msra.mxu0 %v4204_v28  ;;  %3661 = vmatprep.subr.bf16.mxu1 %v4205_v29  ;;  %v4212_v47 = vld [vmem:[%s5305_s4 + $0x138] sm:$0xff]   ;;  %v4221_v48 = vld [vmem:[%s4618_s24 + $0x10] ss:$0 sps:$4 sm:$0xff]   ;;  %v4222_v49 = vld [vmem:[%s4618_s24 + $0x14] ss:$0 sps:$4 sm:$0xff]   ;;  %s563_s20 = sand.u32 1, %s4332_s27  }
  0x64   : > { %3789 = vmatprep.subr.bf16.mxu0 %v4206_v30  ;;  %675 = vst [vmem:[#allocation2] sm:$0xf0] %v3278_v43  ;;  %676 = vst [vmem:[#allocation2 + $0x8] sm:$0xf] %v3279_v44  ;;  %vm832_vm2 = vsmask.f32 4352 }
  0x65   : > { %762 = vst [vmem:[#allocation2 + $0x30] sm:$0xf0] %v4221_v48  ;;  %763 = vst [vmem:[#allocation2 + $0x38] sm:$0xf] %v4222_v49  ;;  %v4644_v55 = vld [vmem:[%s5305_s4 + $0xc0] sm:$0xff]   ;;  %v4220_v15 = vld [vmem:[%s5305_s4 + $0x1c8] sm:$0xff]  }
  0x66   : > { %3662 = vmatpush3.bf16.msra.mxu1 %v4205_v29  ;;  %v4218_v60 = vld [vmem:[%s5305_s4 + $0x1c0] sm:$0xff]   ;;  %v4224_v16 = vld [vmem:[%s4618_s24 + $0x18] ss:$0 sps:$4 sm:$0xff]   ;;  %v4225_v28 = vld [vmem:[%s4618_s24 + $0x1c] ss:$0 sps:$4 sm:$0xff]   ;;  %s3269_s18 = sshll.u32 %s563_s20, 3 }
  0x67   : > { %3790 = vmatpush3.bf16.msra.mxu0 %v4206_v30  ;;  %3663 = vmatprep.subr.bf16.mxu1 %v4207_v31  ;;  %v815_v50 = vld [vmem:[#allocation2 + $0x18] sm:$0xf]  ;;  %v4638_v51 = vld [vmem:[#allocation2 + $0x10] sm:$0xf0]  ;;  %764 = vst [vmem:[#allocation2 + $0x40] sm:$0xf0] %v4224_v16 }
  0x68   : > { %3791 = vmatprep.subr.bf16.mxu0 %v4208_v32  ;;  %v814_v52 = vld [vmem:[#allocation2 + $0x10] sm:$0xf8]  ;;  %v1576_v53 = vrot.slane %v4638_v51, 4  ;;  %v1577_v54 = vrot.slane %v815_v50, 4  ;;  %v859_v58 = vshrl.u32 %v815_v50, 16  ;;  %v862_v59 = vshll.u32 %v815_v50, 16 }
  0x69   : > { %v851_v56 = vshrl.u32 %v814_v52, 16  ;;  %v854_v57 = vshll.u32 %v814_v52, 16  ;;  %v4652_v0 = vld [vmem:[#allocation2 + $0x20] sm:$0xf0]  ;;  %v817_v5 = vld [vmem:[#allocation2 + $0x28] sm:$0xf] }
  0x6a   : > { %3664 = vmatpush3.bf16.msra.mxu1 %v4207_v31  ;;  %v4650_v63 = vsel %vm1572_vm1, %v1576_v53, %v1577_v54  ;;  %v861_v8 = vrot.slane %v859_v58, 3  ;;  %v864_v9 = vrot.slane %v862_v59, 4  ;;  %v816_v10 = vld [vmem:[#allocation2 + $0x20] sm:$0xf8]  ;;  %v1579_v19 = vrot.slane %v4652_v0, 4  ;;  %v4219_v34 = vld [vmem:[%s5305_s4 + $0xc8] sm:$0xff]  }
  0x6b   : > { %3792 = vmatpush3.bf16.msra.mxu0 %v4208_v32  ;;  %3665 = vmatprep.subr.bf16.mxu1 %v4209_v35  ;;  %v812_v61 = vld [vmem:[#allocation2] sm:$0xf8]  ;;  %v813_v62 = vld [vmem:[#allocation2 + $0x8] sm:$0xf]  ;;  %v853_v6 = vrot.slane %v851_v56, 3  ;;  %v856_v7 = vrot.slane %v854_v57, 4 }
  0x6c   : > { %3793 = vmatprep.subr.bf16.mxu0 %v4210_v39  ;;  %v834_v1 = vshrl.u32 %v812_v61, 16  ;;  %v837_v2 = vshll.u32 %v812_v61, 16  ;;  %v842_v3 = vshrl.u32 %v813_v62, 16  ;;  %v845_v4 = vshll.u32 %v813_v62, 16  ;;  %3797 = vmatprep.mubr.bf16.mxu0 %v4650_v63  ;;  %v819_v21 = vld [vmem:[#allocation2 + $0x38] sm:$0xf] }
  0x6d   : > { %v857_v17 = vor.u32 %v856_v7, %v853_v6  ;;  %v865_v18 = vor.u32 %v864_v9, %v861_v8  ;;  %v1580_v20 = vrot.slane %v817_v5, 4  ;;  %v4661_v22 = vld [vmem:[#allocation2 + $0x30] sm:$0xf0]  ;;  %v868_v25 = vshrl.u32 %v816_v10, 16  ;;  %765 = vst [vmem:[#allocation2 + $0x48] sm:$0xf] %v4225_v28 }
  0x6e   : > { %3666 = vmatpush3.bf16.msra.mxu1 %v4209_v35  ;;  %v836_v11 = vrot.slane %v834_v1, 3  ;;  %v839_v12 = vrot.slane %v837_v2, 4  ;;  %v844_v13 = vrot.slane %v842_v3, 3  ;;  %v847_v14 = vrot.slane %v845_v4, 4  ;;  %v818_v27 = vld [vmem:[#allocation2 + $0x30] sm:$0xf8] }
  0x6f   : > { %3794 = vmatpush3.bf16.msra.mxu0 %v4210_v39  ;;  %3667 = vmatprep.subr.bf16.mxu1 %v4211_v46  ;;  %v871_v26 = vshll.u32 %v816_v10, 16  ;;  %v4665_v29 = vsel %vm832_vm2, %v857_v17, %v865_v18  ;;  %v4668_v30 = vsel %vm1572_vm1, %v1579_v19, %v1580_v20  ;;  %v876_v31 = vshrl.u32 %v817_v5, 16  ;;  %v4223_v50 = vld [vmem:[%s5305_s4 + $0xd0] sm:$0xff]   ;;  %v4694_v57 = vld [vmem:[#allocation2 + $0x40] sm:$0xf0]  ;;  %v4227_v7 = vld [vmem:[%s5305_s4 + $0xd8] sm:$0xff]  }
  0x70   : > { %3795 = vmatprep.subr.bf16.mxu0 %v4212_v47  ;;  %v840_v23 = vor.u32 %v839_v12, %v836_v11  ;;  %v848_v24 = vor.u32 %v847_v14, %v844_v13  ;;  %v879_v32 = vshll.u32 %v817_v5, 16  ;;  %v870_v35 = vrot.slane %v868_v25, 3  ;;  %v820_v58 = vld [vmem:[#allocation2 + $0x40] sm:$0xf8]  ;;  %v4229_v59 = vld [vmem:[%s4618_s24 + $0x20] ss:$0 sps:$4 sm:$0xff]  }
  0x71   : > { %v873_v36 = vrot.slane %v871_v26, 4  ;;  %v1582_v37 = vrot.slane %v4661_v22, 4  ;;  %v878_v38 = vrot.slane %v876_v31, 3  ;;  %v1583_v40 = vrot.slane %v819_v21, 4  ;;  %v4230_v2 = vld [vmem:[%s4618_s24 + $0x24] ss:$0 sps:$4 sm:$0xff]  }
  0x72   : > { %3668 = vmatpush3.bf16.msra.mxu1 %v4211_v46  ;;  %v849_v33 = vsel %vm832_vm2, %v840_v23, %v848_v24  ;;  %v881_v39 = vrot.slane %v879_v32, 4  ;;  %v885_v41 = vshrl.u32 %v818_v27, 16  ;;  %v888_v43 = vshll.u32 %v818_v27, 16  ;;  %v4226_v46 = vld [vmem:[%s5305_s4 + $0x1d0] sm:$0xff]   ;;  %766 = vst [vmem:[#allocation2 + $0x50] sm:$0xf0] %v4229_v59 }
  0x73   : > { %3796 = vmatpush3.bf16.msra.mxu0 %v4212_v47  ;;  %3685 = vmatprep.subr.bf16.mxu1 %v4644_v55  ;;  %v874_v42 = vor.u32 %v873_v36, %v870_v35  ;;  %v893_v44 = vshrl.u32 %v819_v21, 16  ;;  %v896_v45 = vshll.u32 %v819_v21, 16  ;;  %v4682_v48 = vsel %vm1572_vm1, %v1582_v37, %v1583_v40  ;;  %767 = vst [vmem:[#allocation2 + $0x58] sm:$0xf] %v4230_v2  ;;  %v4232_v12 = vld [vmem:[%s4618_s24 + $0x28] ss:$0 sps:$4 sm:$0xff]  }
  0x74   : > { %3813 = vmatprep.subr.bf16.mxu0 %v4218_v60  ;;  %3669 = vmatprep.mubr.bf16.mxu1 %v849_v33  ;;  %v882_v47 = vor.u32 %v881_v39, %v878_v38  ;;  %v887_v49 = vrot.slane %v885_v41, 3  ;;  %v890_v52 = vrot.slane %v888_v43, 4  ;;  %v1585_v62 = vrot.slane %v4694_v57, 4  ;;  %v821_v3 = vld [vmem:[#allocation2 + $0x48] sm:$0xf]  ;;  %v4234_v16 = vld [vmem:[%s5305_s4 + $0x1e0] sm:$0xff]  }
  0x75   : > { %3670 = vmatmul.mubr.bf16.vlgmr.msra.gmra.mrb[0].mxu1 %v4665_v29  ;;  %v895_v53 = vrot.slane %v893_v44, 3  ;;  %v898_v54 = vrot.slane %v896_v45, 4  ;;  %v902_v1 = vshrl.u32 %v820_v58, 16  ;;  %v905_v4 = vshll.u32 %v820_v58, 16  ;;  %v4231_v19 = vld [vmem:[%s5305_s4 + $0xe0] sm:$0xff]   ;;  %v4236_v20 = vld [vmem:[%s5305_s4 + $0x1e8] sm:$0xff]  }
  0x76   : > { %3798 = vmatmul.mubr.bf16.vlgmr.msra.gmra.mrb[0].mxu0 %v4668_v30  ;;  %3686 = vmatpush3.bf16.msra.mxu1 %v4644_v55  ;;  %v4228_v55 = vld [vmem:[%s5305_s4 + $0x1d8] sm:$0xff]   ;;  %v4692_v56 = vsel %vm832_vm2, %v874_v42, %v882_v47  ;;  %v1586_v6 = vrot.slane %v821_v3, 4  ;;  %v910_v9 = vshrl.u32 %v821_v3, 16  ;;  %v913_v11 = vshll.u32 %v821_v3, 16  ;;  %768 = vst [vmem:[#allocation2 + $0x60] sm:$0xf0] %v4232_v12 }
  0x77   : > { %3814 = vmatpush3.bf16.msra.mxu0 %v4218_v60  ;;  %3687 = vmatprep.subr.bf16.mxu1 %v4219_v34  ;;  %v891_v60 = vor.u32 %v890_v52, %v887_v49  ;;  %v899_v61 = vor.u32 %v898_v54, %v895_v53  ;;  %v904_v8 = vrot.slane %v902_v1, 3  ;;  %v907_v10 = vrot.slane %v905_v4, 4  ;;  %v4237_v23 = vld [vmem:[%s4618_s24 + $0x30] ss:$0 sps:$4 sm:$0xff]   ;;  %v4238_v26 = vld [vmem:[%s4618_s24 + $0x34] ss:$0 sps:$4 sm:$0xff]  }
  0x78   : > { %3815 = vmatprep.subr.bf16.mxu0 %v4220_v15  ;;  %3801 = vmatprep.mubr.bf16.mxu0 %v4682_v48  ;;  %v4709_v13 = vsel %vm1572_vm1, %v1585_v62, %v1586_v6  ;;  %v912_v14 = vrot.slane %v910_v9, 3  ;;  %v915_v18 = vrot.slane %v913_v11, 4  ;;  %770 = vst [vmem:[#allocation2 + $0x70] sm:$0xf0] %v4237_v23  ;;  %771 = vst [vmem:[#allocation2 + $0x78] sm:$0xf] %v4238_v26 }
  0x79   : > { %3673 = vmatprep.mubr.bf16.mxu1 %v4692_v56  ;;  %v4701_v5 = vsel %vm832_vm2, %v891_v60, %v899_v61  ;;  %v908_v17 = vor.u32 %v907_v10, %v904_v8  ;;  %v4723_v24 = vld [vmem:[#allocation2 + $0x50] sm:$0xf0]  ;;  %v4244_v60 = vld [vmem:[%s5305_s4 + $0x1f8] sm:$0xff]   ;;  %p659_p7 = scmp.lt.s32.totalorder %s4356_s11, 1  ;;  %s565_s21 = scalar_lea.vmem [#allocation5], %s3269_s18  ;;  %vm3066_vm5 = vcmask 23552  }
  0x7a   : > { %3688 = vmatpush3.bf16.msra.mxu1 %v4219_v34  ;;  %v916_v21 = vor.u32 %v915_v18, %v912_v14  ;;  %v822_v25 = vld [vmem:[#allocation2 + $0x50] sm:$0xf8]  ;;  %v823_v28 = vld [vmem:[#allocation2 + $0x58] sm:$0xf]  ;;  %v1588_v31 = vrot.slane %v4723_v24, 4  ;;  %v4235_v34 = vld [vmem:[%s5305_s4 + $0xe8] sm:$0xff]  }
  0x7b   : > { %3816 = vmatpush3.bf16.msra.mxu0 %v4220_v15  ;;  %3689 = vmatprep.subr.bf16.mxu1 %v4223_v50  ;;  %v4233_v15 = vld [vmem:[%s4618_s24 + $0x2c] ss:$0 sps:$4 sm:$0xff]   ;;  %v919_v32 = vshrl.u32 %v822_v25, 16  ;;  %v922_v33 = vshll.u32 %v822_v25, 16  ;;  %v1589_v35 = vrot.slane %v823_v28, 4  ;;  %v927_v36 = vshrl.u32 %v823_v28, 16 }
  0x7c   : > { %3817 = vmatprep.subr.bf16.mxu0 %v4226_v46  ;;  %769 = vst [vmem:[#allocation2 + $0x68] sm:$0xf] %v4233_v15  ;;  %v4727_v27 = vsel %vm832_vm2, %v908_v17, %v916_v21  ;;  %v930_v37 = vshll.u32 %v823_v28, 16  ;;  %v4242_v38 = vld [vmem:[%s5305_s4 + $0x1f0] sm:$0xff]   ;;  %v4240_v1 = vld [vmem:[%s4618_s24 + $0x38] ss:$0 sps:$4 sm:$0xff]  }
  0x7d   : > { %3674 = vmatmul.mubr.bf16.gmra.mrb[4].mxu1 %v4701_v5  ;;  %v921_v39 = vrot.slane %v919_v32, 3  ;;  %v924_v40 = vrot.slane %v922_v33, 4  ;;  %v4738_v41 = vsel %vm1572_vm1, %v1588_v31, %v1589_v35  ;;  %v929_v42 = vrot.slane %v927_v36, 3  ;;  %v4740_v44 = vld [vmem:[#allocation2 + $0x60] sm:$0xf0]  ;;  %v4239_v53 = vld [vmem:[%s5305_s4 + $0xf0] sm:$0xff]  }
  0x7e   : > { %3802 = vmatmul.mubr.bf16.gmra.mrb[4].mxu0 %v4709_v13  ;;  %3690 = vmatpush3.bf16.msra.mxu1 %v4223_v50  ;;  %v932_v43 = vrot.slane %v930_v37, 4  ;;  %v824_v45 = vld [vmem:[#allocation2 + $0x60] sm:$0xf8]  ;;  %v1591_v49 = vrot.slane %v4740_v44, 4  ;;  %v4241_v2 = vld [vmem:[%s4618_s24 + $0x3c] ss:$0 sps:$4 sm:$0xff]  }
  0x7f   : > { %3818 = vmatpush3.bf16.msra.mxu0 %v4226_v46  ;;  %3691 = vmatprep.subr.bf16.mxu1 %v4227_v7  ;;  %v925_v46 = vor.u32 %v924_v40, %v921_v39  ;;  %v936_v50 = vshrl.u32 %v824_v45, 16  ;;  %v939_v52 = vshll.u32 %v824_v45, 16  ;;  %v4758_v8 = vld [vmem:[#allocation2 + $0x70] sm:$0xf0]  ;;  %v827_v11 = vld [vmem:[#allocation2 + $0x78] sm:$0xf] }
  0x80   : > { %3819 = vmatprep.subr.bf16.mxu0 %v4228_v55  ;;  %3677 = vmatprep.mubr.bf16.mxu1 %v4727_v27  ;;  %v933_v54 = vor.u32 %v932_v43, %v929_v42  ;;  %v826_v9 = vld [vmem:[#allocation2 + $0x70] sm:$0xf8]  ;;  %v1594_v12 = vrot.slane %v4758_v8, 4  ;;  %772 = vst [vmem:[#allocation2 + $0x80] sm:$0xf0] %v4240_v1  ;;  %v1595_v18 = vrot.slane %v827_v11, 4 }
  0x81   : > { %3805 = vmatprep.mubr.bf16.mxu0 %v4738_v41  ;;  %v938_v61 = vrot.slane %v936_v50, 3  ;;  %v941_v62 = vrot.slane %v939_v52, 4  ;;  %v953_v14 = vshrl.u32 %v826_v9, 16  ;;  %v956_v15 = vshll.u32 %v826_v9, 16  ;;  %773 = vst [vmem:[#allocation2 + $0x88] sm:$0xf] %v4241_v2 }
  0x82   : > { %3692 = vmatpush3.bf16.msra.mxu1 %v4227_v7  ;;  %v4753_v3 = vsel %vm832_vm2, %v925_v46, %v933_v54  ;;  %v4246_v21 = vld [vmem:[%s5305_s4 + $0x80] sm:$0xff]   ;;  %v4773_v28 = vsel %vm1572_vm1, %v1594_v12, %v1595_v18  ;;  %v4247_v43 = vld [vmem:[%s5305_s4 + $0x188] sm:$0xff]   ;;  %v4249_v45 = vld [vmem:[%s5305_s4 + $0x190] sm:$0xff]   ;;  %s662_s25 = scalar_select %p659_p7, 1, 0  ;;  %v2180_v9 = vshrl.u32 %v4638_v51, 16 }
  0x83   : > { %3820 = vmatpush3.bf16.msra.mxu0 %v4228_v55  ;;  %3693 = vmatprep.subr.bf16.mxu1 %v4231_v19  ;;  %v825_v47 = vld [vmem:[#allocation2 + $0x68] sm:$0xf]  ;;  %v942_v10 = vor.u32 %v941_v62, %v938_v61  ;;  %v955_v23 = vrot.slane %v953_v14, 3  ;;  %v958_v25 = vrot.slane %v956_v15, 4  ;;  %v660_v46 = vld [vmem:[%s565_s21] sm:$0xf] }
  0x84   : > { %3821 = vmatprep.subr.bf16.mxu0 %v4234_v16  ;;  %v1592_v55 = vrot.slane %v825_v47, 4  ;;  %v944_v58 = vshrl.u32 %v825_v47, 16  ;;  %v947_v59 = vshll.u32 %v825_v47, 16  ;;  %v661_v47 = vld [vmem:[%s565_s21 + $0x4] sm:$0xf]  ;;  %v663_v50 = vstv %s662_s25  ;;  %v4254_v18 = vld [vmem:[%s5305_s4 + $0xa0] sm:$0xff]  }
  0x85   : > { %3678 = vmatmul.mubr.bf16.gmra.mrb[8].mxu1 %v4753_v3  ;;  %v959_v33 = vor.u32 %v958_v25, %v955_v23  ;;  %v4250_v52 = vld [vmem:[%s5305_s4 + $0x90] sm:$0xff]   ;;  %vm664_vm3 = vcmp.eq.s32.totalorder %v663_v50, 1  ;;  %v4252_v61 = vld [vmem:[%s5305_s4 + $0x98] sm:$0xff]   ;;  %v4255_v23 = vld [vmem:[%s5305_s4 + $0x1a8] sm:$0xff]   ;;  %v2197_v25 = vshrl.u32 %v4652_v0, 16  ;;  %s4375_s26 = smov 125  }
  0x86   : > { %3694 = vmatpush3.bf16.msra.mxu1 %v4231_v19  ;;  %v4756_v4 = vsel %vm1572_vm1, %v1591_v49, %v1592_v55  ;;  %v946_v6 = vrot.slane %v944_v58, 3  ;;  %v949_v7 = vrot.slane %v947_v59, 4  ;;  %v961_v19 = vshrl.u32 %v827_v11, 16  ;;  %s5325_s0 = sld [smem:[#allocation6_spill]]  ;;  %s3270_s24 = sshll.u32 %s4356_s11, 3 }
  0x87   : > { %3822 = vmatpush3.bf16.msra.mxu0 %v4234_v16  ;;  %3695 = vmatprep.subr.bf16.mxu1 %v4235_v34  ;;  %v4243_v16 = vld [vmem:[%s5305_s4 + $0xf8] sm:$0xff]   ;;  %v828_v49 = vld [vmem:[#allocation2 + $0x80] sm:$0xf8]  ;;  %v665_v54 = vsel %vm664_vm3, %v660_v46, 0  ;;  %v666_v55 = vsel %vm664_vm3, %v661_v47, 0  ;;  %v4257_v47 = vld [vmem:[%s5305_s4 + $0x1b0] sm:$0xff]  }
  0x88   : > { %3823 = vmatprep.subr.bf16.mxu0 %v4236_v20  ;;  %3806 = vmatmul.mubr.bf16.gmra.mrb[8].mxu0 %v4756_v4  ;;  %v950_v17 = vor.u32 %v949_v7, %v946_v6  ;;  %v963_v31 = vrot.slane %v961_v19, 3  ;;  %v4783_v37 = vld [vmem:[#allocation2 + $0x88] sm:$0xf]  ;;  %v3296_v59 = vcombine.low %v665_v54, %v665_v54  ;;  %v1155_v62 = vshrl.u32 %v828_v49, 16  ;;  %v4823_v6 = vld [vmem:[#allocation2] sm:$0xf0] }
  0x89   : > { %3809 = vmatprep.mubr.bf16.mxu0 %v4773_v28  ;;  %v1786_v40 = vrot.slane %v4783_v37, 4  ;;  %v1163_v58 = vshrl.u32 %v4783_v37, 16  ;;  %v1158_v1 = vshll.u32 %v828_v49, 16  ;;  %v1166_v2 = vshll.u32 %v4783_v37, 16  ;;  %v2151_v7 = vld [vmem:[#allocation2 + $0x8] sm:$0x1f] }
  0x8a   : > { %3696 = vmatpush3.bf16.msra.mxu1 %v4235_v34  ;;  %v4770_v26 = vsel %vm832_vm2, %v942_v10, %v950_v17  ;;  %v4245_v34 = vld [vmem:[%s5305_s4 + $0x180] sm:$0xff]   ;;  %783 = vst [vmem:[#allocation2 + $0x90] sm:$0xf0] %v3296_v59  ;;  %v2163_v14 = vshrl.u32 %v4823_v6, 16  ;;  %v2166_v15 = vshll.u32 %v4823_v6, 16  ;;  %v2174_v17 = vshll.u32 %v2151_v7, 16 }
  0x8b   : > { %3824 = vmatpush3.bf16.msra.mxu0 %v4236_v20  ;;  %v964_v20 = vshll.u32 %v827_v11, 16  ;;  %3697 = vmatprep.subr.bf16.mxu1 %v4239_v53  ;;  %v4253_v10 = vld [vmem:[%s5305_s4 + $0x1a0] sm:$0xff]   ;;  %v2183_v11 = vshll.u32 %v4638_v51, 16  ;;  %v1165_v12 = vrot.slane %v1163_v58, 3  ;;  %v1157_v19 = vrot.slane %v1155_v62, 3  ;;  %p622_p9 = scmp.lt.s32.totalorder %s3270_s24, 15 }
  0x8c   : > { %3825 = vmatprep.subr.bf16.mxu0 %v4242_v38  ;;  %3681 = vmatprep.mubr.bf16.mxu1 %v4770_v26  ;;  %v1160_v51 = vrot.slane %v1158_v1, 4  ;;  %v4863_v58 = vrot.slane %v2197_v25, 4  ;;  %v2214_v59 = vshrl.u32 %v4661_v22, 16  ;;  %vm2161_vm4 = vsmask.f32 3328  ;;  %p620_p8 = scmp.lt.s32.totalorder %s5325_s0, 1 }
  0x8d   : > { %v966_v32 = vrot.slane %v964_v20, 4  ;;  %v1168_v20 = vrot.slane %v1166_v2, 4  ;;  %v4853_v46 = vrot.slane %v2183_v11, 5  ;;  %v2154_v2 = vld [vmem:[#allocation2 + $0x38] sm:$0x1f]  ;;  %s5361_s24 = smov (!%p622_p9, %s3270_s24), 15 }
  0x8e   : > { %3698 = vmatpush3.bf16.msra.mxu1 %v4239_v53  ;;  %v4251_v53 = vld [vmem:[%s5305_s4 + $0x198] sm:$0xff]   ;;  %s5359_s0 = smov (!%p620_p8, %s5325_s0), 1  ;;  %s3271_s29 = sshll.u32 %s5361_s24, 1 }
  0x8f   : > { %3826 = vmatpush3.bf16.msra.mxu0 %v4242_v38  ;;  %v967_v35 = vor.u32 %v966_v32, %v963_v31  ;;  %3699 = vmatprep.subr.bf16.mxu1 %v4243_v16  ;;  %v4785_v38 = vld [vmem:[#allocation2 + $0x80] sm:$0xf0]  ;;  %v2200_v31 = vshll.u32 %v4652_v0, 16  ;;  %v4256_v32 = vld [vmem:[%s5305_s4 + $0xa8] sm:$0xff]   ;;  %s3272_s16 = sshll.u32 %s5359_s0, 5  ;;  %s5326_s18 = sld [smem:[#allocation11_spill]] }
  0x90   : > { %3827 = vmatprep.subr.bf16.mxu0 %v4244_v60  ;;  %v1785_v39 = vrot.slane %v4785_v38, 4  ;;  %s5149_s22 = sadd.s32 %s3272_s16, %s3271_s29  ;;  %s5327_s6 = sld [smem:[#allocation12_spill]] }
  0x91   : > { %v4781_v36 = vsel %vm832_vm2, %v959_v33, %v967_v35  ;;  %v2165_v33 = vrot.slane %v2163_v14, 4  ;;  %v2152_v35 = vld [vmem:[#allocation2 + $0x18] sm:$0x1f]  ;;  %v4851_v0 = vld [vmem:[#allocation2 + $0x90] sm:$0xf0]  ;;  %s3273_s12 = sshll.u32 %s5149_s22, 3 }
  0x92   : > { %3682 = vmatmul.mubr.bf16.gmra.mrb[12].mxu1 %v4781_v36  ;;  %v4793_v42 = vsel %vm1572_vm1, %v1785_v39, %v1786_v40  ;;  %v2176_v40 = vrot.slane %v2174_v17, 5  ;;  %v2188_v49 = vshrl.u32 %v2152_v35, 16  ;;  %v2191_v50 = vshll.u32 %v2152_v35, 16  ;;  %s5328_s19 = sld [smem:[#allocation13_spill]] }
  0x93   : > { %3828 = vmatpush3.bf16.msra.mxu0 %v4244_v60  ;;  %3700 = vmatpush3.bf16.msra.mxu1 %v4243_v16  ;;  %v3297_v60 = vcombine.low %v666_v55, %v666_v55  ;;  %v2171_v16 = vshrl.u32 %v2151_v7, 16  ;;  %v1969_v54 = vrot.slane %v4851_v0, 4  ;;  %v4259_v7 = vld [vmem:[%s5305_s4 + $0x1b8] sm:$0xff]   ;;  %v2222_v17 = vshrl.u32 %v2154_v2, 16 }
  0x94   : > { %3845 = vmatprep.subr.bf16.mxu0 %v4246_v21  ;;  %3701 = vmatprep.mubr.bf16.mxu1 %v4665_v29  ;;  %v4248_v29 = vld [vmem:[%s5305_s4 + $0x88] sm:$0xff]   ;;  %v2193_v11 = vrot.slane %v2191_v50, 5 }
  0x95   : > { %3717 = vmatprep.subr.bf16.mxu1 %v4245_v34  ;;  %3810 = vmatmul.mubr.bf16.gmra.mrb[12].mxu0 %v4793_v42  ;;  %784 = vst [vmem:[#allocation2 + $0x98] sm:$0xf] %v3297_v60  ;;  %v2173_v39 = vrot.slane %v2171_v16, 4  ;;  %v4264_v50 = vld [vmem:[%s5305_s4 + $0x148] sm:$0xff]   ;;  %s5155_s8 = scalar_lea.vmem %s5326_s18, %s3273_s12 }
  0x96   : > { %3829 = vmatprep.mubr.bf16.mxu0 %v4668_v30 }
  0x97   : > { %v2177_v1 = vor.u32 %v2176_v40, %v2173_v39  ;;  %v4263_v40 = vld [vmem:[%s5305_s4 + $0x48] sm:$0xff]  }
  0x9a   : > { %3702 = vmatmul.mubr.bf16.vlgmr.msra.gmra.mrb[0].mxu1 %v4692_v56 }
  0x9b   : > { %3718 = vmatpush3.bf16.msra.mxu1 %v4245_v34  ;;  %3705 = vmatprep.mubr.bf16.mxu1 %v4701_v5  ;;  %v2168_v34 = vrot.slane %v2166_v15, 5  ;;  %v2217_v15 = vshll.u32 %v4661_v22, 16 }
  0x9c   : > { %3719 = vmatprep.subr.bf16.mxu1 %v4247_v43  ;;  %v4849_v37 = vld [vmem:[#allocation2 + $0x98] sm:$0xf] }
  0x9d   : > { %3830 = vmatmul.mubr.bf16.vlgmr.msra.gmra.mrb[0].mxu0 %v4682_v48  ;;  %v1970_v55 = vrot.slane %v4849_v37, 4  ;;  %v2169_v62 = vor.u32 %v2168_v34, %v2165_v33  ;;  %v2156_v33 = vld [vmem:[#allocation2 + $0x58] sm:$0x1f]  ;;  %v2234_v34 = vshll.u32 %v4694_v57, 16 }
  0x9e   : > { %3846 = vmatpush3.bf16.msra.mxu0 %v4246_v21  ;;  %3833 = vmatprep.mubr.bf16.mxu0 %v4709_v13  ;;  %v4838_v21 = vrot.slane %v2180_v9, 4  ;;  %v2190_v9 = vrot.slane %v2188_v49, 4 }
  0x9f   : > { %3847 = vmatprep.subr.bf16.mxu0 %v4248_v29  ;;  %3720 = vmatpush3.bf16.msra.mxu1 %v4247_v43  ;;  %v2153_v43 = vld [vmem:[#allocation2 + $0x28] sm:$0x1f]  ;;  %v1971_v16 = vsel %vm1572_vm1, %v1969_v54, %v1970_v55  ;;  %v2265_v54 = vshrl.u32 %v4740_v44, 16  ;;  %v4265_v55 = vld [vmem:[%s5305_s4 + $0x50] sm:$0xff]  }
  0xa0   : > { %3721 = vmatprep.subr.bf16.mxu1 %v4249_v45  ;;  %v2186_v22 = vor.u32 %v4853_v46, %v4838_v21  ;;  %v4262_v21 = vld [vmem:[%s5305_s4 + $0x140] sm:$0xff]   ;;  %v2248_v46 = vshrl.u32 %v4723_v24, 16 }
  0xa2   : > { %3848 = vmatpush3.bf16.msra.mxu0 %v4248_v29  ;;  %3706 = vmatmul.mubr.bf16.gmra.mrb[4].mxu1 %v4727_v27  ;;  %v1161_v29 = vor.u32 %v1160_v51, %v1157_v19  ;;  %v2178_v19 = vsel %vm2161_vm4, %v2169_v62, %v2177_v1  ;;  %v2155_v51 = vld [vmem:[#allocation2 + $0x48] sm:$0x1f]  ;;  %v4920_v1 = vrot.slane %v2248_v46, 4 }
  0xa3   : > { %3849 = vmatprep.subr.bf16.mxu0 %v4250_v52  ;;  %3722 = vmatpush3.bf16.msra.mxu1 %v4249_v45  ;;  %v1169_v45 = vor.u32 %v1168_v20, %v1165_v12  ;;  %v4261_v20 = vld [vmem:[%s5305_s4 + $0x40] sm:$0xff]   ;;  %v2239_v35 = vshrl.u32 %v2155_v51, 16  ;;  %v2242_v39 = vshll.u32 %v2155_v51, 16 }
  0xa4   : > { %3723 = vmatprep.subr.bf16.mxu1 %v4251_v53  ;;  %3709 = vmatprep.mubr.bf16.mxu1 %v4753_v3 }
  0xa5   : > { %3834 = vmatmul.mubr.bf16.gmra.mrb[4].mxu0 %v4738_v41  ;;  %v4867_v60 = vsel %vm832_vm2, %v1161_v29, %v1169_v45  ;;  %v2224_v29 = vrot.slane %v2222_v17, 4 }
  0xa6   : > { %3850 = vmatpush3.bf16.msra.mxu0 %v4250_v52  ;;  %3837 = vmatprep.mubr.bf16.mxu0 %v4756_v4  ;;  %v2205_v52 = vshrl.u32 %v2153_v43, 16 }
  0xa7   : > { %3851 = vmatprep.subr.bf16.mxu0 %v4252_v61  ;;  %3724 = vmatpush3.bf16.msra.mxu1 %v4251_v53  ;;  %v2208_v53 = vshll.u32 %v2153_v43, 16 }
  0xa8   : > { %3725 = vmatprep.subr.bf16.mxu1 %v4253_v10  ;;  %v2207_v12 = vrot.slane %v2205_v52, 4  ;;  %v2259_v52 = vshll.u32 %v2156_v33, 16 }
  0xa9   : > { %v2210_v14 = vrot.slane %v2208_v53, 5  ;;  %v2157_v53 = vld [vmem:[#allocation2 + $0x68] sm:$0x1f] }
  0xaa   : > { %3852 = vmatpush3.bf16.msra.mxu0 %v4252_v61  ;;  %3710 = vmatmul.mubr.bf16.gmra.mrb[8].mxu1 %v4770_v26  ;;  %v4258_v61 = vld [vmem:[%s5305_s4 + $0xb0] sm:$0xff]  }
  0xab   : > { %3853 = vmatprep.subr.bf16.mxu0 %v4254_v18  ;;  %3726 = vmatpush3.bf16.msra.mxu1 %v4253_v10  ;;  %v4260_v10 = vld [vmem:[%s5305_s4 + $0xb8] sm:$0xff]   ;;  %v2211_v43 = vor.u32 %v2210_v14, %v2207_v12  ;;  %v2261_v14 = vrot.slane %v2259_v52, 5 }
  0xac   : > { %3727 = vmatprep.subr.bf16.mxu1 %v4255_v23  ;;  %3713 = vmatprep.mubr.bf16.mxu1 %v4781_v36 }
  0xad   : > { %3838 = vmatmul.mubr.bf16.gmra.mrb[8].mxu0 %v4773_v28 }
  0xae   : > { %3854 = vmatpush3.bf16.msra.mxu0 %v4254_v18  ;;  %3841 = vmatprep.mubr.bf16.mxu0 %v4793_v42  ;;  %v4872_v42 = vrot.slane %v2200_v31, 5  ;;  %v2225_v18 = vshll.u32 %v2154_v2, 16  ;;  %v4892_v31 = vrot.slane %v2214_v59, 4  ;;  %v2241_v59 = vrot.slane %v2239_v35, 4 }
  0xaf   : > { %3855 = vmatprep.subr.bf16.mxu0 %v4256_v32  ;;  %3728 = vmatpush3.bf16.msra.mxu1 %v4255_v23  ;;  %v2194_v23 = vor.u32 %v2193_v11, %v2190_v9  ;;  %v2273_v2 = vshrl.u32 %v2157_v53, 16  ;;  %v830_v9 = vld [vmem:[#allocation2 + $0x90] sm:$0xf8]  ;;  %v1359_v35 = vshrl.u32 %v4849_v37, 16 }
  0xb0   : > { %3729 = vmatprep.subr.bf16.mxu1 %v4257_v47  ;;  %v2203_v25 = vor.u32 %v4872_v42, %v4863_v58  ;;  %v2227_v45 = vrot.slane %v2225_v18, 5  ;;  %v2236_v58 = vrot.slane %v2234_v34, 5  ;;  %v2268_v42 = vshll.u32 %v4740_v44, 16  ;;  %v4267_v44 = vld [vmem:[%s5305_s4 + $0x58] sm:$0xff]  }
  0xb1   : > { %v4907_v49 = vsel %vm2161_vm4, %v2186_v22, %v2194_v23  ;;  %v2275_v51 = vrot.slane %v2273_v2, 4  ;;  %v4268_v22 = vld [vmem:[%s5305_s4 + $0x158] sm:$0xff]  }
  0xb2   : > { %3856 = vmatpush3.bf16.msra.mxu0 %v4256_v32  ;;  %3714 = vmatmul.mubr.bf16.gmra.mrb[12].mxu1 %v4867_v60  ;;  %v4894_v32 = vrot.slane %v2217_v15, 5  ;;  %v4918_v62 = vsel %vm2161_vm4, %v2203_v25, %v2211_v43  ;;  %v4930_v15 = vrot.slane %v2265_v54, 4  ;;  %v2270_v18 = vrot.slane %v2268_v42, 5 }
  0xb3   : > { %3857 = vmatprep.subr.bf16.mxu0 %v4258_v61  ;;  %3730 = vmatpush3.bf16.msra.mxu1 %v4257_v47  ;;  %v2256_v47 = vshrl.u32 %v2156_v33, 16  ;;  %v2158_v33 = vld [vmem:[#allocation2 + $0x78] sm:$0x1f]  ;;  %v2681_v43 = vshrl.u32 %v4851_v0, 16 }
  0xb4   : > { %3731 = vmatprep.subr.bf16.mxu1 %v4259_v7  ;;  %3733 = vmatprep.mubr.bf16.mxu1 %v4692_v56  ;;  %v2231_v56 = vshrl.u32 %v4694_v57, 16  ;;  %v2251_v57 = vshll.u32 %v4723_v24, 16  ;;  %v2290_v46 = vshrl.u32 %v2158_v33, 16 }
  0xb5   : > { %3842 = vmatmul.mubr.bf16.gmra.mrb[12].mxu0 %v1971_v16  ;;  %v2258_v12 = vrot.slane %v2256_v47, 4  ;;  %v2684_v47 = vshll.u32 %v4851_v0, 16  ;;  %v4271_v0 = vld [vmem:[%s5305_s4 + $0x68] sm:$0xff]  }
  0xb6   : > { %3858 = vmatpush3.bf16.msra.mxu0 %v4258_v61  ;;  %3861 = vmatprep.mubr.bf16.mxu0 %v2178_v19  ;;  %v2233_v24 = vrot.slane %v2231_v56, 4  ;;  %v2244_v61 = vrot.slane %v2242_v39, 5  ;;  %v2253_v11 = vrot.slane %v2251_v57, 5  ;;  %v1351_v19 = vshrl.u32 %v830_v9, 16  ;;  %v2160_v57 = vld [vmem:[#allocation2 + $0x98] sm:$0x1f] }
  0xb7   : > { %3859 = vmatprep.subr.bf16.mxu0 %v4260_v10  ;;  %3732 = vmatpush3.bf16.msra.mxu1 %v4259_v7  ;;  %v2276_v7 = vshll.u32 %v2157_v53, 16  ;;  %v2262_v34 = vor.u32 %v2261_v14, %v2258_v12  ;;  %v2271_v39 = vor.u32 %v2270_v18, %v4930_v15  ;;  %v2692_v52 = vshll.u32 %v2160_v57, 16  ;;  %v4270_v53 = vld [vmem:[%s5305_s4 + $0x160] sm:$0xff]  }
  0xb8   : > { %3749 = vmatprep.subr.bf16.mxu1 %v4261_v20  ;;  %v2237_v16 = vor.u32 %v2236_v58, %v2233_v24  ;;  %v2245_v17 = vor.u32 %v2244_v61, %v2241_v59  ;;  %v2254_v56 = vor.u32 %v2253_v11, %v4920_v1  ;;  %v2686_v24 = vrot.slane %v2684_v47, 5 }
  0xb9   : > { %v2694_v59 = vrot.slane %v2692_v52, 5  ;;  %v2292_v2 = vrot.slane %v2290_v46, 4 }
  0xba   : > { %3860 = vmatpush3.bf16.msra.mxu0 %v4260_v10  ;;  %3734 = vmatmul.mubr.bf16.vlgmr.msra.gmra.mrb[0].mxu1 %v4701_v5  ;;  %v2220_v5 = vor.u32 %v4894_v32, %v4892_v31  ;;  %v4266_v10 = vld [vmem:[%s5305_s4 + $0x150] sm:$0xff]   ;;  %v4944_v25 = vsel %vm2161_vm4, %v2237_v16, %v2245_v17  ;;  %v4269_v31 = vld [vmem:[%s5305_s4 + $0x60] sm:$0xff]   ;;  %v1354_v32 = vshll.u32 %v830_v9, 16  ;;  %v4967_v61 = vsel %vm2161_vm4, %v2254_v56, %v2262_v34 }
  0xbb   : > { %3877 = vmatprep.subr.bf16.mxu0 %v4262_v21  ;;  %3750 = vmatpush3.bf16.msra.mxu1 %v4261_v20  ;;  %v2278_v20 = vrot.slane %v2276_v7, 5  ;;  %v2485_v56 = vshrl.u32 %v4785_v38, 16  ;;  %v2488_v34 = vshll.u32 %v4785_v38, 16  ;;  %v4283_v38 = vld [vmem:[%s5305_s4 + $0x230] sm:$0xff]  }
  0xbc   : > { %3751 = vmatprep.subr.bf16.mxu1 %v4263_v40  ;;  %3737 = vmatprep.mubr.bf16.mxu1 %v4727_v27  ;;  %v2228_v27 = vor.u32 %v2227_v45, %v2224_v29  ;;  %v2282_v29 = vshrl.u32 %v4758_v8, 16  ;;  %v2285_v45 = vshll.u32 %v4758_v8, 16  ;;  %v1356_v54 = vrot.slane %v1354_v32, 4  ;;  %v4278_v32 = vld [vmem:[%s5305_s4 + $0x208] sm:$0xff]  }
  0xbd   : > { %3862 = vmatmul.mubr.bf16.vlgmr.msra.gmra.mrb[0].mxu0 %v4907_v49 }
  0xbe   : > { %3878 = vmatpush3.bf16.msra.mxu0 %v4262_v21  ;;  %3865 = vmatprep.mubr.bf16.mxu0 %v4918_v62  ;;  %v4941_v23 = vsel %vm2161_vm4, %v2220_v5, %v2228_v27  ;;  %v2279_v21 = vor.u32 %v2278_v20, %v2275_v51  ;;  %v2284_v1 = vrot.slane %v2282_v29, 4  ;;  %v2287_v5 = vrot.slane %v2285_v45, 5  ;;  %v4284_v29 = vld [vmem:[%s5305_s4 + $0x238] sm:$0xff]  }
  0xbf   : > { %3879 = vmatprep.subr.bf16.mxu0 %v4264_v50  ;;  %3752 = vmatpush3.bf16.msra.mxu1 %v4263_v40  ;;  %v1353_v40 = vrot.slane %v1351_v19, 3  ;;  %v1573_v27 = vrot.slane %v4823_v6, 4  ;;  %v4274_v19 = vld [vmem:[%s5305_s4 + $0x170] sm:$0xff]   ;;  %v4275_v6 = vld [vmem:[%s5305_s4 + $0x78] sm:$0xff]  }
  0xc0   : > { %3753 = vmatprep.subr.bf16.mxu1 %v4265_v55  ;;  %v4974_v11 = vsel %vm2161_vm4, %v2271_v39, %v2279_v21  ;;  %v2288_v17 = vor.u32 %v2287_v5, %v2284_v1  ;;  %v2490_v39 = vrot.slane %v2488_v34, 5 }
  0xc1   : > { %v1357_v12 = vor.u32 %v1356_v54, %v1353_v40 }
  0xc2   : > { %3880 = vmatpush3.bf16.msra.mxu0 %v4264_v50  ;;  %3738 = vmatmul.mubr.bf16.gmra.mrb[4].mxu1 %v4753_v3  ;;  %v1362_v3 = vshll.u32 %v4849_v37, 16  ;;  %v2683_v37 = vrot.slane %v2681_v43, 4  ;;  %v2689_v50 = vshrl.u32 %v2160_v57, 16 }
  0xc3   : > { %3881 = vmatprep.subr.bf16.mxu0 %v4266_v10  ;;  %3754 = vmatpush3.bf16.msra.mxu1 %v4265_v55  ;;  %v1361_v55 = vrot.slane %v1359_v35, 3 }
  0xc4   : > { %3755 = vmatprep.subr.bf16.mxu1 %v4267_v44  ;;  %3741 = vmatprep.mubr.bf16.mxu1 %v4770_v26  ;;  %v2293_v26 = vshll.u32 %v2158_v33, 16  ;;  %v1364_v8 = vrot.slane %v1362_v3, 4  ;;  %v2691_v58 = vrot.slane %v2689_v50, 4  ;;  %v2687_v42 = vor.u32 %v2686_v24, %v2683_v37  ;;  %v4279_v33 = vld [vmem:[%s5305_s4 + $0x210] sm:$0xff]  }
  0xc5   : > { %3866 = vmatmul.mubr.bf16.gmra.mrb[4].mxu0 %v4941_v23  ;;  %v2487_v3 = vrot.slane %v2485_v56, 4 }
  0xc6   : > { %3882 = vmatpush3.bf16.msra.mxu0 %v4266_v10  ;;  %3869 = vmatprep.mubr.bf16.mxu0 %v4944_v25  ;;  %v2295_v7 = vrot.slane %v2293_v26, 5  ;;  %v2695_v9 = vor.u32 %v2694_v59, %v2691_v58  ;;  %v4272_v10 = vld [vmem:[%s5305_s4 + $0x168] sm:$0xff]   ;;  %v1365_v14 = vor.u32 %v1364_v8, %v1361_v55 }
  0xc7   : > { %3883 = vmatprep.subr.bf16.mxu0 %v4268_v22  ;;  %3756 = vmatpush3.bf16.msra.mxu1 %v4267_v44  ;;  %v4285_v44 = vld [vmem:[#allocation2 + $0x8] sm:$0xf]  ;;  %v2491_v43 = vor.u32 %v2490_v39, %v2487_v3 }
  0xc8   : > { %3757 = vmatprep.subr.bf16.mxu1 %v4269_v31  ;;  %v4981_v15 = vsel %vm2161_vm4, %v2687_v42, %v2695_v9  ;;  %v1574_v16 = vrot.slane %v4285_v44, 4  ;;  %v2296_v18 = vor.u32 %v2295_v7, %v2292_v2 }
  0xca   : > { %3884 = vmatpush3.bf16.msra.mxu0 %v4268_v22  ;;  %3742 = vmatmul.mubr.bf16.gmra.mrb[8].mxu1 %v4781_v36  ;;  %v4273_v36 = vld [vmem:[%s5305_s4 + $0x70] sm:$0xff]   ;;  %v1575_v51 = vsel %vm1572_vm1, %v1573_v27, %v1574_v16  ;;  %v4995_v20 = vsel %vm2161_vm4, %v2288_v17, %v2296_v18  ;;  %v4276_v22 = vld [vmem:[%s5305_s4 + $0x178] sm:$0xff]  }
  0xcb   : > { %3885 = vmatprep.subr.bf16.mxu0 %v4270_v53  ;;  %3758 = vmatpush3.bf16.msra.mxu1 %v4269_v31  ;;  %v4277_v31 = vld [vmem:[%s5305_s4 + $0x200] sm:$0xff]  }
  0xcc   : > { %3759 = vmatprep.subr.bf16.mxu1 %v4271_v0  ;;  %3745 = vmatprep.mubr.bf16.mxu1 %v4867_v60  ;;  %v1366_v60 = vsel %vm832_vm2, %v1357_v12, %v1365_v14 }
  0xcd   : > { %3870 = vmatmul.mubr.bf16.gmra.mrb[8].mxu0 %v4967_v61 }
  0xce   : > { %3886 = vmatpush3.bf16.msra.mxu0 %v4270_v53  ;;  %3873 = vmatprep.mubr.bf16.mxu0 %v4974_v11 }
  0xcf   : > { %3887 = vmatprep.subr.bf16.mxu0 %v4272_v10  ;;  %3760 = vmatpush3.bf16.msra.mxu1 %v4271_v0 }
  0xd0   : > { %3761 = vmatprep.subr.bf16.mxu1 %v4273_v36 }
  0xd2   : > { %3888 = vmatpush3.bf16.msra.mxu0 %v4272_v10  ;;  %3746 = vmatmul.mubr.bf16.gmra.mrb[12].mxu1 %v1366_v60 }
  0xd3   : > { %3889 = vmatprep.subr.bf16.mxu0 %v4274_v19  ;;  %3762 = vmatpush3.bf16.msra.mxu1 %v4273_v36 }
  0xd4   : > { %3763 = vmatprep.subr.bf16.mxu1 %v4275_v6  ;;  %3765 = vmatprep.mubr.bf16.mxu1 %v1575_v51 }
  0xd5   : > { %3874 = vmatmul.mubr.bf16.gmra.mrb[12].mxu0 %v4995_v20 }
  0xd6   : > { %3890 = vmatpush3.bf16.msra.mxu0 %v4274_v19  ;;  %3893 = vmatprep.mubr.bf16.mxu0 %v4907_v49  ;;  %v4281_v49 = vld [vmem:[%s5305_s4 + $0x220] sm:$0xff]  }
  0xd7   : > { %3891 = vmatprep.subr.bf16.mxu0 %v4276_v22  ;;  %3764 = vmatpush3.bf16.msra.mxu1 %v4275_v6 }
  0xd8   : > { %3941 = vmatprep.subr.bf16.mxu1 %v4277_v31 }
  0xda   : > { %3892 = vmatpush3.bf16.msra.mxu0 %v4276_v22  ;;  %3766 = vmatmul.mubr.bf16.vlgmr.msra.gmra.mrb[0].mxu1 %v4650_v63  ;;  %v4280_v63 = vld [vmem:[%s5305_s4 + $0x218] sm:$0xff]  }
  0xdb   : > { %3909 = vmatprep.subr.bf16.mxu0 %v4277_v31  ;;  %3949 = vmatpush3.bf16.msra.mxu1 %v4277_v31 }
  0xdc   : > { %3942 = vmatprep.subr.bf16.mxu1 %v4278_v32  ;;  %3769 = vmatprep.mubr.bf16.mxu1 %v4668_v30  ;;  %v2159_v30 = vld [vmem:[#allocation2 + $0x88] sm:$0x1f] }
  0xdd   : > { %3894 = vmatmul.mubr.bf16.vlgmr.msra.gmra.mrb[0].mxu0 %v4918_v62  ;;  %v2496_v35 = vshll.u32 %v2159_v30, 16 }
  0xde   : > { %3910 = vmatpush3.bf16.msra.mxu0 %v4277_v31  ;;  %3897 = vmatprep.mubr.bf16.mxu0 %v4941_v23 }
  0xdf   : > { %3911 = vmatprep.subr.bf16.mxu0 %v4278_v32  ;;  %3950 = vmatpush3.bf16.msra.mxu1 %v4278_v32  ;;  %v2498_v40 = vrot.slane %v2496_v35, 5 }
  0xe0   : > { %3943 = vmatprep.subr.bf16.mxu1 %v4279_v33 }
  0xe2   : > { %3912 = vmatpush3.bf16.msra.mxu0 %v4278_v32  ;;  %3770 = vmatmul.mubr.bf16.gmra.mrb[4].mxu1 %v4682_v48  ;;  %v2493_v48 = vshrl.u32 %v2159_v30, 16 }
  0xe3   : > { %3913 = vmatprep.subr.bf16.mxu0 %v4279_v33  ;;  %3951 = vmatpush3.bf16.msra.mxu1 %v4279_v33 }
  0xe4   : > { %3944 = vmatprep.subr.bf16.mxu1 %v4280_v63  ;;  %3773 = vmatprep.mubr.bf16.mxu1 %v4709_v13  ;;  %v4282_v13 = vld [vmem:[%s5305_s4 + $0x228] sm:$0xff]   ;;  %v2495_v21 = vrot.slane %v2493_v48, 4 }
  0xe5   : > { %3898 = vmatmul.mubr.bf16.gmra.mrb[4].mxu0 %v4944_v25 }
  0xe6   : > { %3914 = vmatpush3.bf16.msra.mxu0 %v4279_v33  ;;  %3901 = vmatprep.mubr.bf16.mxu0 %v4967_v61 }
  0xe7   : > { %3915 = vmatprep.subr.bf16.mxu0 %v4280_v63  ;;  %3952 = vmatpush3.bf16.msra.mxu1 %v4280_v63 }
  0xe8   : > { %3945 = vmatprep.subr.bf16.mxu1 %v4281_v49 }
  0xea   : > { %3916 = vmatpush3.bf16.msra.mxu0 %v4280_v63  ;;  %3774 = vmatmul.mubr.bf16.gmra.mrb[8].mxu1 %v4738_v41  ;;  %v2499_v41 = vor.u32 %v2498_v40, %v2495_v21 }
  0xeb   : > { %3917 = vmatprep.subr.bf16.mxu0 %v4281_v49  ;;  %3953 = vmatpush3.bf16.msra.mxu1 %v4281_v49 }
  0xec   : > { %3946 = vmatprep.subr.bf16.mxu1 %v4282_v13  ;;  %3777 = vmatprep.mubr.bf16.mxu1 %v4756_v4  ;;  %v2500_v4 = vsel %vm2161_vm4, %v2491_v43, %v2499_v41 }
  0xed   : > { %3902 = vmatmul.mubr.bf16.gmra.mrb[8].mxu0 %v4974_v11 }
  0xee   : > { %3918 = vmatpush3.bf16.msra.mxu0 %v4281_v49  ;;  %3905 = vmatprep.mubr.bf16.mxu0 %v4995_v20 }
  0xef   : > { %3919 = vmatprep.subr.bf16.mxu0 %v4282_v13  ;;  %3954 = vmatpush3.bf16.msra.mxu1 %v4282_v13 }
  0xf0   : > { %3947 = vmatprep.subr.bf16.mxu1 %v4283_v38 }
  0xf2   : > { %3920 = vmatpush3.bf16.msra.mxu0 %v4282_v13  ;;  %3778 = vmatmul.mubr.bf16.gmra.mrb[12].mxu1 %v4773_v28 }
  0xf3   : > { %3921 = vmatprep.subr.bf16.mxu0 %v4283_v38  ;;  %3955 = vmatpush3.bf16.msra.mxu1 %v4283_v38 }
  0xf4   : > { %3948 = vmatprep.subr.bf16.mxu1 %v4284_v29  ;;  %3933 = vmatprep.mubr.bf16.mxu1 %v4974_v11 }
  0xf5   : > { %3906 = vmatmul.mubr.bf16.gmra.mrb[12].mxu0 %v2500_v4 }
  0xf6   : > { %3922 = vmatpush3.bf16.msra.mxu0 %v4283_v38  ;;  %3925 = vmatprep.mubr.bf16.mxu0 %v4918_v62 }
  0xf7   : > { %3923 = vmatprep.subr.bf16.mxu0 %v4284_v29  ;;  %3956 = vmatpush3.bf16.msra.mxu1 %v4284_v29 }
  0xfa   : > { %3924 = vmatpush3.bf16.msra.mxu0 %v4284_v29  ;;  %3934 = vmatmul.mubr.bf16.vlgmr.msra.gmra.mrb[16].mxu1 %v4995_v20 }
  0xfb   : > { %3937 = vmatprep.mubr.bf16.mxu1 %v2500_v4 }
  0xfd   : > { %3926 = vmatmul.mubr.bf16.vlgmr.msra.gmra.mrb[0].mxu0 %v4941_v23  ;;  %v5060_v23 = vld [vmem:[%s5306_s5] ss:$0 sm:$0xff] }
  0xfe   : > { %3929 = vmatprep.mubr.bf16.mxu0 %v4944_v25 }
 0x102   : > { %3938 = vmatmul.mubr.bf16.gmra.mrb[20].mxu1 %v4981_v15 }
 0x105   : > { %3930 = vmatmul.mubr.bf16.gmra.mrb[4].mxu0 %v4967_v61 }
 0x1ad   : > { %v3767_v28 = vpop.f32.mrb[0].mxu1 }
 0x1ae   : > { %v1704_v45 = vpop.f32.mrb[1].mxu1  ;;  %v3957_v31 = vadd.f32 %v3767_v28, %v5060_v23 }
 0x1af   : > { %v3768_v46 = vpop.f32.mrb[2].mxu1  ;;  %v3959_v63 = vadd.f32 %v5060_v23, %v1704_v45 }
 0x1b0   : > { %v1707_v57 = vpop.f32.mrb[3].mxu1  ;;  %v3961_v34 = vadd.f32 %v3768_v46, %v5060_v23 }
 0x1b1   : > { %v3963_v3 = vadd.f32 %v5060_v23, %v1707_v57 }
 0x1b5   : > { %v5049_v47 = vpop.f32.mrb[4].mxu1 }
 0x1b6   : > { %v5051_v62 = vpop.f32.mrb[5].mxu1  ;;  %v3965_v28 = vadd.f32 %v5049_v47, %v5060_v23 }
 0x1b7   : > { %v5053_v26 = vpop.f32.mrb[6].mxu1  ;;  %v3967_v57 = vadd.f32 %v5060_v23, %v5051_v62 }
 0x1b8   : > { %v5055_v37 = vpop.f32.mrb[7].mxu1 }
 0x1bd   : > { %v3775_v25 = vpop.f32.mrb[8].mxu1 }
 0x1be   : > { %v3973_v50 = vadd.f32 %v3775_v25, %v5060_v23  ;;  %v1736_v52 = vpop.f32.mrb[9].mxu1 }
 0x1bf   : > { %v3976_v53 = vadd.f32 %v5060_v23, %v1736_v52  ;;  %v3776_v54 = vpop.f32.mrb[10].mxu1 }
 0x1c0   : > { %v3903_v55 = vpop.f32.mrb[8].mxu0  ;;  %v3979_v8 = vadd.f32 %v3776_v54, %v5060_v23  ;;  %v1739_v24 = vpop.f32.mrb[11].mxu1 }
 0x1c1   : > { %v3974_v0 = vadd.f32 %v3973_v50, %v3903_v55  ;;  %v2633_v58 = vpop.f32.mrb[9].mxu0  ;;  %v3982_v59 = vadd.f32 %v5060_v23, %v1739_v24 }
 0x1c2   : > { %v3977_v61 = vadd.f32 %v3976_v53, %v2633_v58  ;;  %v3904_v1 = vpop.f32.mrb[10].mxu0  ;;  %v3969_v53 = vadd.f32 %v5053_v26, %v5060_v23 }
 0x1c3   : > { %v3980_v42 = vadd.f32 %v3979_v8, %v3904_v1  ;;  %v2636_v5 = vpop.f32.mrb[11].mxu0  ;;  %v3971_v8 = vadd.f32 %v5060_v23, %v5055_v37  ;;  %v5160_v37 = vld [vmem:[%s5327_s6] ss:$0 sm:$0xff] }
 0x1c4   : > { %v3983_v2 = vadd.f32 %v3982_v59, %v2636_v5  ;;  %v2878_v59 = vld [vmem:[%s5155_s8 + $0x10] sm:$0xff]  ;;  %v5168_v1 = vld [vmem:[%s5328_s19] ss:$0 sm:$0xff] }
 0x1c5   : > { %v3779_v7 = vpop.f32.mrb[12].mxu1  ;;  %v2901_v5 = vsub.f32 %v2878_v59, %v5160_v37 }
 0x1c6   : > { %v3985_v9 = vadd.f32 %v3779_v7, %v5060_v23  ;;  %v1752_v10 = vpop.f32.mrb[13].mxu1 }
 0x1c7   : > { %v3988_v11 = vadd.f32 %v5060_v23, %v1752_v10  ;;  %v3780_v12 = vpop.f32.mrb[14].mxu1 }
 0x1c8   : > { %v3907_v14 = vpop.f32.mrb[12].mxu0  ;;  %v3991_v36 = vadd.f32 %v3780_v12, %v5060_v23  ;;  %v1755_v15 = vpop.f32.mrb[15].mxu1 }
 0x1c9   : > { %v3986_v27 = vadd.f32 %v3985_v9, %v3907_v14  ;;  %v2649_v44 = vpop.f32.mrb[13].mxu0  ;;  %v3994_v16 = vadd.f32 %v5060_v23, %v1755_v15  ;;  %v2886_v23 = vld [vmem:[%s5155_s8 + $0x50] sm:$0xff]  ;;  %v2887_v15 = vld [vmem:[%s5155_s8 + $0x58] sm:$0xff] }
 0x1ca   : > { %v3989_v17 = vadd.f32 %v3988_v11, %v2649_v44  ;;  %v3908_v18 = vpop.f32.mrb[14].mxu0  ;;  %v2884_v11 = vld [vmem:[%s5155_s8 + $0x40] sm:$0xff] }
 0x1cb   : > { %v3992_v60 = vadd.f32 %v3991_v36, %v3908_v18  ;;  %v2652_v19 = vpop.f32.mrb[15].mxu0  ;;  %v2924_v36 = vmul.f32 %v5168_v1, %v2901_v5  ;;  %v2877_v18 = vld [vmem:[%s5155_s8 + $0x8] sm:$0xff] }
 0x1cc   : > { %v3995_v6 = vadd.f32 %v3994_v16, %v2652_v19 }
 0x1cd   : > { %v3935_v51 = vpop.f32.mrb[16].mxu1 }
 0x1ce   : > { %v5070_v20 = vadd.f32 %v3974_v0, %v3935_v51  ;;  %v2829_v22 = vpop.f32.mrb[17].mxu1  ;;  %v2910_v51 = vsub.f32 %v2887_v15, %v5160_v37 }
 0x1cf   : > { %v5073_v32 = vadd.f32 %v3977_v61, %v2829_v22  ;;  %v3936_v33 = vpop.f32.mrb[18].mxu1  ;;  %v2909_v61 = vsub.f32 %v2886_v23, %v5160_v37 }
 0x1d0   : > { %v3927_v30 = vpop.f32.mrb[0].mxu0  ;;  %v5076_v49 = vadd.f32 %v3980_v42, %v3936_v33  ;;  %3006 = vrot.lane.b32.xlu0 %v5070_v20, %s4375_s26  ;;  %v2832_v56 = vpop.f32.mrb[19].mxu1  ;;  %v2876_v42 = vld [vmem:[%s5155_s8] sm:$0xff]  ;;  %v2948_v7 = vadd.f32 1.0, %v5070_v20  ;;  %v2885_v33 = vld [vmem:[%s5155_s8 + $0x48] sm:$0xff] }
 0x1d1   : > { %v5081_v48 = vadd.f32 %v3957_v31, %v3927_v30  ;;  %v2797_v35 = vpop.f32.mrb[1].mxu0  ;;  %v5083_v13 = vadd.f32 %v3983_v2, %v2832_v56  ;;  %v2879_v2 = vld [vmem:[%s5155_s8 + $0x18] sm:$0xff]  ;;  %v2932_v9 = vmul.f32 %v5168_v1, %v2909_v61  ;;  %v2899_v10 = vsub.f32 %v2876_v42, %v5160_v37 }
 0x1d2   : > { %v5086_v39 = vadd.f32 %v3959_v63, %v2797_v35  ;;  %v3928_v21 = vpop.f32.mrb[2].mxu0  ;;  %v2902_v12 = vsub.f32 %v2879_v2, %v5160_v37  ;;  %v2900_v31 = vsub.f32 %v2877_v18, %v5160_v37  ;;  %v2946_v63 = vadd.f32 1.0, %v5073_v32  ;;  %v2881_v2 = vld [vmem:[%s5155_s8 + $0x28] sm:$0xff] }
 0x1d3   : > { %v5088_v40 = vadd.f32 %v3961_v34, %v3928_v21  ;;  %v2800_v38 = vpop.f32.mrb[3].mxu0  ;;  %2990 = vrot.lane.b32.xlu1 %v5081_v48, %s4375_s26  ;;  %v2940_v14 = vadd.f32 1.0, %v5081_v48  ;;  %v2964_v44 = vmul.f32 %v2948_v7, %v2932_v9  ;;  %v2922_v16 = vmul.f32 %v5168_v1, %v2899_v10  ;;  %v2888_v7 = vld [vmem:[%s5155_s8 + $0x60] sm:$0xff] }
 0x1d4   : > { %v5092_v43 = vadd.f32 %v3963_v3, %v2800_v38  ;;  %2986 = vrot.lane.b32.xlu0 %v5086_v39, %s4375_s26  ;;  %v2908_v38 = vsub.f32 %v2885_v33, %v5160_v37  ;;  %v2947_v59 = vadd.f32 1.0, %v5083_v13 }
 0x1d5   : > { %v3939_v41 = vpop.f32.mrb[20].mxu1  ;;  %v2941_v20 = vadd.f32 1.0, %v5088_v40  ;;  %v2956_v22 = vmul.f32 %v2940_v14, %v2924_v36 }
 0x1d6   : > { %v5096_v29 = vadd.f32 %v3986_v27, %v3939_v41  ;;  %v2845_v4 = vpop.f32.mrb[21].mxu1  ;;  %v2938_v27 = vadd.f32 1.0, %v5086_v39  ;;  %v2882_v39 = vld [vmem:[%s5155_s8 + $0x30] sm:$0xff]  ;;  %v2931_v23 = vmul.f32 %v5168_v1, %v2908_v38 }
 0x1d7   : > { %2992 = vrot.lane.b32.xlu1 %v5088_v40, %s4375_s26  ;;  %v5102_v45 = vadd.f32 %v3989_v17, %v2845_v4  ;;  %v3940_v46 = vpop.f32.mrb[22].mxu1  ;;  %v2907_v17 = vsub.f32 %v2884_v11, %v5160_v37  ;;  %v2933_v40 = vmul.f32 %v5168_v1, %v2910_v51 }
 0x1d8   : > { %v3931_v25 = vpop.f32.mrb[4].mxu0  ;;  %v5106_v50 = vadd.f32 %v3992_v60, %v3940_v46  ;;  %3002 = vrot.lane.b32.xlu0 %v5073_v32, %s4375_s26  ;;  %v2848_v52 = vpop.f32.mrb[23].mxu1  ;;  %v2954_v34 = vmul.f32 %v2938_v27, %v2922_v16  ;;  %v2949_v32 = vadd.f32 1.0, %v5076_v49  ;;  %v2880_v46 = vld [vmem:[%s5155_s8 + $0x20] sm:$0xff]  ;;  %v2904_v27 = vsub.f32 %v2881_v2, %v5160_v37 }
 0x1d9   : > { %v5112_v47 = vadd.f32 %v3965_v28, %v3931_v25  ;;  %v2813_v54 = vpop.f32.mrb[5].mxu0  ;;  %v5114_v55 = vadd.f32 %v3995_v6, %v2848_v52  ;;  %v2925_v6 = vmul.f32 %v5168_v1, %v2902_v12  ;;  %v2930_v48 = vmul.f32 %v5168_v1, %v2907_v17 }
 0x1da   : > { %v5118_v24 = vadd.f32 %v3967_v57, %v2813_v54  ;;  %v3932_v62 = vpop.f32.mrb[6].mxu0  ;;  %v2923_v28 = vmul.f32 %v5168_v1, %v2900_v31  ;;  %v2939_v57 = vadd.f32 1.0, %v5092_v43  ;;  %v2905_v54 = vsub.f32 %v2882_v39, %v5160_v37 }
 0x1db   : > { %v5120_v0 = vadd.f32 %v3969_v53, %v3932_v62  ;;  %v2816_v58 = vpop.f32.mrb[7].mxu0  ;;  %3008 = vrot.lane.b32.xlu1 %v5076_v49, %s4375_s26  ;;  %v2957_v4 = vmul.f32 %v2941_v20, %v2925_v6  ;;  %v2962_v53 = vmul.f32 %v2946_v63, %v2930_v48  ;;  %v2965_v42 = vmul.f32 %v2949_v32, %v2933_v40 }
 0x1dc   : > { %v5124_v26 = vadd.f32 %v3971_v8, %v2816_v58  ;;  %2988 = vrot.lane.b32.xlu0 %v5092_v43, %s4375_s26  ;;  %v2883_v8 = vld [vmem:[%s5155_s8 + $0x38] sm:$0xff]  ;;  %v2903_v43 = vsub.f32 %v2880_v46, %v5160_v37  ;;  %v2944_v9 = vadd.f32 1.0, %v5112_v47  ;;  %v2955_v12 = vmul.f32 %v2939_v57, %v2923_v28 }
 0x1dd   : > { %v2906_v5 = vsub.f32 %v2883_v8, %v5160_v37  ;;  %v2928_v14 = vmul.f32 %v5168_v1, %v2905_v54  ;;  %v2963_v17 = vmul.f32 %v2947_v59, %v2931_v23  ;;  %v2942_v6 = vadd.f32 1.0, %v5118_v24 }
 0x1de   : > { %v2926_v31 = vmul.f32 %v5168_v1, %v2903_v43  ;;  %v2950_v39 = vadd.f32 1.0, %v5102_v45  ;;  %v2951_v46 = vadd.f32 1.0, %v5114_v55 }
 0x1df   : > { %3004 = vrot.lane.b32.xlu1 %v5083_v13, %s4375_s26  ;;  %v2929_v18 = vmul.f32 %v5168_v1, %v2906_v5 }
 0x1e0   : > { %2998 = vrot.lane.b32.xlu0 %v5112_v47, %s4375_s26  ;;  %v2911_v47 = vsub.f32 %v2888_v7, %v5160_v37  ;;  %v2958_v38 = vmul.f32 %v2942_v6, %v2926_v31 }
 0x1e2   : > { %v2934_v32 = vmul.f32 %v5168_v1, %v2911_v47 }
 0x1e3   : > { %3000 = vrot.lane.b32.xlu1 %v5120_v0, %s4375_s26 }
 0x1e4   : > { %2994 = vrot.lane.b32.xlu0 %v5118_v24, %s4375_s26  ;;  %v2943_v24 = vadd.f32 1.0, %v5124_v26  ;;  %v2966_v8 = vmul.f32 %v2950_v39, %v2934_v32 }
 0x1e7   : > { %2996 = vrot.lane.b32.xlu1 %v5124_v26, %s4375_s26 }
 0x1e8   : > { %3010 = vrot.lane.b32.xlu0 %v5102_v45, %s4375_s26 }
 0x1eb   : > { %3012 = vrot.lane.b32.xlu1 %v5114_v55, %s4375_s26 }
 0x1ec   : > { %3014 = vrot.lane.b32.xlu0 %v5096_v29, %s4375_s26 }
 0x1ef   : > { %3016 = vrot.lane.b32.xlu1 %v5106_v50, %s4375_s26  ;;  %s5329_s26 = sld [smem:[#allocation14_spill]] }
 0x1f5   : > { %s5191_s0 = scalar_lea.vmem %s5329_s26, %s3273_s12 }
 0x242   : > { %v3007_v60 = vpop.permute.xlu0 %3006 }
 0x243   : > { %v3044_v19 = vadd.f32 %v3007_v60, %v2964_v44  ;;  %v2945_v44 = vadd.f32 1.0, %v5120_v0  ;;  %v2889_v60 = vld [vmem:[%s5155_s8 + $0x68] sm:$0xff] }
 0x245   : > { %v2991_v30 = vpop.permute.xlu1 %2990  ;;  %v3060_v56 = vmax.f32 %v3044_v19, 0.0  ;;  %v2890_v19 = vld [vmem:[%s5155_s8 + $0x70] sm:$0xff]  ;;  %v2961_v48 = vmul.f32 %v2945_v44, %v2929_v18 }
 0x246   : > { %v3036_v35 = vadd.f32 %v2991_v30, %v2956_v22  ;;  %v2987_v3 = vpop.permute.xlu0 %2986  ;;  %v2960_v22 = vmul.f32 %v2944_v9, %v2928_v14  ;;  %v2912_v30 = vsub.f32 %v2889_v60, %v5160_v37 }
 0x247   : > { %3077 = vst.msk [vmem:[%s5191_s0 + $0x50] sm:$0xff] %vm3066_vm5, %v3060_v56  ;;  %v3034_v21 = vadd.f32 %v2987_v3, %v2954_v34  ;;  %v2913_v56 = vsub.f32 %v2890_v19, %v5160_v37  ;;  %v2891_v3 = vld [vmem:[%s5155_s8 + $0x78] sm:$0xff] }
 0x248   : > { %v3052_v41 = vmax.f32 %v3036_v35, 0.0  ;;  %v2927_v35 = vmul.f32 %v5168_v1, %v2904_v27  ;;  %v2914_v28 = vsub.f32 %v2891_v3, %v5160_v37  ;;  %v2953_v37 = vadd.f32 1.0, %v5106_v50 }
 0x249   : > { %v2993_v25 = vpop.permute.xlu1 %2992  ;;  %v3050_v52 = vmax.f32 %v3034_v21, 0.0 }
 0x24a   : > { %3069 = vst.msk [vmem:[%s5191_s0 + $0x10] sm:$0xff] %vm3066_vm5, %v3052_v41  ;;  %v3037_v62 = vadd.f32 %v2993_v25, %v2957_v4  ;;  %v3003_v58 = vpop.permute.xlu0 %3002  ;;  %v2959_v45 = vmul.f32 %v2943_v24, %v2927_v35  ;;  %v2935_v25 = vmul.f32 %v5168_v1, %v2912_v30 }
 0x24b   : > { %3067 = vst.msk [vmem:[%s5191_s0] sm:$0xff] %vm3066_vm5, %v3050_v52  ;;  %v3042_v49 = vadd.f32 %v3003_v58, %v2962_v53  ;;  %v2952_v52 = vadd.f32 1.0, %v5096_v29  ;;  %v2937_v29 = vmul.f32 %v5168_v1, %v2914_v28 }
 0x24c   : > { %v3053_v61 = vmax.f32 %v3037_v62, 0.0  ;;  %v2936_v62 = vmul.f32 %v5168_v1, %v2913_v56  ;;  %v2967_v43 = vmul.f32 %v2951_v46, %v2935_v25 }
 0x24d   : > { %v3058_v10 = vmax.f32 %v3042_v49, 0.0  ;;  %v3009_v11 = vpop.permute.xlu1 %3008 }
 0x24e   : > { %3070 = vst.msk [vmem:[%s5191_s0 + $0x18] sm:$0xff] %vm3066_vm5, %v3053_v61  ;;  %v3045_v36 = vadd.f32 %v3009_v11, %v2965_v42  ;;  %v2989_v15 = vpop.permute.xlu0 %2988  ;;  %v2968_v42 = vmul.f32 %v2952_v52, %v2936_v62 }
 0x24f   : > { %3075 = vst.msk [vmem:[%s5191_s0 + $0x40] sm:$0xff] %vm3066_vm5, %v3058_v10  ;;  %v3035_v13 = vadd.f32 %v2989_v15, %v2955_v12  ;;  %v2969_v10 = vmul.f32 %v2953_v37, %v2937_v29 }
 0x250   : > { %v3061_v16 = vmax.f32 %v3045_v36, 0.0 }
 0x251   : > { %v3051_v51 = vmax.f32 %v3035_v13, 0.0  ;;  %v3005_v20 = vpop.permute.xlu1 %3004 }
 0x252   : > { %3078 = vst.msk [vmem:[%s5191_s0 + $0x58] sm:$0xff] %vm3066_vm5, %v3061_v16  ;;  %v3043_v33 = vadd.f32 %v3005_v20, %v2963_v17  ;;  %v2999_v63 = vpop.permute.xlu0 %2998 }
 0x253   : > { %3068 = vst.msk [vmem:[%s5191_s0 + $0x8] sm:$0xff] %vm3066_vm5, %v3051_v51  ;;  %v3040_v0 = vadd.f32 %v2999_v63, %v2960_v22 }
 0x254   : > { %v3059_v34 = vmax.f32 %v3043_v33, 0.0 }
 0x255   : > { %v3056_v21 = vmax.f32 %v3040_v0, 0.0  ;;  %v3001_v40 = vpop.permute.xlu1 %3000 }
 0x256   : > { %3076 = vst.msk [vmem:[%s5191_s0 + $0x48] sm:$0xff] %vm3066_vm5, %v3059_v34  ;;  %v3041_v41 = vadd.f32 %v3001_v40, %v2961_v48  ;;  %v2995_v4 = vpop.permute.xlu0 %2994 }
 0x257   : > { %3073 = vst.msk [vmem:[%s5191_s0 + $0x30] sm:$0xff] %vm3066_vm5, %v3056_v21  ;;  %v3038_v26 = vadd.f32 %v2995_v4, %v2958_v38 }
 0x258   : > { %v3057_v57 = vmax.f32 %v3041_v41, 0.0 }
 0x259   : > { %v3054_v53 = vmax.f32 %v3038_v26, 0.0  ;;  %v2997_v54 = vpop.permute.xlu1 %2996 }
 0x25a   : > { %3074 = vst.msk [vmem:[%s5191_s0 + $0x38] sm:$0xff] %vm3066_vm5, %v3057_v57  ;;  %v3039_v58 = vadd.f32 %v2997_v54, %v2959_v45  ;;  %v3011_v49 = vpop.permute.xlu0 %3010 }
 0x25b   : > { %3071 = vst.msk [vmem:[%s5191_s0 + $0x20] sm:$0xff] %vm3066_vm5, %v3054_v53  ;;  %v3046_v55 = vadd.f32 %v3011_v49, %v2966_v8 }
 0x25c   : > { %v3055_v23 = vmax.f32 %v3039_v58, 0.0 }
 0x25d   : > { %v3062_v59 = vmax.f32 %v3046_v55, 0.0  ;;  %v3013_v61 = vpop.permute.xlu1 %3012 }
 0x25e   : > { %3072 = vst.msk [vmem:[%s5191_s0 + $0x28] sm:$0xff] %vm3066_vm5, %v3055_v23  ;;  %v3047_v5 = vadd.f32 %v3013_v61, %v2967_v43  ;;  %v3015_v2 = vpop.permute.xlu0 %3014 }
 0x25f   : > { %3079 = vst.msk [vmem:[%s5191_s0 + $0x60] sm:$0xff] %vm3066_vm5, %v3062_v59  ;;  %v3048_v7 = vadd.f32 %v3015_v2, %v2968_v42 }
 0x260   : > { %v3063_v9 = vmax.f32 %v3047_v5, 0.0 }
 0x261   : > { %v3064_v50 = vmax.f32 %v3048_v7, 0.0  ;;  %v3017_v11 = vpop.permute.xlu1 %3016 }
 0x262   : > { %3080 = vst.msk [vmem:[%s5191_s0 + $0x68] sm:$0xff] %vm3066_vm5, %v3063_v9  ;;  %v3049_v12 = vadd.f32 %v3017_v11, %v2969_v10 }
 0x263   : > { %3081 = vst.msk [vmem:[%s5191_s0 + $0x70] sm:$0xff] %vm3066_vm5, %v3064_v50 }
 0x264   : > { %v3065_v1 = vmax.f32 %v3049_v12, 0.0 }
 0x266   : > { %3082 = vst.msk [vmem:[%s5191_s0 + $0x78] sm:$0xff] %vm3066_vm5, %v3065_v1 }
 0x267 PF: > { %s18_s15 = sadd.s32 1, %s4372_s15   ;;  %s5330_s24 = sld [smem:[#allocation10_spill]] }
 0x268   : > { %p15_p10 = scmp.ge.s32.totalorder %s18_s15, 6   ;;  %s5331_s16 = sld [smem:[#allocation9_spill]] }
 0x269   : > { %s5332_s22 = sld [smem:[#allocation7_spill]]  ;;  %s5333_s20 = sld [smem:[#allocation8_spill]] }
 0x26a   : > { %s5334_s27 = smov %s4336_s28  ;;  %s5335_s28 = smov %s4530_s17 }
 0x26b   : > { %s5336_s29 = smov %s4344_s30  ;;  %s5338_s9 = smov %s4352_s10 }
 0x26c   : > { %s5340_s11 = smov %s4364_s13  ;;  %s5341_s12 = smov %s4368_s14 }
 0x26d   : > { %s5337_s30 = smov %s5330_s24  ;;  %17 = sbr.rel (!%p15_p10) target bundleno = 11 (0xb), region = 239 }
 0x26e   : > { %s5339_s10 = smov %s5331_s16 }
 0x26f   : > { %s5342_s13 = smov %s5332_s22  ;;  %s5343_s14 = smov %s5333_s20 }

// kernel: sin_spade_forward_pallas.12
= control target key start
LH: loop header
LB: loop body
LE: loop exit
PB: predicated region body
PF: predicated region fallthrough
CT: control target
= control target key end

     0   :  { %s5416_s0 = inlined_call_operand.vmem [shape: f32[2,16,16,3], index: 0, kind: input, shape index: {}]   ;;  %s5417_s1 = inlined_call_operand.vmem [shape: bf16[2,16,16,384], index: 1, kind: input, shape index: {}, may-alias: {1,2,3}]   ;;  %s5418_s2 = inlined_call_operand.vmem [shape: bf16[2,16,16,384], index: 2, kind: input, shape index: {}, may-alias: {1,2,3}]   ;;  %s5419_s3 = inlined_call_operand.vmem [shape: bf16[2,16,16,384], index: 3, kind: input, shape index: {}, may-alias: {1,2,3}]   ;;  %s5420_s4 = inlined_call_operand.vmem [shape: bf16[3,3,128,6], index: 4, kind: input, shape index: {}]   ;;  %s5421_s5 = inlined_call_operand.vmem [shape: f32[1,6], index: 5, kind: input, shape index: {}]   ;;  %s5422_s6 = inlined_call_operand.vmem [shape: f32[1,1,3], index: 6, kind: input, shape index: {}]   ;;  %s5423_s7 = inlined_call_operand.vmem [shape: f32[1,1,3], index: 7, kind: input, shape index: {}]   ;;  %s5424_s8 = inlined_call_operand.vmem [shape: bf16[2,16,16,3], index: 8, kind: output, shape index: {}]  }
   0x1   :  { %5428 = sst [smem:[#allocation11_spill]] %s5416_s0 }
   0x2   :  { %5429 = sst [smem:[#allocation12_spill]] %s5422_s6 }
   0x3   :  { %5430 = sst [smem:[#allocation13_spill]] %s5423_s7 }
   0x4   :  { %5431 = sst [smem:[#allocation14_spill]] %s5424_s8 }
   0x5   :  { %s4535_s27 = smov 0   ;;  %s4537_s28 = smov 0  }
   0x6   :  { %s4539_s29 = smov 0   ;;  %s4541_s30 = smov 0  }
   0x7   :  { %s4543_s9 = smov 0   ;;  %s4545_s10 = smov 0  }
   0x8   :  { %s4547_s11 = smov 0   ;;  %s4549_s12 = smov 0  }
   0x9   :  { %s4551_s13 = smov 0   ;;  %s4553_s14 = smov 0  }
   0xa   :  { %s4555_s15 = smov 0  }
   0xb LB: > { %5432 = sst [smem:[#allocation6_spill]] %s4474_s12  ;;  %s27_s16 = sadd.s32 1, %s4478_s13  ;;  %s4486_s15 = sphi %s4555_s15, %s18_s15   ;;  %s4482_s14 = sphi %s4553_s14, %s5458_s14   ;;  %s4478_s13 = sphi %s4551_s13, %s5457_s13   ;;  %s4474_s12 = sphi %s4549_s12, %s5456_s12   ;;  %s4470_s11 = sphi %s4547_s11, %s5455_s11   ;;  %s4466_s10 = sphi %s4545_s10, %s5454_s10   ;;  %s4462_s9 = sphi %s4543_s9, %s5453_s9   ;;  %s4458_s30 = sphi %s4541_s30, %s5452_s30   ;;  %s4454_s29 = sphi %s4539_s29, %s5451_s29   ;;  %s4450_s28 = sphi %s4537_s28, %s5450_s28   ;;  %s4446_s27 = sphi %s4535_s27, %s5449_s27  }
   0xc   : > { %s30_s17 = sadd.s32 1, %s4482_s14  ;;  %p28_p0 = scmp.ge.s32.totalorder %s27_s16, 2 }
   0xd   : > { %s67_s18 = sadd.s32 1, %s4466_s10  ;;  %p74_p1 = scmp.ne.s32.totalorder %s4466_s10, %s4462_s9 }
   0xe   : > { %p75_p2 = scmp.eq.s32.totalorder %s4486_s15, 0  ;;  %s5460_s16 = smov (%p28_p0, %s27_s16), 0 }
   0xf   : > { %5433 = sst [smem:[#allocation7_spill]] %s5460_s16  ;;  %s5462_s17 = smov (!%p28_p0, %s30_s17), %s4482_s14 }
  0x10   : > { %s63_s19 = ssub.s32 %s4478_s13, %s5460_s16  ;;  %p4603_p3 = por %p75_p2, %p74_p1 }
  0x11   : > { %p32_p4 = scmp.ge.s32.totalorder %s5462_s17, 2  ;;  %s3317_s21 = sshll.u32 %s4478_s13, 3 }
  0x12   : > { %s3318_s22 = sadd.s32 4294967295, %s3317_s21  ;;  %s3319_s23 = sshll.u32 %s5460_s16, 3 }
  0x13   : > { %s5464_s17 = smov (%p32_p4, %s5462_s17), 0  ;;  %p92_p5 = scmp.gt.s32.totalorder %s3318_s22, 0 }
  0x14   : > { %5435 = sst [smem:[#allocation8_spill]] %s5464_s17  ;;  %s3320_s24 = sadd.s32 4294967295, %s3319_s23 }
  0x15   : > { %s62_s25 = ssub.s32 %s4482_s14, %s5464_s17  ;;  %p96_p6 = scmp.gt.s32.totalorder %s3320_s24, 0 }
  0x16   : > { %s64_s26 = sor.u32 %s63_s19, %s62_s25  ;;  %s103_s8 = sadd.s32 1, %s4458_s30 }
  0x17   : > { %p65_p7 = scmp.eq.s32.totalorder %s64_s26, 0  ;;  %p110_p8 = scmp.ne.s32.totalorder %s4458_s30, %s4454_s29 }
  0x18   : > { %s5466_s22 = smov (!%p92_p5, %s3318_s22), 0  ;;  %s5468_s24 = smov (!%p96_p6, %s3320_s24), 0 }
  0x19   : > { %s4619_s7 = scalar_select %p65_p7, %s4466_s10, %s67_s18  }
  0x1a   : > { %p4623_p9 = por %p110_p8, %p75_p2  ;;  %s3608_s19 = sadd.s32 8, %s3317_s21 }
  0x1b   : > { %5436 = sst [smem:[#allocation9_spill]] %s4619_s7  ;;  %s99_s17 = ssub.s32 %s5466_s22, %s5468_s24 }
  0x1c   : > { %p128_p10 = scmp.lt.s32.totalorder %s3608_s19, 15  ;;  %s100_s26 = sor.u32 %s99_s17, %s62_s25 }
  0x1d   : > { %s3610_s6 = sadd.s32 8, %s3319_s23  ;;  %p101_p11 = scmp.eq.s32.totalorder %s100_s26, 0 }
  0x1e   : > { %p132_p12 = scmp.lt.s32.totalorder %s3610_s6, 15  ;;  %s5470_s19 = smov (!%p128_p10, %s3608_s19), 15 }
  0x1f   : > { %s4631_s18 = scalar_select %p101_p11, %s4458_s30, %s103_s8  }
  0x20   : > { %s5472_s6 = smov (!%p132_p12, %s3610_s6), 15  ;;  %p146_p13 = scmp.ne.s32.totalorder %s4450_s28, %s4446_s27 }
  0x21   : > { %5438 = sst [smem:[#allocation10_spill]] %s4631_s18  ;;  %s135_s7 = ssub.s32 %s5470_s19, %s5472_s6 }
  0x22   : > { %s139_s0 = sadd.s32 1, %s4450_s28  ;;  %s136_s12 = sor.u32 %s135_s7, %s62_s25 }
  0x23   : > { %p4639_p0 = por %p146_p13, %p75_p2  ;;  %p137_p1 = scmp.eq.s32.totalorder %s136_s12, 0 }
  0x24   : > { %p3324_p4 = scmp.ge.s32.totalorder %s4486_s15, 4 }
  0x25   : > { %s4644_s17 = scalar_select %p137_p1, %s4450_s28, %s139_s0  }
  0x26   : > { %296 = sbr.rel (%p3324_p4) target bundleno = 81 (0x51), region = 32 }
  0x2d   : > { %313 = sbr.rel (!%p4603_p3) target bundleno = 63 (0x3f), region = 40  ;;  %s315_s6 = sand.u32 (%p4603_p3), 1, %s4466_s10  }
  0x2e   : > { %s3189_s8 = smul.u32 (%p4603_p3), 48, %s4478_s13  ;;  %s3325_s7 = sshll.u32 (%p4603_p3), %s315_s6, 6 }
  0x2f   : > { %s3190_s23 = smul.u32 (%p4603_p3), 96, %s4482_s14  ;;  %s317_s12 = scalar_lea.vmem (%p4603_p3), [#allocation3], %s3325_s7 }
  0x31   : > { %s3191_s24 = sadd.s32 (%p4603_p3), %s3190_s23, %s3189_s8 }
  0x32   : > { %s3326_s25 = sshll.u32 (%p4603_p3), %s3191_s24, 2 }
  0x33   : > { %s4655_s0 = scalar_lea.vmem (%p4603_p3), %s5417_s1, %s3326_s25 }
  0x34   : > { %v3327_v0 = vld [vmem:[%s4655_s0 + $0x4] sm:$0xf]  ;;  %v3328_v1 = vld [vmem:[%s4655_s0 + $0x10] sm:$0xf]  ;;  %v3329_v2 = vld [vmem:[%s4655_s0 + $0x1c] sm:$0xf] }
  0x35   : > { %341 = vst [vmem:[%s317_s12] sm:$0xf] %v3327_v0  ;;  %343 = vst [vmem:[%s317_s12 + $0x4] sm:$0xf] %v3328_v1  ;;  %v3330_v3 = vld [vmem:[%s4655_s0 + $0x28] sm:$0xf] }
  0x36   : > { %345 = vst [vmem:[%s317_s12 + $0x8] sm:$0xf] %v3329_v2  ;;  %v3331_v4 = vld [vmem:[%s4655_s0 + $0x34] sm:$0xf]  ;;  %v3332_v5 = vld [vmem:[%s4655_s0 + $0x40] sm:$0xf] }
  0x37   : > { %347 = vst [vmem:[%s317_s12 + $0xc] sm:$0xf] %v3330_v3  ;;  %349 = vst [vmem:[%s317_s12 + $0x10] sm:$0xf] %v3331_v4  ;;  %v3333_v6 = vld [vmem:[%s4655_s0 + $0x4c] sm:$0xf] }
  0x38   : > { %351 = vst [vmem:[%s317_s12 + $0x14] sm:$0xf] %v3332_v5  ;;  %v3334_v7 = vld [vmem:[%s4655_s0 + $0x58] sm:$0xf]  ;;  %v3335_v8 = vld [vmem:[%s4655_s0 + $0x64] sm:$0xf] }
  0x39   : > { %353 = vst [vmem:[%s317_s12 + $0x18] sm:$0xf] %v3333_v6  ;;  %355 = vst [vmem:[%s317_s12 + $0x1c] sm:$0xf] %v3334_v7  ;;  %v3336_v9 = vld [vmem:[%s4655_s0 + $0x70] sm:$0xf] }
  0x3a   : > { %357 = vst [vmem:[%s317_s12 + $0x20] sm:$0xf] %v3335_v8  ;;  %v3337_v10 = vld [vmem:[%s4655_s0 + $0x7c] sm:$0xf]  ;;  %v3338_v11 = vld [vmem:[%s4655_s0 + $0x88] sm:$0xf] }
  0x3b   : > { %359 = vst [vmem:[%s317_s12 + $0x24] sm:$0xf] %v3336_v9  ;;  %361 = vst [vmem:[%s317_s12 + $0x28] sm:$0xf] %v3337_v10  ;;  %v3339_v12 = vld [vmem:[%s4655_s0 + $0x94] sm:$0xf] }
  0x3c   : > { %363 = vst [vmem:[%s317_s12 + $0x2c] sm:$0xf] %v3338_v11  ;;  %v3340_v13 = vld [vmem:[%s4655_s0 + $0xa0] sm:$0xf]  ;;  %v3341_v14 = vld [vmem:[%s4655_s0 + $0xac] sm:$0xf] }
  0x3d   : > { %365 = vst [vmem:[%s317_s12 + $0x30] sm:$0xf] %v3339_v12  ;;  %367 = vst [vmem:[%s317_s12 + $0x34] sm:$0xf] %v3340_v13  ;;  %v3342_v15 = vld [vmem:[%s4655_s0 + $0xb8] sm:$0xf] }
  0x3e   : > { %369 = vst [vmem:[%s317_s12 + $0x38] sm:$0xf] %v3341_v14  ;;  %371 = vst [vmem:[%s317_s12 + $0x3c] sm:$0xf] %v3342_v15 }
  0x3f PF: > { %426 = sbr.rel (!%p4623_p9) target bundleno = 72 (0x48), region = 81  ;;  %s428_s20 = sand.u32 (%p4623_p9), 1, %s4458_s30  }
  0x40   : > { %s3197_s18 = smul.u32 (%p4623_p9), 6, %s5466_s22  ;;  %s3343_s6 = sshll.u32 (%p4623_p9), %s428_s20, 3 }
  0x41   : > { %s3198_s8 = smul.u32 (%p4623_p9), 96, %s4482_s14  ;;  %s430_s0 = scalar_lea.vmem (%p4623_p9), [#allocation4], %s3343_s6 }
  0x43   : > { %s3199_s7 = sadd.s32 (%p4623_p9), %s3198_s8, %s3197_s18 }
  0x44   : > { %s3346_s23 = sshll.u32 (%p4623_p9), %s3199_s7, 2 }
  0x45   : > { %s3201_s26 = scalar_lea.vmem (%p4623_p9), %s5418_s2, %s3346_s23 }
  0x46   : > { %v3347_v16 = vld [vmem:[%s3201_s26 + $0x4] sm:$0xf]  ;;  %v3348_v17 = vld [vmem:[%s3201_s26 + $0x10] sm:$0xf] }
  0x47   : > { %457 = vst [vmem:[%s430_s0] sm:$0xf] %v3347_v16  ;;  %459 = vst [vmem:[%s430_s0 + $0x4] sm:$0xf] %v3348_v17 }
  0x48 PF: > { %486 = sbr.rel (!%p4639_p0) target bundleno = 81 (0x51), region = 122  ;;  %s488_s16 = sand.u32 (%p4639_p0), 1, %s4450_s28  }
  0x49   : > { %s3205_s22 = smul.u32 (%p4639_p0), 6, %s5470_s19  ;;  %s3349_s12 = sshll.u32 (%p4639_p0), %s488_s16, 3 }
  0x4a   : > { %s3206_s20 = smul.u32 (%p4639_p0), 96, %s4482_s14  ;;  %s490_s6 = scalar_lea.vmem (%p4639_p0), [#allocation5], %s3349_s12 }
  0x4c   : > { %s3207_s18 = sadd.s32 (%p4639_p0), %s3206_s20, %s3205_s22 }
  0x4d   : > { %s3351_s8 = sshll.u32 (%p4639_p0), %s3207_s18, 2 }
  0x4e   : > { %s3209_s24 = scalar_lea.vmem (%p4639_p0), %s5419_s3, %s3351_s8 }
  0x4f   : > { %v3352_v18 = vld [vmem:[%s3209_s24 + $0x4] sm:$0xf]  ;;  %v3353_v19 = vld [vmem:[%s3209_s24 + $0x10] sm:$0xf] }
  0x50   : > { %517 = vst [vmem:[%s490_s6] sm:$0xf] %v3352_v18  ;;  %519 = vst [vmem:[%s490_s6 + $0x4] sm:$0xf] %v3353_v19 }
  0x51 PF: > { %p3354_p2 = scmp.ge.s32.totalorder %s4486_s15, 1  ;;  %p545_p3 = scmp.lt.s32.totalorder %s4486_s15, 5 }
  0x53   : > { %p546_p5 = pnand %p3354_p2, %p545_p3 }
  0x54   : > { %v4311_v20 = vld [vmem:[%s5420_s4] sm:$0xff] (!%p546_p5)   ;;  %v4313_v22 = vld [vmem:[%s5420_s4 + $0x8] sm:$0xff] (!%p546_p5)   ;;  %v4315_v24 = vld [vmem:[%s5420_s4 + $0x10] sm:$0xff] (!%p546_p5)   ;;  %v4488_v26 = vmov (!%p546_p5), 0   ;;  %s559_s23 = sand.u32 (!%p546_p5), 1, %s4454_s29   ;;  %s552_s25 = sand.u32 (!%p546_p5), 1, %s4462_s9  }
  0x55   : > { %549 = sbr.rel (%p546_p5) target bundleno = 617 (0x269), region = 163  ;;  %v4312_v21 = vld [vmem:[%s5420_s4 + $0x100] sm:$0xff] (!%p546_p5)   ;;  %3773 = vmatprep.subr.bf16.mxu1 (!%p546_p5), %v4311_v20  ;;  %v4314_v23 = vld [vmem:[%s5420_s4 + $0x108] sm:$0xff] (!%p546_p5)   ;;  %v4316_v25 = vld [vmem:[%s5420_s4 + $0x110] sm:$0xff] (!%p546_p5)   ;;  %788 = vst [vmem:[#allocation2] sm:$0xf] (!%p546_p5), %v4488_v26 }
  0x56   : > { %3901 = vmatprep.subr.bf16.mxu0 (!%p546_p5), %v4312_v21  ;;  %3774 = vmatpush3.bf16.msra.mxu1 (!%p546_p5), %v4311_v20  ;;  %789 = vst [vmem:[#allocation2 + $0x10] sm:$0xf] (!%p546_p5), %v4488_v26  ;;  %790 = vst [vmem:[#allocation2 + $0x20] sm:$0xf] (!%p546_p5), %v4488_v26  ;;  %v4317_v27 = vld [vmem:[%s5420_s4 + $0x18] sm:$0xff] (!%p546_p5)   ;;  %s3356_s26 = sshll.u32 (!%p546_p5), %s559_s23, 3 }
  0x57   : > { %3902 = vmatpush3.bf16.msra.mxu0 (!%p546_p5), %v4312_v21  ;;  %3775 = vmatprep.subr.bf16.mxu1 (!%p546_p5), %v4313_v22  ;;  %791 = vst [vmem:[#allocation2 + $0x30] sm:$0xf] (!%p546_p5), %v4488_v26  ;;  %792 = vst [vmem:[#allocation2 + $0x40] sm:$0xf] (!%p546_p5), %v4488_v26  ;;  %v4318_v28 = vld [vmem:[%s5420_s4 + $0x118] sm:$0xff] (!%p546_p5)   ;;  %p654_p6 = scmp.gt.s32.totalorder (!%p546_p5), %s4470_s11, 0 }
  0x58   : > { %3903 = vmatprep.subr.bf16.mxu0 (!%p546_p5), %v4314_v23  ;;  %793 = vst [vmem:[#allocation2 + $0x50] sm:$0xf] (!%p546_p5), %v4488_v26  ;;  %794 = vst [vmem:[#allocation2 + $0x60] sm:$0xf] (!%p546_p5), %v4488_v26  ;;  %v4319_v29 = vld [vmem:[%s5420_s4 + $0x20] sm:$0xff] (!%p546_p5)   ;;  %s3355_s16 = sshll.u32 (!%p546_p5), %s552_s25, 6 }
  0x59   : > { %795 = vst [vmem:[#allocation2 + $0x70] sm:$0xf] (!%p546_p5), %v4488_v26  ;;  %796 = vst [vmem:[#allocation2 + $0x80] sm:$0xf] (!%p546_p5), %v4488_v26  ;;  %v4320_v30 = vld [vmem:[%s5420_s4 + $0x120] sm:$0xff] (!%p546_p5)   ;;  %v4321_v31 = vld [vmem:[%s5420_s4 + $0x28] sm:$0xff] (!%p546_p5)  }
  0x5a   : > { %797 = vst [vmem:[#allocation2 + $0x90] sm:$0xf] (!%p546_p5), %v4488_v26  ;;  %798 = vst [vmem:[#allocation2 + $0x8] sm:$0xf0] (!%p546_p5), %v4488_v26  ;;  %3776 = vmatpush3.bf16.msra.mxu1 (!%p546_p5), %v4313_v22  ;;  %v4322_v32 = vld [vmem:[%s5420_s4 + $0x128] sm:$0xff] (!%p546_p5)   ;;  %s561_s7 = scalar_lea.vmem (!%p546_p5), [#allocation4], %s3356_s26 }
  0x5b   : > { %799 = vst [vmem:[#allocation2 + $0x18] sm:$0xf0] (!%p546_p5), %v4488_v26  ;;  %800 = vst [vmem:[#allocation2 + $0x28] sm:$0xf0] (!%p546_p5), %v4488_v26  ;;  %3904 = vmatpush3.bf16.msra.mxu0 (!%p546_p5), %v4314_v23  ;;  %3777 = vmatprep.subr.bf16.mxu1 (!%p546_p5), %v4315_v24  ;;  %v655_v33 = vld [vmem:[%s561_s7] sm:$0xf] (!%p546_p5) }
  0x5c   : > { %801 = vst [vmem:[#allocation2 + $0x38] sm:$0xf0] %v4488_v26  ;;  %802 = vst [vmem:[#allocation2 + $0x48] sm:$0xf0] %v4488_v26  ;;  %3905 = vmatprep.subr.bf16.mxu0 %v4316_v25  ;;  %s657_s23 = scalar_select %p654_p6, 1, 0 }
  0x5d   : > { %803 = vst [vmem:[#allocation2 + $0x58] sm:$0xf0] %v4488_v26  ;;  %804 = vst [vmem:[#allocation2 + $0x68] sm:$0xf0] %v4488_v26  ;;  %v656_v34 = vld [vmem:[%s561_s7 + $0x4] sm:$0xf] }
  0x5e   : > { %805 = vst [vmem:[#allocation2 + $0x78] sm:$0xf0] %v4488_v26  ;;  %806 = vst [vmem:[#allocation2 + $0x88] sm:$0xf0] %v4488_v26  ;;  %3778 = vmatpush3.bf16.msra.mxu1 %v4315_v24  ;;  %s4732_s24 = scalar_lea.vmem [#allocation3], %s3355_s16  ;;  %v4323_v35 = vld [vmem:[%s5420_s4 + $0x30] sm:$0xff]   ;;  %v658_v36 = vstv %s657_s23 }
  0x5f   : > { %807 = vst [vmem:[#allocation2 + $0x98] sm:$0xf0] %v4488_v26  ;;  %3906 = vmatpush3.bf16.msra.mxu0 %v4316_v25  ;;  %3779 = vmatprep.subr.bf16.mxu1 %v4317_v27  ;;  %v4327_v37 = vld [vmem:[%s4732_s24] ss:$0 sps:$4 sm:$0xff]   ;;  %v4328_v38 = vld [vmem:[%s4732_s24 + $0x4] ss:$0 sps:$4 sm:$0xff]  }
  0x60   : > { %3907 = vmatprep.subr.bf16.mxu0 %v4318_v28  ;;  %v4324_v39 = vld [vmem:[%s5420_s4 + $0x130] sm:$0xff]   ;;  %vm659_vm0 = vcmp.eq.s32.totalorder %v658_v36, 1  ;;  %761 = vst [vmem:[#allocation2 + $0x10] sm:$0xf0] %v4327_v37  ;;  %762 = vst [vmem:[#allocation2 + $0x18] sm:$0xf] %v4328_v38 }
  0x61   : > { %v660_v40 = vsel %vm659_vm0, %v655_v33, 0  ;;  %v661_v41 = vsel %vm659_vm0, %v656_v34, 0  ;;  %v4330_v42 = vld [vmem:[%s4732_s24 + $0x8] ss:$0 sps:$4 sm:$0xff]   ;;  %v4331_v45 = vld [vmem:[%s4732_s24 + $0xc] ss:$0 sps:$4 sm:$0xff]  }
  0x62   : > { %3780 = vmatpush3.bf16.msra.mxu1 %v4317_v27  ;;  %v3366_v43 = vcombine.low %v660_v40, %v660_v40  ;;  %v3367_v44 = vcombine.low %v661_v41, %v661_v41  ;;  %763 = vst [vmem:[#allocation2 + $0x20] sm:$0xf0] %v4330_v42  ;;  %v4325_v46 = vld [vmem:[%s5420_s4 + $0x38] sm:$0xff]   ;;  %764 = vst [vmem:[#allocation2 + $0x28] sm:$0xf] %v4331_v45  ;;  %vm1575_vm1 = vcmask 1043456  }
  0x63   : > { %3908 = vmatpush3.bf16.msra.mxu0 %v4318_v28  ;;  %3781 = vmatprep.subr.bf16.mxu1 %v4319_v29  ;;  %v4326_v47 = vld [vmem:[%s5420_s4 + $0x138] sm:$0xff]   ;;  %v4335_v48 = vld [vmem:[%s4732_s24 + $0x10] ss:$0 sps:$4 sm:$0xff]   ;;  %v4336_v49 = vld [vmem:[%s4732_s24 + $0x14] ss:$0 sps:$4 sm:$0xff]   ;;  %s566_s20 = sand.u32 1, %s4446_s27  }
  0x64   : > { %3909 = vmatprep.subr.bf16.mxu0 %v4320_v30  ;;  %678 = vst [vmem:[#allocation2] sm:$0xf0] %v3366_v43  ;;  %679 = vst [vmem:[#allocation2 + $0x8] sm:$0xf] %v3367_v44  ;;  %vm835_vm2 = vsmask.f32 4352 }
  0x65   : > { %765 = vst [vmem:[#allocation2 + $0x30] sm:$0xf0] %v4335_v48  ;;  %766 = vst [vmem:[#allocation2 + $0x38] sm:$0xf] %v4336_v49  ;;  %v4758_v55 = vld [vmem:[%s5420_s4 + $0xc0] sm:$0xff]   ;;  %v4334_v15 = vld [vmem:[%s5420_s4 + $0x1c8] sm:$0xff]  }
  0x66   : > { %3782 = vmatpush3.bf16.msra.mxu1 %v4319_v29  ;;  %v4332_v60 = vld [vmem:[%s5420_s4 + $0x1c0] sm:$0xff]   ;;  %v4338_v16 = vld [vmem:[%s4732_s24 + $0x18] ss:$0 sps:$4 sm:$0xff]   ;;  %v4339_v28 = vld [vmem:[%s4732_s24 + $0x1c] ss:$0 sps:$4 sm:$0xff]   ;;  %s3357_s18 = sshll.u32 %s566_s20, 3 }
  0x67   : > { %3910 = vmatpush3.bf16.msra.mxu0 %v4320_v30  ;;  %3783 = vmatprep.subr.bf16.mxu1 %v4321_v31  ;;  %v818_v50 = vld [vmem:[#allocation2 + $0x18] sm:$0xf]  ;;  %v4752_v51 = vld [vmem:[#allocation2 + $0x10] sm:$0xf0]  ;;  %767 = vst [vmem:[#allocation2 + $0x40] sm:$0xf0] %v4338_v16 }
  0x68   : > { %3911 = vmatprep.subr.bf16.mxu0 %v4322_v32  ;;  %v817_v52 = vld [vmem:[#allocation2 + $0x10] sm:$0xf8]  ;;  %v1579_v53 = vrot.slane %v4752_v51, 4  ;;  %v1580_v54 = vrot.slane %v818_v50, 4  ;;  %v862_v58 = vshrl.u32 %v818_v50, 16  ;;  %v865_v59 = vshll.u32 %v818_v50, 16 }
  0x69   : > { %v854_v56 = vshrl.u32 %v817_v52, 16  ;;  %v857_v57 = vshll.u32 %v817_v52, 16  ;;  %v4766_v0 = vld [vmem:[#allocation2 + $0x20] sm:$0xf0]  ;;  %v820_v5 = vld [vmem:[#allocation2 + $0x28] sm:$0xf] }
  0x6a   : > { %3784 = vmatpush3.bf16.msra.mxu1 %v4321_v31  ;;  %v4764_v63 = vsel %vm1575_vm1, %v1579_v53, %v1580_v54  ;;  %v864_v8 = vrot.slane %v862_v58, 3  ;;  %v867_v9 = vrot.slane %v865_v59, 4  ;;  %v819_v10 = vld [vmem:[#allocation2 + $0x20] sm:$0xf8]  ;;  %v1582_v19 = vrot.slane %v4766_v0, 4  ;;  %v4333_v34 = vld [vmem:[%s5420_s4 + $0xc8] sm:$0xff]  }
  0x6b   : > { %3912 = vmatpush3.bf16.msra.mxu0 %v4322_v32  ;;  %3785 = vmatprep.subr.bf16.mxu1 %v4323_v35  ;;  %v815_v61 = vld [vmem:[#allocation2] sm:$0xf8]  ;;  %v816_v62 = vld [vmem:[#allocation2 + $0x8] sm:$0xf]  ;;  %v856_v6 = vrot.slane %v854_v56, 3  ;;  %v859_v7 = vrot.slane %v857_v57, 4 }
  0x6c   : > { %3913 = vmatprep.subr.bf16.mxu0 %v4324_v39  ;;  %v837_v1 = vshrl.u32 %v815_v61, 16  ;;  %v840_v2 = vshll.u32 %v815_v61, 16  ;;  %v845_v3 = vshrl.u32 %v816_v62, 16  ;;  %v848_v4 = vshll.u32 %v816_v62, 16  ;;  %3917 = vmatprep.mubr.bf16.mxu0 %v4764_v63  ;;  %v822_v21 = vld [vmem:[#allocation2 + $0x38] sm:$0xf] }
  0x6d   : > { %v860_v17 = vor.u32 %v859_v7, %v856_v6  ;;  %v868_v18 = vor.u32 %v867_v9, %v864_v8  ;;  %v1583_v20 = vrot.slane %v820_v5, 4  ;;  %v4775_v22 = vld [vmem:[#allocation2 + $0x30] sm:$0xf0]  ;;  %v871_v25 = vshrl.u32 %v819_v10, 16  ;;  %768 = vst [vmem:[#allocation2 + $0x48] sm:$0xf] %v4339_v28 }
  0x6e   : > { %3786 = vmatpush3.bf16.msra.mxu1 %v4323_v35  ;;  %v839_v11 = vrot.slane %v837_v1, 3  ;;  %v842_v12 = vrot.slane %v840_v2, 4  ;;  %v847_v13 = vrot.slane %v845_v3, 3  ;;  %v850_v14 = vrot.slane %v848_v4, 4  ;;  %v821_v27 = vld [vmem:[#allocation2 + $0x30] sm:$0xf8] }
  0x6f   : > { %3914 = vmatpush3.bf16.msra.mxu0 %v4324_v39  ;;  %3787 = vmatprep.subr.bf16.mxu1 %v4325_v46  ;;  %v874_v26 = vshll.u32 %v819_v10, 16  ;;  %v4779_v29 = vsel %vm835_vm2, %v860_v17, %v868_v18  ;;  %v4782_v30 = vsel %vm1575_vm1, %v1582_v19, %v1583_v20  ;;  %v879_v31 = vshrl.u32 %v820_v5, 16  ;;  %v4337_v50 = vld [vmem:[%s5420_s4 + $0xd0] sm:$0xff]   ;;  %v4808_v57 = vld [vmem:[#allocation2 + $0x40] sm:$0xf0]  ;;  %v4341_v7 = vld [vmem:[%s5420_s4 + $0xd8] sm:$0xff]  }
  0x70   : > { %3915 = vmatprep.subr.bf16.mxu0 %v4326_v47  ;;  %v843_v23 = vor.u32 %v842_v12, %v839_v11  ;;  %v851_v24 = vor.u32 %v850_v14, %v847_v13  ;;  %v882_v32 = vshll.u32 %v820_v5, 16  ;;  %v873_v35 = vrot.slane %v871_v25, 3  ;;  %v823_v58 = vld [vmem:[#allocation2 + $0x40] sm:$0xf8]  ;;  %v4343_v59 = vld [vmem:[%s4732_s24 + $0x20] ss:$0 sps:$4 sm:$0xff]  }
  0x71   : > { %v876_v36 = vrot.slane %v874_v26, 4  ;;  %v1585_v37 = vrot.slane %v4775_v22, 4  ;;  %v881_v38 = vrot.slane %v879_v31, 3  ;;  %v1586_v40 = vrot.slane %v822_v21, 4  ;;  %v4344_v2 = vld [vmem:[%s4732_s24 + $0x24] ss:$0 sps:$4 sm:$0xff]  }
  0x72   : > { %3788 = vmatpush3.bf16.msra.mxu1 %v4325_v46  ;;  %v852_v33 = vsel %vm835_vm2, %v843_v23, %v851_v24  ;;  %v884_v39 = vrot.slane %v882_v32, 4  ;;  %v888_v41 = vshrl.u32 %v821_v27, 16  ;;  %v891_v43 = vshll.u32 %v821_v27, 16  ;;  %v4340_v46 = vld [vmem:[%s5420_s4 + $0x1d0] sm:$0xff]   ;;  %769 = vst [vmem:[#allocation2 + $0x50] sm:$0xf0] %v4343_v59 }
  0x73   : > { %3916 = vmatpush3.bf16.msra.mxu0 %v4326_v47  ;;  %3805 = vmatprep.subr.bf16.mxu1 %v4758_v55  ;;  %v877_v42 = vor.u32 %v876_v36, %v873_v35  ;;  %v896_v44 = vshrl.u32 %v822_v21, 16  ;;  %v899_v45 = vshll.u32 %v822_v21, 16  ;;  %v4796_v48 = vsel %vm1575_vm1, %v1585_v37, %v1586_v40  ;;  %770 = vst [vmem:[#allocation2 + $0x58] sm:$0xf] %v4344_v2  ;;  %v4346_v12 = vld [vmem:[%s4732_s24 + $0x28] ss:$0 sps:$4 sm:$0xff]  }
  0x74   : > { %3933 = vmatprep.subr.bf16.mxu0 %v4332_v60  ;;  %3789 = vmatprep.mubr.bf16.mxu1 %v852_v33  ;;  %v885_v47 = vor.u32 %v884_v39, %v881_v38  ;;  %v890_v49 = vrot.slane %v888_v41, 3  ;;  %v893_v52 = vrot.slane %v891_v43, 4  ;;  %v1588_v62 = vrot.slane %v4808_v57, 4  ;;  %v824_v3 = vld [vmem:[#allocation2 + $0x48] sm:$0xf]  ;;  %v4348_v16 = vld [vmem:[%s5420_s4 + $0x1e0] sm:$0xff]  }
  0x75   : > { %3790 = vmatmul.mubr.bf16.vlgmr.msra.gmra.mrb[0].mxu1 %v4779_v29  ;;  %v898_v53 = vrot.slane %v896_v44, 3  ;;  %v901_v54 = vrot.slane %v899_v45, 4  ;;  %v905_v1 = vshrl.u32 %v823_v58, 16  ;;  %v908_v4 = vshll.u32 %v823_v58, 16  ;;  %v4345_v19 = vld [vmem:[%s5420_s4 + $0xe0] sm:$0xff]   ;;  %v4350_v20 = vld [vmem:[%s5420_s4 + $0x1e8] sm:$0xff]  }
  0x76   : > { %3918 = vmatmul.mubr.bf16.vlgmr.msra.gmra.mrb[0].mxu0 %v4782_v30  ;;  %3806 = vmatpush3.bf16.msra.mxu1 %v4758_v55  ;;  %v4342_v55 = vld [vmem:[%s5420_s4 + $0x1d8] sm:$0xff]   ;;  %v4806_v56 = vsel %vm835_vm2, %v877_v42, %v885_v47  ;;  %v1589_v6 = vrot.slane %v824_v3, 4  ;;  %v913_v9 = vshrl.u32 %v824_v3, 16  ;;  %v916_v11 = vshll.u32 %v824_v3, 16  ;;  %771 = vst [vmem:[#allocation2 + $0x60] sm:$0xf0] %v4346_v12 }
  0x77   : > { %3934 = vmatpush3.bf16.msra.mxu0 %v4332_v60  ;;  %3807 = vmatprep.subr.bf16.mxu1 %v4333_v34  ;;  %v894_v60 = vor.u32 %v893_v52, %v890_v49  ;;  %v902_v61 = vor.u32 %v901_v54, %v898_v53  ;;  %v907_v8 = vrot.slane %v905_v1, 3  ;;  %v910_v10 = vrot.slane %v908_v4, 4  ;;  %v4351_v23 = vld [vmem:[%s4732_s24 + $0x30] ss:$0 sps:$4 sm:$0xff]   ;;  %v4352_v26 = vld [vmem:[%s4732_s24 + $0x34] ss:$0 sps:$4 sm:$0xff]  }
  0x78   : > { %3935 = vmatprep.subr.bf16.mxu0 %v4334_v15  ;;  %3921 = vmatprep.mubr.bf16.mxu0 %v4796_v48  ;;  %v4823_v13 = vsel %vm1575_vm1, %v1588_v62, %v1589_v6  ;;  %v915_v14 = vrot.slane %v913_v9, 3  ;;  %v918_v18 = vrot.slane %v916_v11, 4  ;;  %773 = vst [vmem:[#allocation2 + $0x70] sm:$0xf0] %v4351_v23  ;;  %774 = vst [vmem:[#allocation2 + $0x78] sm:$0xf] %v4352_v26 }
  0x79   : > { %3793 = vmatprep.mubr.bf16.mxu1 %v4806_v56  ;;  %v4815_v5 = vsel %vm835_vm2, %v894_v60, %v902_v61  ;;  %v911_v17 = vor.u32 %v910_v10, %v907_v8  ;;  %v4837_v24 = vld [vmem:[#allocation2 + $0x50] sm:$0xf0]  ;;  %v4358_v60 = vld [vmem:[%s5420_s4 + $0x1f8] sm:$0xff]   ;;  %p662_p7 = scmp.lt.s32.totalorder %s4470_s11, 1  ;;  %s568_s21 = scalar_lea.vmem [#allocation5], %s3357_s18  ;;  %vm3133_vm5 = vcmask 19456  }
  0x7a   : > { %3808 = vmatpush3.bf16.msra.mxu1 %v4333_v34  ;;  %v919_v21 = vor.u32 %v918_v18, %v915_v14  ;;  %v825_v25 = vld [vmem:[#allocation2 + $0x50] sm:$0xf8]  ;;  %v826_v28 = vld [vmem:[#allocation2 + $0x58] sm:$0xf]  ;;  %v1591_v31 = vrot.slane %v4837_v24, 4  ;;  %v4349_v34 = vld [vmem:[%s5420_s4 + $0xe8] sm:$0xff]  }
  0x7b   : > { %3936 = vmatpush3.bf16.msra.mxu0 %v4334_v15  ;;  %3809 = vmatprep.subr.bf16.mxu1 %v4337_v50  ;;  %v4347_v15 = vld [vmem:[%s4732_s24 + $0x2c] ss:$0 sps:$4 sm:$0xff]   ;;  %v922_v32 = vshrl.u32 %v825_v25, 16  ;;  %v925_v33 = vshll.u32 %v825_v25, 16  ;;  %v1592_v35 = vrot.slane %v826_v28, 4  ;;  %v930_v36 = vshrl.u32 %v826_v28, 16 }
  0x7c   : > { %3937 = vmatprep.subr.bf16.mxu0 %v4340_v46  ;;  %772 = vst [vmem:[#allocation2 + $0x68] sm:$0xf] %v4347_v15  ;;  %v4841_v27 = vsel %vm835_vm2, %v911_v17, %v919_v21  ;;  %v933_v37 = vshll.u32 %v826_v28, 16  ;;  %v4356_v38 = vld [vmem:[%s5420_s4 + $0x1f0] sm:$0xff]   ;;  %v4354_v1 = vld [vmem:[%s4732_s24 + $0x38] ss:$0 sps:$4 sm:$0xff]  }
  0x7d   : > { %3794 = vmatmul.mubr.bf16.gmra.mrb[4].mxu1 %v4815_v5  ;;  %v924_v39 = vrot.slane %v922_v32, 3  ;;  %v927_v40 = vrot.slane %v925_v33, 4  ;;  %v4852_v41 = vsel %vm1575_vm1, %v1591_v31, %v1592_v35  ;;  %v932_v42 = vrot.slane %v930_v36, 3  ;;  %v4854_v44 = vld [vmem:[#allocation2 + $0x60] sm:$0xf0]  ;;  %v4353_v53 = vld [vmem:[%s5420_s4 + $0xf0] sm:$0xff]  }
  0x7e   : > { %3922 = vmatmul.mubr.bf16.gmra.mrb[4].mxu0 %v4823_v13  ;;  %3810 = vmatpush3.bf16.msra.mxu1 %v4337_v50  ;;  %v935_v43 = vrot.slane %v933_v37, 4  ;;  %v827_v45 = vld [vmem:[#allocation2 + $0x60] sm:$0xf8]  ;;  %v1594_v49 = vrot.slane %v4854_v44, 4  ;;  %v4355_v2 = vld [vmem:[%s4732_s24 + $0x3c] ss:$0 sps:$4 sm:$0xff]  }
  0x7f   : > { %3938 = vmatpush3.bf16.msra.mxu0 %v4340_v46  ;;  %3811 = vmatprep.subr.bf16.mxu1 %v4341_v7  ;;  %v928_v46 = vor.u32 %v927_v40, %v924_v39  ;;  %v939_v50 = vshrl.u32 %v827_v45, 16  ;;  %v942_v52 = vshll.u32 %v827_v45, 16  ;;  %v4872_v8 = vld [vmem:[#allocation2 + $0x70] sm:$0xf0]  ;;  %v830_v11 = vld [vmem:[#allocation2 + $0x78] sm:$0xf] }
  0x80   : > { %3939 = vmatprep.subr.bf16.mxu0 %v4342_v55  ;;  %3797 = vmatprep.mubr.bf16.mxu1 %v4841_v27  ;;  %v936_v54 = vor.u32 %v935_v43, %v932_v42  ;;  %v829_v9 = vld [vmem:[#allocation2 + $0x70] sm:$0xf8]  ;;  %v1597_v12 = vrot.slane %v4872_v8, 4  ;;  %775 = vst [vmem:[#allocation2 + $0x80] sm:$0xf0] %v4354_v1  ;;  %v1598_v18 = vrot.slane %v830_v11, 4 }
  0x81   : > { %3925 = vmatprep.mubr.bf16.mxu0 %v4852_v41  ;;  %v941_v61 = vrot.slane %v939_v50, 3  ;;  %v944_v62 = vrot.slane %v942_v52, 4  ;;  %v956_v14 = vshrl.u32 %v829_v9, 16  ;;  %v959_v15 = vshll.u32 %v829_v9, 16  ;;  %776 = vst [vmem:[#allocation2 + $0x88] sm:$0xf] %v4355_v2 }
  0x82   : > { %3812 = vmatpush3.bf16.msra.mxu1 %v4341_v7  ;;  %v4867_v3 = vsel %vm835_vm2, %v928_v46, %v936_v54  ;;  %v4360_v21 = vld [vmem:[%s5420_s4 + $0x80] sm:$0xff]   ;;  %v4887_v28 = vsel %vm1575_vm1, %v1597_v12, %v1598_v18  ;;  %v4361_v43 = vld [vmem:[%s5420_s4 + $0x188] sm:$0xff]   ;;  %v4363_v45 = vld [vmem:[%s5420_s4 + $0x190] sm:$0xff]   ;;  %s665_s25 = scalar_select %p662_p7, 1, 0  ;;  %v2183_v9 = vshrl.u32 %v4752_v51, 16 }
  0x83   : > { %3940 = vmatpush3.bf16.msra.mxu0 %v4342_v55  ;;  %3813 = vmatprep.subr.bf16.mxu1 %v4345_v19  ;;  %v828_v47 = vld [vmem:[#allocation2 + $0x68] sm:$0xf]  ;;  %v945_v10 = vor.u32 %v944_v62, %v941_v61  ;;  %v958_v23 = vrot.slane %v956_v14, 3  ;;  %v961_v25 = vrot.slane %v959_v15, 4  ;;  %v663_v46 = vld [vmem:[%s568_s21] sm:$0xf] }
  0x84   : > { %3941 = vmatprep.subr.bf16.mxu0 %v4348_v16  ;;  %v1595_v55 = vrot.slane %v828_v47, 4  ;;  %v947_v58 = vshrl.u32 %v828_v47, 16  ;;  %v950_v59 = vshll.u32 %v828_v47, 16  ;;  %v664_v47 = vld [vmem:[%s568_s21 + $0x4] sm:$0xf]  ;;  %v666_v50 = vstv %s665_s25  ;;  %v4368_v18 = vld [vmem:[%s5420_s4 + $0xa0] sm:$0xff]  }
  0x85   : > { %3798 = vmatmul.mubr.bf16.gmra.mrb[8].mxu1 %v4867_v3  ;;  %v962_v33 = vor.u32 %v961_v25, %v958_v23  ;;  %v4364_v52 = vld [vmem:[%s5420_s4 + $0x90] sm:$0xff]   ;;  %vm667_vm3 = vcmp.eq.s32.totalorder %v666_v50, 1  ;;  %v4366_v61 = vld [vmem:[%s5420_s4 + $0x98] sm:$0xff]   ;;  %v4369_v23 = vld [vmem:[%s5420_s4 + $0x1a8] sm:$0xff]   ;;  %v2200_v25 = vshrl.u32 %v4766_v0, 16  ;;  %s4489_s26 = smov 125  }
  0x86   : > { %3814 = vmatpush3.bf16.msra.mxu1 %v4345_v19  ;;  %v4870_v4 = vsel %vm1575_vm1, %v1594_v49, %v1595_v55  ;;  %v949_v6 = vrot.slane %v947_v58, 3  ;;  %v952_v7 = vrot.slane %v950_v59, 4  ;;  %v964_v19 = vshrl.u32 %v830_v11, 16  ;;  %s5440_s0 = sld [smem:[#allocation6_spill]]  ;;  %s3358_s24 = sshll.u32 %s4470_s11, 3 }
  0x87   : > { %3942 = vmatpush3.bf16.msra.mxu0 %v4348_v16  ;;  %3815 = vmatprep.subr.bf16.mxu1 %v4349_v34  ;;  %v4357_v16 = vld [vmem:[%s5420_s4 + $0xf8] sm:$0xff]   ;;  %v831_v49 = vld [vmem:[#allocation2 + $0x80] sm:$0xf8]  ;;  %v668_v54 = vsel %vm667_vm3, %v663_v46, 0  ;;  %v669_v55 = vsel %vm667_vm3, %v664_v47, 0  ;;  %v4371_v47 = vld [vmem:[%s5420_s4 + $0x1b0] sm:$0xff]  }
  0x88   : > { %3943 = vmatprep.subr.bf16.mxu0 %v4350_v20  ;;  %3926 = vmatmul.mubr.bf16.gmra.mrb[8].mxu0 %v4870_v4  ;;  %v953_v17 = vor.u32 %v952_v7, %v949_v6  ;;  %v966_v31 = vrot.slane %v964_v19, 3  ;;  %v4897_v37 = vld [vmem:[#allocation2 + $0x88] sm:$0xf]  ;;  %v3384_v59 = vcombine.low %v668_v54, %v668_v54  ;;  %v1158_v62 = vshrl.u32 %v831_v49, 16  ;;  %v4937_v6 = vld [vmem:[#allocation2] sm:$0xf0] }
  0x89   : > { %3929 = vmatprep.mubr.bf16.mxu0 %v4887_v28  ;;  %v1789_v40 = vrot.slane %v4897_v37, 4  ;;  %v1166_v58 = vshrl.u32 %v4897_v37, 16  ;;  %v1161_v1 = vshll.u32 %v831_v49, 16  ;;  %v1169_v2 = vshll.u32 %v4897_v37, 16  ;;  %v2154_v7 = vld [vmem:[#allocation2 + $0x8] sm:$0x1f] }
  0x8a   : > { %3816 = vmatpush3.bf16.msra.mxu1 %v4349_v34  ;;  %v4884_v26 = vsel %vm835_vm2, %v945_v10, %v953_v17  ;;  %v4359_v34 = vld [vmem:[%s5420_s4 + $0x180] sm:$0xff]   ;;  %786 = vst [vmem:[#allocation2 + $0x90] sm:$0xf0] %v3384_v59  ;;  %v2166_v14 = vshrl.u32 %v4937_v6, 16  ;;  %v2169_v15 = vshll.u32 %v4937_v6, 16  ;;  %v2177_v17 = vshll.u32 %v2154_v7, 16 }
  0x8b   : > { %3944 = vmatpush3.bf16.msra.mxu0 %v4350_v20  ;;  %v967_v20 = vshll.u32 %v830_v11, 16  ;;  %3817 = vmatprep.subr.bf16.mxu1 %v4353_v53  ;;  %v4367_v10 = vld [vmem:[%s5420_s4 + $0x1a0] sm:$0xff]   ;;  %v2186_v11 = vshll.u32 %v4752_v51, 16  ;;  %v1168_v12 = vrot.slane %v1166_v58, 3  ;;  %v1160_v19 = vrot.slane %v1158_v62, 3  ;;  %p625_p9 = scmp.lt.s32.totalorder %s3358_s24, 15 }
  0x8c   : > { %3945 = vmatprep.subr.bf16.mxu0 %v4356_v38  ;;  %3801 = vmatprep.mubr.bf16.mxu1 %v4884_v26  ;;  %v1163_v51 = vrot.slane %v1161_v1, 4  ;;  %v4977_v58 = vrot.slane %v2200_v25, 4  ;;  %v2217_v59 = vshrl.u32 %v4775_v22, 16  ;;  %vm2164_vm4 = vsmask.f32 3328  ;;  %p623_p8 = scmp.lt.s32.totalorder %s5440_s0, 1 }
  0x8d   : > { %v969_v32 = vrot.slane %v967_v20, 4  ;;  %v1171_v20 = vrot.slane %v1169_v2, 4  ;;  %v4967_v46 = vrot.slane %v2186_v11, 5  ;;  %v2157_v2 = vld [vmem:[#allocation2 + $0x38] sm:$0x1f]  ;;  %s5476_s24 = smov (!%p625_p9, %s3358_s24), 15 }
  0x8e   : > { %3818 = vmatpush3.bf16.msra.mxu1 %v4353_v53  ;;  %v4365_v53 = vld [vmem:[%s5420_s4 + $0x198] sm:$0xff]   ;;  %s5474_s0 = smov (!%p623_p8, %s5440_s0), 1  ;;  %s3359_s29 = sshll.u32 %s5476_s24, 1 }
  0x8f   : > { %3946 = vmatpush3.bf16.msra.mxu0 %v4356_v38  ;;  %v970_v35 = vor.u32 %v969_v32, %v966_v31  ;;  %3819 = vmatprep.subr.bf16.mxu1 %v4357_v16  ;;  %v4899_v38 = vld [vmem:[#allocation2 + $0x80] sm:$0xf0]  ;;  %v2203_v31 = vshll.u32 %v4766_v0, 16  ;;  %v4370_v32 = vld [vmem:[%s5420_s4 + $0xa8] sm:$0xff]   ;;  %s3360_s16 = sshll.u32 %s5474_s0, 5  ;;  %s5441_s18 = sld [smem:[#allocation11_spill]] }
  0x90   : > { %3947 = vmatprep.subr.bf16.mxu0 %v4358_v60  ;;  %v1788_v39 = vrot.slane %v4899_v38, 4  ;;  %s5263_s22 = sadd.s32 %s3360_s16, %s3359_s29  ;;  %s5442_s6 = sld [smem:[#allocation12_spill]] }
  0x91   : > { %v4895_v36 = vsel %vm835_vm2, %v962_v33, %v970_v35  ;;  %v2168_v33 = vrot.slane %v2166_v14, 4  ;;  %v2155_v35 = vld [vmem:[#allocation2 + $0x18] sm:$0x1f]  ;;  %v4965_v0 = vld [vmem:[#allocation2 + $0x90] sm:$0xf0]  ;;  %s3361_s12 = sshll.u32 %s5263_s22, 3 }
  0x92   : > { %3802 = vmatmul.mubr.bf16.gmra.mrb[12].mxu1 %v4895_v36  ;;  %v4907_v42 = vsel %vm1575_vm1, %v1788_v39, %v1789_v40  ;;  %v2179_v40 = vrot.slane %v2177_v17, 5  ;;  %v2191_v49 = vshrl.u32 %v2155_v35, 16  ;;  %v2194_v50 = vshll.u32 %v2155_v35, 16  ;;  %s5443_s19 = sld [smem:[#allocation13_spill]]  ;;  %s3365_s21 = sshll.u32 %s5263_s22, 2 }
  0x93   : > { %3948 = vmatpush3.bf16.msra.mxu0 %v4358_v60  ;;  %3820 = vmatpush3.bf16.msra.mxu1 %v4357_v16  ;;  %v3385_v60 = vcombine.low %v669_v55, %v669_v55  ;;  %v2174_v16 = vshrl.u32 %v2154_v7, 16  ;;  %v1972_v54 = vrot.slane %v4965_v0, 4  ;;  %v4373_v7 = vld [vmem:[%s5420_s4 + $0x1b8] sm:$0xff]   ;;  %v2225_v17 = vshrl.u32 %v2157_v2, 16  ;;  %s5444_s0 = sld [smem:[#allocation14_spill]] }
  0x94   : > { %3965 = vmatprep.subr.bf16.mxu0 %v4360_v21  ;;  %3821 = vmatprep.mubr.bf16.mxu1 %v4779_v29  ;;  %v4362_v29 = vld [vmem:[%s5420_s4 + $0x88] sm:$0xff]   ;;  %v2196_v11 = vrot.slane %v2194_v50, 5 }
  0x95   : > { %3837 = vmatprep.subr.bf16.mxu1 %v4359_v34  ;;  %3930 = vmatmul.mubr.bf16.gmra.mrb[12].mxu0 %v4907_v42  ;;  %787 = vst [vmem:[#allocation2 + $0x98] sm:$0xf] %v3385_v60  ;;  %v2176_v39 = vrot.slane %v2174_v16, 4  ;;  %v4378_v50 = vld [vmem:[%s5420_s4 + $0x148] sm:$0xff]   ;;  %s5269_s8 = scalar_lea.vmem %s5441_s18, %s3361_s12 }
  0x96   : > { %3949 = vmatprep.mubr.bf16.mxu0 %v4782_v30 }
  0x97   : > { %v2180_v1 = vor.u32 %v2179_v40, %v2176_v39  ;;  %v4377_v40 = vld [vmem:[%s5420_s4 + $0x48] sm:$0xff]  }
  0x99   : > { %s5310_s24 = scalar_lea.vmem %s5444_s0, %s3365_s21 }
  0x9a   : > { %3822 = vmatmul.mubr.bf16.vlgmr.msra.gmra.mrb[0].mxu1 %v4806_v56 }
  0x9b   : > { %3838 = vmatpush3.bf16.msra.mxu1 %v4359_v34  ;;  %3825 = vmatprep.mubr.bf16.mxu1 %v4815_v5  ;;  %v2171_v34 = vrot.slane %v2169_v15, 5  ;;  %v2220_v15 = vshll.u32 %v4775_v22, 16 }
  0x9c   : > { %3839 = vmatprep.subr.bf16.mxu1 %v4361_v43  ;;  %v4963_v37 = vld [vmem:[#allocation2 + $0x98] sm:$0xf] }
  0x9d   : > { %3950 = vmatmul.mubr.bf16.vlgmr.msra.gmra.mrb[0].mxu0 %v4796_v48  ;;  %v1973_v55 = vrot.slane %v4963_v37, 4  ;;  %v2172_v62 = vor.u32 %v2171_v34, %v2168_v33  ;;  %v2159_v33 = vld [vmem:[#allocation2 + $0x58] sm:$0x1f]  ;;  %v2237_v34 = vshll.u32 %v4808_v57, 16 }
  0x9e   : > { %3966 = vmatpush3.bf16.msra.mxu0 %v4360_v21  ;;  %3953 = vmatprep.mubr.bf16.mxu0 %v4823_v13  ;;  %v4952_v21 = vrot.slane %v2183_v9, 4  ;;  %v2193_v9 = vrot.slane %v2191_v49, 4 }
  0x9f   : > { %3967 = vmatprep.subr.bf16.mxu0 %v4362_v29  ;;  %3840 = vmatpush3.bf16.msra.mxu1 %v4361_v43  ;;  %v2156_v43 = vld [vmem:[#allocation2 + $0x28] sm:$0x1f]  ;;  %v1974_v16 = vsel %vm1575_vm1, %v1972_v54, %v1973_v55  ;;  %v2268_v54 = vshrl.u32 %v4854_v44, 16  ;;  %v4379_v55 = vld [vmem:[%s5420_s4 + $0x50] sm:$0xff]  }
  0xa0   : > { %3841 = vmatprep.subr.bf16.mxu1 %v4363_v45  ;;  %v2189_v22 = vor.u32 %v4967_v46, %v4952_v21  ;;  %v4376_v21 = vld [vmem:[%s5420_s4 + $0x140] sm:$0xff]   ;;  %v2251_v46 = vshrl.u32 %v4837_v24, 16 }
  0xa2   : > { %3968 = vmatpush3.bf16.msra.mxu0 %v4362_v29  ;;  %3826 = vmatmul.mubr.bf16.gmra.mrb[4].mxu1 %v4841_v27  ;;  %v1164_v29 = vor.u32 %v1163_v51, %v1160_v19  ;;  %v2181_v19 = vsel %vm2164_vm4, %v2172_v62, %v2180_v1  ;;  %v2158_v51 = vld [vmem:[#allocation2 + $0x48] sm:$0x1f]  ;;  %v5034_v1 = vrot.slane %v2251_v46, 4 }
  0xa3   : > { %3969 = vmatprep.subr.bf16.mxu0 %v4364_v52  ;;  %3842 = vmatpush3.bf16.msra.mxu1 %v4363_v45  ;;  %v1172_v45 = vor.u32 %v1171_v20, %v1168_v12  ;;  %v4375_v20 = vld [vmem:[%s5420_s4 + $0x40] sm:$0xff]   ;;  %v2242_v35 = vshrl.u32 %v2158_v51, 16  ;;  %v2245_v39 = vshll.u32 %v2158_v51, 16 }
  0xa4   : > { %3843 = vmatprep.subr.bf16.mxu1 %v4365_v53  ;;  %3829 = vmatprep.mubr.bf16.mxu1 %v4867_v3 }
  0xa5   : > { %3954 = vmatmul.mubr.bf16.gmra.mrb[4].mxu0 %v4852_v41  ;;  %v4981_v60 = vsel %vm835_vm2, %v1164_v29, %v1172_v45  ;;  %v2227_v29 = vrot.slane %v2225_v17, 4 }
  0xa6   : > { %3970 = vmatpush3.bf16.msra.mxu0 %v4364_v52  ;;  %3957 = vmatprep.mubr.bf16.mxu0 %v4870_v4  ;;  %v2208_v52 = vshrl.u32 %v2156_v43, 16 }
  0xa7   : > { %3971 = vmatprep.subr.bf16.mxu0 %v4366_v61  ;;  %3844 = vmatpush3.bf16.msra.mxu1 %v4365_v53  ;;  %v2211_v53 = vshll.u32 %v2156_v43, 16 }
  0xa8   : > { %3845 = vmatprep.subr.bf16.mxu1 %v4367_v10  ;;  %v2210_v12 = vrot.slane %v2208_v52, 4  ;;  %v2262_v52 = vshll.u32 %v2159_v33, 16 }
  0xa9   : > { %v2213_v14 = vrot.slane %v2211_v53, 5  ;;  %v2160_v53 = vld [vmem:[#allocation2 + $0x68] sm:$0x1f] }
  0xaa   : > { %3972 = vmatpush3.bf16.msra.mxu0 %v4366_v61  ;;  %3830 = vmatmul.mubr.bf16.gmra.mrb[8].mxu1 %v4884_v26  ;;  %v4372_v61 = vld [vmem:[%s5420_s4 + $0xb0] sm:$0xff]  }
  0xab   : > { %3973 = vmatprep.subr.bf16.mxu0 %v4368_v18  ;;  %3846 = vmatpush3.bf16.msra.mxu1 %v4367_v10  ;;  %v4374_v10 = vld [vmem:[%s5420_s4 + $0xb8] sm:$0xff]   ;;  %v2214_v43 = vor.u32 %v2213_v14, %v2210_v12  ;;  %v2264_v14 = vrot.slane %v2262_v52, 5 }
  0xac   : > { %3847 = vmatprep.subr.bf16.mxu1 %v4369_v23  ;;  %3833 = vmatprep.mubr.bf16.mxu1 %v4895_v36 }
  0xad   : > { %3958 = vmatmul.mubr.bf16.gmra.mrb[8].mxu0 %v4887_v28 }
  0xae   : > { %3974 = vmatpush3.bf16.msra.mxu0 %v4368_v18  ;;  %3961 = vmatprep.mubr.bf16.mxu0 %v4907_v42  ;;  %v4986_v42 = vrot.slane %v2203_v31, 5  ;;  %v2228_v18 = vshll.u32 %v2157_v2, 16  ;;  %v5006_v31 = vrot.slane %v2217_v59, 4  ;;  %v2244_v59 = vrot.slane %v2242_v35, 4 }
  0xaf   : > { %3975 = vmatprep.subr.bf16.mxu0 %v4370_v32  ;;  %3848 = vmatpush3.bf16.msra.mxu1 %v4369_v23  ;;  %v2197_v23 = vor.u32 %v2196_v11, %v2193_v9  ;;  %v2276_v2 = vshrl.u32 %v2160_v53, 16  ;;  %v833_v9 = vld [vmem:[#allocation2 + $0x90] sm:$0xf8]  ;;  %v1362_v35 = vshrl.u32 %v4963_v37, 16 }
  0xb0   : > { %3849 = vmatprep.subr.bf16.mxu1 %v4371_v47  ;;  %v2206_v25 = vor.u32 %v4986_v42, %v4977_v58  ;;  %v2230_v45 = vrot.slane %v2228_v18, 5  ;;  %v2239_v58 = vrot.slane %v2237_v34, 5  ;;  %v2271_v42 = vshll.u32 %v4854_v44, 16  ;;  %v4381_v44 = vld [vmem:[%s5420_s4 + $0x58] sm:$0xff]  }
  0xb1   : > { %v5021_v49 = vsel %vm2164_vm4, %v2189_v22, %v2197_v23  ;;  %v2278_v51 = vrot.slane %v2276_v2, 4  ;;  %v4382_v22 = vld [vmem:[%s5420_s4 + $0x158] sm:$0xff]  }
  0xb2   : > { %3976 = vmatpush3.bf16.msra.mxu0 %v4370_v32  ;;  %3834 = vmatmul.mubr.bf16.gmra.mrb[12].mxu1 %v4981_v60  ;;  %v5008_v32 = vrot.slane %v2220_v15, 5  ;;  %v5032_v62 = vsel %vm2164_vm4, %v2206_v25, %v2214_v43  ;;  %v5044_v15 = vrot.slane %v2268_v54, 4  ;;  %v2273_v18 = vrot.slane %v2271_v42, 5 }
  0xb3   : > { %3977 = vmatprep.subr.bf16.mxu0 %v4372_v61  ;;  %3850 = vmatpush3.bf16.msra.mxu1 %v4371_v47  ;;  %v2259_v47 = vshrl.u32 %v2159_v33, 16  ;;  %v2161_v33 = vld [vmem:[#allocation2 + $0x78] sm:$0x1f]  ;;  %v2684_v43 = vshrl.u32 %v4965_v0, 16 }
  0xb4   : > { %3851 = vmatprep.subr.bf16.mxu1 %v4373_v7  ;;  %3853 = vmatprep.mubr.bf16.mxu1 %v4806_v56  ;;  %v2234_v56 = vshrl.u32 %v4808_v57, 16  ;;  %v2254_v57 = vshll.u32 %v4837_v24, 16  ;;  %v2293_v46 = vshrl.u32 %v2161_v33, 16 }
  0xb5   : > { %3962 = vmatmul.mubr.bf16.gmra.mrb[12].mxu0 %v1974_v16  ;;  %v2261_v12 = vrot.slane %v2259_v47, 4  ;;  %v2687_v47 = vshll.u32 %v4965_v0, 16  ;;  %v4385_v0 = vld [vmem:[%s5420_s4 + $0x68] sm:$0xff]  }
  0xb6   : > { %3978 = vmatpush3.bf16.msra.mxu0 %v4372_v61  ;;  %3981 = vmatprep.mubr.bf16.mxu0 %v2181_v19  ;;  %v2236_v24 = vrot.slane %v2234_v56, 4  ;;  %v2247_v61 = vrot.slane %v2245_v39, 5  ;;  %v2256_v11 = vrot.slane %v2254_v57, 5  ;;  %v1354_v19 = vshrl.u32 %v833_v9, 16  ;;  %v2163_v57 = vld [vmem:[#allocation2 + $0x98] sm:$0x1f] }
  0xb7   : > { %3979 = vmatprep.subr.bf16.mxu0 %v4374_v10  ;;  %3852 = vmatpush3.bf16.msra.mxu1 %v4373_v7  ;;  %v2279_v7 = vshll.u32 %v2160_v53, 16  ;;  %v2265_v34 = vor.u32 %v2264_v14, %v2261_v12  ;;  %v2274_v39 = vor.u32 %v2273_v18, %v5044_v15  ;;  %v2695_v52 = vshll.u32 %v2163_v57, 16  ;;  %v4384_v53 = vld [vmem:[%s5420_s4 + $0x160] sm:$0xff]  }
  0xb8   : > { %3869 = vmatprep.subr.bf16.mxu1 %v4375_v20  ;;  %v2240_v16 = vor.u32 %v2239_v58, %v2236_v24  ;;  %v2248_v17 = vor.u32 %v2247_v61, %v2244_v59  ;;  %v2257_v56 = vor.u32 %v2256_v11, %v5034_v1  ;;  %v2689_v24 = vrot.slane %v2687_v47, 5 }
  0xb9   : > { %v2697_v59 = vrot.slane %v2695_v52, 5  ;;  %v2295_v2 = vrot.slane %v2293_v46, 4 }
  0xba   : > { %3980 = vmatpush3.bf16.msra.mxu0 %v4374_v10  ;;  %3854 = vmatmul.mubr.bf16.vlgmr.msra.gmra.mrb[0].mxu1 %v4815_v5  ;;  %v2223_v5 = vor.u32 %v5008_v32, %v5006_v31  ;;  %v4380_v10 = vld [vmem:[%s5420_s4 + $0x150] sm:$0xff]   ;;  %v5058_v25 = vsel %vm2164_vm4, %v2240_v16, %v2248_v17  ;;  %v4383_v31 = vld [vmem:[%s5420_s4 + $0x60] sm:$0xff]   ;;  %v1357_v32 = vshll.u32 %v833_v9, 16  ;;  %v5081_v61 = vsel %vm2164_vm4, %v2257_v56, %v2265_v34 }
  0xbb   : > { %3997 = vmatprep.subr.bf16.mxu0 %v4376_v21  ;;  %3870 = vmatpush3.bf16.msra.mxu1 %v4375_v20  ;;  %v2281_v20 = vrot.slane %v2279_v7, 5  ;;  %v2488_v56 = vshrl.u32 %v4899_v38, 16  ;;  %v2491_v34 = vshll.u32 %v4899_v38, 16  ;;  %v4397_v38 = vld [vmem:[%s5420_s4 + $0x230] sm:$0xff]  }
  0xbc   : > { %3871 = vmatprep.subr.bf16.mxu1 %v4377_v40  ;;  %3857 = vmatprep.mubr.bf16.mxu1 %v4841_v27  ;;  %v2231_v27 = vor.u32 %v2230_v45, %v2227_v29  ;;  %v2285_v29 = vshrl.u32 %v4872_v8, 16  ;;  %v2288_v45 = vshll.u32 %v4872_v8, 16  ;;  %v1359_v54 = vrot.slane %v1357_v32, 4  ;;  %v4392_v32 = vld [vmem:[%s5420_s4 + $0x208] sm:$0xff]  }
  0xbd   : > { %3982 = vmatmul.mubr.bf16.vlgmr.msra.gmra.mrb[0].mxu0 %v5021_v49 }
  0xbe   : > { %3998 = vmatpush3.bf16.msra.mxu0 %v4376_v21  ;;  %3985 = vmatprep.mubr.bf16.mxu0 %v5032_v62  ;;  %v5055_v23 = vsel %vm2164_vm4, %v2223_v5, %v2231_v27  ;;  %v2282_v21 = vor.u32 %v2281_v20, %v2278_v51  ;;  %v2287_v1 = vrot.slane %v2285_v29, 4  ;;  %v2290_v5 = vrot.slane %v2288_v45, 5  ;;  %v4398_v29 = vld [vmem:[%s5420_s4 + $0x238] sm:$0xff]  }
  0xbf   : > { %3999 = vmatprep.subr.bf16.mxu0 %v4378_v50  ;;  %3872 = vmatpush3.bf16.msra.mxu1 %v4377_v40  ;;  %v1356_v40 = vrot.slane %v1354_v19, 3  ;;  %v1576_v27 = vrot.slane %v4937_v6, 4  ;;  %v4388_v19 = vld [vmem:[%s5420_s4 + $0x170] sm:$0xff]   ;;  %v4389_v6 = vld [vmem:[%s5420_s4 + $0x78] sm:$0xff]  }
  0xc0   : > { %3873 = vmatprep.subr.bf16.mxu1 %v4379_v55  ;;  %v5088_v11 = vsel %vm2164_vm4, %v2274_v39, %v2282_v21  ;;  %v2291_v17 = vor.u32 %v2290_v5, %v2287_v1  ;;  %v2493_v39 = vrot.slane %v2491_v34, 5 }
  0xc1   : > { %v1360_v12 = vor.u32 %v1359_v54, %v1356_v40 }
  0xc2   : > { %4000 = vmatpush3.bf16.msra.mxu0 %v4378_v50  ;;  %3858 = vmatmul.mubr.bf16.gmra.mrb[4].mxu1 %v4867_v3  ;;  %v1365_v3 = vshll.u32 %v4963_v37, 16  ;;  %v2686_v37 = vrot.slane %v2684_v43, 4  ;;  %v2692_v50 = vshrl.u32 %v2163_v57, 16 }
  0xc3   : > { %4001 = vmatprep.subr.bf16.mxu0 %v4380_v10  ;;  %3874 = vmatpush3.bf16.msra.mxu1 %v4379_v55  ;;  %v1364_v55 = vrot.slane %v1362_v35, 3 }
  0xc4   : > { %3875 = vmatprep.subr.bf16.mxu1 %v4381_v44  ;;  %3861 = vmatprep.mubr.bf16.mxu1 %v4884_v26  ;;  %v2296_v26 = vshll.u32 %v2161_v33, 16  ;;  %v1367_v8 = vrot.slane %v1365_v3, 4  ;;  %v2694_v58 = vrot.slane %v2692_v50, 4  ;;  %v2690_v42 = vor.u32 %v2689_v24, %v2686_v37  ;;  %v4393_v33 = vld [vmem:[%s5420_s4 + $0x210] sm:$0xff]  }
  0xc5   : > { %3986 = vmatmul.mubr.bf16.gmra.mrb[4].mxu0 %v5055_v23  ;;  %v2490_v3 = vrot.slane %v2488_v56, 4 }
  0xc6   : > { %4002 = vmatpush3.bf16.msra.mxu0 %v4380_v10  ;;  %3989 = vmatprep.mubr.bf16.mxu0 %v5058_v25  ;;  %v2298_v7 = vrot.slane %v2296_v26, 5  ;;  %v2698_v9 = vor.u32 %v2697_v59, %v2694_v58  ;;  %v4386_v10 = vld [vmem:[%s5420_s4 + $0x168] sm:$0xff]   ;;  %v1368_v14 = vor.u32 %v1367_v8, %v1364_v55 }
  0xc7   : > { %4003 = vmatprep.subr.bf16.mxu0 %v4382_v22  ;;  %3876 = vmatpush3.bf16.msra.mxu1 %v4381_v44  ;;  %v4399_v44 = vld [vmem:[#allocation2 + $0x8] sm:$0xf]  ;;  %v2494_v43 = vor.u32 %v2493_v39, %v2490_v3 }
  0xc8   : > { %3877 = vmatprep.subr.bf16.mxu1 %v4383_v31  ;;  %v5095_v15 = vsel %vm2164_vm4, %v2690_v42, %v2698_v9  ;;  %v1577_v16 = vrot.slane %v4399_v44, 4  ;;  %v2299_v18 = vor.u32 %v2298_v7, %v2295_v2 }
  0xca   : > { %4004 = vmatpush3.bf16.msra.mxu0 %v4382_v22  ;;  %3862 = vmatmul.mubr.bf16.gmra.mrb[8].mxu1 %v4895_v36  ;;  %v4387_v36 = vld [vmem:[%s5420_s4 + $0x70] sm:$0xff]   ;;  %v1578_v51 = vsel %vm1575_vm1, %v1576_v27, %v1577_v16  ;;  %v5109_v20 = vsel %vm2164_vm4, %v2291_v17, %v2299_v18  ;;  %v4390_v22 = vld [vmem:[%s5420_s4 + $0x178] sm:$0xff]  }
  0xcb   : > { %4005 = vmatprep.subr.bf16.mxu0 %v4384_v53  ;;  %3878 = vmatpush3.bf16.msra.mxu1 %v4383_v31  ;;  %v4391_v31 = vld [vmem:[%s5420_s4 + $0x200] sm:$0xff]  }
  0xcc   : > { %3879 = vmatprep.subr.bf16.mxu1 %v4385_v0  ;;  %3865 = vmatprep.mubr.bf16.mxu1 %v4981_v60  ;;  %v1369_v60 = vsel %vm835_vm2, %v1360_v12, %v1368_v14 }
  0xcd   : > { %3990 = vmatmul.mubr.bf16.gmra.mrb[8].mxu0 %v5081_v61 }
  0xce   : > { %4006 = vmatpush3.bf16.msra.mxu0 %v4384_v53  ;;  %3993 = vmatprep.mubr.bf16.mxu0 %v5088_v11 }
  0xcf   : > { %4007 = vmatprep.subr.bf16.mxu0 %v4386_v10  ;;  %3880 = vmatpush3.bf16.msra.mxu1 %v4385_v0 }
  0xd0   : > { %3881 = vmatprep.subr.bf16.mxu1 %v4387_v36 }
  0xd2   : > { %4008 = vmatpush3.bf16.msra.mxu0 %v4386_v10  ;;  %3866 = vmatmul.mubr.bf16.gmra.mrb[12].mxu1 %v1369_v60 }
  0xd3   : > { %4009 = vmatprep.subr.bf16.mxu0 %v4388_v19  ;;  %3882 = vmatpush3.bf16.msra.mxu1 %v4387_v36 }
  0xd4   : > { %3883 = vmatprep.subr.bf16.mxu1 %v4389_v6  ;;  %3885 = vmatprep.mubr.bf16.mxu1 %v1578_v51 }
  0xd5   : > { %3994 = vmatmul.mubr.bf16.gmra.mrb[12].mxu0 %v5109_v20 }
  0xd6   : > { %4010 = vmatpush3.bf16.msra.mxu0 %v4388_v19  ;;  %4013 = vmatprep.mubr.bf16.mxu0 %v5021_v49  ;;  %v4395_v49 = vld [vmem:[%s5420_s4 + $0x220] sm:$0xff]  }
  0xd7   : > { %4011 = vmatprep.subr.bf16.mxu0 %v4390_v22  ;;  %3884 = vmatpush3.bf16.msra.mxu1 %v4389_v6 }
  0xd8   : > { %4061 = vmatprep.subr.bf16.mxu1 %v4391_v31 }
  0xda   : > { %4012 = vmatpush3.bf16.msra.mxu0 %v4390_v22  ;;  %3886 = vmatmul.mubr.bf16.vlgmr.msra.gmra.mrb[0].mxu1 %v4764_v63  ;;  %v4394_v63 = vld [vmem:[%s5420_s4 + $0x218] sm:$0xff]  }
  0xdb   : > { %4029 = vmatprep.subr.bf16.mxu0 %v4391_v31  ;;  %4069 = vmatpush3.bf16.msra.mxu1 %v4391_v31 }
  0xdc   : > { %4062 = vmatprep.subr.bf16.mxu1 %v4392_v32  ;;  %3889 = vmatprep.mubr.bf16.mxu1 %v4782_v30  ;;  %v2162_v30 = vld [vmem:[#allocation2 + $0x88] sm:$0x1f] }
  0xdd   : > { %4014 = vmatmul.mubr.bf16.vlgmr.msra.gmra.mrb[0].mxu0 %v5032_v62  ;;  %v2499_v35 = vshll.u32 %v2162_v30, 16 }
  0xde   : > { %4030 = vmatpush3.bf16.msra.mxu0 %v4391_v31  ;;  %4017 = vmatprep.mubr.bf16.mxu0 %v5055_v23 }
  0xdf   : > { %4031 = vmatprep.subr.bf16.mxu0 %v4392_v32  ;;  %4070 = vmatpush3.bf16.msra.mxu1 %v4392_v32  ;;  %v2501_v40 = vrot.slane %v2499_v35, 5 }
  0xe0   : > { %4063 = vmatprep.subr.bf16.mxu1 %v4393_v33 }
  0xe2   : > { %4032 = vmatpush3.bf16.msra.mxu0 %v4392_v32  ;;  %3890 = vmatmul.mubr.bf16.gmra.mrb[4].mxu1 %v4796_v48  ;;  %v2496_v48 = vshrl.u32 %v2162_v30, 16 }
  0xe3   : > { %4033 = vmatprep.subr.bf16.mxu0 %v4393_v33  ;;  %4071 = vmatpush3.bf16.msra.mxu1 %v4393_v33 }
  0xe4   : > { %4064 = vmatprep.subr.bf16.mxu1 %v4394_v63  ;;  %3893 = vmatprep.mubr.bf16.mxu1 %v4823_v13  ;;  %v4396_v13 = vld [vmem:[%s5420_s4 + $0x228] sm:$0xff]   ;;  %v2498_v21 = vrot.slane %v2496_v48, 4 }
  0xe5   : > { %4018 = vmatmul.mubr.bf16.gmra.mrb[4].mxu0 %v5058_v25 }
  0xe6   : > { %4034 = vmatpush3.bf16.msra.mxu0 %v4393_v33  ;;  %4021 = vmatprep.mubr.bf16.mxu0 %v5081_v61 }
  0xe7   : > { %4035 = vmatprep.subr.bf16.mxu0 %v4394_v63  ;;  %4072 = vmatpush3.bf16.msra.mxu1 %v4394_v63 }
  0xe8   : > { %4065 = vmatprep.subr.bf16.mxu1 %v4395_v49 }
  0xea   : > { %4036 = vmatpush3.bf16.msra.mxu0 %v4394_v63  ;;  %3894 = vmatmul.mubr.bf16.gmra.mrb[8].mxu1 %v4852_v41  ;;  %v2502_v41 = vor.u32 %v2501_v40, %v2498_v21 }
  0xeb   : > { %4037 = vmatprep.subr.bf16.mxu0 %v4395_v49  ;;  %4073 = vmatpush3.bf16.msra.mxu1 %v4395_v49 }
  0xec   : > { %4066 = vmatprep.subr.bf16.mxu1 %v4396_v13  ;;  %3897 = vmatprep.mubr.bf16.mxu1 %v4870_v4  ;;  %v2503_v4 = vsel %vm2164_vm4, %v2494_v43, %v2502_v41 }
  0xed   : > { %4022 = vmatmul.mubr.bf16.gmra.mrb[8].mxu0 %v5088_v11 }
  0xee   : > { %4038 = vmatpush3.bf16.msra.mxu0 %v4395_v49  ;;  %4025 = vmatprep.mubr.bf16.mxu0 %v5109_v20 }
  0xef   : > { %4039 = vmatprep.subr.bf16.mxu0 %v4396_v13  ;;  %4074 = vmatpush3.bf16.msra.mxu1 %v4396_v13 }
  0xf0   : > { %4067 = vmatprep.subr.bf16.mxu1 %v4397_v38 }
  0xf2   : > { %4040 = vmatpush3.bf16.msra.mxu0 %v4396_v13  ;;  %3898 = vmatmul.mubr.bf16.gmra.mrb[12].mxu1 %v4887_v28 }
  0xf3   : > { %4041 = vmatprep.subr.bf16.mxu0 %v4397_v38  ;;  %4075 = vmatpush3.bf16.msra.mxu1 %v4397_v38 }
  0xf4   : > { %4068 = vmatprep.subr.bf16.mxu1 %v4398_v29  ;;  %4053 = vmatprep.mubr.bf16.mxu1 %v5088_v11 }
  0xf5   : > { %4026 = vmatmul.mubr.bf16.gmra.mrb[12].mxu0 %v2503_v4 }
  0xf6   : > { %4042 = vmatpush3.bf16.msra.mxu0 %v4397_v38  ;;  %4045 = vmatprep.mubr.bf16.mxu0 %v5032_v62 }
  0xf7   : > { %4043 = vmatprep.subr.bf16.mxu0 %v4398_v29  ;;  %4076 = vmatpush3.bf16.msra.mxu1 %v4398_v29 }
  0xfa   : > { %4044 = vmatpush3.bf16.msra.mxu0 %v4398_v29  ;;  %4054 = vmatmul.mubr.bf16.vlgmr.msra.gmra.mrb[16].mxu1 %v5109_v20 }
  0xfb   : > { %4057 = vmatprep.mubr.bf16.mxu1 %v2503_v4 }
  0xfd   : > { %4046 = vmatmul.mubr.bf16.vlgmr.msra.gmra.mrb[0].mxu0 %v5055_v23  ;;  %v5174_v23 = vld [vmem:[%s5421_s5] ss:$0 sm:$0xff] }
  0xfe   : > { %4049 = vmatprep.mubr.bf16.mxu0 %v5058_v25 }
 0x102   : > { %4058 = vmatmul.mubr.bf16.gmra.mrb[20].mxu1 %v5095_v15 }
 0x105   : > { %4050 = vmatmul.mubr.bf16.gmra.mrb[4].mxu0 %v5081_v61 }
 0x1ad   : > { %v3887_v28 = vpop.f32.mrb[0].mxu1 }
 0x1ae   : > { %v1707_v45 = vpop.f32.mrb[1].mxu1  ;;  %v4077_v31 = vadd.f32 %v3887_v28, %v5174_v23 }
 0x1af   : > { %v3888_v46 = vpop.f32.mrb[2].mxu1  ;;  %v4079_v63 = vadd.f32 %v5174_v23, %v1707_v45 }
 0x1b0   : > { %v1710_v57 = vpop.f32.mrb[3].mxu1  ;;  %v4081_v34 = vadd.f32 %v3888_v46, %v5174_v23 }
 0x1b1   : > { %v4083_v3 = vadd.f32 %v5174_v23, %v1710_v57 }
 0x1b5   : > { %v5163_v47 = vpop.f32.mrb[4].mxu1 }
 0x1b6   : > { %v5165_v62 = vpop.f32.mrb[5].mxu1  ;;  %v4085_v28 = vadd.f32 %v5163_v47, %v5174_v23 }
 0x1b7   : > { %v5167_v26 = vpop.f32.mrb[6].mxu1  ;;  %v4087_v57 = vadd.f32 %v5174_v23, %v5165_v62 }
 0x1b8   : > { %v5169_v37 = vpop.f32.mrb[7].mxu1 }
 0x1bd   : > { %v3895_v25 = vpop.f32.mrb[8].mxu1 }
 0x1be   : > { %v4093_v50 = vadd.f32 %v3895_v25, %v5174_v23  ;;  %v1739_v52 = vpop.f32.mrb[9].mxu1 }
 0x1bf   : > { %v4096_v53 = vadd.f32 %v5174_v23, %v1739_v52  ;;  %v3896_v54 = vpop.f32.mrb[10].mxu1 }
 0x1c0   : > { %v4023_v55 = vpop.f32.mrb[8].mxu0  ;;  %v4099_v8 = vadd.f32 %v3896_v54, %v5174_v23  ;;  %v1742_v24 = vpop.f32.mrb[11].mxu1 }
 0x1c1   : > { %v4094_v0 = vadd.f32 %v4093_v50, %v4023_v55  ;;  %v2636_v58 = vpop.f32.mrb[9].mxu0  ;;  %v4102_v59 = vadd.f32 %v5174_v23, %v1742_v24 }
 0x1c2   : > { %v4097_v61 = vadd.f32 %v4096_v53, %v2636_v58  ;;  %v4024_v1 = vpop.f32.mrb[10].mxu0  ;;  %v4089_v53 = vadd.f32 %v5167_v26, %v5174_v23 }
 0x1c3   : > { %v4100_v42 = vadd.f32 %v4099_v8, %v4024_v1  ;;  %v2639_v5 = vpop.f32.mrb[11].mxu0  ;;  %v4091_v8 = vadd.f32 %v5174_v23, %v5169_v37  ;;  %v5274_v37 = vld [vmem:[%s5442_s6] ss:$0 sm:$0xff] }
 0x1c4   : > { %v4103_v2 = vadd.f32 %v4102_v59, %v2639_v5  ;;  %v2881_v59 = vld [vmem:[%s5269_s8 + $0x10] sm:$0xff]  ;;  %v5282_v1 = vld [vmem:[%s5443_s19] ss:$0 sm:$0xff] }
 0x1c5   : > { %v3899_v7 = vpop.f32.mrb[12].mxu1  ;;  %v2904_v5 = vsub.f32 %v2881_v59, %v5274_v37 }
 0x1c6   : > { %v4105_v9 = vadd.f32 %v3899_v7, %v5174_v23  ;;  %v1755_v10 = vpop.f32.mrb[13].mxu1 }
 0x1c7   : > { %v4108_v11 = vadd.f32 %v5174_v23, %v1755_v10  ;;  %v3900_v12 = vpop.f32.mrb[14].mxu1 }
 0x1c8   : > { %v4027_v14 = vpop.f32.mrb[12].mxu0  ;;  %v4111_v36 = vadd.f32 %v3900_v12, %v5174_v23  ;;  %v1758_v15 = vpop.f32.mrb[15].mxu1 }
 0x1c9   : > { %v4106_v27 = vadd.f32 %v4105_v9, %v4027_v14  ;;  %v2652_v44 = vpop.f32.mrb[13].mxu0  ;;  %v4114_v16 = vadd.f32 %v5174_v23, %v1758_v15  ;;  %v2889_v23 = vld [vmem:[%s5269_s8 + $0x50] sm:$0xff]  ;;  %v2882_v9 = vld [vmem:[%s5269_s8 + $0x18] sm:$0xff]  ;;  %v2927_v14 = vmul.f32 %v5282_v1, %v2904_v5 }
 0x1ca   : > { %v4109_v17 = vadd.f32 %v4108_v11, %v2652_v44  ;;  %v4028_v18 = vpop.f32.mrb[14].mxu0  ;;  %v2887_v11 = vld [vmem:[%s5269_s8 + $0x40] sm:$0xff]  ;;  %v2890_v15 = vld [vmem:[%s5269_s8 + $0x58] sm:$0xff] }
 0x1cb   : > { %v4112_v60 = vadd.f32 %v4111_v36, %v4028_v18  ;;  %v2655_v19 = vpop.f32.mrb[15].mxu0  ;;  %v2905_v36 = vsub.f32 %v2882_v9, %v5274_v37  ;;  %v2880_v18 = vld [vmem:[%s5269_s8 + $0x8] sm:$0xff] }
 0x1cc   : > { %v4115_v6 = vadd.f32 %v4114_v16, %v2655_v19 }
 0x1cd   : > { %v4055_v51 = vpop.f32.mrb[16].mxu1 }
 0x1ce   : > { %v5184_v20 = vadd.f32 %v4094_v0, %v4055_v51  ;;  %v2832_v22 = vpop.f32.mrb[17].mxu1 }
 0x1cf   : > { %v5187_v32 = vadd.f32 %v4097_v61, %v2832_v22  ;;  %v4056_v33 = vpop.f32.mrb[18].mxu1  ;;  %v2912_v61 = vsub.f32 %v2889_v23, %v5274_v37  ;;  %v2928_v22 = vmul.f32 %v5282_v1, %v2905_v36 }
 0x1d0   : > { %v4047_v30 = vpop.f32.mrb[0].mxu0  ;;  %v5190_v49 = vadd.f32 %v4100_v42, %v4056_v33  ;;  %3009 = vrot.lane.b32.xlu0 %v5184_v20, %s4489_s26  ;;  %v2835_v56 = vpop.f32.mrb[19].mxu1  ;;  %v2879_v42 = vld [vmem:[%s5269_s8] sm:$0xff]  ;;  %v2888_v33 = vld [vmem:[%s5269_s8 + $0x48] sm:$0xff] }
 0x1d1   : > { %v5195_v48 = vadd.f32 %v4077_v31, %v4047_v30  ;;  %v2800_v35 = vpop.f32.mrb[1].mxu0  ;;  %v5197_v13 = vadd.f32 %v4103_v2, %v2835_v56  ;;  %v2951_v2 = vadd.f32 1.0, %v5184_v20  ;;  %v2935_v7 = vmul.f32 %v5282_v1, %v2912_v61 }
 0x1d2   : > { %v5200_v39 = vadd.f32 %v4079_v63, %v2800_v35  ;;  %v4048_v21 = vpop.f32.mrb[2].mxu0  ;;  %v2902_v10 = vsub.f32 %v2879_v42, %v5274_v37  ;;  %v2903_v31 = vsub.f32 %v2880_v18, %v5274_v37  ;;  %v2949_v63 = vadd.f32 1.0, %v5187_v32 }
 0x1d3   : > { %v5202_v40 = vadd.f32 %v4081_v34, %v4048_v21  ;;  %v2803_v38 = vpop.f32.mrb[3].mxu0  ;;  %2993 = vrot.lane.b32.xlu1 %v5195_v48, %s4489_s26  ;;  %v2943_v12 = vadd.f32 1.0, %v5195_v48  ;;  %v2967_v44 = vmul.f32 %v2951_v2, %v2935_v7  ;;  %v2950_v5 = vadd.f32 1.0, %v5197_v13 }
 0x1d4   : > { %v5206_v43 = vadd.f32 %v4083_v3, %v2803_v38  ;;  %2989 = vrot.lane.b32.xlu0 %v5200_v39, %s4489_s26  ;;  %v2925_v16 = vmul.f32 %v5282_v1, %v2902_v10  ;;  %v2911_v38 = vsub.f32 %v2888_v33, %v5274_v37  ;;  %v2884_v10 = vld [vmem:[%s5269_s8 + $0x28] sm:$0xff] }
 0x1d5   : > { %v4059_v41 = vpop.f32.mrb[20].mxu1  ;;  %v2944_v51 = vadd.f32 1.0, %v5202_v40  ;;  %v2959_v20 = vmul.f32 %v2943_v12, %v2927_v14 }
 0x1d6   : > { %v5210_v29 = vadd.f32 %v4106_v27, %v4059_v41  ;;  %v2848_v4 = vpop.f32.mrb[21].mxu1  ;;  %v2941_v27 = vadd.f32 1.0, %v5200_v39  ;;  %v2885_v39 = vld [vmem:[%s5269_s8 + $0x30] sm:$0xff]  ;;  %v2952_v41 = vadd.f32 1.0, %v5190_v49  ;;  %v2934_v42 = vmul.f32 %v5282_v1, %v2911_v38 }
 0x1d7   : > { %2995 = vrot.lane.b32.xlu1 %v5202_v40, %s4489_s26  ;;  %v5216_v45 = vadd.f32 %v4109_v17, %v2848_v4  ;;  %v4060_v46 = vpop.f32.mrb[22].mxu1  ;;  %v2910_v17 = vsub.f32 %v2887_v11, %v5274_v37  ;;  %v2891_v11 = vld [vmem:[%s5269_s8 + $0x60] sm:$0xff] }
 0x1d8   : > { %v4051_v25 = vpop.f32.mrb[4].mxu0  ;;  %v5220_v50 = vadd.f32 %v4112_v60, %v4060_v46  ;;  %3005 = vrot.lane.b32.xlu0 %v5187_v32, %s4489_s26  ;;  %v2851_v52 = vpop.f32.mrb[23].mxu1  ;;  %v2957_v34 = vmul.f32 %v2941_v27, %v2925_v16  ;;  %v2926_v46 = vmul.f32 %v5282_v1, %v2903_v31  ;;  %v2893_v31 = vld [vmem:[%s5269_s8 + $0x70] sm:$0xff] }
 0x1d9   : > { %v5226_v47 = vadd.f32 %v4085_v28, %v4051_v25  ;;  %v2816_v54 = vpop.f32.mrb[5].mxu0  ;;  %v5228_v55 = vadd.f32 %v4115_v6, %v2851_v52  ;;  %v2913_v6 = vsub.f32 %v2890_v15, %v5274_v37  ;;  %v2933_v48 = vmul.f32 %v5282_v1, %v2910_v17 }
 0x1da   : > { %v5232_v24 = vadd.f32 %v4087_v57, %v2816_v54  ;;  %v4052_v62 = vpop.f32.mrb[6].mxu0  ;;  %v2960_v28 = vmul.f32 %v2944_v51, %v2928_v22  ;;  %v2883_v57 = vld [vmem:[%s5269_s8 + $0x20] sm:$0xff]  ;;  %v2942_v25 = vadd.f32 1.0, %v5206_v43  ;;  %v2966_v51 = vmul.f32 %v2950_v5, %v2934_v42  ;;  %v2892_v22 = vld [vmem:[%s5269_s8 + $0x68] sm:$0xff] }
 0x1db   : > { %v5234_v0 = vadd.f32 %v4089_v53, %v4052_v62  ;;  %v2819_v58 = vpop.f32.mrb[7].mxu0  ;;  %3011 = vrot.lane.b32.xlu1 %v5190_v49, %s4489_s26  ;;  %v2936_v32 = vmul.f32 %v5282_v1, %v2913_v6  ;;  %v2965_v54 = vmul.f32 %v2949_v63, %v2933_v48  ;;  %v2886_v62 = vld [vmem:[%s5269_s8 + $0x38] sm:$0xff]  ;;  %v2947_v12 = vadd.f32 1.0, %v5226_v47 }
 0x1dc   : > { %v5238_v26 = vadd.f32 %v4091_v8, %v2819_v58  ;;  %2991 = vrot.lane.b32.xlu0 %v5206_v43, %s4489_s26  ;;  %v2908_v8 = vsub.f32 %v2885_v39, %v5274_v37  ;;  %v2906_v43 = vsub.f32 %v2883_v57, %v5274_v37  ;;  %v2909_v9 = vsub.f32 %v2886_v62, %v5274_v37 }
 0x1dd   : > { %v2968_v7 = vmul.f32 %v2952_v41, %v2936_v32  ;;  %v2958_v15 = vmul.f32 %v2942_v25, %v2926_v46  ;;  %v2945_v33 = vadd.f32 1.0, %v5232_v24 }
 0x1df   : > { %3007 = vrot.lane.b32.xlu1 %v5197_v13, %s4489_s26  ;;  %v2931_v13 = vmul.f32 %v5282_v1, %v2908_v8 }
 0x1e0   : > { %3001 = vrot.lane.b32.xlu0 %v5226_v47, %s4489_s26  ;;  %v2948_v47 = vadd.f32 1.0, %v5234_v0 }
 0x1e3   : > { %3003 = vrot.lane.b32.xlu1 %v5234_v0, %s4489_s26  ;;  %v2929_v0 = vmul.f32 %v5282_v1, %v2906_v43 }
 0x1e4   : > { %2997 = vrot.lane.b32.xlu0 %v5232_v24, %s4489_s26  ;;  %v2946_v24 = vadd.f32 1.0, %v5238_v26 }
 0x1e5   : > { %v2961_v25 = vmul.f32 %v2945_v33, %v2929_v0 }
 0x1e7   : > { %2999 = vrot.lane.b32.xlu1 %v5238_v26, %s4489_s26 }
 0x1e8   : > { %3013 = vrot.lane.b32.xlu0 %v5216_v45, %s4489_s26 }
 0x1eb   : > { %3015 = vrot.lane.b32.xlu1 %v5228_v55, %s4489_s26 }
 0x1ec   : > { %3017 = vrot.lane.b32.xlu0 %v5210_v29, %s4489_s26 }
 0x1ef   : > { %3019 = vrot.lane.b32.xlu1 %v5220_v50, %s4489_s26 }
 0x242   : > { %v3010_v60 = vpop.permute.xlu0 %3009 }
 0x243   : > { %v3047_v19 = vadd.f32 %v3010_v60, %v2967_v44  ;;  %v2907_v60 = vsub.f32 %v2884_v10, %v5274_v37 }
 0x245   : > { %v2994_v30 = vpop.permute.xlu1 %2993  ;;  %v3063_v56 = vmax.f32 %v3047_v19, 0.0  ;;  %v2914_v19 = vsub.f32 %v2891_v11, %v5274_v37  ;;  %v2930_v41 = vmul.f32 %v5282_v1, %v2907_v60  ;;  %v2956_v11 = vadd.f32 1.0, %v5220_v50 }
 0x246   : > { %v3039_v35 = vadd.f32 %v2994_v30, %v2959_v20  ;;  %v2990_v3 = vpop.permute.xlu0 %2989  ;;  %v2932_v20 = vmul.f32 %v5282_v1, %v2909_v9 }
 0x247   : > { %v3623_v21 = vpack.c.bf16 %v3063_v56, %v3063_v56  ;;  %v3037_v40 = vadd.f32 %v2990_v3, %v2957_v34  ;;  %v2963_v56 = vmul.f32 %v2947_v12, %v2931_v13 }
 0x248   : > { %v3055_v4 = vmax.f32 %v3039_v35, 0.0  ;;  %v2964_v38 = vmul.f32 %v2948_v47, %v2932_v20 }
 0x249   : > { %3144 = vst.msk [vmem:[%s5310_s24 + $0x28] sm:$0xf] %vm3133_vm5, %v3623_v21  ;;  %v2996_v52 = vpop.permute.xlu1 %2995  ;;  %v3053_v53 = vmax.f32 %v3037_v40, 0.0  ;;  %v2915_v21 = vsub.f32 %v2892_v22, %v5274_v37  ;;  %v2916_v40 = vsub.f32 %v2893_v31, %v5274_v37 }
 0x24a   : > { %v3615_v49 = vpack.c.bf16 %v3055_v4, %v3055_v4  ;;  %v3040_v58 = vadd.f32 %v2996_v52, %v2960_v28  ;;  %v3006_v23 = vpop.permute.xlu0 %3005  ;;  %v2894_v4 = vld [vmem:[%s5269_s8 + $0x78] sm:$0xff]  ;;  %v2953_v28 = vadd.f32 1.0, %v5216_v45  ;;  %v2937_v52 = vmul.f32 %v5282_v1, %v2914_v19 }
 0x24b   : > { %v3613_v59 = vpack.c.bf16 %v3053_v53, %v3053_v53  ;;  %v3045_v61 = vadd.f32 %v3006_v23, %v2965_v54  ;;  %v2962_v23 = vmul.f32 %v2946_v24, %v2930_v41 }
 0x24c   : > { %3136 = vst.msk [vmem:[%s5310_s24 + $0x8] sm:$0xf] %vm3133_vm5, %v3615_v49  ;;  %v3056_v2 = vmax.f32 %v3040_v58, 0.0  ;;  %v2917_v49 = vsub.f32 %v2894_v4, %v5274_v37  ;;  %v2954_v58 = vadd.f32 1.0, %v5228_v55  ;;  %v2969_v5 = vmul.f32 %v2953_v28, %v2937_v52 }
 0x24d   : > { %3134 = vst.msk [vmem:[%s5310_s24] sm:$0xf] %vm3133_vm5, %v3613_v59  ;;  %v3061_v14 = vmax.f32 %v3045_v61, 0.0  ;;  %v3012_v36 = vpop.permute.xlu1 %3011  ;;  %v2938_v59 = vmul.f32 %v5282_v1, %v2915_v21  ;;  %v2955_v61 = vadd.f32 1.0, %v5210_v29 }
 0x24e   : > { %v3616_v27 = vpack.c.bf16 %v3056_v2, %v3056_v2  ;;  %v3048_v44 = vadd.f32 %v3012_v36, %v2968_v7  ;;  %v2992_v16 = vpop.permute.xlu0 %2991  ;;  %v2939_v2 = vmul.f32 %v5282_v1, %v2916_v40 }
 0x24f   : > { %v3621_v17 = vpack.c.bf16 %v3061_v14, %v3061_v14  ;;  %v3038_v18 = vadd.f32 %v2992_v16, %v2958_v15  ;;  %v2970_v12 = vmul.f32 %v2954_v58, %v2938_v59  ;;  %v2940_v14 = vmul.f32 %v5282_v1, %v2917_v49 }
 0x250   : > { %3137 = vst.msk [vmem:[%s5310_s24 + $0xc] sm:$0xf] %vm3133_vm5, %v3616_v27  ;;  %v3064_v6 = vmax.f32 %v3048_v44, 0.0  ;;  %v2971_v13 = vmul.f32 %v2955_v61, %v2939_v2 }
 0x251   : > { %3142 = vst.msk [vmem:[%s5310_s24 + $0x20] sm:$0xf] %vm3133_vm5, %v3621_v17  ;;  %v3054_v63 = vmax.f32 %v3038_v18, 0.0  ;;  %v3008_v30 = vpop.permute.xlu1 %3007  ;;  %v2972_v60 = vmul.f32 %v2956_v11, %v2940_v14 }
 0x252   : > { %v3624_v34 = vpack.c.bf16 %v3064_v6, %v3064_v6  ;;  %v3046_v48 = vadd.f32 %v3008_v30, %v2966_v51  ;;  %v3002_v35 = vpop.permute.xlu0 %3001 }
 0x253   : > { %v3614_v3 = vpack.c.bf16 %v3054_v63, %v3054_v63  ;;  %v3043_v39 = vadd.f32 %v3002_v35, %v2963_v56 }
 0x254   : > { %3145 = vst.msk [vmem:[%s5310_s24 + $0x2c] sm:$0xf] %vm3133_vm5, %v3624_v34  ;;  %v3062_v32 = vmax.f32 %v3046_v48, 0.0 }
 0x255   : > { %3135 = vst.msk [vmem:[%s5310_s24 + $0x4] sm:$0xf] %vm3133_vm5, %v3614_v3  ;;  %v3059_v46 = vmax.f32 %v3043_v39, 0.0  ;;  %v3004_v57 = vpop.permute.xlu1 %3003 }
 0x256   : > { %v3622_v53 = vpack.c.bf16 %v3062_v32, %v3062_v32  ;;  %v3044_v26 = vadd.f32 %v3004_v57, %v2964_v38  ;;  %v2998_v54 = vpop.permute.xlu0 %2997 }
 0x257   : > { %v3619_v8 = vpack.c.bf16 %v3059_v46, %v3059_v46  ;;  %v3041_v62 = vadd.f32 %v2998_v54, %v2961_v25 }
 0x258   : > { %3143 = vst.msk [vmem:[%s5310_s24 + $0x24] sm:$0xf] %vm3133_vm5, %v3622_v53  ;;  %v3060_v45 = vmax.f32 %v3044_v26, 0.0 }
 0x259   : > { %3140 = vst.msk [vmem:[%s5310_s24 + $0x18] sm:$0xf] %vm3133_vm5, %v3619_v8  ;;  %v3057_v42 = vmax.f32 %v3041_v62, 0.0  ;;  %v3000_v43 = vpop.permute.xlu1 %2999 }
 0x25a   : > { %v3620_v37 = vpack.c.bf16 %v3060_v45, %v3060_v45  ;;  %v3042_v7 = vadd.f32 %v3000_v43, %v2962_v23  ;;  %v3014_v55 = vpop.permute.xlu0 %3013 }
 0x25b   : > { %v3617_v9 = vpack.c.bf16 %v3057_v42, %v3057_v42  ;;  %v3049_v10 = vadd.f32 %v3014_v55, %v2969_v5 }
 0x25c   : > { %3141 = vst.msk [vmem:[%s5310_s24 + $0x1c] sm:$0xf] %vm3133_vm5, %v3620_v37  ;;  %v3058_v29 = vmax.f32 %v3042_v7, 0.0 }
 0x25d   : > { %3138 = vst.msk [vmem:[%s5310_s24 + $0x10] sm:$0xf] %vm3133_vm5, %v3617_v9  ;;  %v3065_v36 = vmax.f32 %v3049_v10, 0.0  ;;  %v3016_v15 = vpop.permute.xlu1 %3015 }
 0x25e   : > { %v3618_v27 = vpack.c.bf16 %v3058_v29, %v3058_v29  ;;  %v3050_v44 = vadd.f32 %v3016_v15, %v2970_v12  ;;  %v3018_v16 = vpop.permute.xlu0 %3017 }
 0x25f   : > { %v3625_v17 = vpack.c.bf16 %v3065_v36, %v3065_v36  ;;  %v3051_v50 = vadd.f32 %v3018_v16, %v2971_v13 }
 0x260   : > { %3139 = vst.msk [vmem:[%s5310_s24 + $0x14] sm:$0xf] %vm3133_vm5, %v3618_v27  ;;  %v3066_v18 = vmax.f32 %v3050_v44, 0.0 }
 0x261   : > { %3146 = vst.msk [vmem:[%s5310_s24 + $0x30] sm:$0xf] %vm3133_vm5, %v3625_v17  ;;  %v3067_v1 = vmax.f32 %v3051_v50, 0.0  ;;  %v3020_v19 = vpop.permute.xlu1 %3019 }
 0x262   : > { %v3626_v47 = vpack.c.bf16 %v3066_v18, %v3066_v18  ;;  %v3052_v6 = vadd.f32 %v3020_v19, %v2972_v60 }
 0x263   : > { %v3627_v51 = vpack.c.bf16 %v3067_v1, %v3067_v1 }
 0x264   : > { %3147 = vst.msk [vmem:[%s5310_s24 + $0x34] sm:$0xf] %vm3133_vm5, %v3626_v47  ;;  %v3068_v20 = vmax.f32 %v3052_v6, 0.0 }
 0x265   : > { %3148 = vst.msk [vmem:[%s5310_s24 + $0x38] sm:$0xf] %vm3133_vm5, %v3627_v51 }
 0x266   : > { %v3628_v22 = vpack.c.bf16 %v3068_v20, %v3068_v20 }
 0x268   : > { %3149 = vst.msk [vmem:[%s5310_s24 + $0x3c] sm:$0xf] %vm3133_vm5, %v3628_v22 }
 0x269 PF: > { %s18_s15 = sadd.s32 1, %s4486_s15   ;;  %s5445_s16 = sld [smem:[#allocation10_spill]] }
 0x26a   : > { %p15_p10 = scmp.ge.s32.totalorder %s18_s15, 6   ;;  %s5446_s22 = sld [smem:[#allocation9_spill]] }
 0x26b   : > { %s5447_s20 = sld [smem:[#allocation7_spill]]  ;;  %s5448_s18 = sld [smem:[#allocation8_spill]] }
 0x26c   : > { %s5449_s27 = smov %s4450_s28  ;;  %s5450_s28 = smov %s4644_s17 }
 0x26d   : > { %s5451_s29 = smov %s4458_s30  ;;  %s5453_s9 = smov %s4466_s10 }
 0x26e   : > { %s5455_s11 = smov %s4478_s13  ;;  %s5456_s12 = smov %s4482_s14 }
 0x26f   : > { %s5452_s30 = smov %s5445_s16  ;;  %17 = sbr.rel (!%p15_p10) target bundleno = 11 (0xb), region = 239 }
 0x270   : > { %s5454_s10 = smov %s5446_s22 }
 0x271   : > { %s5457_s13 = smov %s5447_s20  ;;  %s5458_s14 = smov %s5448_s18 }

// kernel: sin_spade_forward_pallas.13
= control target key start
LH: loop header
LB: loop body
LE: loop exit
PB: predicated region body
PF: predicated region fallthrough
CT: control target
= control target key end

     0   :  { %s861_s12 = smov 0   ;;  %s863_s13 = smov 0   ;;  %s949_s0 = inlined_call_operand.vmem [shape: bf16[2,16,16,27], index: 0, kind: input, shape index: {}]   ;;  %s950_s1 = inlined_call_operand.vmem [shape: bf16[27,128], index: 1, kind: input, shape index: {}]   ;;  %s951_s2 = inlined_call_operand.vmem [shape: f32[1,128], index: 2, kind: input, shape index: {}]   ;;  %s952_s3 = inlined_call_operand.vmem [shape: bf16[2,16,16,128], index: 3, kind: output, shape index: {}]  }
   0x1   :  { %s865_s14 = smov 0   ;;  %s867_s15 = smov 0  }
   0x2   :  { %s869_s16 = smov 0  }
   0x3 LB: > { %s22_s17 = sadd.s32 1, %s830_s14  ;;  %s25_s18 = sadd.s32 1, %s834_s15  ;;  %s838_s16 = sphi %s869_s16, %s13_s16   ;;  %s834_s15 = sphi %s867_s15, %s956_s15   ;;  %s830_s14 = sphi %s865_s14, %s955_s14   ;;  %s826_s13 = sphi %s863_s13, %s954_s13   ;;  %s822_s12 = sphi %s861_s12, %s953_s12  }
   0x4   : > { %p23_p0 = scmp.ge.s32.totalorder %s22_s17, 2  ;;  %p606_p1 = scmp.ge.s32.totalorder %s838_s16, 1 }
   0x5   : > { %p159_p2 = scmp.lt.s32.totalorder %s838_s16, 5 }
   0x6   : > { %s958_s17 = smov (%p23_p0, %s22_s17), 0  ;;  %s960_s18 = smov (!%p23_p0, %s25_s18), %s834_s15 }
   0x7   : > { %p160_p3 = pnand %p606_p1, %p159_p2  ;;  %p27_p4 = scmp.ge.s32.totalorder %s960_s18, 2 }
   0x8   : > { %v790_v0 = vld [vmem:[%s950_s1] sm:$0xff] (!%p160_p3)   ;;  %vm319_vm0 = vcmask (!%p160_p3), 1044480   ;;  %v791_v1 = vld [vmem:[%s950_s1 + $0x8] sm:$0x3f] (!%p160_p3)   ;;  %vm320_vm1 = vcmask (!%p160_p3), 1045504   ;;  %s607_s23 = sshll.u32 (!%p160_p3), %s822_s12, 3 }
   0x9   : > { %s962_s18 = smov (%p27_p4, %s960_s18), 0  ;;  %163 = sbr.rel (%p160_p3) target bundleno = 252 (0xfc), region = 32 }
   0xa   : > { %725 = vmatprep.subr.bf16.mxu0 (!%p160_p3), %v790_v0  ;;  %745 = vmatprep.subr.bf16.mxu1 (!%p160_p3), %v790_v0  ;;  %p194_p5 = scmp.lt.s32.totalorder (!%p160_p3), %s826_s13, 1  ;;  %v840_v2 = vmov (!%p160_p3), 65535   ;;  %p196_p6 = scmp.lt.s32.totalorder (!%p160_p3), %s607_s23, 15  ;;  %vm294_vm2 = vcmask (!%p160_p3), 220160   ;;  %v615_v15 = vld [vmem:[%s951_s2] ss:$0 sm:$0xff] (!%p160_p3) }
   0xb   : > { %726 = vmatpush3.bf16.msra.mxu0 (!%p160_p3), %v790_v0  ;;  %747 = vmatpush3.bf16.msra.mxu1 (!%p160_p3), %v790_v0  ;;  %v321_v3 = vsel (!%p160_p3), %vm319_vm0, 4294967295, %v840_v2 }
   0xc   : > { %v322_v4 = vsel (!%p160_p3), %vm320_vm1, %v321_v3, 0 }
   0xd   : > { %v324_v5 = vand.u32 (!%p160_p3), %v791_v1, %v322_v4 }
   0xf   : > { %727 = vmatprep.subr.bf16.mxu0 (!%p160_p3), %v324_v5  ;;  %746 = vmatprep.subr.bf16.mxu1 (!%p160_p3), %v324_v5 }
  0x10   : > { %s964_s13 = smov (!%p194_p5, %s826_s13), 1  ;;  %s966_s23 = smov (!%p196_p6, %s607_s23), 15  ;;  %728 = vmatpush3.bf16.msra.mxu0 %v324_v5  ;;  %748 = vmatpush3.bf16.msra.mxu1 %v324_v5 }
  0x11   : > { %s609_s24 = sshll.u32 %s964_s13, 5  ;;  %s608_s25 = sshll.u32 %s966_s23, 1 }
  0x12   : > { %s900_s26 = sadd.s32 %s609_s24, %s608_s25 }
  0x13   : > { %s610_s27 = sshll.u32 %s900_s26, 2 }
  0x14   : > { %s202_s30 = scalar_lea.vmem %s949_s0, %s610_s27  ;;  %s924_s8 = scalar_lea.vmem %s952_s3, %s610_s27 }
  0x15   : > { %v792_v6 = vld [vmem:[%s202_s30] sm:$0xff]   ;;  %v794_v8 = vld [vmem:[%s202_s30 + $0x8] sm:$0xff]   ;;  %v796_v10 = vld [vmem:[%s202_s30 + $0x10] sm:$0xff]  }
  0x16   : > { %v793_v7 = vld [vmem:[%s202_s30 + $0x20] sm:$0xff]   ;;  %729 = vmatprep.mubr.msk.bf16.mxu0 %vm294_vm2, %v792_v6  ;;  %v795_v9 = vld [vmem:[%s202_s30 + $0x28] sm:$0xff]   ;;  %v797_v11 = vld [vmem:[%s202_s30 + $0x30] sm:$0xff]  }
  0x17   : > { %737 = vmatprep.mubr.msk.bf16.mxu1 %vm294_vm2, %v793_v7  ;;  %730 = vmatmul.mubr.msk.bf16.vlgmr.msra.gmra.mrb[0].mxu0 %vm294_vm2, %v794_v8  ;;  %v798_v12 = vld [vmem:[%s202_s30 + $0x18] sm:$0xff]  }
  0x18   : > { %738 = vmatmul.mubr.msk.bf16.vlgmr.msra.gmra.mrb[0].mxu1 %vm294_vm2, %v795_v9  ;;  %733 = vmatprep.mubr.msk.bf16.mxu0 %vm294_vm2, %v796_v10  ;;  %v799_v13 = vld [vmem:[%s202_s30 + $0x38] sm:$0xff]  }
  0x19   : > { %741 = vmatprep.mubr.msk.bf16.mxu1 %vm294_vm2, %v797_v11 }
  0x1f   : > { %734 = vmatmul.mubr.msk.bf16.gmra.mrb[4].mxu0 %vm294_vm2, %v798_v12 }
  0x20   : > { %742 = vmatmul.mubr.msk.bf16.gmra.mrb[4].mxu1 %vm294_vm2, %v799_v13 }
  0xea   : > { %v731_v14 = vpop.f32.mrb[0].mxu0 }
  0xeb   : > { %v739_v16 = vpop.f32.mrb[0].mxu1  ;;  %v360_v17 = vpop.f32.mrb[1].mxu0  ;;  %v369_v20 = vadd.f32 %v731_v14, %v615_v15 }
  0xec   : > { %v392_v18 = vpop.f32.mrb[1].mxu1  ;;  %v732_v19 = vpop.f32.mrb[2].mxu0  ;;  %v401_v24 = vadd.f32 %v739_v16, %v615_v15  ;;  %v361_v25 = vadd.f32 %v615_v15, %v360_v17 }
  0xed   : > { %v372_v21 = vadd.f32 %v732_v19, %v615_v15  ;;  %v740_v22 = vpop.f32.mrb[2].mxu1  ;;  %v363_v23 = vpop.f32.mrb[3].mxu0  ;;  %v393_v29 = vadd.f32 %v615_v15, %v392_v18 }
  0xee   : > { %v404_v26 = vadd.f32 %v740_v22, %v615_v15  ;;  %v364_v27 = vadd.f32 %v615_v15, %v363_v23  ;;  %v395_v28 = vpop.f32.mrb[3].mxu1 }
  0xef   : > { %v676_v30 = vpack.c.bf16 %v372_v21, %v369_v20  ;;  %v396_v31 = vadd.f32 %v615_v15, %v395_v28 }
  0xf0   : > { %v696_v32 = vpack.c.bf16 %v404_v26, %v401_v24  ;;  %v671_v33 = vpack.c.bf16 %v364_v27, %v361_v25 }
  0xf1   : > { %708 = vst [vmem:[%s924_s8 + $0x8] sm:$0xff] %v676_v30   ;;  %v691_v34 = vpack.c.bf16 %v396_v31, %v393_v29 }
  0xf2   : > { %712 = vst [vmem:[%s924_s8 + $0x28] sm:$0xff] %v696_v32   ;;  %672 = vst [vmem:[%s924_s8] sm:$0xff] %v671_v33   ;;  %v735_v35 = vpop.f32.mrb[4].mxu0 }
  0xf3   : > { %711 = vst [vmem:[%s924_s8 + $0x20] sm:$0xff] %v691_v34   ;;  %v743_v36 = vpop.f32.mrb[4].mxu1  ;;  %v376_v37 = vpop.f32.mrb[5].mxu0  ;;  %v385_v40 = vadd.f32 %v735_v35, %v615_v15 }
  0xf4   : > { %v408_v38 = vpop.f32.mrb[5].mxu1  ;;  %v736_v39 = vpop.f32.mrb[6].mxu0  ;;  %v417_v44 = vadd.f32 %v743_v36, %v615_v15  ;;  %v377_v45 = vadd.f32 %v615_v15, %v376_v37 }
  0xf5   : > { %v388_v41 = vadd.f32 %v736_v39, %v615_v15  ;;  %v744_v42 = vpop.f32.mrb[6].mxu1  ;;  %v379_v43 = vpop.f32.mrb[7].mxu0  ;;  %v409_v49 = vadd.f32 %v615_v15, %v408_v38 }
  0xf6   : > { %v420_v46 = vadd.f32 %v744_v42, %v615_v15  ;;  %v380_v47 = vadd.f32 %v615_v15, %v379_v43  ;;  %v411_v48 = vpop.f32.mrb[7].mxu1 }
  0xf7   : > { %v686_v50 = vpack.c.bf16 %v388_v41, %v385_v40  ;;  %v412_v51 = vadd.f32 %v615_v15, %v411_v48 }
  0xf8   : > { %v706_v52 = vpack.c.bf16 %v420_v46, %v417_v44  ;;  %v681_v53 = vpack.c.bf16 %v380_v47, %v377_v45 }
  0xf9   : > { %710 = vst [vmem:[%s924_s8 + $0x18] sm:$0xff] %v686_v50   ;;  %v701_v54 = vpack.c.bf16 %v412_v51, %v409_v49 }
  0xfa   : > { %714 = vst [vmem:[%s924_s8 + $0x38] sm:$0xff] %v706_v52   ;;  %709 = vst [vmem:[%s924_s8 + $0x10] sm:$0xff] %v681_v53  }
  0xfb   : > { %713 = vst [vmem:[%s924_s8 + $0x30] sm:$0xff] %v701_v54  }
  0xfc PF: > { %s13_s16 = sadd.s32 1, %s838_s16   ;;  %s953_s12 = smov %s830_s14 }
  0xfd   : > { %p10_p7 = scmp.ge.s32.totalorder %s13_s16, 6   ;;  %s954_s13 = smov %s834_s15 }
  0xfe   : > { %s955_s14 = smov %s958_s17  ;;  %s956_s15 = smov %s962_s18 }
  0xff   :  { %12 = sbr.rel (!%p10_p7) target bundleno = 3 (0x3), region = 62 }

// kernel: sin_spade_forward_pallas.14
= control target key start
LH: loop header
LB: loop body
LE: loop exit
PB: predicated region body
PF: predicated region fallthrough
CT: control target
= control target key end

     0   :  { %s502_s9 = smov 0   ;;  %s504_s10 = smov 0   ;;  %s616_s0 = inlined_call_operand.vmem [shape: f32[2,16,16,4], index: 0, kind: input, shape index: {}]   ;;  %s617_s1 = inlined_call_operand.vmem [shape: f32[2,1,4], index: 1, kind: output, shape index: {0}]   ;;  %s618_s2 = inlined_call_operand.vmem [shape: f32[2,1,4], index: 2, kind: output, shape index: {1}]  }
   0x1   :  { %s506_s11 = smov 0   ;;  %s508_s12 = smov 0  }
   0x2   :  { %s510_s13 = smov 0  }
   0x3 LB: > { %s22_s14 = sadd.s32 1, %s476_s11  ;;  %s25_s15 = sadd.s32 1, %s480_s12  ;;  %s484_s13 = sphi %s510_s13, %s13_s13   ;;  %s480_s12 = sphi %s508_s12, %s622_s12   ;;  %s476_s11 = sphi %s506_s11, %s621_s11   ;;  %s472_s10 = sphi %s504_s10, %s620_s10   ;;  %s468_s9 = sphi %s502_s9, %s619_s9  }
   0x4   : > { %p23_p0 = scmp.ge.s32.totalorder %s22_s14, 2  ;;  %p397_p1 = scmp.ge.s32.totalorder %s484_s13, 1 }
   0x5   : > { %p135_p2 = scmp.lt.s32.totalorder %s484_s13, 5 }
   0x6   : > { %s624_s14 = smov (%p23_p0, %s22_s14), 0  ;;  %s626_s15 = smov (!%p23_p0, %s25_s15), %s480_s12 }
   0x7   : > { %p136_p3 = pnand %p397_p1, %p135_p2  ;;  %p27_p4 = scmp.ge.s32.totalorder %s626_s15, 2 }
   0x8   : > { %s398_s16 = sshll.u32 (!%p136_p3), %s468_s9, 3  ;;  %p164_p5 = scmp.lt.s32.totalorder (!%p136_p3), %s472_s10, 1 }
   0x9   : > { %s628_s15 = smov (%p27_p4, %s626_s15), 0  ;;  %139 = sbr.rel (%p136_p3) target bundleno = 76 (0x4c), region = 24 }
   0xa   : > { %p166_p6 = scmp.lt.s32.totalorder (!%p136_p3), %s398_s16, 15  ;;  %p402_p7 = scmp.ne.s32.totalorder (!%p136_p3), %s468_s9, 0 }
  0x10   : > { %s630_s10 = smov (!%p164_p5, %s472_s10), 1  ;;  %s632_s16 = smov (!%p166_p6, %s398_s16), 15 }
  0x11   : > { %s400_s17 = sshll.u32 %s630_s10, 5  ;;  %s535_s20 = scalar_lea.vmem %s617_s1, %s630_s10  ;;  %vm184_vm0 = vcmask (!%p402_p7), 24576   ;;  %v486_v0 = vmov (!%p402_p7), 0.0  }
  0x12   : > { %s399_s21 = sshll.u32 %s632_s16, 1  ;;  %s540_s24 = scalar_lea.vmem %s618_s2, %s630_s10  ;;  %185 = vst.msk [vmem:[%s535_s20] sm:$0x1] (!%p402_p7), %vm184_vm0, %v486_v0 }
  0x13   : > { %s170_s25 = sadd.s32 %s400_s17, %s399_s21  ;;  %183 = sbr.rel (%p402_p7) target bundleno = 26 (0x1a), region = 28  ;;  %186 = vst.msk [vmem:[%s540_s24] sm:$0x1] (!%p402_p7), %vm184_vm0, %v486_v0 }
  0x14   : > { %s401_s26 = sshll.u32 %s170_s25, 3 }
  0x15   : > { %s545_s29 = scalar_lea.vmem %s616_s0, %s401_s26 }
  0x1a PF: > { %v187_v1 = vld [vmem:[%s545_s29] sm:$0xff]  ;;  %v188_v2 = vld [vmem:[%s545_s29 + $0x8] sm:$0xff]  ;;  %v189_v3 = vld [vmem:[%s545_s29 + $0x10] sm:$0xff]  ;;  %vm204_vm1 = vcmask 31744   ;;  %vm243_vm2 = vcmask 24576  }
  0x1b   : > { %v205_v4 = vsel %vm204_vm1, %v187_v1, 0.0  ;;  %v206_v5 = vsel %vm204_vm1, %v188_v2, 0.0  ;;  %v208_v6 = vsel %vm204_vm1, %v189_v3, 0.0  ;;  %v190_v7 = vld [vmem:[%s545_s29 + $0x18] sm:$0xff]  ;;  %v191_v10 = vld [vmem:[%s545_s29 + $0x20] sm:$0xff]  ;;  %v192_v13 = vld [vmem:[%s545_s29 + $0x28] sm:$0xff]  ;;  %v246_v15 = vmul.f32 %v187_v1, %v187_v1 }
  0x1c   : > { %v207_v8 = vadd.f32 %v206_v5, %v205_v4  ;;  %v210_v9 = vsel %vm204_vm1, %v190_v7, 0.0  ;;  %v212_v12 = vsel %vm204_vm1, %v191_v10, 0.0  ;;  %v247_v16 = vmul.f32 %v188_v2, %v188_v2  ;;  %v193_v19 = vld [vmem:[%s545_s29 + $0x30] sm:$0xff]  ;;  %v194_v24 = vld [vmem:[%s545_s29 + $0x38] sm:$0xff]  ;;  %v195_v31 = vld [vmem:[%s545_s29 + $0x40] sm:$0xff] }
  0x1d   : > { %v248_v17 = vmul.f32 %v189_v3, %v189_v3  ;;  %v214_v18 = vsel %vm204_vm1, %v192_v13, 0.0  ;;  %v249_v21 = vmul.f32 %v190_v7, %v190_v7  ;;  %v216_v22 = vsel %vm204_vm1, %v193_v19, 0.0  ;;  %v196_v37 = vld [vmem:[%s545_s29 + $0x48] sm:$0xff]  ;;  %v197_v43 = vld [vmem:[%s545_s29 + $0x50] sm:$0xff]  ;;  %v198_v49 = vld [vmem:[%s545_s29 + $0x58] sm:$0xff] }
  0x1e   : > { %v209_v11 = vadd.f32 %v208_v6, %v207_v8  ;;  %v250_v23 = vmul.f32 %v191_v10, %v191_v10  ;;  %v262_v26 = vsel %vm204_vm1, %v246_v15, 0.0  ;;  %v263_v27 = vsel %vm204_vm1, %v247_v16, 0.0  ;;  %v199_v55 = vld [vmem:[%s545_s29 + $0x60] sm:$0xff]  ;;  %v200_v61 = vld [vmem:[%s545_s29 + $0x68] sm:$0xff]  ;;  %v201_v3 = vld [vmem:[%s545_s29 + $0x70] sm:$0xff] }
  0x1f   : > { %v265_v28 = vsel %vm204_vm1, %v248_v17, 0.0  ;;  %v218_v29 = vsel %vm204_vm1, %v194_v24, 0.0  ;;  %v264_v30 = vadd.f32 %v263_v27, %v262_v26  ;;  %v251_v33 = vmul.f32 %v192_v13, %v192_v13 }
  0x20   : > { %v211_v14 = vadd.f32 %v210_v9, %v209_v11  ;;  %v267_v34 = vsel %vm204_vm1, %v249_v21, 0.0  ;;  %v220_v35 = vsel %vm204_vm1, %v195_v31, 0.0  ;;  %v252_v39 = vmul.f32 %v193_v19, %v193_v19  ;;  %v202_v9 = vld [vmem:[%s545_s29 + $0x78] sm:$0xff] }
  0x21   : > { %v266_v36 = vadd.f32 %v265_v28, %v264_v30  ;;  %v269_v40 = vsel %vm204_vm1, %v250_v23, 0.0  ;;  %v222_v41 = vsel %vm204_vm1, %v196_v37, 0.0  ;;  %v253_v45 = vmul.f32 %v194_v24, %v194_v24 }
  0x22   : > { %v213_v20 = vadd.f32 %v212_v12, %v211_v14  ;;  %v271_v46 = vsel %vm204_vm1, %v251_v33, 0.0  ;;  %v224_v47 = vsel %vm204_vm1, %v197_v43, 0.0  ;;  %v254_v51 = vmul.f32 %v195_v31, %v195_v31 }
  0x23   : > { %v268_v42 = vadd.f32 %v267_v34, %v266_v36  ;;  %v273_v52 = vsel %vm204_vm1, %v252_v39, 0.0  ;;  %v226_v53 = vsel %vm204_vm1, %v198_v49, 0.0  ;;  %v255_v57 = vmul.f32 %v196_v37, %v196_v37  ;;  %v203_v36 = vld [vmem:[%s535_s20] sm:$0x1] }
  0x24   : > { %v215_v25 = vadd.f32 %v214_v18, %v213_v20  ;;  %v275_v58 = vsel %vm204_vm1, %v253_v45, 0.0  ;;  %v228_v59 = vsel %vm204_vm1, %v199_v55, 0.0  ;;  %v256_v63 = vmul.f32 %v197_v43, %v197_v43 }
  0x25   : > { %v270_v48 = vadd.f32 %v269_v40, %v268_v42  ;;  %v277_v0 = vsel %vm204_vm1, %v254_v51, 0.0  ;;  %v230_v1 = vsel %vm204_vm1, %v200_v61, 0.0  ;;  %v257_v5 = vmul.f32 %v198_v49, %v198_v49 }
  0x26   : > { %v217_v32 = vadd.f32 %v216_v22, %v215_v25  ;;  %v279_v6 = vsel %vm204_vm1, %v255_v57, 0.0  ;;  %v232_v7 = vsel %vm204_vm1, %v201_v3, 0.0  ;;  %v258_v11 = vmul.f32 %v199_v55, %v199_v55 }
  0x27   : > { %v272_v54 = vadd.f32 %v271_v46, %v270_v48  ;;  %v281_v12 = vsel %vm204_vm1, %v256_v63, 0.0  ;;  %v234_v13 = vsel %vm204_vm1, %v202_v9, 0.0  ;;  %v259_v16 = vmul.f32 %v200_v61, %v200_v61 }
  0x28   : > { %v219_v38 = vadd.f32 %v218_v29, %v217_v32  ;;  %v283_v17 = vsel %vm204_vm1, %v257_v5, 0.0  ;;  %v260_v20 = vmul.f32 %v201_v3, %v201_v3  ;;  %v285_v21 = vsel %vm204_vm1, %v258_v11, 0.0 }
  0x29   : > { %v274_v60 = vadd.f32 %v273_v52, %v272_v54  ;;  %v261_v24 = vmul.f32 %v202_v9, %v202_v9  ;;  %v287_v25 = vsel %vm204_vm1, %v259_v16, 0.0 }
  0x2a   : > { %v221_v44 = vadd.f32 %v220_v35, %v219_v38  ;;  %v289_v28 = vsel %vm204_vm1, %v260_v20, 0.0 }
  0x2b   : > { %v276_v2 = vadd.f32 %v275_v58, %v274_v60  ;;  %v291_v31 = vsel %vm204_vm1, %v261_v24, 0.0 }
  0x2c   : > { %v223_v50 = vadd.f32 %v222_v41, %v221_v44  ;;  %v245_v44 = vld [vmem:[%s540_s24] sm:$0x1] }
  0x2d   : > { %v278_v8 = vadd.f32 %v277_v0, %v276_v2 }
  0x2e   : > { %v225_v56 = vadd.f32 %v224_v47, %v223_v50 }
  0x2f   : > { %v280_v14 = vadd.f32 %v279_v6, %v278_v8 }
  0x30   : > { %v227_v62 = vadd.f32 %v226_v53, %v225_v56 }
  0x31   : > { %v282_v18 = vadd.f32 %v281_v12, %v280_v14 }
  0x32   : > { %v229_v4 = vadd.f32 %v228_v59, %v227_v62 }
  0x33   : > { %v284_v22 = vadd.f32 %v283_v17, %v282_v18 }
  0x34   : > { %v231_v10 = vadd.f32 %v230_v1, %v229_v4 }
  0x35   : > { %v286_v26 = vadd.f32 %v285_v21, %v284_v22 }
  0x36   : > { %v233_v15 = vadd.f32 %v232_v7, %v231_v10 }
  0x37   : > { %v288_v29 = vadd.f32 %v287_v25, %v286_v26 }
  0x38   : > { %v235_v19 = vadd.f32 %v234_v13, %v233_v15 }
  0x39   : > { %v290_v32 = vadd.f32 %v289_v28, %v288_v29 }
  0x3a   : > { %v236_v23 = vrot.slane %v235_v19, 4 }
  0x3b   : > { %v292_v34 = vadd.f32 %v291_v31, %v290_v32 }
  0x3c   : > { %v237_v27 = vadd.f32 %v236_v23, %v235_v19 }
  0x3d   : > { %v293_v37 = vrot.slane %v292_v34, 4 }
  0x3e   : > { %v238_v30 = vrot.slane %v237_v27, 2 }
  0x3f   : > { %v294_v39 = vadd.f32 %v293_v37, %v292_v34 }
  0x40   : > { %v239_v33 = vadd.f32 %v238_v30, %v237_v27 }
  0x41   : > { %v295_v41 = vrot.slane %v294_v39, 2 }
  0x42   : > { %v240_v35 = vrot.slane %v239_v33, 1 }
  0x43   : > { %v296_v42 = vadd.f32 %v295_v41, %v294_v39 }
  0x44   : > { %v241_v38 = vadd.f32 %v240_v35, %v239_v33 }
  0x45   : > { %v297_v43 = vrot.slane %v296_v42, 1 }
  0x46   : > { %v242_v40 = vadd.f32 %v241_v38, %v203_v36 }
  0x47   : > { %v298_v45 = vadd.f32 %v297_v43, %v296_v42 }
  0x48   : > { %244 = vst.msk [vmem:[%s535_s20] sm:$0x1] %vm243_vm2, %v242_v40 }
  0x49   : > { %v299_v46 = vadd.f32 %v298_v45, %v245_v44 }
  0x4b   : > { %300 = vst.msk [vmem:[%s540_s24] sm:$0x1] %vm243_vm2, %v299_v46 }
  0x4c PF: > { %s13_s13 = sadd.s32 1, %s484_s13   ;;  %s619_s9 = smov %s476_s11 }
  0x4d   : > { %p10_p8 = scmp.ge.s32.totalorder %s13_s13, 6   ;;  %s620_s10 = smov %s480_s12 }
  0x4e   : > { %s621_s11 = smov %s624_s14  ;;  %s622_s12 = smov %s628_s15 }
  0x4f   :  { %12 = sbr.rel (!%p10_p8) target bundleno = 3 (0x3), region = 70 }

// kernel: sin_spade_forward_pallas.15
= control target key start
LH: loop header
LB: loop body
LE: loop exit
PB: predicated region body
PF: predicated region fallthrough
CT: control target
= control target key end

     0   :  { %s7862_s0 = inlined_call_operand.vmem [shape: f32[2,16,16,4], index: 0, kind: input, shape index: {}]   ;;  %s7863_s1 = inlined_call_operand.vmem [shape: bf16[2,16,16,128], index: 1, kind: input, shape index: {}, may-alias: {1,2,3}]   ;;  %s7864_s2 = inlined_call_operand.vmem [shape: bf16[2,16,16,128], index: 2, kind: input, shape index: {}, may-alias: {1,2,3}]   ;;  %s7865_s3 = inlined_call_operand.vmem [shape: bf16[2,16,16,128], index: 3, kind: input, shape index: {}, may-alias: {1,2,3}]   ;;  %s7866_s4 = inlined_call_operand.vmem [shape: bf16[2,16,16,384], index: 4, kind: input, shape index: {}, may-alias: {4,5,6}]   ;;  %s7867_s5 = inlined_call_operand.vmem [shape: bf16[2,16,16,384], index: 5, kind: input, shape index: {}, may-alias: {4,5,6}]   ;;  %s7868_s6 = inlined_call_operand.vmem [shape: bf16[2,16,16,384], index: 6, kind: input, shape index: {}, may-alias: {4,5,6}]   ;;  %s7869_s7 = inlined_call_operand.vmem [shape: bf16[3,3,256,8], index: 7, kind: input, shape index: {}]   ;;  %s7870_s8 = inlined_call_operand.vmem [shape: f32[1,8], index: 8, kind: input, shape index: {}]   ;;  %s7871_s9 = inlined_call_operand.vmem [shape: f32[2,1,4], index: 9, kind: input, shape index: {}]   ;;  %s7872_s10 = inlined_call_operand.vmem [shape: f32[2,1,4], index: 10, kind: input, shape index: {}]   ;;  %s7873_s11 = inlined_call_operand.vmem [shape: f32[2,16,16,4], index: 11, kind: output, shape index: {}]  }
   0x1   :  { %7876 = sst [smem:[#allocation10_spill]] %s7862_s0 }
   0x2   :  { %7877 = sst [smem:[#allocation11_spill]] %s7863_s1 }
   0x3   :  { %7878 = sst [smem:[#allocation12_spill]] %s7864_s2 }
   0x4   :  { %7879 = sst [smem:[#allocation13_spill]] %s7865_s3 }
   0x5   :  { %7880 = sst [smem:[#allocation14_spill]] %s7870_s8 }
   0x6   :  { %7881 = sst [smem:[#allocation15_spill]] %s7871_s9 }
   0x7   :  { %7882 = sst [smem:[#allocation16_spill]] %s7872_s10 }
   0x8   :  { %7883 = sst [smem:[#allocation17_spill]] %s7873_s11 }
   0x9   :  { %s6327_s17 = smov 0   ;;  %s6329_s18 = smov 0  }
   0xa   :  { %s6331_s19 = smov 0   ;;  %s6333_s20 = smov 0  }
   0xb   :  { %s6335_s21 = smov 0   ;;  %s6337_s22 = smov 0  }
   0xc   :  { %s6339_s23 = smov 0   ;;  %s6341_s24 = smov 0  }
   0xd   :  { %s6343_s25 = smov 0   ;;  %s6345_s26 = smov 0  }
   0xe   :  { %s6347_s27 = smov 0  }
   0xf LB: > { %s30_s28 = sadd.s32 1, %s6255_s25  ;;  %s33_s29 = sadd.s32 1, %s6259_s26  ;;  %s6263_s27 = sphi %s6347_s27, %s21_s27   ;;  %s6259_s26 = sphi %s6345_s26, %s7917_s26   ;;  %s6255_s25 = sphi %s6343_s25, %s7916_s25   ;;  %s6251_s24 = sphi %s6341_s24, %s7915_s24   ;;  %s6247_s23 = sphi %s6339_s23, %s7914_s23   ;;  %s6243_s22 = sphi %s6337_s22, %s7913_s22   ;;  %s6239_s21 = sphi %s6335_s21, %s7912_s21   ;;  %s6235_s20 = sphi %s6333_s20, %s7911_s20   ;;  %s6231_s19 = sphi %s6331_s19, %s7910_s19   ;;  %s6227_s18 = sphi %s6329_s18, %s7909_s18   ;;  %s6223_s17 = sphi %s6327_s17, %s7908_s17  }
  0x10   : > { %p31_p0 = scmp.ge.s32.totalorder %s30_s28, 2  ;;  %s170_s30 = sadd.s32 1, %s6243_s22 }
  0x11   : > { %p177_p1 = scmp.ne.s32.totalorder %s6243_s22, %s6239_s21  ;;  %p178_p2 = scmp.eq.s32.totalorder %s6263_s27, 0 }
  0x12   : > { %s7919_s28 = smov (%p31_p0, %s30_s28), 0  ;;  %s7921_s29 = smov (!%p31_p0, %s33_s29), %s6259_s26 }
  0x13   : > { %7884 = sst [smem:[#allocation6_spill]] %s7919_s28  ;;  %s166_s12 = ssub.s32 %s6255_s25, %s7919_s28 }
  0x14   : > { %p6395_p3 = por %p178_p2, %p177_p1  ;;  %p35_p4 = scmp.ge.s32.totalorder %s7921_s29, 2 }
  0x15   : > { %s4776_s14 = sshll.u32 %s6255_s25, 3  ;;  %s4778_s16 = sshll.u32 %s7919_s28, 3 }
  0x16   : > { %s4777_s15 = sadd.s32 4294967295, %s4776_s14  ;;  %s7923_s29 = smov (%p35_p4, %s7921_s29), 0 }
  0x17   : > { %7886 = sst [smem:[#allocation7_spill]] %s7923_s29  ;;  %p195_p5 = scmp.gt.s32.totalorder %s4777_s15, 0 }
  0x18   : > { %s4779_s11 = sadd.s32 4294967295, %s4778_s16  ;;  %s165_s10 = ssub.s32 %s6259_s26, %s7923_s29 }
  0x19   : > { %p199_p6 = scmp.gt.s32.totalorder %s4779_s11, 0  ;;  %s167_s9 = sor.u32 %s166_s12, %s165_s10 }
  0x1a   : > { %s206_s0 = sadd.s32 1, %s6235_s20  ;;  %p168_p7 = scmp.eq.s32.totalorder %s167_s9, 0 }
  0x1b   : > { %p213_p8 = scmp.ne.s32.totalorder %s6235_s20, %s6231_s19  ;;  %s7925_s15 = smov (!%p195_p5, %s4777_s15), 0 }
  0x1c   : > { %s6411_s8 = scalar_select %p168_p7, %s6243_s22, %s170_s30  }
  0x1d   : > { %s7927_s11 = smov (!%p199_p6, %s4779_s11), 0  ;;  %p6415_p9 = por %p213_p8, %p178_p2 }
  0x1e   : > { %7887 = sst [smem:[#allocation8_spill]] %s6411_s8  ;;  %s5296_s12 = sadd.s32 8, %s4776_s14 }
  0x1f   : > { %s202_s29 = ssub.s32 %s7925_s15, %s7927_s11  ;;  %p231_p10 = scmp.lt.s32.totalorder %s5296_s12, 15 }
  0x20   : > { %s203_s9 = sor.u32 %s202_s29, %s165_s10  ;;  %s5298_s3 = sadd.s32 8, %s4778_s16 }
  0x21   : > { %p204_p11 = scmp.eq.s32.totalorder %s203_s9, 0  ;;  %p235_p12 = scmp.lt.s32.totalorder %s5298_s3, 15 }
  0x22   : > { %s7929_s12 = smov (!%p231_p10, %s5296_s12), 15  ;;  %p249_p13 = scmp.ne.s32.totalorder %s6227_s18, %s6223_s17 }
  0x23   : > { %s6423_s30 = scalar_select %p204_p11, %s6235_s20, %s206_s0  }
  0x24   : > { %s7931_s3 = smov (!%p235_p12, %s5298_s3), 15  ;;  %s242_s2 = sadd.s32 1, %s6227_s18 }
  0x25   : > { %7889 = sst [smem:[#allocation9_spill]] %s6423_s30  ;;  %s238_s8 = ssub.s32 %s7929_s12, %s7931_s3 }
  0x26   : > { %s239_s1 = sor.u32 %s238_s8, %s165_s10  ;;  %p6431_p0 = por %p249_p13, %p178_p2 }
  0x27   : > { %p240_p1 = scmp.eq.s32.totalorder %s239_s1, 0  ;;  %p4783_p4 = scmp.ge.s32.totalorder %s6263_s27, 4 }
  0x29   : > { %s6436_s11 = scalar_select %p240_p1, %s6227_s18, %s242_s2  }
  0x2a   : > { %403 = sbr.rel (%p4783_p4) target bundleno = 85 (0x55), region = 24 }
  0x31   : > { %474 = sbr.rel (!%p6395_p3) target bundleno = 67 (0x43), region = 44  ;;  %s476_s0 = sand.u32 (%p6395_p3), 1, %s6243_s22  }
  0x32   : > { %s4576_s3 = smul.u32 (%p6395_p3), 48, %s6255_s25  ;;  %s4784_s8 = sshll.u32 (%p6395_p3), %s476_s0, 6 }
  0x33   : > { %s4577_s10 = smul.u32 (%p6395_p3), 96, %s6259_s26  ;;  %s478_s2 = scalar_lea.vmem (%p6395_p3), [#allocation3], %s4784_s8 }
  0x35   : > { %s4578_s29 = sadd.s32 (%p6395_p3), %s4577_s10, %s4576_s3 }
  0x36   : > { %s4785_s16 = sshll.u32 (%p6395_p3), %s4578_s29, 2 }
  0x37   : > { %s6447_s1 = scalar_lea.vmem (%p6395_p3), %s7866_s4, %s4785_s16 }
  0x38   : > { %v4786_v0 = vld [vmem:[%s6447_s1 + $0x8] sm:$0xf]  ;;  %v4787_v1 = vld [vmem:[%s6447_s1 + $0x14] sm:$0xf]  ;;  %v4788_v2 = vld [vmem:[%s6447_s1 + $0x20] sm:$0xf] }
  0x39   : > { %502 = vst [vmem:[%s478_s2] sm:$0xf] %v4786_v0  ;;  %504 = vst [vmem:[%s478_s2 + $0x4] sm:$0xf] %v4787_v1  ;;  %v4789_v3 = vld [vmem:[%s6447_s1 + $0x2c] sm:$0xf] }
  0x3a   : > { %506 = vst [vmem:[%s478_s2 + $0x8] sm:$0xf] %v4788_v2  ;;  %v4790_v4 = vld [vmem:[%s6447_s1 + $0x38] sm:$0xf]  ;;  %v4791_v5 = vld [vmem:[%s6447_s1 + $0x44] sm:$0xf] }
  0x3b   : > { %508 = vst [vmem:[%s478_s2 + $0xc] sm:$0xf] %v4789_v3  ;;  %510 = vst [vmem:[%s478_s2 + $0x10] sm:$0xf] %v4790_v4  ;;  %v4792_v6 = vld [vmem:[%s6447_s1 + $0x50] sm:$0xf] }
  0x3c   : > { %512 = vst [vmem:[%s478_s2 + $0x14] sm:$0xf] %v4791_v5  ;;  %v4793_v7 = vld [vmem:[%s6447_s1 + $0x5c] sm:$0xf]  ;;  %v4794_v8 = vld [vmem:[%s6447_s1 + $0x68] sm:$0xf] }
  0x3d   : > { %514 = vst [vmem:[%s478_s2 + $0x18] sm:$0xf] %v4792_v6  ;;  %516 = vst [vmem:[%s478_s2 + $0x1c] sm:$0xf] %v4793_v7  ;;  %v4795_v9 = vld [vmem:[%s6447_s1 + $0x74] sm:$0xf] }
  0x3e   : > { %518 = vst [vmem:[%s478_s2 + $0x20] sm:$0xf] %v4794_v8  ;;  %v4796_v10 = vld [vmem:[%s6447_s1 + $0x80] sm:$0xf]  ;;  %v4797_v11 = vld [vmem:[%s6447_s1 + $0x8c] sm:$0xf] }
  0x3f   : > { %520 = vst [vmem:[%s478_s2 + $0x24] sm:$0xf] %v4795_v9  ;;  %522 = vst [vmem:[%s478_s2 + $0x28] sm:$0xf] %v4796_v10  ;;  %v4798_v12 = vld [vmem:[%s6447_s1 + $0x98] sm:$0xf] }
  0x40   : > { %524 = vst [vmem:[%s478_s2 + $0x2c] sm:$0xf] %v4797_v11  ;;  %v4799_v13 = vld [vmem:[%s6447_s1 + $0xa4] sm:$0xf]  ;;  %v4800_v14 = vld [vmem:[%s6447_s1 + $0xb0] sm:$0xf] }
  0x41   : > { %526 = vst [vmem:[%s478_s2 + $0x30] sm:$0xf] %v4798_v12  ;;  %528 = vst [vmem:[%s478_s2 + $0x34] sm:$0xf] %v4799_v13  ;;  %v4801_v15 = vld [vmem:[%s6447_s1 + $0xbc] sm:$0xf] }
  0x42   : > { %530 = vst [vmem:[%s478_s2 + $0x38] sm:$0xf] %v4800_v14  ;;  %532 = vst [vmem:[%s478_s2 + $0x3c] sm:$0xf] %v4801_v15 }
  0x43 PF: > { %587 = sbr.rel (!%p6415_p9) target bundleno = 76 (0x4c), region = 85  ;;  %s589_s13 = sand.u32 (%p6415_p9), 1, %s6235_s20  }
  0x44   : > { %s4584_s30 = smul.u32 (%p6415_p9), 6, %s7925_s15  ;;  %s4802_s0 = sshll.u32 (%p6415_p9), %s589_s13, 3 }
  0x45   : > { %s4585_s3 = smul.u32 (%p6415_p9), 96, %s6259_s26  ;;  %s591_s1 = scalar_lea.vmem (%p6415_p9), [#allocation4], %s4802_s0 }
  0x47   : > { %s4586_s8 = sadd.s32 (%p6415_p9), %s4585_s3, %s4584_s30 }
  0x48   : > { %s4805_s10 = sshll.u32 (%p6415_p9), %s4586_s8, 2 }
  0x49   : > { %s4588_s9 = scalar_lea.vmem (%p6415_p9), %s7867_s5, %s4805_s10 }
  0x4a   : > { %v4806_v16 = vld [vmem:[%s4588_s9 + $0x8] sm:$0xf]  ;;  %v4807_v17 = vld [vmem:[%s4588_s9 + $0x14] sm:$0xf] }
  0x4b   : > { %618 = vst [vmem:[%s591_s1] sm:$0xf] %v4806_v16  ;;  %620 = vst [vmem:[%s591_s1 + $0x4] sm:$0xf] %v4807_v17 }
  0x4c PF: > { %647 = sbr.rel (!%p6431_p0) target bundleno = 85 (0x55), region = 126  ;;  %s649_s28 = sand.u32 (%p6431_p0), 1, %s6227_s18  }
  0x4d   : > { %s4592_s15 = smul.u32 (%p6431_p0), 6, %s7929_s12  ;;  %s4808_s2 = sshll.u32 (%p6431_p0), %s649_s28, 3 }
  0x4e   : > { %s4593_s13 = smul.u32 (%p6431_p0), 96, %s6259_s26  ;;  %s651_s0 = scalar_lea.vmem (%p6431_p0), [#allocation5], %s4808_s2 }
  0x50   : > { %s4594_s30 = sadd.s32 (%p6431_p0), %s4593_s13, %s4592_s15 }
  0x51   : > { %s4810_s3 = sshll.u32 (%p6431_p0), %s4594_s30, 2 }
  0x52   : > { %s4596_s29 = scalar_lea.vmem (%p6431_p0), %s7868_s6, %s4810_s3 }
  0x53   : > { %v4811_v18 = vld [vmem:[%s4596_s29 + $0x8] sm:$0xf]  ;;  %v4812_v19 = vld [vmem:[%s4596_s29 + $0x14] sm:$0xf] }
  0x54   : > { %678 = vst [vmem:[%s651_s0] sm:$0xf] %v4811_v18  ;;  %680 = vst [vmem:[%s651_s0 + $0x4] sm:$0xf] %v4812_v19 }
  0x55 PF: > { %p4813_p2 = scmp.ge.s32.totalorder %s6263_s27, 1  ;;  %p718_p3 = scmp.lt.s32.totalorder %s6263_s27, 5 }
  0x57   : > { %p719_p5 = pnand %p4813_p2, %p718_p3 }
  0x58   : > { %v5987_v20 = vld [vmem:[%s7869_s7 + $0x40] sm:$0xff] (!%p719_p5)   ;;  %v5989_v22 = vld [vmem:[%s7869_s7 + $0x48] sm:$0xff] (!%p719_p5)   ;;  %s732_s13 = sand.u32 (!%p719_p5), 1, %s6231_s19   ;;  %v5991_v24 = vld [vmem:[%s7869_s7 + $0x50] sm:$0xff] (!%p719_p5)   ;;  %v6265_v25 = vmov (!%p719_p5), 0   ;;  %s725_s0 = sand.u32 (!%p719_p5), 1, %s6239_s21  }
  0x59   : > { %722 = sbr.rel (%p719_p5) target bundleno = 774 (0x306), region = 175  ;;  %v5988_v21 = vld [vmem:[%s7869_s7] sm:$0xff] (!%p719_p5)   ;;  %5305 = vmatprep.subr.bf16.mxu0 (!%p719_p5), %v5987_v20  ;;  %5881 = vmatprep.subr.bf16.mxu1 (!%p719_p5), %v5987_v20  ;;  %v5990_v23 = vld [vmem:[%s7869_s7 + $0x8] sm:$0xff] (!%p719_p5)   ;;  %1204 = vst [vmem:[#allocation2 + $0x8] sm:$0xf] (!%p719_p5), %v6265_v25  ;;  %s6501_s8 = sshll.u32 (!%p719_p5), %s732_s13, 3 }
  0x5a   : > { %5306 = vmatpush3.bf16.msra.mxu0 (!%p719_p5), %v5988_v21  ;;  %5889 = vmatpush3.bf16.msra.mxu1 (!%p719_p5), %v5988_v21  ;;  %1060 = vst [vmem:[#allocation2] sm:$0xf] (!%p719_p5), %v6265_v25  ;;  %1061 = vst [vmem:[#allocation2 + $0x20] sm:$0xf] (!%p719_p5), %v6265_v25  ;;  %v5992_v26 = vld [vmem:[%s7869_s7 + $0x10] sm:$0xff] (!%p719_p5)   ;;  %v5993_v27 = vld [vmem:[%s7869_s7 + $0x58] sm:$0xff] (!%p719_p5)  }
  0x5b   : > { %5307 = vmatprep.subr.bf16.mxu0 (!%p719_p5), %v5989_v22  ;;  %5882 = vmatprep.subr.bf16.mxu1 (!%p719_p5), %v5989_v22  ;;  %1062 = vst [vmem:[#allocation2 + $0x40] sm:$0xf] (!%p719_p5), %v6265_v25  ;;  %1063 = vst [vmem:[#allocation2 + $0x60] sm:$0xf] (!%p719_p5), %v6265_v25  ;;  %p926_p6 = scmp.gt.s32.totalorder (!%p719_p5), %s6247_s23, 0  ;;  %s6512_s16 = sshll.u32 (!%p719_p5), %s6247_s23, 3 }
  0x5c   : > { %1064 = vst [vmem:[#allocation2 + $0x80] sm:$0xf] (!%p719_p5), %v6265_v25  ;;  %1065 = vst [vmem:[#allocation2 + $0xa0] sm:$0xf] (!%p719_p5), %v6265_v25  ;;  %p844_p7 = scmp.lt.s32.totalorder (!%p719_p5), %s6251_s24, 1  ;;  %s4814_s19 = sshll.u32 (!%p719_p5), %s725_s0, 6 }
  0x5d   : > { %1066 = vst [vmem:[#allocation2 + $0xc0] sm:$0xf] (!%p719_p5), %v6265_v25  ;;  %1067 = vst [vmem:[#allocation2 + $0xe0] sm:$0xf] (!%p719_p5), %v6265_v25  ;;  %p846_p8 = scmp.lt.s32.totalorder (!%p719_p5), %s6512_s16, 15  ;;  %v5994_v28 = vld [vmem:[%s7869_s7 + $0x18] sm:$0xff] (!%p719_p5)  }
  0x5e   : > { %1068 = vst [vmem:[#allocation2 + $0x100] sm:$0xf] (!%p719_p5), %v6265_v25  ;;  %1069 = vst [vmem:[#allocation2 + $0x120] sm:$0xf] (!%p719_p5), %v6265_v25  ;;  %5308 = vmatpush3.bf16.msra.mxu0 (!%p719_p5), %v5990_v23  ;;  %5890 = vmatpush3.bf16.msra.mxu1 (!%p719_p5), %v5990_v23  ;;  %v5995_v29 = vld [vmem:[%s7869_s7 + $0x60] sm:$0xff] (!%p719_p5)   ;;  %s6536_s29 = sadd.s32 (!%p719_p5), 4294967295, %s6512_s16 }
  0x5f   : > { %1070 = vst [vmem:[#allocation2 + $0x10] sm:$0xf0] (!%p719_p5), %v6265_v25  ;;  %1071 = vst [vmem:[#allocation2 + $0x30] sm:$0xf0] (!%p719_p5), %v6265_v25  ;;  %5309 = vmatprep.subr.bf16.mxu0 (!%p719_p5), %v5991_v24  ;;  %5883 = vmatprep.subr.bf16.mxu1 (!%p719_p5), %v5991_v24  ;;  %v5996_v30 = vld [vmem:[%s7869_s7 + $0x20] sm:$0xff] (!%p719_p5)   ;;  %v5997_v31 = vld [vmem:[%s7869_s7 + $0x68] sm:$0xff] (!%p719_p5)  }
  0x60   : > { %1072 = vst [vmem:[#allocation2 + $0x50] sm:$0xf0] %v6265_v25  ;;  %1073 = vst [vmem:[#allocation2 + $0x70] sm:$0xf0] %v6265_v25  ;;  %s7933_s24 = smov (!%p844_p7, %s6251_s24), 1  ;;  %s734_s9 = scalar_lea.vmem [#allocation4], %s6501_s8 }
  0x61   : > { %1074 = vst [vmem:[#allocation2 + $0x90] sm:$0xf0] %v6265_v25  ;;  %1075 = vst [vmem:[#allocation2 + $0xb0] sm:$0xf0] %v6265_v25  ;;  %s847_s15 = scalar_select %p846_p8, %s6512_s16, 15  ;;  %v5998_v34 = vld [vmem:[%s7869_s7 + $0x28] sm:$0xff]  }
  0x62   : > { %1076 = vst [vmem:[#allocation2 + $0xd0] sm:$0xf0] %v6265_v25  ;;  %1077 = vst [vmem:[#allocation2 + $0xf0] sm:$0xf0] %v6265_v25  ;;  %5310 = vmatpush3.bf16.msra.mxu0 %v5992_v26  ;;  %5891 = vmatpush3.bf16.msra.mxu1 %v5992_v26  ;;  %s6527_s13 = sshll.u32 %s7933_s24, 5  ;;  %s6544_s1 = scalar_lea.vmem [#allocation3], %s4814_s19 }
  0x63   : > { %1078 = vst [vmem:[#allocation2 + $0x110] sm:$0xf0] %v6265_v25  ;;  %1079 = vst [vmem:[#allocation2 + $0x130] sm:$0xf0] %v6265_v25  ;;  %5311 = vmatprep.subr.bf16.mxu0 %v5993_v27  ;;  %5884 = vmatprep.subr.bf16.mxu1 %v5993_v27  ;;  %s4818_s2 = sshll.u32 %s847_s15, 1  ;;  %p867_p9 = scmp.gt.s32.totalorder %s6536_s29, 0 }
  0x64   : > { %1205 = vst [vmem:[#allocation2 + $0x28] sm:$0xf] %v6265_v25  ;;  %1206 = vst [vmem:[#allocation2 + $0x48] sm:$0xf] %v6265_v25  ;;  %s6533_s10 = sadd.s32 %s6527_s13, %s4818_s2  ;;  %v1080_v32 = vld [vmem:[%s734_s9] sm:$0xf] }
  0x65   : > { %1207 = vst [vmem:[#allocation2 + $0x68] sm:$0xf] %v6265_v25  ;;  %1208 = vst [vmem:[#allocation2 + $0x88] sm:$0xf] %v6265_v25  ;;  %s929_s14 = scalar_select %p926_p6, 1, 0 }
  0x66   : > { %1209 = vst [vmem:[#allocation2 + $0xa8] sm:$0xf] %v6265_v25  ;;  %1210 = vst [vmem:[#allocation2 + $0xc8] sm:$0xf] %v6265_v25  ;;  %5312 = vmatpush3.bf16.msra.mxu0 %v5994_v28  ;;  %5892 = vmatpush3.bf16.msra.mxu1 %v5994_v28  ;;  %v1081_v33 = vld [vmem:[%s734_s9 + $0x4] sm:$0xf] }
  0x67   : > { %1211 = vst [vmem:[#allocation2 + $0xe8] sm:$0xf] %v6265_v25  ;;  %1212 = vst [vmem:[#allocation2 + $0x108] sm:$0xf] %v6265_v25  ;;  %5313 = vmatprep.subr.bf16.mxu0 %v5995_v29  ;;  %5885 = vmatprep.subr.bf16.mxu1 %v5995_v29  ;;  %v930_v35 = vstv %s929_s14  ;;  %v6003_v36 = vld [vmem:[%s6544_s1 + $0x18] ss:$0 sps:$4 sm:$0xff]  }
  0x68   : > { %1213 = vst [vmem:[#allocation2 + $0x128] sm:$0xf] %v6265_v25  ;;  %1214 = vst [vmem:[#allocation2 + $0x18] sm:$0xf0] %v6265_v25  ;;  %v6004_v37 = vld [vmem:[%s6544_s1 + $0x1c] ss:$0 sps:$4 sm:$0xff]  }
  0x69   : > { %1215 = vst [vmem:[#allocation2 + $0x38] sm:$0xf0] %v6265_v25  ;;  %1216 = vst [vmem:[#allocation2 + $0x58] sm:$0xf0] %v6265_v25  ;;  %s4824_s15 = sshll.u32 %s6533_s10, 2  ;;  %vm6552_vm0 = vcmp.eq.s32.totalorder %v930_v35, 1 }
  0x6a   : > { %1217 = vst [vmem:[#allocation2 + $0x78] sm:$0xf0] %v6265_v25  ;;  %1218 = vst [vmem:[#allocation2 + $0x98] sm:$0xf0] %v6265_v25  ;;  %5314 = vmatpush3.bf16.msra.mxu0 %v5996_v30  ;;  %5893 = vmatpush3.bf16.msra.mxu1 %v5996_v30  ;;  %s7893_s2 = sld [smem:[#allocation11_spill]]  ;;  %v5999_v39 = vld [vmem:[%s7869_s7 + $0x70] sm:$0xff]  }
  0x6b   : > { %1219 = vst [vmem:[#allocation2 + $0xb8] sm:$0xf0] %v6265_v25  ;;  %1220 = vst [vmem:[#allocation2 + $0xd8] sm:$0xf0] %v6265_v25  ;;  %5315 = vmatprep.subr.bf16.mxu0 %v5997_v31  ;;  %5886 = vmatprep.subr.bf16.mxu1 %v5997_v31  ;;  %v1082_v40 = vsel %vm6552_vm0, %v1080_v32, 0  ;;  %v1083_v41 = vsel %vm6552_vm0, %v1081_v33, 0 }
  0x6c   : > { %1221 = vst [vmem:[#allocation2 + $0xf8] sm:$0xf0] %v6265_v25  ;;  %1222 = vst [vmem:[#allocation2 + $0x118] sm:$0xf0] %v6265_v25  ;;  %p4827_p10 = scmp.lt.s32.totalorder %s6536_s29, 15  ;;  %v4866_v42 = vcombine.low %v1082_v40, %v1082_v40  ;;  %v4867_v43 = vcombine.low %v1083_v41, %v1083_v41  ;;  %s7935_s29 = smov (!%p867_p9, %s6536_s29), 0 }
  0x6d   : > { %1223 = vst [vmem:[#allocation2 + $0x138] sm:$0xf0] %v6265_v25  ;;  %1184 = vst [vmem:[#allocation2 + $0x88] sm:$0xf0] %v6003_v36  ;;  %v6000_v46 = vld [vmem:[%s7869_s7 + $0x30] sm:$0xff]   ;;  %v6001_v47 = vld [vmem:[%s7869_s7 + $0x78] sm:$0xff]  }
  0x6e   : > { %1185 = vst [vmem:[#allocation2 + $0x98] sm:$0xf] %v6004_v37  ;;  %5316 = vmatpush3.bf16.msra.mxu0 %v5998_v34  ;;  %5894 = vmatpush3.bf16.msra.mxu1 %v5998_v34  ;;  %1096 = vst [vmem:[#allocation2 + $0x8] sm:$0xf0] %v4866_v42  ;;  %s7937_s29 = smov (!%p4827_p10, %s7935_s29), 15  ;;  %v6002_v48 = vld [vmem:[%s7869_s7 + $0x38] sm:$0xff]  }
  0x6f   : > { %1097 = vst [vmem:[#allocation2 + $0x18] sm:$0xf] %v4867_v43  ;;  %5317 = vmatprep.subr.bf16.mxu0 %v5999_v39  ;;  %5887 = vmatprep.subr.bf16.mxu1 %v5999_v39  ;;  %vm1271_vm1 = vsmask.f32 4352  ;;  %s4832_s8 = sshll.u32 %s7937_s29, 1  ;;  %v6007_v49 = vld [vmem:[%s7869_s7 + $0x1c0] sm:$0xff]  }
  0x70   : > { %s6559_s30 = scalar_lea.vmem %s7893_s2, %s4824_s15  ;;  %s875_s19 = sadd.s32 %s4832_s8, %s6527_s13  ;;  %v6008_v52 = vld [vmem:[%s7869_s7 + $0x340] sm:$0xff]   ;;  %v6011_v35 = vld [vmem:[%s7869_s7 + $0x1c8] sm:$0xff]   ;;  %vm2409_vm3 = vcmask 1043456   ;;  %vm3244_vm4 = vsmask.f32 3328  ;;  %vm4505_vm5 = vcmask 31744  }
  0x71   : > { %v6005_v44 = vld [vmem:[%s6559_s30 + $0x18] ss:$0 sps:$4 sm:$0xff]   ;;  %v6006_v45 = vld [vmem:[%s6559_s30 + $0x1c] ss:$0 sps:$4 sm:$0xff]   ;;  %s4834_s0 = sshll.u32 %s875_s19, 2  ;;  %s7894_s21 = sld [smem:[#allocation12_spill]] }
  0x72   : > { %1039 = vst [vmem:[#allocation2 + $0x80] sm:$0xf0] %v6005_v44  ;;  %1040 = vst [vmem:[#allocation2 + $0x90] sm:$0xf] %v6006_v45  ;;  %5318 = vmatpush3.bf16.msra.mxu0 %v6000_v46  ;;  %5895 = vmatpush3.bf16.msra.mxu1 %v6000_v46  ;;  %v6015_v21 = vld [vmem:[%s6544_s1] ss:$0 sps:$4 sm:$0xff]  }
  0x73   : > { %5319 = vmatprep.subr.bf16.mxu0 %v6001_v47  ;;  %5888 = vmatprep.subr.bf16.mxu1 %v6001_v47  ;;  %v6016_v26 = vld [vmem:[%s6544_s1 + $0x4] ss:$0 sps:$4 sm:$0xff]   ;;  %1178 = vst [vmem:[#allocation2 + $0x28] sm:$0xf0] %v6015_v21  ;;  %v6017_v32 = vld [vmem:[%s6544_s1 + $0x20] ss:$0 sps:$4 sm:$0xff]  }
  0x74   : > { %v1248_v50 = vld [vmem:[#allocation2 + $0x88] sm:$0xf8]  ;;  %v6009_v31 = vld [vmem:[%s7869_s7 + $0x180] sm:$0xff]   ;;  %1179 = vst [vmem:[#allocation2 + $0x38] sm:$0xf] %v6016_v26  ;;  %v6023_v44 = vld [vmem:[%s7869_s7 + $0x1d0] sm:$0xff]  }
  0x75   : > { %v1250_v51 = vld [vmem:[#allocation2 + $0x98] sm:$0xf]  ;;  %v1426_v53 = vshrl.u32 %v1248_v50, 16  ;;  %v1429_v54 = vshll.u32 %v1248_v50, 16  ;;  %v1232_v59 = vld [vmem:[#allocation2 + $0x8] sm:$0xf8] }
  0x76   : > { %v1434_v55 = vshrl.u32 %v1250_v51, 16  ;;  %v1437_v56 = vshll.u32 %v1250_v51, 16  ;;  %v1234_v60 = vld [vmem:[#allocation2 + $0x18] sm:$0xf]  ;;  %5320 = vmatpush3.bf16.msra.mxu0 %v6002_v48  ;;  %5896 = vmatpush3.bf16.msra.mxu1 %v6002_v48  ;;  %v1290_v63 = vshrl.u32 %v1232_v59, 16  ;;  %v1293_v0 = vshll.u32 %v1232_v59, 16 }
  0x77   : > { %s877_s28 = scalar_lea.vmem %s7894_s21, %s4834_s0  ;;  %v1428_v61 = vrot.slane %v1426_v53, 3  ;;  %v1431_v62 = vrot.slane %v1429_v54, 4  ;;  %v1298_v1 = vshrl.u32 %v1234_v60, 16  ;;  %v1301_v2 = vshll.u32 %v1234_v60, 16  ;;  %5369 = vmatprep.subr.bf16.mxu1 %v6007_v49  ;;  %5433 = vmatprep.subr.bf16.mxu0 %v6008_v52  ;;  %v6018_v33 = vld [vmem:[%s6544_s1 + $0x24] ss:$0 sps:$4 sm:$0xff]  }
  0x78   : > { %v927_v57 = vld [vmem:[%s877_s28] sm:$0xf]  ;;  %v928_v58 = vld [vmem:[%s877_s28 + $0x4] sm:$0xf]  ;;  %v1436_v5 = vrot.slane %v1434_v55, 3  ;;  %v1439_v6 = vrot.slane %v1437_v56, 4 }
  0x79   : > { %v1247_v3 = vld [vmem:[#allocation2 + $0x80] sm:$0xf8]  ;;  %v1432_v4 = vor.u32 %v1431_v62, %v1428_v61  ;;  %v932_v7 = vsel %vm6552_vm0, %v927_v57, 0  ;;  %v1249_v8 = vld [vmem:[#allocation2 + $0x90] sm:$0xf]  ;;  %v1292_v9 = vrot.slane %v1290_v63, 3 }
  0x7a   : > { %v1295_v10 = vrot.slane %v1293_v0, 4  ;;  %v1300_v11 = vrot.slane %v1298_v1, 3  ;;  %v1303_v12 = vrot.slane %v1301_v2, 4  ;;  %v1440_v13 = vor.u32 %v1439_v6, %v1436_v5  ;;  %v6019_v36 = vld [vmem:[%s6559_s30] ss:$0 sps:$4 sm:$0xff]   ;;  %v6013_v42 = vld [vmem:[%s7869_s7 + $0x188] sm:$0xff]  }
  0x7b   : > { %v933_v14 = vsel %vm6552_vm0, %v928_v58, 0  ;;  %v4846_v15 = vcombine.low %v932_v7, %v932_v7  ;;  %v1409_v16 = vshrl.u32 %v1247_v3, 16  ;;  %v1412_v20 = vshll.u32 %v1247_v3, 16  ;;  %1186 = vst [vmem:[#allocation2 + $0xa8] sm:$0xf0] %v6017_v32  ;;  %v6010_v60 = vld [vmem:[%s7869_s7 + $0x300] sm:$0xff]  }
  0x7c   : > { %v1296_v17 = vor.u32 %v1295_v10, %v1292_v9  ;;  %v1304_v18 = vor.u32 %v1303_v12, %v1300_v11  ;;  %v4847_v19 = vcombine.low %v933_v14, %v933_v14  ;;  %v6598_v22 = vsel %vm1271_vm1, %v1432_v4, %v1440_v13  ;;  %1187 = vst [vmem:[#allocation2 + $0xb8] sm:$0xf] %v6018_v33  ;;  %v6020_v38 = vld [vmem:[%s6559_s30 + $0x4] ss:$0 sps:$4 sm:$0xff]   ;;  %v6021_v39 = vld [vmem:[%s6559_s30 + $0x20] ss:$0 sps:$4 sm:$0xff]  }
  0x7d   : > { %950 = vst [vmem:[#allocation2] sm:$0xf0] %v4846_v15  ;;  %v1411_v23 = vrot.slane %v1409_v16, 3  ;;  %v1417_v24 = vshrl.u32 %v1249_v8, 16  ;;  %v1420_v25 = vshll.u32 %v1249_v8, 16  ;;  %1752 = vmatprep.mubr.bf16.mxu1 %v6598_v22  ;;  %v1414_v28 = vrot.slane %v1412_v20, 4 }
  0x7e   : > { %v1305_v27 = vsel %vm1271_vm1, %v1296_v17, %v1304_v18  ;;  %951 = vst [vmem:[#allocation2 + $0x10] sm:$0xf] %v4847_v19  ;;  %1033 = vst [vmem:[#allocation2 + $0x20] sm:$0xf0] %v6019_v36  ;;  %v6022_v40 = vld [vmem:[%s6559_s30 + $0x24] ss:$0 sps:$4 sm:$0xff]  }
  0x7f   : > { %1720 = vmatprep.mubr.bf16.mxu0 %v1305_v27  ;;  %v1419_v29 = vrot.slane %v1417_v24, 3  ;;  %v1422_v30 = vrot.slane %v1420_v25, 4  ;;  %v1415_v34 = vor.u32 %v1414_v28, %v1411_v23  ;;  %1034 = vst [vmem:[#allocation2 + $0x30] sm:$0xf] %v6020_v38  ;;  %1041 = vst [vmem:[#allocation2 + $0xa0] sm:$0xf0] %v6021_v39 }
  0x80   : > { %1042 = vst [vmem:[#allocation2 + $0xb0] sm:$0xf] %v6022_v40  ;;  %v1236_v48 = vld [vmem:[#allocation2 + $0x28] sm:$0xf8]  ;;  %v1238_v51 = vld [vmem:[#allocation2 + $0x38] sm:$0xf] }
  0x81   : > { %v1423_v37 = vor.u32 %v1422_v30, %v1419_v29  ;;  %v1324_v52 = vshrl.u32 %v1236_v48, 16  ;;  %v1327_v53 = vshll.u32 %v1236_v48, 16  ;;  %v1332_v56 = vshrl.u32 %v1238_v51, 16  ;;  %v6012_v1 = vld [vmem:[%s7869_s7 + $0x348] sm:$0xff]   ;;  %v6025_v6 = vld [vmem:[%s7869_s7 + $0x190] sm:$0xff]   ;;  %v6027_v18 = vld [vmem:[%s7869_s7 + $0x1d8] sm:$0xff]  }
  0x82   : > { %v1335_v57 = vshll.u32 %v1238_v51, 16  ;;  %v1252_v63 = vld [vmem:[#allocation2 + $0xa8] sm:$0xf8]  ;;  %v6029_v30 = vld [vmem:[%s7869_s7 + $0x198] sm:$0xff]   ;;  %v6039_v40 = vld [vmem:[%s7869_s7 + $0x1e0] sm:$0xff]   ;;  %s5304_s3 = sadd.s32 8, %s6512_s16 }
  0x83   : > { %v6616_v41 = vsel %vm1271_vm1, %v1415_v34, %v1423_v37  ;;  %v1326_v61 = vrot.slane %v1324_v52, 3  ;;  %v1329_v62 = vrot.slane %v1327_v53, 4  ;;  %v1334_v2 = vrot.slane %v1332_v56, 3  ;;  %v1254_v4 = vld [vmem:[#allocation2 + $0xb8] sm:$0xf]  ;;  %v6014_v20 = vld [vmem:[%s7869_s7 + $0x308] sm:$0xff]  }
  0x84   : > { %v1231_v43 = vld [vmem:[#allocation2] sm:$0xf8]  ;;  %1753 = vmatmul.mubr.bf16.vlgmr.msra.gmra.mrb[0].mxu1 %v6616_v41  ;;  %v1337_v3 = vrot.slane %v1335_v57, 4  ;;  %v1460_v5 = vshrl.u32 %v1252_v63, 16  ;;  %v1463_v9 = vshll.u32 %v1252_v63, 16  ;;  %v1468_v10 = vshrl.u32 %v1254_v4, 16 }
  0x85   : > { %v1233_v45 = vld [vmem:[#allocation2 + $0x10] sm:$0xf]  ;;  %v1273_v46 = vshrl.u32 %v1231_v43, 16  ;;  %v1276_v47 = vshll.u32 %v1231_v43, 16  ;;  %5370 = vmatpush3.bf16.msra.mxu1 %v6009_v31  ;;  %v1330_v8 = vor.u32 %v1329_v62, %v1326_v61  ;;  %v1235_v11 = vld [vmem:[#allocation2 + $0x20] sm:$0xf8] }
  0x86   : > { %v1281_v49 = vshrl.u32 %v1233_v45, 16  ;;  %v1284_v50 = vshll.u32 %v1233_v45, 16  ;;  %5371 = vmatprep.subr.bf16.mxu1 %v6011_v35  ;;  %v1237_v12 = vld [vmem:[#allocation2 + $0x30] sm:$0xf]  ;;  %v1338_v13 = vor.u32 %v1337_v3, %v1334_v2  ;;  %v1462_v14 = vrot.slane %v1460_v5, 3  ;;  %v6041_v53 = vld [vmem:[%s7869_s7 + $0x1a0] sm:$0xff]  }
  0x87   : > { %v1275_v54 = vrot.slane %v1273_v46, 3  ;;  %v1278_v55 = vrot.slane %v1276_v47, 4  ;;  %v1471_v15 = vshll.u32 %v1254_v4, 16  ;;  %v1307_v16 = vshrl.u32 %v1235_v11, 16  ;;  %v1251_v17 = vld [vmem:[#allocation2 + $0xa0] sm:$0xf8] }
  0x88   : > { %v1283_v58 = vrot.slane %v1281_v49, 3  ;;  %v1286_v59 = vrot.slane %v1284_v50, 4  ;;  %v1465_v21 = vrot.slane %v1463_v9, 4  ;;  %v1470_v23 = vrot.slane %v1468_v10, 3  ;;  %v1253_v25 = vld [vmem:[#allocation2 + $0xb0] sm:$0xf] }
  0x89   : > { %v1279_v0 = vor.u32 %v1278_v55, %v1275_v54  ;;  %5372 = vmatpush3.bf16.msra.mxu1 %v6013_v42  ;;  %v1310_v24 = vshll.u32 %v1235_v11, 16  ;;  %v6642_v26 = vsel %vm1271_vm1, %v1330_v8, %v1338_v13  ;;  %v1473_v27 = vrot.slane %v1471_v15, 4  ;;  %v6024_v35 = vld [vmem:[%s7869_s7 + $0x350] sm:$0xff]   ;;  %v6028_v50 = vld [vmem:[%s7869_s7 + $0x358] sm:$0xff]   ;;  %v6034_v61 = vld [vmem:[%s6544_s1 + $0x2c] ss:$0 sps:$4 sm:$0xff]  }
  0x8a   : > { %v1287_v7 = vor.u32 %v1286_v59, %v1283_v58  ;;  %5373 = vmatprep.subr.bf16.mxu1 %v6023_v44  ;;  %v1309_v28 = vrot.slane %v1307_v16, 3  ;;  %v1315_v29 = vshrl.u32 %v1237_v12, 16  ;;  %v1466_v31 = vor.u32 %v1465_v21, %v1462_v14  ;;  %v6026_v46 = vld [vmem:[%s7869_s7 + $0x310] sm:$0xff]   ;;  %v6030_v57 = vld [vmem:[%s7869_s7 + $0x318] sm:$0xff]   ;;  %v6031_v58 = vld [vmem:[%s6544_s1 + $0x8] ss:$0 sps:$4 sm:$0xff]  }
  0x8b   : > { %v1312_v32 = vrot.slane %v1310_v24, 4  ;;  %v1318_v33 = vshll.u32 %v1237_v12, 16  ;;  %v1443_v34 = vshrl.u32 %v1251_v17, 16  ;;  %v1474_v36 = vor.u32 %v1473_v27, %v1470_v23  ;;  %v6032_v59 = vld [vmem:[%s6544_s1 + $0xc] ss:$0 sps:$4 sm:$0xff]   ;;  %v6040_v62 = vld [vmem:[%s7869_s7 + $0x360] sm:$0xff]  }
  0x8c   : > { %v1288_v19 = vsel %vm1271_vm1, %v1279_v0, %v1287_v7  ;;  %v1317_v37 = vrot.slane %v1315_v29, 3  ;;  %v1446_v38 = vshll.u32 %v1251_v17, 16  ;;  %v1451_v39 = vshrl.u32 %v1253_v25, 16  ;;  %1180 = vst [vmem:[#allocation2 + $0x48] sm:$0xf0] %v6031_v58  ;;  %v6042_v4 = vld [vmem:[%s7869_s7 + $0x320] sm:$0xff]  }
  0x8d   : > { %1721 = vmatmul.mubr.bf16.vlgmr.msra.gmra.mrb[0].mxu0 %v1288_v19  ;;  %5374 = vmatpush3.bf16.msra.mxu1 %v6025_v6  ;;  %v1313_v42 = vor.u32 %v1312_v32, %v1309_v28  ;;  %v1320_v43 = vrot.slane %v1318_v33, 4  ;;  %v1445_v44 = vrot.slane %v1443_v34, 3  ;;  %v1454_v45 = vshll.u32 %v1253_v25, 16  ;;  %1181 = vst [vmem:[#allocation2 + $0x58] sm:$0xf] %v6032_v59  ;;  %v6043_v5 = vld [vmem:[%s7869_s7 + $0x1e8] sm:$0xff]  }
  0x8e   : > { %5434 = vmatpush3.bf16.msra.mxu0 %v6010_v60  ;;  %1728 = vmatprep.mubr.bf16.mxu0 %v6642_v26  ;;  %v6658_v47 = vsel %vm1271_vm1, %v1466_v31, %v1474_v36  ;;  %v1448_v48 = vrot.slane %v1446_v38, 4  ;;  %v1453_v49 = vrot.slane %v1451_v39, 3  ;;  %v6033_v60 = vld [vmem:[%s6544_s1 + $0x28] ss:$0 sps:$4 sm:$0xff]   ;;  %1189 = vst [vmem:[#allocation2 + $0xd8] sm:$0xf] %v6034_v61 }
  0x8f   : > { %5435 = vmatprep.subr.bf16.mxu0 %v6012_v1  ;;  %5375 = vmatprep.subr.bf16.mxu1 %v6027_v18  ;;  %v1321_v51 = vor.u32 %v1320_v43, %v1317_v37  ;;  %v1456_v52 = vrot.slane %v1454_v45, 4  ;;  %v6035_v0 = vld [vmem:[%s6559_s30 + $0x8] ss:$0 sps:$4 sm:$0xff]   ;;  %1188 = vst [vmem:[#allocation2 + $0xc8] sm:$0xf0] %v6033_v60  ;;  %v6057_v58 = vld [vmem:[%s7869_s7 + $0x1b0] sm:$0xff]  }
  0x90   : > { %1760 = vmatprep.mubr.bf16.mxu1 %v6658_v47  ;;  %v1449_v54 = vor.u32 %v1448_v48, %v1445_v44  ;;  %v6036_v1 = vld [vmem:[%s6559_s30 + $0xc] ss:$0 sps:$4 sm:$0xff]   ;;  %1035 = vst [vmem:[#allocation2 + $0x40] sm:$0xf0] %v6035_v0  ;;  %v6037_v2 = vld [vmem:[%s6559_s30 + $0x28] ss:$0 sps:$4 sm:$0xff]  }
  0x91   : > { %5376 = vmatpush3.bf16.msra.mxu1 %v6029_v30  ;;  %v6668_v55 = vsel %vm1271_vm1, %v1313_v42, %v1321_v51  ;;  %v1457_v56 = vor.u32 %v1456_v52, %v1453_v49  ;;  %v6038_v3 = vld [vmem:[%s6559_s30 + $0x2c] ss:$0 sps:$4 sm:$0xff]   ;;  %1036 = vst [vmem:[#allocation2 + $0x50] sm:$0xf] %v6036_v1  ;;  %1043 = vst [vmem:[#allocation2 + $0xc0] sm:$0xf0] %v6037_v2 }
  0x92   : > { %5436 = vmatpush3.bf16.msra.mxu0 %v6014_v20  ;;  %5377 = vmatprep.subr.bf16.mxu1 %v6039_v40  ;;  %1044 = vst [vmem:[#allocation2 + $0xd0] sm:$0xf] %v6038_v3  ;;  %v6044_v34 = vld [vmem:[%s7869_s7 + $0x368] sm:$0xff]   ;;  %v6056_v52 = vld [vmem:[%s7869_s7 + $0x370] sm:$0xff]   ;;  %p6802_p11 = scmp.lt.s32.totalorder %s5304_s3, 15  ;;  %s739_s28 = sand.u32 1, %s6223_s17  }
  0x93   : > { %5437 = vmatprep.subr.bf16.mxu0 %v6024_v35  ;;  %v6682_v63 = vsel %vm1271_vm1, %v1449_v54, %v1457_v56  ;;  %v1240_v6 = vld [vmem:[#allocation2 + $0x48] sm:$0xf8]  ;;  %v6047_v2 = vld [vmem:[%s6544_s1 + $0x10] ss:$0 sps:$4 sm:$0xff]   ;;  %v6048_v3 = vld [vmem:[%s6544_s1 + $0x14] ss:$0 sps:$4 sm:$0xff]  }
  0x94   : > { %1761 = vmatmul.mubr.bf16.gmra.mrb[4].mxu1 %v6682_v63  ;;  %v6695_v7 = vld [vmem:[#allocation2 + $0x58] sm:$0xf]  ;;  %v1358_v8 = vshrl.u32 %v1240_v6, 16  ;;  %v1361_v9 = vshll.u32 %v1240_v6, 16  ;;  %v6045_v35 = vld [vmem:[%s7869_s7 + $0x1a8] sm:$0xff]   ;;  %s7939_s3 = smov (!%p6802_p11, %s5304_s3), 15 }
  0x95   : > { %1729 = vmatmul.mubr.bf16.gmra.mrb[4].mxu0 %v6668_v55  ;;  %5378 = vmatpush3.bf16.msra.mxu1 %v6041_v53  ;;  %v1366_v10 = vshrl.u32 %v6695_v7, 16  ;;  %v1369_v11 = vshll.u32 %v6695_v7, 16  ;;  %v1258_v13 = vld [vmem:[#allocation2 + $0xd8] sm:$0xf]  ;;  %v6046_v40 = vld [vmem:[%s7869_s7 + $0x328] sm:$0xff]   ;;  %s7941_s3 = smov (!%p6802_p11, %s7939_s3), 15 }
  0x96   : > { %5438 = vmatpush3.bf16.msra.mxu0 %v6026_v46  ;;  %v1256_v12 = vld [vmem:[#allocation2 + $0xc8] sm:$0xf8]  ;;  %5379 = vmatprep.subr.bf16.mxu1 %v6043_v5  ;;  %v1360_v17 = vrot.slane %v1358_v8, 3  ;;  %v1363_v18 = vrot.slane %v1361_v9, 4  ;;  %v1502_v25 = vshrl.u32 %v1258_v13, 16  ;;  %v1505_v27 = vshll.u32 %v1258_v13, 16 }
  0x97   : > { %5439 = vmatprep.subr.bf16.mxu0 %v6028_v50  ;;  %v1494_v14 = vshrl.u32 %v1256_v12, 16  ;;  %v1497_v15 = vshll.u32 %v1256_v12, 16  ;;  %v1239_v16 = vld [vmem:[#allocation2 + $0x40] sm:$0xf8]  ;;  %v1368_v19 = vrot.slane %v1366_v10, 3  ;;  %v1371_v20 = vrot.slane %v1369_v11, 4 }
  0x98   : > { %v6699_v21 = vld [vmem:[#allocation2 + $0x50] sm:$0xf]  ;;  %v1255_v28 = vld [vmem:[#allocation2 + $0xc0] sm:$0xf8]  ;;  %v1364_v29 = vor.u32 %v1363_v18, %v1360_v17  ;;  %v1341_v31 = vshrl.u32 %v1239_v16, 16  ;;  %v1344_v32 = vshll.u32 %v1239_v16, 16 }
  0x99   : > { %v1496_v23 = vrot.slane %v1494_v14, 3  ;;  %v1499_v24 = vrot.slane %v1497_v15, 4  ;;  %v1372_v30 = vor.u32 %v1371_v20, %v1368_v19  ;;  %v1257_v33 = vld [vmem:[#allocation2 + $0xd0] sm:$0xf]  ;;  %v1504_v37 = vrot.slane %v1502_v25, 3  ;;  %5380 = vmatpush3.bf16.msra.mxu1 %v6045_v35  ;;  %v6059_v16 = vld [vmem:[%s7869_s7 + $0x1f8] sm:$0xff]  }
  0x9a   : > { %5440 = vmatpush3.bf16.msra.mxu0 %v6030_v57  ;;  %v1507_v38 = vrot.slane %v1505_v27, 4  ;;  %v1349_v39 = vshrl.u32 %v6699_v21, 16  ;;  %v1343_v43 = vrot.slane %v1341_v31, 3  ;;  %v1346_v44 = vrot.slane %v1344_v32, 4  ;;  %v6055_v46 = vld [vmem:[%s7869_s7 + $0x1f0] sm:$0xff]   ;;  %s4839_s17 = sshll.u32 %s7941_s3, 1 }
  0x9b   : > { %5441 = vmatprep.subr.bf16.mxu0 %v6040_v62  ;;  %v1500_v36 = vor.u32 %v1499_v24, %v1496_v23  ;;  %v6712_v42 = vsel %vm1271_vm1, %v1364_v29, %v1372_v30  ;;  %v1352_v45 = vshll.u32 %v6699_v21, 16  ;;  %v1477_v50 = vshrl.u32 %v1255_v28, 16  ;;  %5381 = vmatprep.subr.bf16.mxu1 %v6055_v46  ;;  %v6049_v5 = vld [vmem:[%s6544_s1 + $0x30] ss:$0 sps:$4 sm:$0xff]   ;;  %1182 = vst [vmem:[#allocation2 + $0x68] sm:$0xf0] %v6047_v2  ;;  %s892_s9 = sadd.s32 %s4839_s17, %s6527_s13 }
  0x9c   : > { %1736 = vmatprep.mubr.bf16.mxu0 %v6712_v42  ;;  %v1508_v48 = vor.u32 %v1507_v38, %v1504_v37  ;;  %v1351_v49 = vrot.slane %v1349_v39, 3  ;;  %v1480_v51 = vshll.u32 %v1255_v28, 16  ;;  %v1347_v53 = vor.u32 %v1346_v44, %v1343_v43  ;;  %1183 = vst [vmem:[#allocation2 + $0x78] sm:$0xf] %v6048_v3  ;;  %v6050_v9 = vld [vmem:[%s6544_s1 + $0x34] ss:$0 sps:$4 sm:$0xff]  }
  0x9d   : > { %v1354_v54 = vrot.slane %v1352_v45, 4  ;;  %v1485_v56 = vshrl.u32 %v1257_v33, 16  ;;  %v1488_v57 = vshll.u32 %v1257_v33, 16  ;;  %v1479_v60 = vrot.slane %v1477_v50, 3  ;;  %5382 = vmatpush3.bf16.msra.mxu1 %v6057_v58  ;;  %1190 = vst [vmem:[#allocation2 + $0xe8] sm:$0xf0] %v6049_v5 }
  0x9e   : > { %5442 = vmatpush3.bf16.msra.mxu0 %v6042_v4  ;;  %v6726_v59 = vsel %vm1271_vm1, %v1500_v36, %v1508_v48  ;;  %v1482_v61 = vrot.slane %v1480_v51, 4  ;;  %v6051_v10 = vld [vmem:[%s6559_s30 + $0x10] ss:$0 sps:$4 sm:$0xff]   ;;  %v6052_v11 = vld [vmem:[%s6559_s30 + $0x14] ss:$0 sps:$4 sm:$0xff]   ;;  %5383 = vmatprep.subr.bf16.mxu1 %v6059_v16  ;;  %v6062_v2 = vld [vmem:[%s7869_s7 + $0x338] sm:$0xff]  }
  0x9f   : > { %5443 = vmatprep.subr.bf16.mxu0 %v6044_v34  ;;  %1768 = vmatprep.mubr.bf16.mxu1 %v6726_v59  ;;  %v1355_v62 = vor.u32 %v1354_v54, %v1351_v49  ;;  %v1487_v0 = vrot.slane %v1485_v56, 3  ;;  %v1490_v1 = vrot.slane %v1488_v57, 4  ;;  %1191 = vst [vmem:[#allocation2 + $0xf8] sm:$0xf] %v6050_v9  ;;  %v6053_v13 = vld [vmem:[%s6559_s30 + $0x30] ss:$0 sps:$4 sm:$0xff]  }
  0xa0   : > { %v1483_v4 = vor.u32 %v1482_v61, %v1479_v60  ;;  %v6054_v14 = vld [vmem:[%s6559_s30 + $0x34] ss:$0 sps:$4 sm:$0xff]   ;;  %1037 = vst [vmem:[#allocation2 + $0x60] sm:$0xf0] %v6051_v10  ;;  %1038 = vst [vmem:[#allocation2 + $0x70] sm:$0xf] %v6052_v11 }
  0xa1   : > { %v6733_v6 = vsel %vm1271_vm1, %v1347_v53, %v1355_v62  ;;  %v1491_v8 = vor.u32 %v1490_v1, %v1487_v0  ;;  %1045 = vst [vmem:[#allocation2 + $0xe0] sm:$0xf0] %v6053_v13  ;;  %1046 = vst [vmem:[#allocation2 + $0xf0] sm:$0xf] %v6054_v14  ;;  %v6058_v15 = vld [vmem:[%s7869_s7 + $0x330] sm:$0xff]   ;;  %v6060_v53 = vld [vmem:[%s7869_s7 + $0x378] sm:$0xff]  }
  0xa2   : > { %5444 = vmatpush3.bf16.msra.mxu0 %v6046_v40  ;;  %v1244_v17 = vld [vmem:[#allocation2 + $0x68] sm:$0xf8]  ;;  %v6061_v60 = vld [vmem:[%s7869_s7 + $0x1b8] sm:$0xff]   ;;  %v6063_v9 = vld [vmem:[%s7869_s7 + $0xc0] sm:$0xff]   ;;  %s6864_s29 = sshll.u32 %s739_s28, 3  ;;  %p934_p12 = scmp.lt.s32.totalorder %s6247_s23, 1 }
  0xa3   : > { %5445 = vmatprep.subr.bf16.mxu0 %v6056_v52  ;;  %1737 = vmatmul.mubr.bf16.gmra.mrb[8].mxu0 %v6733_v6  ;;  %v6740_v12 = vsel %vm1271_vm1, %v1483_v4, %v1491_v8  ;;  %v6751_v18 = vld [vmem:[#allocation2 + $0x78] sm:$0xf]  ;;  %v1392_v19 = vshrl.u32 %v1244_v17, 16  ;;  %v1395_v20 = vshll.u32 %v1244_v17, 16  ;;  %s7896_s3 = sld [smem:[#allocation13_spill]]  ;;  %s741_s13 = scalar_lea.vmem [#allocation5], %s6864_s29 }
  0xa4   : > { %1769 = vmatmul.mubr.bf16.gmra.mrb[8].mxu1 %v6740_v12  ;;  %v1400_v23 = vshrl.u32 %v6751_v18, 16  ;;  %v1403_v24 = vshll.u32 %v6751_v18, 16  ;;  %v1260_v25 = vld [vmem:[#allocation2 + $0xe8] sm:$0xf8]  ;;  %s937_s0 = scalar_select %p934_p12, 1, 0 }
  0xa5   : > { %v1528_v28 = vshrl.u32 %v1260_v25, 16  ;;  %v1531_v29 = vshll.u32 %v1260_v25, 16  ;;  %v1394_v30 = vrot.slane %v1392_v19, 3  ;;  %v1397_v31 = vrot.slane %v1395_v20, 4  ;;  %5384 = vmatpush3.bf16.msra.mxu1 %v6061_v60  ;;  %v6066_v25 = vld [vmem:[%s7869_s7 + $0x200] sm:$0xff]   ;;  %s7899_s16 = sld [smem:[#allocation14_spill]] }
  0xa6   : > { %5446 = vmatpush3.bf16.msra.mxu0 %v6058_v15  ;;  %v1262_v27 = vld [vmem:[#allocation2 + $0xf8] sm:$0xf]  ;;  %v1402_v32 = vrot.slane %v1400_v23, 3  ;;  %v1405_v33 = vrot.slane %v1403_v24, 4  ;;  %5497 = vmatprep.subr.bf16.mxu1 %v6063_v9  ;;  %v6065_v23 = vld [vmem:[%s7869_s7 + $0x240] sm:$0xff]   ;;  %s7900_s23 = sld [smem:[#allocation10_spill]] }
  0xa7   : > { %v1243_v34 = vld [vmem:[#allocation2 + $0x60] sm:$0xf8]  ;;  %v1530_v35 = vrot.slane %v1528_v28, 3  ;;  %v1533_v36 = vrot.slane %v1531_v29, 4  ;;  %v1536_v37 = vshrl.u32 %v1262_v27, 16  ;;  %v1539_v38 = vshll.u32 %v1262_v27, 16  ;;  %5447 = vmatprep.subr.bf16.mxu0 %v6060_v53 }
  0xa8   : > { %v6755_v39 = vld [vmem:[#allocation2 + $0x70] sm:$0xf]  ;;  %v1398_v40 = vor.u32 %v1397_v31, %v1394_v30  ;;  %v1406_v43 = vor.u32 %v1405_v33, %v1402_v32  ;;  %v1375_v44 = vshrl.u32 %v1243_v34, 16  ;;  %v1378_v45 = vshll.u32 %v1243_v34, 16  ;;  %v1259_v46 = vld [vmem:[#allocation2 + $0xe0] sm:$0xf8] }
  0xa9   : > { %v1261_v48 = vld [vmem:[#allocation2 + $0xf0] sm:$0xf]  ;;  %v1534_v49 = vor.u32 %v1533_v36, %v1530_v35  ;;  %v1538_v50 = vrot.slane %v1536_v37, 3  ;;  %v1541_v51 = vrot.slane %v1539_v38, 4  ;;  %v1383_v52 = vshrl.u32 %v6755_v39, 16  ;;  %v6069_v27 = vld [vmem:[%s7869_s7 + $0x248] sm:$0xff]  }
  0xaa   : > { %v6762_v54 = vsel %vm1271_vm1, %v1398_v40, %v1406_v43  ;;  %v1377_v56 = vrot.slane %v1375_v44, 3  ;;  %v1380_v57 = vrot.slane %v1378_v45, 4  ;;  %v1386_v58 = vshll.u32 %v6755_v39, 16  ;;  %5448 = vmatpush3.bf16.msra.mxu0 %v6062_v2  ;;  %v6064_v28 = vld [vmem:[%s7869_s7 + $0x80] sm:$0xff]   ;;  %v6070_v29 = vld [vmem:[%s7869_s7 + $0x208] sm:$0xff]   ;;  %v6073_v30 = vld [vmem:[%s7869_s7 + $0x250] sm:$0xff]  }
  0xab   : > { %1744 = vmatprep.mubr.bf16.mxu0 %v6762_v54  ;;  %v1542_v61 = vor.u32 %v1541_v51, %v1538_v50  ;;  %v1385_v62 = vrot.slane %v1383_v52, 3  ;;  %v1511_v0 = vshrl.u32 %v1259_v46, 16  ;;  %v1514_v1 = vshll.u32 %v1259_v46, 16  ;;  %5561 = vmatprep.subr.bf16.mxu0 %v6065_v23  ;;  %v6068_v31 = vld [vmem:[%s7869_s7 + $0x88] sm:$0xff]   ;;  %v6074_v32 = vld [vmem:[%s7869_s7 + $0x210] sm:$0xff]   ;;  %v6075_v34 = vld [vmem:[%s7869_s7 + $0xd8] sm:$0xff]  }
  0xac   : > { %v1381_v3 = vor.u32 %v1380_v57, %v1377_v56  ;;  %v1388_v4 = vrot.slane %v1386_v58, 4  ;;  %v1519_v5 = vshrl.u32 %v1261_v48, 16  ;;  %v1522_v8 = vshll.u32 %v1261_v48, 16  ;;  %v6072_v33 = vld [vmem:[%s7869_s7 + $0x90] sm:$0xff]   ;;  %v6076_v35 = vld [vmem:[%s7869_s7 + $0x98] sm:$0xff]   ;;  %v6079_v37 = vld [vmem:[%s7869_s7 + $0xe0] sm:$0xff]  }
  0xad   : > { %v6776_v10 = vsel %vm1271_vm1, %v1534_v49, %v1542_v61  ;;  %v1513_v11 = vrot.slane %v1511_v0, 3  ;;  %v1516_v13 = vrot.slane %v1514_v1, 4  ;;  %v6078_v36 = vld [vmem:[%s7869_s7 + $0x218] sm:$0xff]   ;;  %v6081_v38 = vld [vmem:[%s7869_s7 + $0x260] sm:$0xff]   ;;  %v6083_v49 = vld [vmem:[%s7869_s7 + $0xe8] sm:$0xff]   ;;  %s7901_s15 = sld [smem:[#allocation15_spill]] }
  0xae   : > { %1776 = vmatprep.mubr.bf16.mxu1 %v6776_v10  ;;  %v1389_v14 = vor.u32 %v1388_v4, %v1385_v62  ;;  %v1521_v15 = vrot.slane %v1519_v5, 3  ;;  %v1524_v16 = vrot.slane %v1522_v8, 4  ;;  %v6082_v40 = vld [vmem:[%s7869_s7 + $0x220] sm:$0xff]   ;;  %v6087_v43 = vld [vmem:[%s6544_s1 + $0x38] ss:$0 sps:$4 sm:$0xff]   ;;  %v6086_v50 = vld [vmem:[%s7869_s7 + $0x228] sm:$0xff]  }
  0xaf   : > { %v1517_v17 = vor.u32 %v1516_v13, %v1513_v11  ;;  %v6088_v44 = vld [vmem:[%s6544_s1 + $0x3c] ss:$0 sps:$4 sm:$0xff]   ;;  %v6089_v45 = vld [vmem:[%s6559_s30 + $0x38] ss:$0 sps:$4 sm:$0xff]   ;;  %v6080_v48 = vld [vmem:[%s7869_s7 + $0xa0] sm:$0xff]  }
  0xb0   : > { %v6780_v19 = vsel %vm1271_vm1, %v1381_v3, %v1389_v14  ;;  %v1525_v20 = vor.u32 %v1524_v16, %v1521_v15  ;;  %v6090_v46 = vld [vmem:[%s6559_s30 + $0x3c] ss:$0 sps:$4 sm:$0xff]   ;;  %1192 = vst [vmem:[#allocation2 + $0x108] sm:$0xf0] %v6087_v43  ;;  %1193 = vst [vmem:[#allocation2 + $0x118] sm:$0xf] %v6088_v44 }
  0xb1   : > { %1745 = vmatmul.mubr.bf16.gmra.mrb[12].mxu0 %v6780_v19  ;;  %1047 = vst [vmem:[#allocation2 + $0x100] sm:$0xf0] %v6089_v45  ;;  %1048 = vst [vmem:[#allocation2 + $0x110] sm:$0xf] %v6090_v46  ;;  %s4841_s30 = sshll.u32 %s892_s9, 2  ;;  %v6093_v51 = vld [vmem:[%s7869_s7 + $0x270] sm:$0xff]  }
  0xb2   : > { %v6787_v24 = vsel %vm1271_vm1, %v1517_v17, %v1525_v20  ;;  %2276 = vmatprep.mubr.bf16.mxu0 %v6712_v42  ;;  %v6084_v52 = vld [vmem:[%s7869_s7 + $0xa8] sm:$0xff]   ;;  %v6091_v53 = vld [vmem:[%s7869_s7 + $0xf0] sm:$0xff]   ;;  %s894_s28 = scalar_lea.vmem %s7896_s3, %s4841_s30  ;;  %v6095_v4 = vld [vmem:[%s7869_s7 + $0xf8] sm:$0xff]   ;;  %s4820_s3 = sshll.u32 %s6533_s10, 3 }
  0xb3   : > { %1777 = vmatmul.mubr.bf16.gmra.mrb[12].mxu1 %v6787_v24  ;;  %v1084_v56 = vld [vmem:[%s741_s13] sm:$0xf]  ;;  %v1085_v60 = vld [vmem:[%s741_s13 + $0x4] sm:$0xf]  ;;  %v935_v0 = vld [vmem:[%s894_s28] sm:$0xf]  ;;  %s7655_s1 = scalar_lea.vmem %s7900_s23, %s4820_s3  ;;  %s910_s8 = scalar_lea.vmem %s7901_s15, %s7933_s24 }
  0xb4   : > { %1998 = vmatprep.mubr.bf16.mxu1 %v6642_v26  ;;  %v6067_v26 = vld [vmem:[%s7869_s7 + $0xc8] sm:$0xff]   ;;  %v6092_v62 = vld [vmem:[%s7869_s7 + $0xb0] sm:$0xff]   ;;  %v936_v3 = vld [vmem:[%s894_s28 + $0x4] sm:$0xf]  ;;  %s7903_s9 = sld [smem:[#allocation17_spill]] }
  0xb5   : > { %v6096_v11 = vld [vmem:[%s7869_s7 + $0xb8] sm:$0xff]  }
  0xb7   : > { %v1264_v57 = vld [vmem:[#allocation2 + $0x108] sm:$0xf8]  ;;  %v6907_v61 = vld [vmem:[#allocation2 + $0x118] sm:$0xf] }
  0xb8   : > { %v1819_v1 = vshrl.u32 %v1264_v57, 16  ;;  %v1822_v5 = vshll.u32 %v1264_v57, 16  ;;  %v1263_v8 = vld [vmem:[#allocation2 + $0x100] sm:$0xf8]  ;;  %v1827_v13 = vshrl.u32 %v6907_v61, 16  ;;  %v1830_v14 = vshll.u32 %v6907_v61, 16 }
  0xb9   : > { %2277 = vmatmul.mubr.bf16.vlgmr.msra.gmra.mrb[16].mxu0 %v6733_v6  ;;  %v6927_v15 = vld [vmem:[#allocation2 + $0x110] sm:$0xf]  ;;  %v1802_v20 = vshrl.u32 %v1263_v8, 16 }
  0xba   : > { %5562 = vmatpush3.bf16.msra.mxu0 %v6066_v25  ;;  %2284 = vmatprep.mubr.bf16.mxu0 %v6762_v54  ;;  %v1821_v25 = vrot.slane %v1819_v1, 3  ;;  %s7783_s21 = scalar_lea.vmem %s7903_s9, %s4820_s3 }
  0xbb   : > { %1999 = vmatmul.mubr.bf16.vlgmr.msra.gmra.mrb[16].mxu1 %v6668_v55  ;;  %5563 = vmatprep.subr.bf16.mxu0 %v6069_v27  ;;  %v6071_v55 = vld [vmem:[%s7869_s7 + $0xd0] sm:$0xff]   ;;  %v1805_v27 = vshll.u32 %v1263_v8, 16 }
  0xbc   : > { %5498 = vmatpush3.bf16.msra.mxu1 %v6064_v28  ;;  %2006 = vmatprep.mubr.bf16.mxu1 %v6712_v42  ;;  %v6077_v42 = vld [vmem:[%s7869_s7 + $0x258] sm:$0xff]  }
  0xbd   : > { %5499 = vmatprep.subr.bf16.mxu1 %v6067_v26 }
  0xbe   : > { %5564 = vmatpush3.bf16.msra.mxu0 %v6070_v29  ;;  %v1824_v29 = vrot.slane %v1822_v5, 4 }
  0xbf   : > { %5565 = vmatprep.subr.bf16.mxu0 %v6073_v30  ;;  %v1829_v30 = vrot.slane %v1827_v13, 3 }
  0xc0   : > { %5500 = vmatpush3.bf16.msra.mxu1 %v6068_v31  ;;  %v1832_v31 = vrot.slane %v1830_v14, 4 }
  0xc1   : > { %2285 = vmatmul.mubr.bf16.gmra.mrb[20].mxu0 %v6780_v19  ;;  %5501 = vmatprep.subr.bf16.mxu1 %v6071_v55 }
  0xc2   : > { %2292 = vmatprep.mubr.bf16.mxu0 %v6598_v22  ;;  %5566 = vmatpush3.bf16.msra.mxu0 %v6074_v32  ;;  %v1810_v32 = vshrl.u32 %v6927_v15, 16 }
  0xc3   : > { %2007 = vmatmul.mubr.bf16.gmra.mrb[20].mxu1 %v6733_v6  ;;  %5567 = vmatprep.subr.bf16.mxu0 %v6077_v42  ;;  %v6085_v6 = vld [vmem:[%s7869_s7 + $0x268] sm:$0xff]   ;;  %v1813_v42 = vshll.u32 %v6927_v15, 16 }
  0xc4   : > { %2014 = vmatprep.mubr.bf16.mxu1 %v6762_v54  ;;  %5502 = vmatpush3.bf16.msra.mxu1 %v6072_v33  ;;  %v6094_v54 = vld [vmem:[%s7869_s7 + $0x230] sm:$0xff]   ;;  %v6101_v33 = vld [vmem:[%s7869_s7 + $0x140] sm:$0xff]  }
  0xc5   : > { %5503 = vmatprep.subr.bf16.mxu1 %v6075_v34  ;;  %v1825_v34 = vor.u32 %v1824_v29, %v1821_v25  ;;  %v6969_v25 = vld [vmem:[#allocation2 + $0x48] sm:$0xf0] }
  0xc6   : > { %5568 = vmatpush3.bf16.msra.mxu0 %v6078_v36  ;;  %v1804_v36 = vrot.slane %v1802_v20, 3 }
  0xc7   : > { %5569 = vmatprep.subr.bf16.mxu0 %v6081_v38  ;;  %v1812_v38 = vrot.slane %v1810_v32, 3  ;;  %v6166_v32 = vld [vmem:[#allocation2 + $0x10] sm:$0xf] }
  0xc8   : > { %5504 = vmatpush3.bf16.msra.mxu1 %v6076_v35  ;;  %v1833_v35 = vor.u32 %v1832_v31, %v1829_v30  ;;  %v2425_v30 = vrot.slane %v6969_v25, 4  ;;  %v2426_v31 = vrot.slane %v6695_v7, 4  ;;  %v2423_v7 = vrot.slane %v6699_v21, 4 }
  0xc9   : > { %2293 = vmatmul.mubr.bf16.gmra.mrb[24].mxu0 %v6616_v41  ;;  %5505 = vmatprep.subr.bf16.mxu1 %v6079_v37  ;;  %v1807_v37 = vrot.slane %v1805_v27, 4 }
  0xca   : > { %2300 = vmatprep.mubr.bf16.mxu0 %v6658_v47  ;;  %5570 = vmatpush3.bf16.msra.mxu0 %v6082_v40  ;;  %v1815_v40 = vrot.slane %v1813_v42, 4  ;;  %v1834_v46 = vsel %vm1271_vm1, %v1825_v34, %v1833_v35  ;;  %v2411_v42 = vrot.slane %v6166_v32, 4  ;;  %v6102_v34 = vld [vmem:[%s7869_s7 + $0x100] sm:$0xff]  }
  0xcb   : > { %2015 = vmatmul.mubr.bf16.gmra.mrb[24].mxu1 %v6780_v19  ;;  %5571 = vmatprep.subr.bf16.mxu0 %v6085_v6  ;;  %v6097_v19 = vld [vmem:[%s7869_s7 + $0x278] sm:$0xff]   ;;  %v1808_v58 = vor.u32 %v1807_v37, %v1804_v36  ;;  %v6100_v35 = vld [vmem:[%s7869_s7 + $0x380] sm:$0xff]   ;;  %v6986_v36 = vsel %vm2409_vm3, %v2425_v30, %v2426_v31 }
  0xcc   : > { %2022 = vmatprep.mubr.bf16.mxu1 %v6598_v22  ;;  %5506 = vmatpush3.bf16.msra.mxu1 %v6080_v48  ;;  %v938_v22 = vstv %s937_s0  ;;  %v6988_v37 = vld [vmem:[#allocation2 + $0x40] sm:$0xf0]  ;;  %s7902_s0 = sld [smem:[#allocation16_spill]] }
  0xcd   : > { %5507 = vmatprep.subr.bf16.mxu1 %v6083_v49  ;;  %vm6903_vm2 = vcmp.eq.s32.totalorder %v938_v22, 1  ;;  %v2422_v21 = vrot.slane %v6988_v37, 4  ;;  %v7099_v31 = vld [vmem:[#allocation2 + $0xa0] sm:$0xf0] }
  0xce   : > { %5572 = vmatpush3.bf16.msra.mxu0 %v6086_v50  ;;  %v1086_v2 = vsel %vm6903_vm2, %v1084_v56, 0  ;;  %v1087_v9 = vsel %vm6903_vm2, %v1085_v60, 0  ;;  %v940_v17 = vsel %vm6903_vm2, %v935_v0, 0  ;;  %v941_v28 = vsel %vm6903_vm2, %v936_v3, 0 }
  0xcf   : > { %5573 = vmatprep.subr.bf16.mxu0 %v6093_v51  ;;  %v4884_v16 = vcombine.low %v1086_v2, %v1086_v2  ;;  %v4885_v23 = vcombine.low %v1087_v9, %v1087_v9  ;;  %v4864_v26 = vcombine.low %v940_v17, %v940_v17  ;;  %v4865_v55 = vcombine.low %v941_v28, %v941_v28  ;;  %v6958_v9 = vld [vmem:[#allocation2 + $0x28] sm:$0xf0]  ;;  %v6972_v28 = vld [vmem:[#allocation2] sm:$0xf0] }
  0xd0   : > { %5508 = vmatpush3.bf16.msra.mxu1 %v6084_v52  ;;  %v1816_v60 = vor.u32 %v1815_v40, %v1812_v38  ;;  %v2419_v14 = vrot.slane %v6958_v9, 4  ;;  %v6105_v38 = vld [vmem:[%s7869_s7 + $0x148] sm:$0xff]  }
  0xd1   : > { %2301 = vmatmul.mubr.bf16.gmra.mrb[28].mxu0 %v6682_v63  ;;  %5509 = vmatprep.subr.bf16.mxu1 %v6091_v53  ;;  %1202 = vst [vmem:[#allocation2 + $0x128] sm:$0xf0] %v4884_v16  ;;  %1203 = vst [vmem:[#allocation2 + $0x138] sm:$0xf] %v4885_v23  ;;  %v6163_v16 = vld [vmem:[#allocation2 + $0x38] sm:$0xf] }
  0xd2   : > { %2308 = vmatprep.mubr.bf16.mxu0 %v6726_v59  ;;  %5574 = vmatpush3.bf16.msra.mxu0 %v6094_v54  ;;  %1058 = vst [vmem:[#allocation2 + $0x120] sm:$0xf0] %v4864_v26  ;;  %1059 = vst [vmem:[#allocation2 + $0x130] sm:$0xf] %v4865_v55  ;;  %v1817_v5 = vsel %vm1271_vm1, %v1808_v58, %v1816_v60  ;;  %v6165_v26 = vld [vmem:[#allocation2 + $0x30] sm:$0xf]  ;;  %s913_s17 = scalar_lea.vmem %s7902_s0, %s7933_s24 }
  0xd3   : > { %2023 = vmatmul.mubr.bf16.gmra.mrb[28].mxu1 %v6616_v41  ;;  %v6098_v41 = vld [vmem:[%s7869_s7 + $0x238] sm:$0xff]   ;;  %5575 = vmatprep.subr.bf16.mxu0 %v6097_v19  ;;  %v2417_v29 = vrot.slane %v6165_v26, 4  ;;  %v2410_v55 = vrot.slane %v6972_v28, 4  ;;  %v6120_v26 = vld [vmem:[%s7869_s7 + $0x3a8] sm:$0xff]   ;;  %s6266_s24 = smov 124  }
  0xd4   : > { %2030 = vmatprep.mubr.bf16.mxu1 %v6658_v47  ;;  %5510 = vmatpush3.bf16.msra.mxu1 %v6092_v62  ;;  %v6099_v47 = vld [vmem:[%s7869_s7 + $0x3c0] sm:$0xff]   ;;  %v6164_v19 = vld [vmem:[#allocation2 + $0x18] sm:$0xf] }
  0xd5   : > { %5511 = vmatprep.subr.bf16.mxu1 %v6095_v4  ;;  %v2414_v20 = vrot.slane %v6164_v19, 4  ;;  %v2412_v40 = vsel %vm2409_vm3, %v2410_v55, %v2411_v42  ;;  %v6167_v58 = vld [vmem:[#allocation2 + $0x98] sm:$0xf]  ;;  %v6126_v55 = vld [vmem:[%s7869_s7 + $0x130] sm:$0xff]   ;;  %v7107_v42 = vld [vmem:[#allocation2 + $0xc8] sm:$0xf0] }
  0xd6   : > { %5576 = vmatpush3.bf16.msra.mxu0 %v6098_v41  ;;  %v2438_v60 = vrot.slane %v6167_v58, 4 }
  0xd7   : > { %5689 = vmatprep.subr.bf16.mxu0 %v6101_v33 }
  0xd8   : > { %5512 = vmatpush3.bf16.msra.mxu1 %v6096_v11  ;;  %v1268_v6 = vld [vmem:[#allocation2 + $0x128] sm:$0xf8]  ;;  %v1270_v43 = vld [vmem:[#allocation2 + $0x138] sm:$0xf] }
  0xd9   : > { %2309 = vmatmul.mubr.bf16.gmra.mrb[32].mxu0 %v6740_v12  ;;  %5625 = vmatprep.subr.bf16.mxu1 %v6099_v47  ;;  %v2097_v44 = vshrl.u32 %v1268_v6, 16  ;;  %v2100_v45 = vshll.u32 %v1268_v6, 16  ;;  %v2105_v48 = vshrl.u32 %v1270_v43, 16  ;;  %v2108_v49 = vshll.u32 %v1270_v43, 16  ;;  %v1267_v50 = vld [vmem:[#allocation2 + $0x120] sm:$0xf8] }
  0xda   : > { %2316 = vmatprep.mubr.bf16.mxu0 %v6776_v10  ;;  %v1269_v52 = vld [vmem:[#allocation2 + $0x130] sm:$0xf]  ;;  %v2080_v53 = vshrl.u32 %v1267_v50, 16  ;;  %v2083_v54 = vshll.u32 %v1267_v50, 16  ;;  %v6960_v11 = vld [vmem:[#allocation2 + $0x8] sm:$0xf0] }
  0xdb   : > { %2031 = vmatmul.mubr.bf16.gmra.mrb[32].mxu1 %v6682_v63  ;;  %v2099_v51 = vrot.slane %v2097_v44, 3  ;;  %v2102_v63 = vrot.slane %v2100_v45, 4  ;;  %v2110_v22 = vrot.slane %v2108_v49, 4  ;;  %v2088_v56 = vshrl.u32 %v1269_v52, 16  ;;  %v6967_v47 = vld [vmem:[#allocation2 + $0x20] sm:$0xf0] }
  0xdc   : > { %2038 = vmatprep.mubr.bf16.mxu1 %v6726_v59  ;;  %v2107_v59 = vrot.slane %v2105_v48, 3  ;;  %v2091_v57 = vshll.u32 %v1269_v52, 16  ;;  %v2082_v1 = vrot.slane %v2080_v53, 3  ;;  %v2085_v2 = vrot.slane %v2083_v54, 4  ;;  %v6995_v6 = vld [vmem:[#allocation2 + $0x68] sm:$0xf0] }
  0xdd   : > { %v2103_v62 = vor.u32 %v2102_v63, %v2099_v51  ;;  %v2090_v3 = vrot.slane %v2088_v56, 3  ;;  %v2413_v17 = vrot.slane %v6960_v11, 4  ;;  %v6103_v43 = vld [vmem:[%s7869_s7 + $0x3c8] sm:$0xff]   ;;  %v2432_v44 = vrot.slane %v6751_v18, 4  ;;  %v6109_v48 = vld [vmem:[%s7869_s7 + $0x150] sm:$0xff]   ;;  %v6113_v54 = vld [vmem:[%s7869_s7 + $0x158] sm:$0xff]  }
  0xde   : > { %v2111_v0 = vor.u32 %v2110_v22, %v2107_v59  ;;  %v2093_v4 = vrot.slane %v2091_v57, 4  ;;  %v2086_v13 = vor.u32 %v2085_v2, %v2082_v1  ;;  %v6106_v45 = vld [vmem:[%s7869_s7 + $0x108] sm:$0xff]   ;;  %v7013_v49 = vld [vmem:[#allocation2 + $0x60] sm:$0xf0]  ;;  %v6107_v50 = vld [vmem:[%s7869_s7 + $0x3d0] sm:$0xff]   ;;  %v7019_v51 = vsel %vm2409_vm3, %v2422_v21, %v2423_v7 }
  0xdf   : > { %v2415_v27 = vsel %vm2409_vm3, %v2413_v17, %v2414_v20  ;;  %v6104_v18 = vld [vmem:[%s7869_s7 + $0x388] sm:$0xff]   ;;  %v6108_v63 = vld [vmem:[%s7869_s7 + $0x390] sm:$0xff]   ;;  %v6111_v22 = vld [vmem:[%s7869_s7 + $0x3d8] sm:$0xff]   ;;  %v2428_v56 = vrot.slane %v7013_v49, 4  ;;  %v2429_v57 = vrot.slane %v6755_v39, 4  ;;  %v2440_v7 = vrot.slane %v7099_v31, 4 }
  0xe0   : > { %v2112_v8 = vsel %vm1271_vm1, %v2103_v62, %v2111_v0  ;;  %v6110_v52 = vld [vmem:[%s7869_s7 + $0x110] sm:$0xff]   ;;  %v7033_v59 = vld [vmem:[#allocation2 + $0x88] sm:$0xf0]  ;;  %v6114_v62 = vld [vmem:[%s7869_s7 + $0x118] sm:$0xff]  }
  0xe1   : > { %2317 = vmatmul.mubr.bf16.gmra.mrb[36].mxu0 %v6787_v24  ;;  %v2437_v0 = vrot.slane %v7033_v59, 4  ;;  %v6117_v1 = vld [vmem:[%s7869_s7 + $0x160] sm:$0xff]   ;;  %v6112_v39 = vld [vmem:[%s7869_s7 + $0x398] sm:$0xff]   ;;  %v6168_v17 = vld [vmem:[#allocation2 + $0x90] sm:$0xf] }
  0xe2   : > { %2324 = vmatprep.mubr.bf16.mxu0 %v1834_v46  ;;  %v6115_v2 = vld [vmem:[%s7869_s7 + $0x3e0] sm:$0xff]   ;;  %v2435_v19 = vrot.slane %v6168_v17, 4  ;;  %v6169_v20 = vld [vmem:[#allocation2 + $0xb8] sm:$0xf]  ;;  %v2724_v17 = vrot.slane %v6907_v61, 4  ;;  %v3300_v61 = vshll.u32 %v6958_v9, 16 }
  0xe3   : > { %2039 = vmatmul.mubr.bf16.gmra.mrb[36].mxu1 %v6740_v12  ;;  %v2094_v12 = vor.u32 %v2093_v4, %v2090_v3  ;;  %v7057_v3 = vsel %vm2409_vm3, %v2428_v56, %v2429_v57  ;;  %v6118_v4 = vld [vmem:[%s7869_s7 + $0x120] sm:$0xff]   ;;  %v6171_v21 = vld [vmem:[#allocation2 + $0xd8] sm:$0xf]  ;;  %v6172_v56 = vld [vmem:[#allocation2 + $0xd0] sm:$0xf] }
  0xe4   : > { %2046 = vmatprep.mubr.bf16.mxu1 %v6776_v10  ;;  %v2420_v10 = vrot.slane %v6163_v16, 4  ;;  %v6119_v16 = vld [vmem:[%s7869_s7 + $0x3e8] sm:$0xff]   ;;  %v2447_v57 = vrot.slane %v6172_v56, 4 }
  0xe5   : > { %v2095_v23 = vsel %vm1271_vm1, %v2086_v13, %v2094_v12  ;;  %v6121_v13 = vld [vmem:[%s7869_s7 + $0x168] sm:$0xff]  }
  0xe6   : > { %v2421_v41 = vsel %vm2409_vm3, %v2419_v14, %v2420_v10  ;;  %v7070_v12 = vld [vmem:[#allocation2 + $0xa8] sm:$0xf0]  ;;  %v6116_v14 = vld [vmem:[%s7869_s7 + $0x3a0] sm:$0xff]  }
  0xe9   : > { %2325 = vmatmul.mubr.bf16.gmra.mrb[40].mxu0 %v1817_v5 }
  0xea   : > { %2332 = vmatprep.mubr.bf16.mxu0 %v2112_v8  ;;  %v7065_v8 = vld [vmem:[#allocation2 + $0x80] sm:$0xf0] }
  0xeb   : > { %2047 = vmatmul.mubr.bf16.gmra.mrb[40].mxu1 %v6787_v24  ;;  %v2416_v24 = vrot.slane %v6967_v47, 4  ;;  %v2434_v10 = vrot.slane %v7065_v8, 4 }
  0xec   : > { %2054 = vmatprep.mubr.bf16.mxu1 %v1834_v46  ;;  %v2431_v46 = vrot.slane %v6995_v6, 4 }
  0xed   : > { %v2418_v33 = vsel %vm2409_vm3, %v2416_v24, %v2417_v29  ;;  %v6125_v24 = vld [vmem:[%s7869_s7 + $0x170] sm:$0xff]   ;;  %v7097_v30 = vsel %vm2409_vm3, %v2434_v10, %v2435_v19  ;;  %v2721_v19 = vrot.slane %v6927_v15, 4  ;;  %v7177_v15 = vld [vmem:[#allocation2 + $0x100] sm:$0xf0] }
  0xee   : > { %v7028_v53 = vsel %vm2409_vm3, %v2431_v46, %v2432_v44  ;;  %v6123_v29 = vld [vmem:[%s7869_s7 + $0x3f0] sm:$0xff]   ;;  %v2449_v44 = vrot.slane %v7107_v42, 4  ;;  %v6133_v46 = vld [vmem:[%s7869_s7 + $0x440] sm:$0xff]  }
  0xf1   : > { %2333 = vmatmul.mubr.bf16.gmra.mrb[44].mxu0 %v2095_v23  ;;  %v2444_v23 = vrot.slane %v6169_v20, 4  ;;  %v3225_v20 = vld [vmem:[#allocation2 + $0x18] sm:$0x1f] }
  0xf2   : > { %2889 = vmatprep.mubr.bf16.mxu0 %v2421_v41 }
  0xf3   : > { %2055 = vmatmul.mubr.bf16.gmra.mrb[44].mxu1 %v1817_v5  ;;  %v7063_v5 = vsel %vm2409_vm3, %v2437_v0, %v2438_v60  ;;  %v6173_v60 = vld [vmem:[#allocation2 + $0xf8] sm:$0xf]  ;;  %v3263_v0 = vshrl.u32 %v6960_v11, 16 }
  0xf4   : > { %2635 = vmatprep.mubr.bf16.mxu1 %v2415_v27  ;;  %v2443_v27 = vrot.slane %v7070_v12, 4 }
  0xf6   : > { %v7105_v32 = vsel %vm2409_vm3, %v2443_v27, %v2444_v23  ;;  %v3249_v27 = vshll.u32 %v6972_v28, 16 }
  0xf9   : > { %2890 = vmatmul.mubr.bf16.vlgmr.msra.gmra.mrb[48].mxu0 %v2418_v33 }
  0xfa   : > { %5690 = vmatpush3.bf16.msra.mxu0 %v6102_v34  ;;  %2897 = vmatprep.mubr.bf16.mxu0 %v6986_v36  ;;  %v6124_v34 = vld [vmem:[%s7869_s7 + $0x3b0] sm:$0xff]  }
  0xfb   : > { %2636 = vmatmul.mubr.bf16.vlgmr.msra.gmra.mrb[48].mxu1 %v2412_v40  ;;  %5691 = vmatprep.subr.bf16.mxu0 %v6105_v38  ;;  %v6170_v38 = vld [vmem:[#allocation2 + $0xb0] sm:$0xf] }
  0xfc   : > { %5626 = vmatpush3.bf16.msra.mxu1 %v6100_v35  ;;  %2643 = vmatprep.mubr.bf16.mxu1 %v2421_v41  ;;  %v6122_v41 = vld [vmem:[%s7869_s7 + $0x128] sm:$0xff]   ;;  %v6127_v35 = vld [vmem:[%s7869_s7 + $0x3f8] sm:$0xff]   ;;  %v2441_v40 = vrot.slane %v6170_v38, 4 }
  0xfd   : > { %5627 = vmatprep.subr.bf16.mxu1 %v6103_v43  ;;  %v6130_v43 = vld [vmem:[%s7869_s7 + $0x138] sm:$0xff]  }
  0xfe   : > { %5692 = vmatpush3.bf16.msra.mxu0 %v6106_v45  ;;  %v2450_v45 = vrot.slane %v6171_v21, 4  ;;  %v3227_v38 = vld [vmem:[#allocation2 + $0x38] sm:$0x1f] }
  0xff   : > { %5693 = vmatprep.subr.bf16.mxu0 %v6109_v48  ;;  %v6128_v48 = vld [vmem:[%s7869_s7 + $0x3b8] sm:$0xff]   ;;  %v3308_v56 = vshll.u32 %v3227_v38, 16 }
 0x100   : > { %5628 = vmatpush3.bf16.msra.mxu1 %v6104_v18  ;;  %v6131_v18 = vld [vmem:[%s7869_s7 + $0x2c0] sm:$0xff]  }
 0x101   : > { %2898 = vmatmul.mubr.bf16.gmra.mrb[52].mxu0 %v7019_v51  ;;  %5629 = vmatprep.subr.bf16.mxu1 %v6107_v50  ;;  %v7137_v50 = vsel %vm2409_vm3, %v2440_v7, %v2441_v40  ;;  %v3251_v7 = vrot.slane %v3249_v27, 5 }
 0x102   : > { %2905 = vmatprep.mubr.bf16.mxu0 %v7028_v53  ;;  %5694 = vmatpush3.bf16.msra.mxu0 %v6110_v52  ;;  %v7142_v52 = vld [vmem:[#allocation2 + $0xc0] sm:$0xf0] }
 0x103   : > { %2644 = vmatmul.mubr.bf16.gmra.mrb[52].mxu1 %v2418_v33  ;;  %5695 = vmatprep.subr.bf16.mxu0 %v6113_v54  ;;  %v6129_v33 = vld [vmem:[%s7869_s7 + $0x178] sm:$0xff]   ;;  %v7144_v54 = vld [vmem:[#allocation2 + $0xe8] sm:$0xf0] }
 0x104   : > { %2651 = vmatprep.mubr.bf16.mxu1 %v6986_v36  ;;  %5630 = vmatpush3.bf16.msra.mxu1 %v6108_v63  ;;  %v7140_v63 = vsel %vm2409_vm3, %v2449_v44, %v2450_v45  ;;  %v2455_v58 = vrot.slane %v7144_v54, 4  ;;  %v2720_v45 = vrot.slane %v7177_v15, 4 }
 0x105   : > { %5631 = vmatprep.subr.bf16.mxu1 %v6111_v22  ;;  %v2446_v22 = vrot.slane %v7142_v52, 4 }
 0x106   : > { %5696 = vmatpush3.bf16.msra.mxu0 %v6114_v62  ;;  %v2456_v62 = vrot.slane %v6173_v60, 4  ;;  %v3226_v60 = vld [vmem:[#allocation2 + $0x30] sm:$0x1f]  ;;  %v7196_v27 = vsel %vm2409_vm3, %v2720_v45, %v2721_v19  ;;  %v3314_v45 = vshrl.u32 %v6988_v37, 16 }
 0x107   : > { %5697 = vmatprep.subr.bf16.mxu0 %v6117_v1  ;;  %v3266_v1 = vshll.u32 %v6960_v11, 16  ;;  %v3265_v11 = vrot.slane %v3263_v0, 4 }
 0x108   : > { %5632 = vmatpush3.bf16.msra.mxu1 %v6112_v39  ;;  %v3246_v39 = vshrl.u32 %v6972_v28, 16 }
 0x109   : > { %2906 = vmatmul.mubr.bf16.gmra.mrb[56].mxu0 %v7057_v3  ;;  %5633 = vmatprep.subr.bf16.mxu1 %v6115_v2  ;;  %v7156_v2 = vsel %vm2409_vm3, %v2446_v22, %v2447_v57  ;;  %v3268_v23 = vrot.slane %v3266_v1, 5  ;;  %v3305_v22 = vshrl.u32 %v3227_v38, 16  ;;  %v3331_v57 = vshrl.u32 %v6969_v25, 16 }
 0x10a   : > { %2913 = vmatprep.mubr.bf16.mxu0 %v7063_v5  ;;  %5698 = vmatpush3.bf16.msra.mxu0 %v6118_v4  ;;  %v7159_v4 = vsel %vm2409_vm3, %v2455_v58, %v2456_v62  ;;  %v3334_v58 = vshll.u32 %v6969_v25, 16 }
 0x10b   : > { %2652 = vmatmul.mubr.bf16.gmra.mrb[56].mxu1 %v7019_v51  ;;  %5699 = vmatprep.subr.bf16.mxu0 %v6121_v13  ;;  %v7161_v13 = vld [vmem:[#allocation2 + $0xe0] sm:$0xf0]  ;;  %v3269_v62 = vor.u32 %v3268_v23, %v3265_v11 }
 0x10c   : > { %2659 = vmatprep.mubr.bf16.mxu1 %v7028_v53  ;;  %5634 = vmatpush3.bf16.msra.mxu1 %v6116_v14  ;;  %v7163_v14 = vld [vmem:[#allocation2 + $0x108] sm:$0xf0] }
 0x10d   : > { %5635 = vmatprep.subr.bf16.mxu1 %v6119_v16  ;;  %v6174_v16 = vld [vmem:[#allocation2 + $0xf0] sm:$0xf] }
 0x10e   : > { %5700 = vmatpush3.bf16.msra.mxu0 %v6122_v41  ;;  %v2453_v10 = vrot.slane %v6174_v16, 4  ;;  %v7168_v41 = vrot.slane %v3246_v39, 4  ;;  %v3310_v16 = vrot.slane %v3308_v56, 5  ;;  %v3241_v56 = vld [vmem:[#allocation2 + $0x118] sm:$0x1f] }
 0x10f   : > { %5701 = vmatprep.subr.bf16.mxu0 %v6125_v24  ;;  %v2452_v24 = vrot.slane %v7161_v13, 4 }
 0x110   : > { %5636 = vmatpush3.bf16.msra.mxu1 %v6120_v26  ;;  %v2723_v26 = vrot.slane %v7163_v14, 4  ;;  %v3252_v25 = vor.u32 %v3251_v7, %v7168_v41  ;;  %v3228_v41 = vld [vmem:[#allocation2 + $0x50] sm:$0x1f] }
 0x111   : > { %2914 = vmatmul.mubr.bf16.gmra.mrb[60].mxu0 %v7097_v30  ;;  %5637 = vmatprep.subr.bf16.mxu1 %v6123_v29  ;;  %v3297_v29 = vshrl.u32 %v6958_v9, 16  ;;  %v7181_v28 = vsel %vm2409_vm3, %v2452_v24, %v2453_v10  ;;  %v3288_v10 = vshrl.u32 %v3226_v60, 16 }
 0x112   : > { %2921 = vmatprep.mubr.bf16.mxu0 %v7105_v32  ;;  %5702 = vmatpush3.bf16.msra.mxu0 %v6126_v55  ;;  %v3271_v55 = vshrl.u32 %v3225_v20, 16 }
 0x113   : > { %2660 = vmatmul.mubr.bf16.gmra.mrb[60].mxu1 %v7057_v3  ;;  %5703 = vmatprep.subr.bf16.mxu0 %v6129_v33  ;;  %v3274_v33 = vshll.u32 %v3225_v20, 16  ;;  %v3299_v40 = vrot.slane %v3297_v29, 4  ;;  %v3229_v20 = vld [vmem:[#allocation2 + $0x58] sm:$0x1f]  ;;  %v7204_v29 = vrot.slane %v3331_v57, 4  ;;  %v7209_v19 = vrot.slane %v3288_v10, 4 }
 0x114   : > { %2667 = vmatprep.mubr.bf16.mxu1 %v7063_v5  ;;  %5638 = vmatpush3.bf16.msra.mxu1 %v6124_v34  ;;  %v3224_v34 = vld [vmem:[#allocation2 + $0x10] sm:$0x1f]  ;;  %v3342_v7 = vshll.u32 %v3229_v20, 16  ;;  %v3793_v57 = vshrl.u32 %v7163_v14, 16  ;;  %v3779_v10 = vshll.u32 %v7177_v15, 16 }
 0x115   : > { %5639 = vmatprep.subr.bf16.mxu1 %v6127_v35  ;;  %v7184_v35 = vsel %vm2409_vm3, %v2723_v26, %v2724_v17  ;;  %v3276_v9 = vrot.slane %v3274_v33, 5  ;;  %v3254_v44 = vshrl.u32 %v3224_v34, 16  ;;  %v3257_v21 = vshll.u32 %v3224_v34, 16 }
 0x116   : > { %5704 = vmatpush3.bf16.msra.mxu0 %v6130_v43  ;;  %v3273_v43 = vrot.slane %v3271_v55, 4  ;;  %v3291_v17 = vshll.u32 %v3226_v60, 16  ;;  %v3339_v55 = vshrl.u32 %v3229_v20, 16  ;;  %v3801_v60 = vshrl.u32 %v3241_v56, 16  ;;  %v3231_v20 = vld [vmem:[#allocation2 + $0x78] sm:$0x1f] }
 0x117   : > { %5817 = vmatprep.subr.bf16.mxu0 %v6133_v46  ;;  %v3302_v46 = vrot.slane %v3300_v61, 5  ;;  %v3256_v1 = vrot.slane %v3254_v44, 4  ;;  %v3259_v39 = vrot.slane %v3257_v21, 5  ;;  %v7206_v61 = vrot.slane %v3334_v58, 5 }
 0x118   : > { %5640 = vmatpush3.bf16.msra.mxu1 %v6128_v48  ;;  %v3280_v48 = vshrl.u32 %v6967_v47, 16  ;;  %v3277_v0 = vor.u32 %v3276_v9, %v3273_v43  ;;  %v7211_v38 = vrot.slane %v3291_v17, 5  ;;  %v3341_v21 = vrot.slane %v3339_v55, 4 }
 0x119   : > { %2922 = vmatmul.mubr.bf16.gmra.mrb[64].mxu0 %v7137_v50  ;;  %5753 = vmatprep.subr.bf16.mxu1 %v6131_v18  ;;  %v3283_v18 = vshll.u32 %v6967_v47, 16  ;;  %v3307_v47 = vrot.slane %v3305_v22, 4  ;;  %v3260_v23 = vor.u32 %v3259_v39, %v3256_v1  ;;  %v3303_v33 = vor.u32 %v3302_v46, %v3299_v40  ;;  %v6134_v40 = vld [vmem:[%s7869_s7 + $0x400] sm:$0xff]   ;;  %v6137_v39 = vld [vmem:[%s7869_s7 + $0x448] sm:$0xff]  }
 0x11a   : > { %2929 = vmatprep.mubr.bf16.mxu0 %v7140_v63  ;;  %v7199_v24 = vrot.slane %v3280_v48, 4  ;;  %v3278_v11 = vsel %vm3244_vm4, %v3269_v62, %v3277_v0  ;;  %v3337_v44 = vor.u32 %v7206_v61, %v7204_v29  ;;  %v3317_v46 = vshll.u32 %v6988_v37, 16  ;;  %v3240_v0 = vld [vmem:[#allocation2 + $0x110] sm:$0x1f]  ;;  %v6132_v37 = vld [vmem:[%s7869_s7 + $0x280] sm:$0xff]  }
 0x11b   : > { %2668 = vmatmul.mubr.bf16.gmra.mrb[64].mxu1 %v7097_v30  ;;  %v7201_v26 = vrot.slane %v3283_v18, 5  ;;  %v3311_v34 = vor.u32 %v3310_v16, %v3307_v47  ;;  %v3261_v43 = vsel %vm3244_vm4, %v3252_v25, %v3260_v23  ;;  %v3322_v48 = vshrl.u32 %v3228_v41, 16 }
 0x11c   : > { %2675 = vmatprep.mubr.bf16.mxu1 %v7105_v32  ;;  %v3294_v22 = vor.u32 %v7211_v38, %v7209_v19  ;;  %v3344_v58 = vrot.slane %v3342_v7, 5  ;;  %v3804_v62 = vshll.u32 %v3241_v56, 16  ;;  %v3776_v1 = vshrl.u32 %v7177_v15, 16  ;;  %v6138_v15 = vld [vmem:[%s7869_s7 + $0x408] sm:$0xff]  }
 0x11d   : > { %v3286_v9 = vor.u32 %v7201_v26, %v7199_v24  ;;  %v7226_v18 = vsel %vm3244_vm4, %v3303_v33, %v3311_v34  ;;  %v3795_v47 = vrot.slane %v3793_v57, 4  ;;  %v3784_v17 = vshrl.u32 %v3240_v0, 16 }
 0x11e   : > { %v3803_v25 = vrot.slane %v3801_v60, 4  ;;  %v3806_v24 = vrot.slane %v3804_v62, 5  ;;  %v3778_v26 = vrot.slane %v3776_v1, 4  ;;  %v3781_v29 = vrot.slane %v3779_v10, 5  ;;  %v6139_v60 = vld [vmem:[%s7869_s7 + $0x2d0] sm:$0xff]  }
 0x11f   : > { %v3786_v61 = vrot.slane %v3784_v17, 4  ;;  %v3787_v55 = vshll.u32 %v3240_v0, 16  ;;  %v3345_v33 = vor.u32 %v3344_v58, %v3341_v21  ;;  %v3365_v34 = vshrl.u32 %v6995_v6, 16  ;;  %v6136_v21 = vld [vmem:[%s7869_s7 + $0x288] sm:$0xff]   ;;  %v3230_v1 = vld [vmem:[#allocation2 + $0x70] sm:$0x1f] }
 0x120   : > { %v3368_v19 = vshll.u32 %v6995_v6, 16  ;;  %v3807_v38 = vor.u32 %v3806_v24, %v3803_v25  ;;  %v3373_v7 = vshrl.u32 %v3231_v20, 16  ;;  %v3316_v6 = vrot.slane %v3314_v45, 4  ;;  %v6142_v45 = vld [vmem:[%s7869_s7 + $0x410] sm:$0xff]   ;;  %v6143_v24 = vld [vmem:[%s7869_s7 + $0x2d8] sm:$0xff]  }
 0x121   : > { %2930 = vmatmul.mubr.bf16.gmra.mrb[68].mxu0 %v7156_v2  ;;  %v3789_v56 = vrot.slane %v3787_v55, 5  ;;  %v3319_v57 = vrot.slane %v3317_v46, 5  ;;  %v7264_v0 = vsel %vm3244_vm4, %v3286_v9, %v3294_v22  ;;  %v3367_v46 = vrot.slane %v3365_v34, 4  ;;  %v3233_v9 = vld [vmem:[#allocation2 + $0x98] sm:$0x1f] }
 0x122   : > { %2937 = vmatprep.mubr.bf16.mxu0 %v7159_v4  ;;  %v3348_v10 = vshrl.u32 %v7013_v49, 16  ;;  %v3359_v25 = vshll.u32 %v3230_v1, 16  ;;  %v6144_v34 = vld [vmem:[%s7869_s7 + $0x298] sm:$0xff]  }
 0x123   : > { %2676 = vmatmul.mubr.bf16.gmra.mrb[68].mxu1 %v7137_v50  ;;  %v3790_v62 = vor.u32 %v3789_v56, %v3786_v61  ;;  %v3410_v61 = vshll.u32 %v3233_v9, 16 }
 0x124   : > { %2683 = vmatprep.mubr.bf16.mxu1 %v7140_v63 }
 0x125   : > { %v3412_v56 = vrot.slane %v3410_v61, 5  ;;  %v6155_v61 = vld [vmem:[%s7869_s7 + $0x2f0] sm:$0xff]  }
 0x129   : > { %2938 = vmatmul.mubr.bf16.gmra.mrb[72].mxu0 %v7181_v28 }
 0x12a   : > { %2945 = vmatprep.mubr.bf16.mxu0 %v7184_v35 }
 0x12b   : > { %2684 = vmatmul.mubr.bf16.gmra.mrb[72].mxu1 %v7156_v2 }
 0x12c   : > { %2691 = vmatprep.mubr.bf16.mxu1 %v7159_v4 }
 0x131   : > { %2946 = vmatmul.mubr.bf16.gmra.mrb[76].mxu0 %v7196_v27 }
 0x132   : > { %3694 = vmatprep.mubr.bf16.mxu0 %v3278_v11  ;;  %v6135_v11 = vld [vmem:[%s7869_s7 + $0x2c8] sm:$0xff]  }
 0x133   : > { %2692 = vmatmul.mubr.bf16.gmra.mrb[76].mxu1 %v7181_v28 }
 0x134   : > { %3143 = vmatprep.mubr.bf16.mxu1 %v6986_v36  ;;  %v3796_v36 = vshll.u32 %v7163_v14, 16  ;;  %v3325_v14 = vshll.u32 %v3228_v41, 16  ;;  %v6141_v41 = vld [vmem:[%s7869_s7 + $0x450] sm:$0xff]  }
 0x136   : > { %v3798_v16 = vrot.slane %v3796_v36, 5  ;;  %v3324_v36 = vrot.slane %v3322_v48, 4  ;;  %v3327_v58 = vrot.slane %v3325_v14, 5  ;;  %v3370_v48 = vrot.slane %v3368_v19, 5 }
 0x137   : > { %v3351_v14 = vshll.u32 %v7013_v49, 16 }
 0x138   : > { %v3799_v23 = vor.u32 %v3798_v16, %v3795_v47  ;;  %v6145_v47 = vld [vmem:[%s7869_s7 + $0x458] sm:$0xff]   ;;  %v6140_v16 = vld [vmem:[%s7869_s7 + $0x290] sm:$0xff]   ;;  %v3328_v17 = vor.u32 %v3327_v58, %v3324_v36  ;;  %v3371_v49 = vor.u32 %v3370_v48, %v3367_v46  ;;  %v3382_v36 = vshrl.u32 %v7065_v8, 16  ;;  %v6151_v48 = vld [vmem:[%s7869_s7 + $0x2e8] sm:$0xff]  }
 0x139   : > { %3695 = vmatmul.mubr.bf16.vlgmr.msra.gmra.mrb[80].mxu0 %v3261_v43  ;;  %v3376_v43 = vshll.u32 %v3231_v20, 16  ;;  %v3356_v20 = vshrl.u32 %v3230_v1, 16  ;;  %v3353_v19 = vrot.slane %v3351_v14, 5  ;;  %v3385_v58 = vshll.u32 %v7065_v8, 16 }
 0x13a   : > { %5818 = vmatpush3.bf16.msra.mxu0 %v6134_v40  ;;  %3702 = vmatprep.mubr.bf16.mxu0 %v7226_v18  ;;  %v3782_v40 = vor.u32 %v3781_v29, %v3778_v26  ;;  %v6146_v26 = vld [vmem:[%s7869_s7 + $0x418] sm:$0xff]   ;;  %v3407_v29 = vshrl.u32 %v3233_v9, 16  ;;  %v3433_v9 = vshrl.u32 %v7070_v12, 16 }
 0x13b   : > { %3144 = vmatmul.mubr.bf16.vlgmr.msra.gmra.mrb[80].mxu1 %v7019_v51  ;;  %5819 = vmatprep.subr.bf16.mxu0 %v6137_v39  ;;  %v7258_v51 = vsel %vm3244_vm4, %v3799_v23, %v3807_v38  ;;  %v3378_v39 = vrot.slane %v3376_v43, 5  ;;  %v3402_v23 = vshll.u32 %v7033_v59, 16  ;;  %v3361_v38 = vrot.slane %v3359_v25, 5 }
 0x13c   : > { %5754 = vmatpush3.bf16.msra.mxu1 %v6132_v37  ;;  %3151 = vmatprep.mubr.bf16.mxu1 %v7028_v53  ;;  %v7267_v53 = vsel %vm3244_vm4, %v3337_v44, %v3345_v33  ;;  %v3375_v37 = vrot.slane %v3373_v7, 4  ;;  %v7276_v22 = vsel %vm3244_vm4, %v3782_v40, %v3790_v62  ;;  %v3320_v44 = vor.u32 %v3319_v57, %v3316_v6  ;;  %v6147_v7 = vld [vmem:[%s7869_s7 + $0x2e0] sm:$0xff]   ;;  %v6153_v57 = vld [vmem:[%s7869_s7 + $0x468] sm:$0xff]   ;;  %v3235_v62 = vld [vmem:[#allocation2 + $0xb8] sm:$0x1f] }
 0x13d   : > { %5755 = vmatprep.subr.bf16.mxu1 %v6135_v11  ;;  %v3399_v11 = vshrl.u32 %v7033_v59, 16  ;;  %v3350_v33 = vrot.slane %v3348_v10, 4  ;;  %v3404_v43 = vrot.slane %v3402_v23, 5  ;;  %v3409_v40 = vrot.slane %v3407_v29, 4 }
 0x13e   : > { %5820 = vmatpush3.bf16.msra.mxu0 %v6138_v15  ;;  %v3379_v55 = vor.u32 %v3378_v39, %v3375_v37  ;;  %v6149_v15 = vld [vmem:[%s7869_s7 + $0x460] sm:$0xff]   ;;  %v7302_v59 = vsel %vm3244_vm4, %v3320_v44, %v3328_v17  ;;  %v6154_v44 = vld [vmem:[%s7869_s7 + $0x428] sm:$0xff]   ;;  %v3436_v10 = vshll.u32 %v7070_v12, 16  ;;  %v3441_v17 = vshrl.u32 %v3235_v62, 16 }
 0x13f   : > { %5821 = vmatprep.subr.bf16.mxu0 %v6141_v41  ;;  %v3232_v41 = vld [vmem:[#allocation2 + $0x90] sm:$0x1f]  ;;  %v3444_v14 = vshll.u32 %v3235_v62, 16  ;;  %v3470_v62 = vshll.u32 %v7107_v42, 16 }
 0x140   : > { %5756 = vmatpush3.bf16.msra.mxu1 %v6136_v21  ;;  %v6150_v21 = vld [vmem:[%s7869_s7 + $0x420] sm:$0xff]   ;;  %v7311_v6 = vsel %vm3244_vm4, %v3371_v49, %v3379_v55  ;;  %v3390_v46 = vshrl.u32 %v3232_v41, 16  ;;  %v3393_v1 = vshll.u32 %v3232_v41, 16  ;;  %v6161_v41 = vld [vmem:[%s7869_s7 + $0x478] sm:$0xff]  }
 0x141   : > { %3703 = vmatmul.mubr.bf16.gmra.mrb[84].mxu0 %v7264_v0  ;;  %5757 = vmatprep.subr.bf16.mxu1 %v6139_v60  ;;  %v6148_v60 = vld [vmem:[%s7869_s7 + $0x2a0] sm:$0xff]  }
 0x142   : > { %3710 = vmatprep.mubr.bf16.mxu0 %v7267_v53  ;;  %5822 = vmatpush3.bf16.msra.mxu0 %v6142_v45  ;;  %v3354_v45 = vor.u32 %v3353_v19, %v3350_v33  ;;  %v3392_v23 = vrot.slane %v3390_v46, 4  ;;  %v3395_v29 = vrot.slane %v3393_v1, 5  ;;  %v6158_v33 = vld [vmem:[%s7869_s7 + $0x430] sm:$0xff]   ;;  %v3438_v19 = vrot.slane %v3436_v10, 5  ;;  %v6162_v46 = vld [vmem:[%s7869_s7 + $0x438] sm:$0xff]  }
 0x143   : > { %3152 = vmatmul.mubr.bf16.gmra.mrb[84].mxu1 %v7057_v3  ;;  %5823 = vmatprep.subr.bf16.mxu0 %v6145_v47  ;;  %v3358_v3 = vrot.slane %v3356_v20, 4  ;;  %v3413_v47 = vor.u32 %v3412_v56, %v3409_v40  ;;  %v6157_v20 = vld [vmem:[%s7869_s7 + $0x470] sm:$0xff]   ;;  %v3416_v56 = vshrl.u32 %v7099_v31, 16 }
 0x144   : > { %3159 = vmatprep.mubr.bf16.mxu1 %v7063_v5  ;;  %5758 = vmatpush3.bf16.msra.mxu1 %v6140_v16  ;;  %v3401_v5 = vrot.slane %v3399_v11, 4  ;;  %v3387_v11 = vrot.slane %v3385_v58, 5  ;;  %v3396_v40 = vor.u32 %v3395_v29, %v3392_v23  ;;  %v3450_v23 = vshrl.u32 %v7142_v52, 16 }
 0x145   : > { %5759 = vmatprep.subr.bf16.mxu1 %v6143_v24  ;;  %v3362_v39 = vor.u32 %v3361_v38, %v3358_v3  ;;  %v3443_v3 = vrot.slane %v3441_v17, 4  ;;  %v3446_v38 = vrot.slane %v3444_v14, 5  ;;  %v3453_v29 = vshll.u32 %v7142_v52, 16 }
 0x146   : > { %5824 = vmatpush3.bf16.msra.mxu0 %v6146_v26  ;;  %v3405_v8 = vor.u32 %v3404_v43, %v3401_v5  ;;  %v3384_v26 = vrot.slane %v3382_v36, 4  ;;  %v3237_v5 = vld [vmem:[#allocation2 + $0xd8] sm:$0x1f]  ;;  %v6156_v43 = vld [vmem:[%s7869_s7 + $0x2b0] sm:$0xff]  }
 0x147   : > { %5825 = vmatprep.subr.bf16.mxu0 %v6149_v15  ;;  %v7347_v55 = vsel %vm3244_vm4, %v3354_v45, %v3362_v39  ;;  %v3234_v15 = vld [vmem:[#allocation2 + $0xb0] sm:$0x1f]  ;;  %v6159_v36 = vld [vmem:[%s7869_s7 + $0x2f8] sm:$0xff]   ;;  %v3447_v1 = vor.u32 %v3446_v38, %v3443_v3  ;;  %v3501_v3 = vshrl.u32 %v7144_v54, 16 }
 0x148   : > { %5760 = vmatpush3.bf16.msra.mxu1 %v6144_v34  ;;  %v3435_v34 = vrot.slane %v3433_v9, 4  ;;  %v3427_v58 = vshll.u32 %v3234_v15, 16 }
 0x149   : > { %3711 = vmatmul.mubr.bf16.gmra.mrb[88].mxu0 %v7302_v59  ;;  %5761 = vmatprep.subr.bf16.mxu1 %v6147_v7  ;;  %v3388_v7 = vor.u32 %v3387_v11, %v3384_v26 }
 0x14a   : > { %3718 = vmatprep.mubr.bf16.mxu0 %v7311_v6  ;;  %5826 = vmatpush3.bf16.msra.mxu0 %v6150_v21  ;;  %v3419_v21 = vshll.u32 %v7099_v31, 16  ;;  %v3439_v31 = vor.u32 %v3438_v19, %v3435_v34  ;;  %v3429_v17 = vrot.slane %v3427_v58, 5 }
 0x14b   : > { %3160 = vmatmul.mubr.bf16.gmra.mrb[88].mxu1 %v7097_v30  ;;  %5827 = vmatprep.subr.bf16.mxu0 %v6153_v57  ;;  %v6152_v30 = vld [vmem:[%s7869_s7 + $0x2a8] sm:$0xff]   ;;  %v3424_v57 = vshrl.u32 %v3234_v15, 16  ;;  %v7381_v9 = vsel %vm3244_vm4, %v3388_v7, %v3396_v40  ;;  %v3504_v7 = vshll.u32 %v7144_v54, 16 }
 0x14c   : > { %3167 = vmatprep.mubr.bf16.mxu1 %v7105_v32  ;;  %5762 = vmatpush3.bf16.msra.mxu1 %v6148_v60  ;;  %v7350_v32 = vsel %vm3244_vm4, %v3405_v8, %v3413_v47  ;;  %v3467_v60 = vshrl.u32 %v7107_v42, 16  ;;  %v6160_v47 = vld [vmem:[%s7869_s7 + $0x2b8] sm:$0xff]   ;;  %v7386_v26 = vsel %vm3244_vm4, %v3439_v31, %v3447_v1 }
 0x14d   : > { %5763 = vmatprep.subr.bf16.mxu1 %v6151_v48  ;;  %v3475_v48 = vshrl.u32 %v3237_v5, 16 }
 0x14e   : > { %5828 = vmatpush3.bf16.msra.mxu0 %v6154_v44  ;;  %v3421_v44 = vrot.slane %v3419_v21, 5  ;;  %v3469_v14 = vrot.slane %v3467_v60, 4 }
 0x14f   : > { %5829 = vmatprep.subr.bf16.mxu0 %v6157_v20  ;;  %v3472_v20 = vrot.slane %v3470_v62, 5  ;;  %v3477_v11 = vrot.slane %v3475_v48, 4  ;;  %v3506_v48 = vrot.slane %v3504_v7, 5  ;;  %v6176_v7 = vld [vmem:[#allocation2 + $0x130] sm:$0xf] }
 0x150   : > { %5764 = vmatpush3.bf16.msra.mxu1 %v6152_v30 }
 0x151   : > { %3719 = vmatmul.mubr.bf16.gmra.mrb[92].mxu0 %v7347_v55  ;;  %5765 = vmatprep.subr.bf16.mxu1 %v6155_v61  ;;  %v3473_v19 = vor.u32 %v3472_v20, %v3469_v14  ;;  %v3487_v14 = vshll.u32 %v7161_v13, 16 }
 0x152   : > { %3726 = vmatprep.mubr.bf16.mxu0 %v7350_v32  ;;  %5830 = vmatpush3.bf16.msra.mxu0 %v6158_v33 }
 0x153   : > { %3168 = vmatmul.mubr.bf16.gmra.mrb[92].mxu1 %v7137_v50  ;;  %5831 = vmatprep.subr.bf16.mxu0 %v6161_v41  ;;  %v3418_v50 = vrot.slane %v3416_v56, 4 }
 0x154   : > { %3175 = vmatprep.mubr.bf16.mxu1 %v7140_v63  ;;  %5766 = vmatpush3.bf16.msra.mxu1 %v6156_v43  ;;  %v3236_v63 = vld [vmem:[#allocation2 + $0xd0] sm:$0x1f] }
 0x155   : > { %5767 = vmatprep.subr.bf16.mxu1 %v6159_v36  ;;  %v3458_v61 = vshrl.u32 %v3236_v63, 16  ;;  %v3461_v15 = vshll.u32 %v3236_v63, 16  ;;  %v3422_v33 = vor.u32 %v3421_v44, %v3418_v50  ;;  %v3455_v36 = vrot.slane %v3453_v29, 5  ;;  %v6175_v29 = vld [vmem:[#allocation2 + $0x138] sm:$0xf] }
 0x156   : > { %5832 = vmatpush3.bf16.msra.mxu0 %v6162_v46  ;;  %v3503_v46 = vrot.slane %v3501_v3, 4  ;;  %v7427_v3 = vld [vmem:[#allocation2 + $0x120] sm:$0xf0] }
 0x157   : > { %v5345_v37 = vpop.f32.mrb[0].mxu1  ;;  %v3460_v58 = vrot.slane %v3458_v61, 4  ;;  %v3463_v60 = vrot.slane %v3461_v15, 5  ;;  %v2978_v61 = vrot.slane %v6175_v29, 4 }
 0x158   : > { %v5346_v16 = vpop.f32.mrb[1].mxu1  ;;  %5768 = vmatpush3.bf16.msra.mxu1 %v6160_v47 }
 0x159   : > { %v7335_v25 = vadd.f32 %v5346_v16, %v5345_v37  ;;  %v5348_v24 = vpop.f32.mrb[2].mxu1  ;;  %v3478_v37 = vshll.u32 %v3237_v5, 16  ;;  %v3426_v16 = vrot.slane %v3424_v57, 4  ;;  %3727 = vmatmul.mubr.bf16.gmra.mrb[96].mxu0 %v7381_v9  ;;  %v3452_v57 = vrot.slane %v3450_v23, 4 }
 0x15a   : > { %v5349_v12 = vpop.f32.mrb[3].mxu1  ;;  %3734 = vmatprep.mubr.bf16.mxu0 %v7386_v26 }
 0x15b   : > { %v7344_v49 = vadd.f32 %v5349_v12, %v5348_v24  ;;  %v3480_v30 = vrot.slane %v3478_v37, 5  ;;  %v3239_v12 = vld [vmem:[#allocation2 + $0xf8] sm:$0x1f]  ;;  %v3430_v34 = vor.u32 %v3429_v17, %v3426_v16  ;;  %3176 = vmatmul.mubr.bf16.gmra.mrb[96].mxu1 %v7156_v2  ;;  %v3456_v44 = vor.u32 %v3455_v36, %v3452_v57 }
 0x15c   : > { %v3509_v5 = vshrl.u32 %v3239_v12, 16  ;;  %v3512_v43 = vshll.u32 %v3239_v12, 16  ;;  %3183 = vmatprep.mubr.bf16.mxu1 %v7159_v4  ;;  %v3464_v16 = vor.u32 %v3463_v60, %v3460_v58  ;;  %v3484_v17 = vshrl.u32 %v7161_v13, 16 }
 0x15d   : > { %v3481_v41 = vor.u32 %v3480_v30, %v3477_v11  ;;  %v7399_v2 = vsel %vm3244_vm4, %v3422_v33, %v3430_v34  ;;  %v3507_v11 = vor.u32 %v3506_v48, %v3503_v46  ;;  %v3489_v33 = vrot.slane %v3487_v14, 5 }
 0x15e   : > { %v3511_v37 = vrot.slane %v3509_v5, 4  ;;  %v7419_v12 = vsel %vm3244_vm4, %v3456_v44, %v3464_v16  ;;  %v3486_v15 = vrot.slane %v3484_v17, 4  ;;  %v2975_v5 = vrot.slane %v6176_v7, 4 }
 0x15f   : > { %v7406_v4 = vsel %vm3244_vm4, %v3473_v19, %v3481_v41  ;;  %v2974_v41 = vrot.slane %v7427_v3, 4 }
 0x160   : > { %v5321_v45 = vpop.f32.mrb[0].mxu0 }
 0x161   : > { %v5322_v39 = vpop.f32.mrb[1].mxu0  ;;  %3735 = vmatmul.mubr.bf16.gmra.mrb[100].mxu0 %v7399_v2 }
 0x162   : > { %v7375_v8 = vadd.f32 %v5322_v39, %v5321_v45  ;;  %v5324_v42 = vpop.f32.mrb[2].mxu0  ;;  %v3514_v39 = vrot.slane %v3512_v43, 5  ;;  %3742 = vmatprep.mubr.bf16.mxu0 %v7406_v4 }
 0x163   : > { %v5325_v10 = vpop.f32.mrb[3].mxu0  ;;  %3184 = vmatmul.mubr.bf16.gmra.mrb[100].mxu1 %v7181_v28 }
 0x164   : > { %v7383_v24 = vadd.f32 %v5325_v10, %v5324_v42  ;;  %v3238_v42 = vld [vmem:[#allocation2 + $0xf0] sm:$0x1f]  ;;  %v7412_v10 = vld [vmem:[#allocation2 + $0x128] sm:$0xf0]  ;;  %v3515_v30 = vor.u32 %v3514_v39, %v3511_v37  ;;  %3191 = vmatprep.mubr.bf16.mxu1 %v7184_v35  ;;  %v3490_v35 = vor.u32 %v3489_v33, %v3486_v15 }
 0x165   : > { %v3492_v20 = vshrl.u32 %v3238_v42, 16  ;;  %v3495_v63 = vshll.u32 %v3238_v42, 16  ;;  %v2977_v23 = vrot.slane %v7412_v10, 4 }
 0x166   : > { %v7423_v13 = vsel %vm3244_vm4, %v3507_v11, %v3515_v30 }
 0x167   : > { %v5351_v52 = vpop.f32.mrb[4].mxu1  ;;  %v3494_v34 = vrot.slane %v3492_v20, 4  ;;  %v3497_v19 = vrot.slane %v3495_v63, 5  ;;  %v2979_v28 = vsel %vm2409_vm3, %v2977_v23, %v2978_v61 }
 0x168   : > { %v5327_v38 = vpop.f32.mrb[4].mxu0  ;;  %v5352_v62 = vpop.f32.mrb[5].mxu1 }
 0x169   : > { %v5328_v40 = vpop.f32.mrb[5].mxu0  ;;  %v7401_v54 = vadd.f32 %v5352_v62, %v5351_v52  ;;  %v5354_v31 = vpop.f32.mrb[6].mxu1  ;;  %3743 = vmatmul.mubr.bf16.gmra.mrb[104].mxu0 %v7419_v12 }
 0x16a   : > { %v7396_v56 = vadd.f32 %v5328_v40, %v5327_v38  ;;  %v5330_v21 = vpop.f32.mrb[6].mxu0  ;;  %v5355_v47 = vpop.f32.mrb[7].mxu1  ;;  %3750 = vmatprep.mubr.bf16.mxu0 %v7423_v13  ;;  %v3498_v38 = vor.u32 %v3497_v19, %v3494_v34  ;;  %v2976_v40 = vsel %vm2409_vm3, %v2974_v41, %v2975_v5 }
 0x16b   : > { %v5331_v45 = vpop.f32.mrb[7].mxu0  ;;  %v7408_v50 = vadd.f32 %v5355_v47, %v5354_v31  ;;  %3192 = vmatmul.mubr.bf16.gmra.mrb[104].mxu1 %v7196_v27 }
 0x16c   : > { %v7403_v1 = vadd.f32 %v5331_v45, %v5330_v21  ;;  %3199 = vmatprep.mubr.bf16.mxu1 %v2979_v28  ;;  %v7433_v43 = vsel %vm3244_vm4, %v3490_v35, %v3498_v38 }
 0x171   : > { %3751 = vmatmul.mubr.bf16.gmra.mrb[108].mxu0 %v7433_v43 }
 0x172   : > { %4250 = vmatprep.mubr.bf16.mxu0 %v7267_v53 }
 0x173   : > { %3200 = vmatmul.mubr.bf16.gmra.mrb[108].mxu1 %v2976_v40 }
 0x174   : > { %3972 = vmatprep.mubr.bf16.mxu1 %v7226_v18 }
 0x176   : > { %v5333_v52 = vpop.f32.mrb[8].mxu0 }
 0x177   : > { %v5334_v21 = vpop.f32.mrb[9].mxu0  ;;  %v5357_v57 = vpop.f32.mrb[8].mxu1 }
 0x178   : > { %v7438_v36 = vadd.f32 %v5334_v21, %v5333_v52  ;;  %v5336_v27 = vpop.f32.mrb[10].mxu0  ;;  %v5358_v58 = vpop.f32.mrb[9].mxu1 }
 0x179   : > { %v5337_v60 = vpop.f32.mrb[11].mxu0  ;;  %v7441_v62 = vadd.f32 %v5358_v58, %v5357_v57  ;;  %v5360_v45 = vpop.f32.mrb[10].mxu1  ;;  %4251 = vmatmul.mubr.bf16.vlgmr.msra.gmra.mrb[112].mxu0 %v7302_v59 }
 0x17a   : > { %v7443_v46 = vadd.f32 %v5337_v60, %v5336_v27  ;;  %v5361_v31 = vpop.f32.mrb[11].mxu1  ;;  %4258 = vmatprep.mubr.bf16.mxu0 %v7311_v6 }
 0x17b   : > { %v7445_v48 = vadd.f32 %v5361_v31, %v5360_v45  ;;  %3973 = vmatmul.mubr.bf16.vlgmr.msra.gmra.mrb[112].mxu1 %v7264_v0  ;;  %v3243_v45 = vld [vmem:[#allocation2 + $0x138] sm:$0x1f] }
 0x17c   : > { %3980 = vmatprep.mubr.bf16.mxu1 %v7267_v53 }
 0x181   : > { %4259 = vmatmul.mubr.bf16.gmra.mrb[116].mxu0 %v7347_v55 }
 0x182   : > { %4266 = vmatprep.mubr.bf16.mxu0 %v7350_v32 }
 0x183   : > { %3981 = vmatmul.mubr.bf16.gmra.mrb[116].mxu1 %v7302_v59 }
 0x184   : > { %v5339_v18 = vpop.f32.mrb[12].mxu0  ;;  %3988 = vmatprep.mubr.bf16.mxu1 %v7311_v6  ;;  %v7470_v6 = vld [vmem:[%s7899_s16] ss:$0 sm:$0xff] }
 0x185   : > { %v5340_v37 = vpop.f32.mrb[13].mxu0  ;;  %v1785_v15 = vadd.f32 %v7375_v8, %v7470_v6  ;;  %v1787_v27 = vadd.f32 %v7396_v56, %v7470_v6  ;;  %v4074_v56 = vshll.u32 %v7412_v10, 16 }
 0x186   : > { %v5363_v39 = vpop.f32.mrb[12].mxu1  ;;  %v7455_v42 = vadd.f32 %v5340_v37, %v5339_v18  ;;  %v5342_v47 = vpop.f32.mrb[14].mxu0 }
 0x187   : > { %v5364_v44 = vpop.f32.mrb[13].mxu1  ;;  %v5343_v16 = vpop.f32.mrb[15].mxu0 }
 0x188   : > { %v7457_v17 = vadd.f32 %v5364_v44, %v5363_v39  ;;  %v5366_v0 = vpop.f32.mrb[14].mxu1  ;;  %v7459_v53 = vadd.f32 %v5343_v16, %v5342_v47  ;;  %v4071_v39 = vshrl.u32 %v7412_v10, 16  ;;  %v4079_v47 = vshrl.u32 %v3243_v45, 16 }
 0x189   : > { %v5367_v14 = vpop.f32.mrb[15].mxu1  ;;  %4267 = vmatmul.mubr.bf16.gmra.mrb[120].mxu0 %v7381_v9  ;;  %v4082_v44 = vshll.u32 %v3243_v45, 16 }
 0x18a   : > { %v7462_v20 = vadd.f32 %v5367_v14, %v5366_v0  ;;  %4274 = vmatprep.mubr.bf16.mxu0 %v7386_v26  ;;  %v4081_v10 = vrot.slane %v4079_v47, 4 }
 0x18b   : > { %3989 = vmatmul.mubr.bf16.gmra.mrb[120].mxu1 %v7347_v55 }
 0x18c   : > { %v5449_v59 = vpop.f32.mrb[16].mxu0  ;;  %3996 = vmatprep.mubr.bf16.mxu1 %v7350_v32  ;;  %v1786_v32 = vadd.f32 %v7383_v24, %v7470_v6 }
 0x18d   : > { %v5450_v63 = vpop.f32.mrb[17].mxu0 }
 0x18e   : > { %v5385_v11 = vpop.f32.mrb[16].mxu1  ;;  %v5451_v30 = vadd.f32 %v5450_v63, %v5449_v59  ;;  %v5452_v23 = vpop.f32.mrb[18].mxu0 }
 0x18f   : > { %v5386_v29 = vpop.f32.mrb[17].mxu1  ;;  %v5453_v61 = vpop.f32.mrb[19].mxu0 }
 0x190   : > { %v5387_v33 = vadd.f32 %v5386_v29, %v5385_v11  ;;  %v5388_v34 = vpop.f32.mrb[18].mxu1  ;;  %v5454_v55 = vadd.f32 %v5453_v61, %v5452_v23  ;;  %v3242_v23 = vld [vmem:[#allocation2 + $0x130] sm:$0x1f]  ;;  %v4073_v61 = vrot.slane %v4071_v39, 4 }
 0x191   : > { %v5389_v19 = vpop.f32.mrb[19].mxu1  ;;  %4275 = vmatmul.mubr.bf16.gmra.mrb[124].mxu0 %v7399_v2 }
 0x192   : > { %v2063_v28 = vadd.f32 %v5387_v33, %v1785_v15  ;;  %v5390_v35 = vadd.f32 %v5389_v19, %v5388_v34  ;;  %4282 = vmatprep.mubr.bf16.mxu0 %v7406_v4  ;;  %v4076_v15 = vrot.slane %v4074_v56, 5  ;;  %v4084_v33 = vrot.slane %v4082_v44, 5 }
 0x193   : > { %3997 = vmatmul.mubr.bf16.gmra.mrb[124].mxu1 %v7381_v9  ;;  %v1789_v34 = vadd.f32 %v7438_v36, %v7470_v6  ;;  %v1791_v56 = vadd.f32 %v7455_v42, %v7470_v6 }
 0x194   : > { %v7479_v38 = vadd.f32 %v5451_v30, %v2063_v28  ;;  %v2064_v41 = vadd.f32 %v5390_v35, %v1786_v32  ;;  %v5455_v7 = vpop.f32.mrb[20].mxu0  ;;  %4004 = vmatprep.mubr.bf16.mxu1 %v7386_v26  ;;  %v1788_v26 = vadd.f32 %v7403_v1, %v7470_v6  ;;  %v4054_v28 = vshrl.u32 %v7427_v3, 16 }
 0x195   : > { %v5456_v8 = vpop.f32.mrb[21].mxu0  ;;  %v4057_v35 = vshll.u32 %v7427_v3, 16  ;;  %v4077_v36 = vor.u32 %v4076_v15, %v4073_v61 }
 0x196   : > { %v7482_v5 = vadd.f32 %v5454_v55, %v2064_v41  ;;  %v5391_v40 = vpop.f32.mrb[20].mxu1  ;;  %v5457_v52 = vadd.f32 %v5456_v8, %v5455_v7  ;;  %v5458_v21 = vpop.f32.mrb[22].mxu0  ;;  %v4062_v41 = vshrl.u32 %v3242_v23, 16  ;;  %v1790_v7 = vadd.f32 %v7443_v46, %v7470_v6 }
 0x197   : > { %v5392_v57 = vpop.f32.mrb[21].mxu1  ;;  %v5459_v24 = vpop.f32.mrb[23].mxu0 }
 0x198   : > { %v5393_v58 = vadd.f32 %v5392_v57, %v5391_v40  ;;  %v5394_v60 = vpop.f32.mrb[22].mxu1  ;;  %v5460_v9 = vadd.f32 %v5459_v24, %v5458_v21  ;;  %v4085_v21 = vor.u32 %v4084_v33, %v4081_v10 }
 0x199   : > { %v5395_v31 = vpop.f32.mrb[23].mxu1  ;;  %4283 = vmatmul.mubr.bf16.gmra.mrb[128].mxu0 %v7419_v12 }
 0x19a   : > { %v2065_v18 = vadd.f32 %v5393_v58, %v1787_v27  ;;  %v5396_v37 = vadd.f32 %v5395_v31, %v5394_v60  ;;  %4290 = vmatprep.mubr.bf16.mxu0 %v7423_v13  ;;  %v4056_v58 = vrot.slane %v4054_v28, 4  ;;  %v4059_v60 = vrot.slane %v4057_v35, 5 }
 0x19b   : > { %4005 = vmatmul.mubr.bf16.gmra.mrb[128].mxu1 %v7399_v2  ;;  %v4086_v39 = vsel %vm3244_vm4, %v4077_v36, %v4085_v21 }
 0x19c   : > { %v7493_v16 = vadd.f32 %v5457_v52, %v2065_v18  ;;  %v2066_v0 = vadd.f32 %v5396_v37, %v1788_v26  ;;  %v5461_v14 = vpop.f32.mrb[24].mxu0  ;;  %4012 = vmatprep.mubr.bf16.mxu1 %v7406_v4  ;;  %v4065_v52 = vshll.u32 %v3242_v23, 16  ;;  %v4064_v26 = vrot.slane %v4062_v41, 4 }
 0x19d   : > { %v5462_v59 = vpop.f32.mrb[25].mxu0 }
 0x19e   : > { %v7496_v1 = vadd.f32 %v5460_v9, %v2066_v0  ;;  %v5397_v63 = vpop.f32.mrb[24].mxu1  ;;  %v5463_v11 = vadd.f32 %v5462_v59, %v5461_v14  ;;  %v5464_v30 = vpop.f32.mrb[26].mxu0  ;;  %v4067_v18 = vrot.slane %v4065_v52, 5  ;;  %v4060_v14 = vor.u32 %v4059_v60, %v4056_v58 }
 0x19f   : > { %v5398_v2 = vpop.f32.mrb[25].mxu1  ;;  %v5465_v29 = vpop.f32.mrb[27].mxu0  ;;  %v1792_v59 = vadd.f32 %v7459_v53, %v7470_v6  ;;  %v1795_v58 = vadd.f32 %v7401_v54, %v7470_v6 }
 0x1a0   : > { %v5399_v55 = vadd.f32 %v5398_v2, %v5397_v63  ;;  %v5400_v19 = vpop.f32.mrb[26].mxu1  ;;  %v5466_v32 = vadd.f32 %v5465_v29, %v5464_v30  ;;  %v4068_v30 = vor.u32 %v4067_v18, %v4064_v26 }
 0x1a1   : > { %v5401_v4 = vpop.f32.mrb[27].mxu1  ;;  %4291 = vmatmul.mubr.bf16.gmra.mrb[132].mxu0 %v7433_v43 }
 0x1a2   : > { %v2067_v8 = vadd.f32 %v5399_v55, %v1789_v34  ;;  %v5402_v40 = vadd.f32 %v5401_v4, %v5400_v19  ;;  %4298 = vmatprep.mubr.bf16.mxu0 %v7258_v51  ;;  %v4069_v53 = vsel %vm3244_vm4, %v4060_v14, %v4068_v30  ;;  %v1793_v19 = vadd.f32 %v7335_v25, %v7470_v6 }
 0x1a3   : > { %4013 = vmatmul.mubr.bf16.gmra.mrb[132].mxu1 %v7419_v12  ;;  %v1797_v14 = vadd.f32 %v7441_v62, %v7470_v6  ;;  %v1798_v30 = vadd.f32 %v7445_v48, %v7470_v6 }
 0x1a4   : > { %v7507_v57 = vadd.f32 %v5463_v11, %v2067_v8  ;;  %v2068_v24 = vadd.f32 %v5402_v40, %v1790_v7  ;;  %v5467_v27 = vpop.f32.mrb[28].mxu0  ;;  %4020 = vmatprep.mubr.bf16.mxu1 %v7423_v13 }
 0x1a5   : > { %v5468_v3 = vpop.f32.mrb[29].mxu0 }
 0x1a6   : > { %v7510_v9 = vadd.f32 %v5466_v32, %v2068_v24  ;;  %v5403_v46 = vpop.f32.mrb[28].mxu1  ;;  %v5469_v45 = vadd.f32 %v5468_v3, %v5467_v27  ;;  %v5470_v31 = vpop.f32.mrb[30].mxu0 }
 0x1a7   : > { %v5404_v37 = vpop.f32.mrb[29].mxu1  ;;  %v5471_v12 = vpop.f32.mrb[31].mxu0 }
 0x1a8   : > { %v5405_v47 = vadd.f32 %v5404_v37, %v5403_v46  ;;  %v5406_v44 = vpop.f32.mrb[30].mxu1  ;;  %v5472_v13 = vadd.f32 %v5471_v12, %v5470_v31 }
 0x1a9   : > { %v5407_v0 = vpop.f32.mrb[31].mxu1  ;;  %4299 = vmatmul.mubr.bf16.gmra.mrb[136].mxu0 %v7276_v22 }
 0x1aa   : > { %v2069_v63 = vadd.f32 %v5405_v47, %v1791_v56  ;;  %v5408_v11 = vadd.f32 %v5407_v0, %v5406_v44  ;;  %4306 = vmatprep.mubr.bf16.mxu0 %v4086_v39 }
 0x1ab   : > { %4021 = vmatmul.mubr.bf16.gmra.mrb[136].mxu1 %v7433_v43 }
 0x1ac   : > { %v7519_v23 = vadd.f32 %v5469_v45, %v2069_v63  ;;  %v2070_v2 = vadd.f32 %v5408_v11, %v1792_v59  ;;  %v5473_v42 = vpop.f32.mrb[32].mxu0  ;;  %4028 = vmatprep.mubr.bf16.mxu1 %v7258_v51  ;;  %v1794_v51 = vadd.f32 %v7344_v49, %v7470_v6 }
 0x1ad   : > { %v5474_v29 = vpop.f32.mrb[33].mxu0 }
 0x1ae   : > { %v7522_v61 = vadd.f32 %v5472_v13, %v2070_v2  ;;  %v5409_v15 = vpop.f32.mrb[32].mxu1  ;;  %v5475_v10 = vadd.f32 %v5474_v29, %v5473_v42  ;;  %v5476_v33 = vpop.f32.mrb[34].mxu0 }
 0x1af   : > { %v5410_v34 = vpop.f32.mrb[33].mxu1  ;;  %v5477_v55 = vpop.f32.mrb[35].mxu0 }
 0x1b0   : > { %v5411_v43 = vadd.f32 %v5410_v34, %v5409_v15  ;;  %v5412_v32 = vpop.f32.mrb[34].mxu1  ;;  %v5478_v4 = vadd.f32 %v5477_v55, %v5476_v33 }
 0x1b1   : > { %v5413_v28 = vpop.f32.mrb[35].mxu1  ;;  %4307 = vmatmul.mubr.bf16.gmra.mrb[140].mxu0 %v4069_v53 }
 0x1b2   : > { %v2071_v35 = vadd.f32 %v5411_v43, %v1793_v19  ;;  %v5414_v41 = vadd.f32 %v5413_v28, %v5412_v32  ;;  %v1799_v32 = vadd.f32 %v7457_v17, %v7470_v6 }
 0x1b3   : > { %4029 = vmatmul.mubr.bf16.gmra.mrb[140].mxu1 %v7276_v22  ;;  %v1796_v22 = vadd.f32 %v7408_v50, %v7470_v6 }
 0x1b4   : > { %v7530_v7 = vadd.f32 %v5475_v10, %v2071_v35  ;;  %v2072_v8 = vadd.f32 %v5414_v41, %v1794_v51  ;;  %v5479_v40 = vpop.f32.mrb[36].mxu0  ;;  %v1800_v35 = vadd.f32 %v7462_v20, %v7470_v6 }
 0x1b5   : > { %v5480_v52 = vpop.f32.mrb[37].mxu0 }
 0x1b6   : > { %v7532_v36 = vadd.f32 %v5478_v4, %v2072_v8  ;;  %v5415_v25 = vpop.f32.mrb[36].mxu1  ;;  %v5481_v21 = vadd.f32 %v5480_v52, %v5479_v40  ;;  %v5482_v24 = vpop.f32.mrb[38].mxu0 }
 0x1b7   : > { %v5416_v27 = vpop.f32.mrb[37].mxu1  ;;  %v5483_v3 = vpop.f32.mrb[39].mxu0 }
 0x1b8   : > { %v5417_v49 = vadd.f32 %v5416_v27, %v5415_v25  ;;  %v5418_v60 = vpop.f32.mrb[38].mxu1  ;;  %v5484_v46 = vadd.f32 %v5483_v3, %v5482_v24 }
 0x1b9   : > { %v5419_v45 = vpop.f32.mrb[39].mxu1 }
 0x1ba   : > { %v2073_v31 = vadd.f32 %v5417_v49, %v1795_v58  ;;  %v5420_v26 = vadd.f32 %v5419_v45, %v5418_v60 }
 0x1bc   : > { %v7538_v18 = vadd.f32 %v5481_v21, %v2073_v31  ;;  %v2074_v37 = vadd.f32 %v5420_v26, %v1796_v22  ;;  %v5485_v12 = vpop.f32.mrb[40].mxu0 }
 0x1bd   : > { %v5486_v39 = vpop.f32.mrb[41].mxu0 }
 0x1be   : > { %v7540_v56 = vadd.f32 %v5484_v46, %v2074_v37  ;;  %v5421_v47 = vpop.f32.mrb[40].mxu1  ;;  %v5487_v44 = vadd.f32 %v5486_v39, %v5485_v12  ;;  %v5488_v13 = vpop.f32.mrb[42].mxu0 }
 0x1bf   : > { %v5422_v54 = vpop.f32.mrb[41].mxu1  ;;  %v5489_v0 = vpop.f32.mrb[43].mxu0 }
 0x1c0   : > { %v5423_v59 = vadd.f32 %v5422_v54, %v5421_v47  ;;  %v5424_v63 = vpop.f32.mrb[42].mxu1  ;;  %v5490_v50 = vadd.f32 %v5489_v0, %v5488_v13 }
 0x1c1   : > { %v5425_v11 = vpop.f32.mrb[43].mxu1 }
 0x1c2   : > { %v2075_v2 = vadd.f32 %v5423_v59, %v1797_v14  ;;  %v5426_v42 = vadd.f32 %v5425_v11, %v5424_v63 }
 0x1c4   : > { %v7546_v29 = vadd.f32 %v5487_v44, %v2075_v2  ;;  %v2076_v15 = vadd.f32 %v5426_v42, %v1798_v30  ;;  %v5491_v10 = vpop.f32.mrb[44].mxu0 }
 0x1c5   : > { %v5492_v33 = vpop.f32.mrb[45].mxu0 }
 0x1c6   : > { %v7548_v53 = vadd.f32 %v5490_v50, %v2076_v15  ;;  %v5427_v34 = vpop.f32.mrb[44].mxu1  ;;  %v5493_v55 = vadd.f32 %v5492_v33, %v5491_v10  ;;  %v5494_v19 = vpop.f32.mrb[46].mxu0 }
 0x1c7   : > { %v5428_v62 = vpop.f32.mrb[45].mxu1  ;;  %v5495_v43 = vpop.f32.mrb[47].mxu0 }
 0x1c8   : > { %v5429_v4 = vadd.f32 %v5428_v62, %v5427_v34  ;;  %v5430_v28 = vpop.f32.mrb[46].mxu1  ;;  %v5496_v48 = vadd.f32 %v5495_v43, %v5494_v19 }
 0x1c9   : > { %v5431_v51 = vpop.f32.mrb[47].mxu1 }
 0x1ca   : > { %v2077_v41 = vadd.f32 %v5429_v4, %v1799_v32  ;;  %v5432_v8 = vadd.f32 %v5431_v51, %v5430_v28 }
 0x1cc   : > { %v7554_v40 = vadd.f32 %v5493_v55, %v2077_v41  ;;  %v2078_v52 = vadd.f32 %v5432_v8, %v1800_v35  ;;  %v5577_v25 = vpop.f32.mrb[48].mxu0 }
 0x1cd   : > { %v5578_v21 = vpop.f32.mrb[49].mxu0 }
 0x1ce   : > { %v7556_v24 = vadd.f32 %v5496_v48, %v2078_v52  ;;  %v5513_v27 = vpop.f32.mrb[48].mxu1  ;;  %v5579_v3 = vadd.f32 %v5578_v21, %v5577_v25  ;;  %v5580_v58 = vpop.f32.mrb[50].mxu0 }
 0x1cf   : > { %v5514_v17 = vpop.f32.mrb[49].mxu1  ;;  %v5581_v49 = vpop.f32.mrb[51].mxu0 }
 0x1d0   : > { %v5515_v60 = vadd.f32 %v5514_v17, %v5513_v27  ;;  %v5516_v46 = vpop.f32.mrb[50].mxu1  ;;  %v5582_v45 = vadd.f32 %v5581_v49, %v5580_v58 }
 0x1d1   : > { %v5517_v22 = vpop.f32.mrb[51].mxu1 }
 0x1d2   : > { %v2700_v20 = vadd.f32 %v5515_v60, %v7479_v38  ;;  %v5518_v6 = vadd.f32 %v5517_v22, %v5516_v46 }
 0x1d4   : > { %v7559_v31 = vadd.f32 %v5579_v3, %v2700_v20  ;;  %v2701_v26 = vadd.f32 %v5518_v6, %v7482_v5  ;;  %v5583_v37 = vpop.f32.mrb[52].mxu0 }
 0x1d5   : > { %v5584_v12 = vpop.f32.mrb[53].mxu0 }
 0x1d6   : > { %v7562_v39 = vadd.f32 %v5582_v45, %v2701_v26  ;;  %v5519_v47 = vpop.f32.mrb[52].mxu1  ;;  %v5585_v44 = vadd.f32 %v5584_v12, %v5583_v37  ;;  %v5586_v13 = vpop.f32.mrb[54].mxu0 }
 0x1d7   : > { %v5520_v54 = vpop.f32.mrb[53].mxu1  ;;  %v5587_v0 = vpop.f32.mrb[55].mxu0 }
 0x1d8   : > { %v5521_v14 = vadd.f32 %v5520_v54, %v5519_v47  ;;  %v5522_v59 = vpop.f32.mrb[54].mxu1  ;;  %v5588_v63 = vadd.f32 %v5587_v0, %v5586_v13 }
 0x1d9   : > { %v5523_v50 = vpop.f32.mrb[55].mxu1 }
 0x1da   : > { %v2702_v38 = vadd.f32 %v5521_v14, %v7493_v16  ;;  %v5524_v11 = vadd.f32 %v5523_v50, %v5522_v59 }
 0x1dc   : > { %v7565_v30 = vadd.f32 %v5585_v44, %v2702_v38  ;;  %v2703_v5 = vadd.f32 %v5524_v11, %v7496_v1  ;;  %v5589_v2 = vpop.f32.mrb[56].mxu0 }
 0x1dd   : > { %v5590_v42 = vpop.f32.mrb[57].mxu0 }
 0x1de   : > { %v7568_v15 = vadd.f32 %v5588_v63, %v2703_v5  ;;  %v5525_v10 = vpop.f32.mrb[56].mxu1  ;;  %v5591_v33 = vadd.f32 %v5590_v42, %v5589_v2  ;;  %v5592_v34 = vpop.f32.mrb[58].mxu0 }
 0x1df   : > { %v5526_v55 = vpop.f32.mrb[57].mxu1  ;;  %v5593_v19 = vpop.f32.mrb[59].mxu0 }
 0x1e0   : > { %v5527_v62 = vadd.f32 %v5526_v55, %v5525_v10  ;;  %v5528_v43 = vpop.f32.mrb[58].mxu1  ;;  %v5594_v32 = vadd.f32 %v5593_v19, %v5592_v34 }
 0x1e1   : > { %v5529_v4 = vpop.f32.mrb[59].mxu1 }
 0x1e2   : > { %v2704_v16 = vadd.f32 %v5527_v62, %v7507_v57  ;;  %v5530_v28 = vadd.f32 %v5529_v4, %v5528_v43 }
 0x1e4   : > { %v7571_v48 = vadd.f32 %v5591_v33, %v2704_v16  ;;  %v2705_v1 = vadd.f32 %v5530_v28, %v7510_v9  ;;  %v5595_v51 = vpop.f32.mrb[60].mxu0 }
 0x1e5   : > { %v5596_v35 = vpop.f32.mrb[61].mxu0 }
 0x1e6   : > { %v7574_v41 = vadd.f32 %v5594_v32, %v2705_v1  ;;  %v5531_v8 = vpop.f32.mrb[60].mxu1  ;;  %v5597_v52 = vadd.f32 %v5596_v35, %v5595_v51  ;;  %v5598_v25 = vpop.f32.mrb[62].mxu0 }
 0x1e7   : > { %v5532_v21 = vpop.f32.mrb[61].mxu1  ;;  %v5599_v27 = vpop.f32.mrb[63].mxu0 }
 0x1e8   : > { %v5533_v3 = vadd.f32 %v5532_v21, %v5531_v8  ;;  %v5534_v58 = vpop.f32.mrb[62].mxu1  ;;  %v5600_v17 = vadd.f32 %v5599_v27, %v5598_v25 }
 0x1e9   : > { %v5535_v49 = vpop.f32.mrb[63].mxu1 }
 0x1ea   : > { %v2706_v57 = vadd.f32 %v5533_v3, %v7519_v23  ;;  %v5536_v60 = vadd.f32 %v5535_v49, %v5534_v58 }
 0x1ec   : > { %v7577_v46 = vadd.f32 %v5597_v52, %v2706_v57  ;;  %v2707_v9 = vadd.f32 %v5536_v60, %v7522_v61  ;;  %v5601_v45 = vpop.f32.mrb[64].mxu0 }
 0x1ed   : > { %v5602_v22 = vpop.f32.mrb[65].mxu0 }
 0x1ee   : > { %v7580_v20 = vadd.f32 %v5600_v17, %v2707_v9  ;;  %v5537_v6 = vpop.f32.mrb[64].mxu1  ;;  %v5603_v26 = vadd.f32 %v5602_v22, %v5601_v45  ;;  %v5604_v37 = vpop.f32.mrb[66].mxu0 }
 0x1ef   : > { %v5538_v12 = vpop.f32.mrb[65].mxu1  ;;  %v5605_v47 = vpop.f32.mrb[67].mxu0 }
 0x1f0   : > { %v5539_v44 = vadd.f32 %v5538_v12, %v5537_v6  ;;  %v5540_v13 = vpop.f32.mrb[66].mxu1  ;;  %v5606_v54 = vadd.f32 %v5605_v47, %v5604_v37 }
 0x1f1   : > { %v5541_v0 = vpop.f32.mrb[67].mxu1 }
 0x1f2   : > { %v2708_v23 = vadd.f32 %v5539_v44, %v7530_v7  ;;  %v5542_v14 = vadd.f32 %v5541_v0, %v5540_v13 }
 0x1f4   : > { %v7583_v59 = vadd.f32 %v5603_v26, %v2708_v23  ;;  %v2709_v61 = vadd.f32 %v5542_v14, %v7532_v36  ;;  %v5607_v63 = vpop.f32.mrb[68].mxu0 }
 0x1f5   : > { %v5608_v50 = vpop.f32.mrb[69].mxu0 }
 0x1f6   : > { %v7586_v38 = vadd.f32 %v5606_v54, %v2709_v61  ;;  %v5543_v11 = vpop.f32.mrb[68].mxu1  ;;  %v5609_v5 = vadd.f32 %v5608_v50, %v5607_v63  ;;  %v5610_v2 = vpop.f32.mrb[70].mxu0 }
 0x1f7   : > { %v5544_v42 = vpop.f32.mrb[69].mxu1  ;;  %v5611_v10 = vpop.f32.mrb[71].mxu0 }
 0x1f8   : > { %v5545_v33 = vadd.f32 %v5544_v42, %v5543_v11  ;;  %v5546_v34 = vpop.f32.mrb[70].mxu1  ;;  %v5612_v55 = vadd.f32 %v5611_v10, %v5610_v2 }
 0x1f9   : > { %v5547_v19 = vpop.f32.mrb[71].mxu1 }
 0x1fa   : > { %v2710_v7 = vadd.f32 %v5545_v33, %v7538_v18  ;;  %v5548_v62 = vadd.f32 %v5547_v19, %v5546_v34 }
 0x1fc   : > { %v7589_v43 = vadd.f32 %v5609_v5, %v2710_v7  ;;  %v2711_v36 = vadd.f32 %v5548_v62, %v7540_v56  ;;  %v5613_v32 = vpop.f32.mrb[72].mxu0 }
 0x1fd   : > { %v5614_v4 = vpop.f32.mrb[73].mxu0 }
 0x1fe   : > { %v7592_v16 = vadd.f32 %v5612_v55, %v2711_v36  ;;  %v5549_v28 = vpop.f32.mrb[72].mxu1  ;;  %v5615_v1 = vadd.f32 %v5614_v4, %v5613_v32  ;;  %v5616_v51 = vpop.f32.mrb[74].mxu0 }
 0x1ff   : > { %v5550_v35 = vpop.f32.mrb[73].mxu1  ;;  %v5617_v8 = vpop.f32.mrb[75].mxu0 }
 0x200   : > { %v5551_v52 = vadd.f32 %v5550_v35, %v5549_v28  ;;  %v5552_v25 = vpop.f32.mrb[74].mxu1  ;;  %v5618_v21 = vadd.f32 %v5617_v8, %v5616_v51 }
 0x201   : > { %v5553_v27 = vpop.f32.mrb[75].mxu1 }
 0x202   : > { %v2712_v18 = vadd.f32 %v5551_v52, %v7546_v29  ;;  %v5554_v3 = vadd.f32 %v5553_v27, %v5552_v25 }
 0x204   : > { %v7595_v58 = vadd.f32 %v5615_v1, %v2712_v18  ;;  %v2713_v56 = vadd.f32 %v5554_v3, %v7548_v53  ;;  %v5619_v17 = vpop.f32.mrb[76].mxu0 }
 0x205   : > { %v5620_v49 = vpop.f32.mrb[77].mxu0 }
 0x206   : > { %v7598_v57 = vadd.f32 %v5618_v21, %v2713_v56  ;;  %v5555_v60 = vpop.f32.mrb[76].mxu1  ;;  %v5621_v9 = vadd.f32 %v5620_v49, %v5619_v17  ;;  %v5622_v45 = vpop.f32.mrb[78].mxu0 }
 0x207   : > { %v5556_v22 = vpop.f32.mrb[77].mxu1  ;;  %v5623_v6 = vpop.f32.mrb[79].mxu0 }
 0x208   : > { %v5557_v26 = vadd.f32 %v5556_v22, %v5555_v60  ;;  %v5558_v37 = vpop.f32.mrb[78].mxu1  ;;  %v5624_v12 = vadd.f32 %v5623_v6, %v5622_v45 }
 0x209   : > { %v5559_v47 = vpop.f32.mrb[79].mxu1 }
 0x20a   : > { %v2714_v29 = vadd.f32 %v5557_v26, %v7554_v40  ;;  %v5560_v44 = vadd.f32 %v5559_v47, %v5558_v37 }
 0x20c   : > { %v7601_v13 = vadd.f32 %v5621_v9, %v2714_v29  ;;  %v2715_v53 = vadd.f32 %v5560_v44, %v7556_v24  ;;  %v5705_v54 = vpop.f32.mrb[80].mxu0 }
 0x20d   : > { %v5706_v0 = vpop.f32.mrb[81].mxu0 }
 0x20e   : > { %v7604_v23 = vadd.f32 %v5624_v12, %v2715_v53  ;;  %v5641_v14 = vpop.f32.mrb[80].mxu1  ;;  %v5707_v61 = vadd.f32 %v5706_v0, %v5705_v54  ;;  %v5708_v63 = vpop.f32.mrb[82].mxu0 }
 0x20f   : > { %v5642_v50 = vpop.f32.mrb[81].mxu1  ;;  %v5709_v11 = vpop.f32.mrb[83].mxu0 }
 0x210   : > { %v5643_v5 = vadd.f32 %v5642_v50, %v5641_v14  ;;  %v5644_v2 = vpop.f32.mrb[82].mxu1  ;;  %v5710_v42 = vadd.f32 %v5709_v11, %v5708_v63 }
 0x211   : > { %v5645_v10 = vpop.f32.mrb[83].mxu1 }
 0x212   : > { %v3208_v40 = vadd.f32 %v5643_v5, %v7559_v31  ;;  %v5646_v33 = vadd.f32 %v5645_v10, %v5644_v2 }
 0x214   : > { %v7607_v34 = vadd.f32 %v5707_v61, %v3208_v40  ;;  %v3209_v24 = vadd.f32 %v5646_v33, %v7562_v39  ;;  %v5711_v55 = vpop.f32.mrb[84].mxu0 }
 0x215   : > { %v5712_v19 = vpop.f32.mrb[85].mxu0 }
 0x216   : > { %v7610_v7 = vadd.f32 %v5710_v42, %v3209_v24  ;;  %v5647_v62 = vpop.f32.mrb[84].mxu1  ;;  %v5713_v36 = vadd.f32 %v5712_v19, %v5711_v55  ;;  %v5714_v32 = vpop.f32.mrb[86].mxu0 }
 0x217   : > { %v5648_v4 = vpop.f32.mrb[85].mxu1  ;;  %v5715_v28 = vpop.f32.mrb[87].mxu0 }
 0x218   : > { %v5649_v1 = vadd.f32 %v5648_v4, %v5647_v62  ;;  %v5650_v51 = vpop.f32.mrb[86].mxu1  ;;  %v5716_v35 = vadd.f32 %v5715_v28, %v5714_v32 }
 0x219   : > { %v5651_v8 = vpop.f32.mrb[87].mxu1 }
 0x21a   : > { %v3210_v31 = vadd.f32 %v5649_v1, %v7565_v30  ;;  %v5652_v52 = vadd.f32 %v5651_v8, %v5650_v51 }
 0x21c   : > { %v7613_v25 = vadd.f32 %v5713_v36, %v3210_v31  ;;  %v3211_v39 = vadd.f32 %v5652_v52, %v7568_v15  ;;  %v5717_v21 = vpop.f32.mrb[88].mxu0 }
 0x21d   : > { %v5718_v27 = vpop.f32.mrb[89].mxu0 }
 0x21e   : > { %v7616_v18 = vadd.f32 %v5716_v35, %v3211_v39  ;;  %v5653_v3 = vpop.f32.mrb[88].mxu1  ;;  %v5719_v56 = vadd.f32 %v5718_v27, %v5717_v21  ;;  %v5720_v17 = vpop.f32.mrb[90].mxu0 }
 0x21f   : > { %v5654_v49 = vpop.f32.mrb[89].mxu1  ;;  %v5721_v60 = vpop.f32.mrb[91].mxu0 }
 0x220   : > { %v5655_v9 = vadd.f32 %v5654_v49, %v5653_v3  ;;  %v5656_v45 = vpop.f32.mrb[90].mxu1  ;;  %v5722_v22 = vadd.f32 %v5721_v60, %v5720_v17 }
 0x221   : > { %v5657_v6 = vpop.f32.mrb[91].mxu1 }
 0x222   : > { %v3212_v30 = vadd.f32 %v5655_v9, %v7571_v48  ;;  %v5658_v26 = vadd.f32 %v5657_v6, %v5656_v45 }
 0x224   : > { %v7619_v37 = vadd.f32 %v5719_v56, %v3212_v30  ;;  %v3213_v15 = vadd.f32 %v5658_v26, %v7574_v41  ;;  %v5723_v12 = vpop.f32.mrb[92].mxu0 }
 0x225   : > { %v5724_v47 = vpop.f32.mrb[93].mxu0 }
 0x226   : > { %v7622_v29 = vadd.f32 %v5722_v22, %v3213_v15  ;;  %v5659_v44 = vpop.f32.mrb[92].mxu1  ;;  %v5725_v53 = vadd.f32 %v5724_v47, %v5723_v12  ;;  %v5726_v54 = vpop.f32.mrb[94].mxu0 }
 0x227   : > { %v5660_v0 = vpop.f32.mrb[93].mxu1  ;;  %v5727_v14 = vpop.f32.mrb[95].mxu0 }
 0x228   : > { %v5661_v61 = vadd.f32 %v5660_v0, %v5659_v44  ;;  %v5662_v63 = vpop.f32.mrb[94].mxu1  ;;  %v5728_v50 = vadd.f32 %v5727_v14, %v5726_v54 }
 0x229   : > { %v5663_v11 = vpop.f32.mrb[95].mxu1 }
 0x22a   : > { %v3214_v48 = vadd.f32 %v5661_v61, %v7577_v46  ;;  %v5664_v5 = vadd.f32 %v5663_v11, %v5662_v63 }
 0x22c   : > { %v7625_v2 = vadd.f32 %v5725_v53, %v3214_v48  ;;  %v3215_v41 = vadd.f32 %v5664_v5, %v7580_v20  ;;  %v5729_v42 = vpop.f32.mrb[96].mxu0 }
 0x22d   : > { %v5730_v10 = vpop.f32.mrb[97].mxu0 }
 0x22e   : > { %v7628_v40 = vadd.f32 %v5728_v50, %v3215_v41  ;;  %v5665_v33 = vpop.f32.mrb[96].mxu1  ;;  %v5731_v24 = vadd.f32 %v5730_v10, %v5729_v42  ;;  %v5732_v55 = vpop.f32.mrb[98].mxu0 }
 0x22f   : > { %v5666_v19 = vpop.f32.mrb[97].mxu1  ;;  %v5733_v62 = vpop.f32.mrb[99].mxu0 }
 0x230   : > { %v5667_v36 = vadd.f32 %v5666_v19, %v5665_v33  ;;  %v5668_v32 = vpop.f32.mrb[98].mxu1  ;;  %v5734_v4 = vadd.f32 %v5733_v62, %v5732_v55 }
 0x231   : > { %v5669_v28 = vpop.f32.mrb[99].mxu1 }
 0x232   : > { %v3216_v46 = vadd.f32 %v5667_v36, %v7583_v59  ;;  %v5670_v1 = vadd.f32 %v5669_v28, %v5668_v32 }
 0x234   : > { %v7631_v51 = vadd.f32 %v5731_v24, %v3216_v46  ;;  %v3217_v20 = vadd.f32 %v5670_v1, %v7586_v38  ;;  %v5735_v35 = vpop.f32.mrb[100].mxu0  ;;  %v7665_v46 = vld [vmem:[%s910_s8] ss:$0 sm:$0xff] }
 0x235   : > { %v5736_v8 = vpop.f32.mrb[101].mxu0 }
 0x236   : > { %v7634_v31 = vadd.f32 %v5734_v4, %v3217_v20  ;;  %v5671_v52 = vpop.f32.mrb[100].mxu1  ;;  %v5737_v39 = vadd.f32 %v5736_v8, %v5735_v35  ;;  %v5738_v21 = vpop.f32.mrb[102].mxu0 }
 0x237   : > { %v5672_v27 = vpop.f32.mrb[101].mxu1  ;;  %v5739_v3 = vpop.f32.mrb[103].mxu0 }
 0x238   : > { %v5673_v56 = vadd.f32 %v5672_v27, %v5671_v52  ;;  %v5674_v17 = vpop.f32.mrb[102].mxu1  ;;  %v5740_v49 = vadd.f32 %v5739_v3, %v5738_v21  ;;  %v4332_v21 = vld [vmem:[%s7655_s1 + $0x8] sm:$0xff] }
 0x239   : > { %v5675_v60 = vpop.f32.mrb[103].mxu1 }
 0x23a   : > { %v3218_v59 = vadd.f32 %v5673_v56, %v7589_v43  ;;  %v5676_v9 = vadd.f32 %v5675_v60, %v5674_v17 }
 0x23c   : > { %v7637_v45 = vadd.f32 %v5737_v39, %v3218_v59  ;;  %v3219_v38 = vadd.f32 %v5676_v9, %v7592_v16  ;;  %v5741_v22 = vpop.f32.mrb[104].mxu0  ;;  %v4355_v9 = vsub.f32 %v4332_v21, %v7665_v46  ;;  %v4336_v21 = vld [vmem:[%s7655_s1 + $0x28] sm:$0xff] }
 0x23d   : > { %v5742_v6 = vpop.f32.mrb[105].mxu0 }
 0x23e   : > { %v7640_v30 = vadd.f32 %v5740_v49, %v3219_v38  ;;  %v5677_v26 = vpop.f32.mrb[104].mxu1  ;;  %v5743_v15 = vadd.f32 %v5742_v6, %v5741_v22  ;;  %v5744_v12 = vpop.f32.mrb[106].mxu0  ;;  %v7675_v49 = vld [vmem:[%s913_s17] ss:$0 sm:$0xff] }
 0x23f   : > { %v5678_v47 = vpop.f32.mrb[105].mxu1  ;;  %v5745_v44 = vpop.f32.mrb[107].mxu0 }
 0x240   : > { %v5679_v53 = vadd.f32 %v5678_v47, %v5677_v26  ;;  %v5680_v54 = vpop.f32.mrb[106].mxu1  ;;  %v5746_v0 = vadd.f32 %v5745_v44, %v5744_v12 }
 0x241   : > { %v5681_v14 = vpop.f32.mrb[107].mxu1 }
 0x242   : > { %v3220_v43 = vadd.f32 %v5679_v53, %v7595_v58  ;;  %v5682_v61 = vadd.f32 %v5681_v14, %v5680_v54 }
 0x244   : > { %v7643_v63 = vadd.f32 %v5743_v15, %v3220_v43  ;;  %v3221_v16 = vadd.f32 %v5682_v61, %v7598_v57  ;;  %v5747_v50 = vpop.f32.mrb[108].mxu0  ;;  %v4333_v15 = vld [vmem:[%s7655_s1 + $0x10] sm:$0xff]  ;;  %v4334_v61 = vld [vmem:[%s7655_s1 + $0x18] sm:$0xff] }
 0x245   : > { %v5748_v11 = vpop.f32.mrb[109].mxu0 }
 0x246   : > { %v7646_v48 = vadd.f32 %v5746_v0, %v3221_v16  ;;  %v5683_v5 = vpop.f32.mrb[108].mxu1  ;;  %v5749_v41 = vadd.f32 %v5748_v11, %v5747_v50  ;;  %v5750_v42 = vpop.f32.mrb[110].mxu0  ;;  %v4378_v0 = vmul.f32 %v7675_v49, %v4355_v9 }
 0x247   : > { %v5684_v10 = vpop.f32.mrb[109].mxu1  ;;  %v5751_v33 = vpop.f32.mrb[111].mxu0 }
 0x248   : > { %v5685_v24 = vadd.f32 %v5684_v10, %v5683_v5  ;;  %v5686_v55 = vpop.f32.mrb[110].mxu1  ;;  %v5752_v58 = vadd.f32 %v5751_v33, %v5750_v42 }
 0x249   : > { %v5687_v19 = vpop.f32.mrb[111].mxu1 }
 0x24a   : > { %v3222_v62 = vadd.f32 %v5685_v24, %v7601_v13  ;;  %v5688_v57 = vadd.f32 %v5687_v19, %v5686_v55  ;;  %v4331_v13 = vld [vmem:[%s7655_s1] sm:$0xff]  ;;  %v4357_v55 = vsub.f32 %v4334_v61, %v7665_v46 }
 0x24b   : > { %v4354_v56 = vsub.f32 %v4331_v13, %v7665_v46 }
 0x24c   : > { %v7661_v36 = vadd.f32 %v5749_v41, %v3222_v62  ;;  %v3223_v32 = vadd.f32 %v5688_v57, %v7604_v23  ;;  %v5833_v4 = vpop.f32.mrb[112].mxu0 }
 0x24d   : > { %v5834_v28 = vpop.f32.mrb[113].mxu0  ;;  %v4377_v26 = vmul.f32 %v7675_v49, %v4354_v56 }
 0x24e   : > { %v7667_v1 = vadd.f32 %v5752_v58, %v3223_v32  ;;  %v5769_v20 = vpop.f32.mrb[112].mxu1  ;;  %v5835_v35 = vadd.f32 %v5834_v28, %v5833_v4  ;;  %v5836_v8 = vpop.f32.mrb[114].mxu0  ;;  %v4335_v32 = vld [vmem:[%s7655_s1 + $0x20] sm:$0xff] }
 0x24f   : > { %v5770_v52 = vpop.f32.mrb[113].mxu1  ;;  %v5837_v39 = vpop.f32.mrb[115].mxu0 }
 0x250   : > { %v5771_v27 = vadd.f32 %v5770_v52, %v5769_v20  ;;  %v5772_v23 = vpop.f32.mrb[114].mxu1  ;;  %v5838_v3 = vadd.f32 %v5837_v39, %v5836_v8  ;;  %v4380_v8 = vmul.f32 %v7675_v49, %v4357_v55 }
 0x251   : > { %v5773_v17 = vpop.f32.mrb[115].mxu1 }
 0x252   : > { %v4037_v60 = vadd.f32 %v5771_v27, %v7607_v34  ;;  %v5774_v59 = vadd.f32 %v5773_v17, %v5772_v23 }
 0x254   : > { %v4038_v38 = vadd.f32 %v5774_v59, %v7610_v7  ;;  %v5839_v22 = vpop.f32.mrb[116].mxu0  ;;  %v4315_v6 = vadd.f32 %v5835_v35, %v4037_v60  ;;  %v4356_v7 = vsub.f32 %v4333_v15, %v7665_v46 }
 0x255   : > { %v5840_v12 = vpop.f32.mrb[117].mxu0 }
 0x256   : > { %v4316_v47 = vadd.f32 %v5838_v3, %v4038_v38  ;;  %v5775_v44 = vpop.f32.mrb[116].mxu1  ;;  %4441 = vrot.lane.b32.xlu0 %v4315_v6, %s6266_s24  ;;  %v4393_v53 = vadd.f32 1.0, %v4315_v6  ;;  %v5841_v54 = vadd.f32 %v5840_v12, %v5839_v22  ;;  %v5842_v34 = vpop.f32.mrb[118].mxu0  ;;  %v4379_v57 = vmul.f32 %v7675_v49, %v4356_v7 }
 0x257   : > { %v5776_v14 = vpop.f32.mrb[117].mxu1  ;;  %v5843_v43 = vpop.f32.mrb[119].mxu0  ;;  %v4359_v22 = vsub.f32 %v4336_v21, %v7665_v46 }
 0x258   : > { %v5777_v16 = vadd.f32 %v5776_v14, %v5775_v44  ;;  %v5778_v50 = vpop.f32.mrb[118].mxu1  ;;  %v5844_v11 = vadd.f32 %v5843_v43, %v5842_v34  ;;  %v7686_v5 = vmul.f32 %v4393_v53, %v4377_v26  ;;  %v4394_v41 = vadd.f32 1.0, %v4316_v47 }
 0x259   : > { %v5779_v42 = vpop.f32.mrb[119].mxu1  ;;  %v4382_v14 = vmul.f32 %v7675_v49, %v4359_v22 }
 0x25a   : > { %v4039_v10 = vadd.f32 %v5777_v16, %v7613_v25  ;;  %v5780_v33 = vadd.f32 %v5779_v42, %v5778_v50  ;;  %4443 = vrot.lane.b32.xlu0 %v4316_v47, %s6266_s24  ;;  %v7690_v24 = vmul.f32 %v4394_v41, %v4378_v0  ;;  %v4337_v47 = vld [vmem:[%s7655_s1 + $0x30] sm:$0xff]  ;;  %v4338_v16 = vld [vmem:[%s7655_s1 + $0x38] sm:$0xff] }
 0x25b   : > { %v4360_v61 = vsub.f32 %v4337_v47, %v7665_v46 }
 0x25c   : > { %v4040_v58 = vadd.f32 %v5780_v33, %v7616_v18  ;;  %v5845_v19 = vpop.f32.mrb[120].mxu0  ;;  %v4317_v62 = vadd.f32 %v5841_v54, %v4039_v10  ;;  %v4358_v18 = vsub.f32 %v4335_v32, %v7665_v46 }
 0x25d   : > { %v5846_v4 = vpop.f32.mrb[121].mxu0 }
 0x25e   : > { %v4318_v28 = vadd.f32 %v5844_v11, %v4040_v58  ;;  %v5781_v13 = vpop.f32.mrb[120].mxu1  ;;  %4445 = vrot.lane.b32.xlu1 %v4317_v62, %s6266_s24  ;;  %v4395_v25 = vadd.f32 1.0, %v4317_v62  ;;  %v5847_v20 = vadd.f32 %v5846_v4, %v5845_v19  ;;  %v5848_v35 = vpop.f32.mrb[122].mxu0  ;;  %v4381_v12 = vmul.f32 %v7675_v49, %v4358_v18 }
 0x25f   : > { %v5782_v52 = vpop.f32.mrb[121].mxu1  ;;  %v5849_v39 = vpop.f32.mrb[123].mxu0  ;;  %v4361_v19 = vsub.f32 %v4338_v16, %v7665_v46  ;;  %v4383_v4 = vmul.f32 %v7675_v49, %v4360_v61 }
 0x260   : > { %v5783_v27 = vadd.f32 %v5782_v52, %v5781_v13  ;;  %v5784_v23 = vpop.f32.mrb[122].mxu1  ;;  %v5850_v3 = vadd.f32 %v5849_v39, %v5848_v35  ;;  %v7700_v56 = vmul.f32 %v4395_v25, %v4379_v57  ;;  %v4396_v17 = vadd.f32 1.0, %v4318_v28 }
 0x261   : > { %v5785_v60 = vpop.f32.mrb[123].mxu1  ;;  %v4384_v52 = vmul.f32 %v7675_v49, %v4361_v19 }
 0x262   : > { %v4041_v59 = vadd.f32 %v5783_v27, %v7619_v37  ;;  %v5786_v9 = vadd.f32 %v5785_v60, %v5784_v23  ;;  %4447 = vrot.lane.b32.xlu1 %v4318_v28, %s6266_s24  ;;  %v7704_v38 = vmul.f32 %v4396_v17, %v4380_v8  ;;  %v4339_v28 = vld [vmem:[%s7655_s1 + $0x40] sm:$0xff]  ;;  %v4340_v27 = vld [vmem:[%s7655_s1 + $0x48] sm:$0xff] }
 0x263   : > { %v4362_v21 = vsub.f32 %v4339_v28, %v7665_v46 }
 0x264   : > { %v4319_v6 = vadd.f32 %v5847_v20, %v4041_v59  ;;  %v4042_v26 = vadd.f32 %v5786_v9, %v7622_v29  ;;  %v5851_v15 = vpop.f32.mrb[124].mxu0 }
 0x265   : > { %v5852_v44 = vpop.f32.mrb[125].mxu0 }
 0x266   : > { %v4320_v53 = vadd.f32 %v5850_v3, %v4042_v26  ;;  %v5787_v54 = vpop.f32.mrb[124].mxu1  ;;  %4449 = vrot.lane.b32.xlu0 %v4319_v6, %s6266_s24  ;;  %v5853_v37 = vadd.f32 %v5852_v44, %v5851_v15  ;;  %v5854_v34 = vpop.f32.mrb[126].mxu0  ;;  %v4397_v0 = vadd.f32 1.0, %v4319_v6  ;;  %v4363_v26 = vsub.f32 %v4340_v27, %v7665_v46 }
 0x267   : > { %v5788_v43 = vpop.f32.mrb[125].mxu1  ;;  %v5855_v7 = vpop.f32.mrb[127].mxu0  ;;  %v4385_v44 = vmul.f32 %v7675_v49, %v4362_v21 }
 0x268   : > { %v5789_v29 = vadd.f32 %v5788_v43, %v5787_v54  ;;  %v5790_v50 = vpop.f32.mrb[126].mxu1  ;;  %4451 = vrot.lane.b32.xlu1 %v4320_v53, %s6266_s24  ;;  %v5856_v11 = vadd.f32 %v5855_v7, %v5854_v34  ;;  %v7715_v41 = vmul.f32 %v4397_v0, %v4381_v12  ;;  %v4398_v42 = vadd.f32 1.0, %v4320_v53  ;;  %v4341_v53 = vld [vmem:[%s7655_s1 + $0x50] sm:$0xff] }
 0x269   : > { %v5791_v10 = vpop.f32.mrb[127].mxu1  ;;  %v4386_v43 = vmul.f32 %v7675_v49, %v4363_v26  ;;  %v4364_v16 = vsub.f32 %v4341_v53, %v7665_v46 }
 0x26a   : > { %v4043_v33 = vadd.f32 %v5789_v29, %v7625_v2  ;;  %v5792_v55 = vadd.f32 %v5791_v10, %v5790_v50  ;;  %v7718_v58 = vmul.f32 %v4398_v42, %v4382_v14  ;;  %v4342_v29 = vld [vmem:[%s7655_s1 + $0x58] sm:$0xff] }
 0x26c   : > { %v4321_v62 = vadd.f32 %v5853_v37, %v4043_v33  ;;  %v4044_v57 = vadd.f32 %v5792_v55, %v7628_v40  ;;  %v5857_v32 = vpop.f32.mrb[128].mxu0 }
 0x26d   : > { %v5858_v13 = vpop.f32.mrb[129].mxu0 }
 0x26e   : > { %v4322_v25 = vadd.f32 %v5856_v11, %v4044_v57  ;;  %v5793_v20 = vpop.f32.mrb[128].mxu1  ;;  %4453 = vrot.lane.b32.xlu0 %v4321_v62, %s6266_s24  ;;  %v5859_v35 = vadd.f32 %v5858_v13, %v5857_v32  ;;  %v5860_v2 = vpop.f32.mrb[130].mxu0  ;;  %v4399_v8 = vadd.f32 1.0, %v4321_v62  ;;  %v4365_v57 = vsub.f32 %v4342_v29, %v7665_v46 }
 0x26f   : > { %v5794_v39 = vpop.f32.mrb[129].mxu1  ;;  %v5861_v18 = vpop.f32.mrb[131].mxu0  ;;  %v4387_v13 = vmul.f32 %v7675_v49, %v4364_v16 }
 0x270   : > { %v5795_v40 = vadd.f32 %v5794_v39, %v5793_v20  ;;  %v5796_v23 = vpop.f32.mrb[130].mxu1  ;;  %4455 = vrot.lane.b32.xlu1 %v4322_v25, %s6266_s24  ;;  %v5862_v3 = vadd.f32 %v5861_v18, %v5860_v2  ;;  %v7729_v17 = vmul.f32 %v4399_v8, %v4383_v4  ;;  %v4400_v60 = vadd.f32 1.0, %v4322_v25  ;;  %v4343_v25 = vld [vmem:[%s7655_s1 + $0x60] sm:$0xff] }
 0x271   : > { %v5797_v59 = vpop.f32.mrb[131].mxu1  ;;  %v4388_v39 = vmul.f32 %v7675_v49, %v4365_v57  ;;  %v4366_v27 = vsub.f32 %v4343_v25, %v7665_v46 }
 0x272   : > { %v4045_v9 = vadd.f32 %v5795_v40, %v7631_v51  ;;  %v5798_v22 = vadd.f32 %v5797_v59, %v5796_v23  ;;  %v7732_v6 = vmul.f32 %v4400_v60, %v4384_v52  ;;  %v4344_v40 = vld [vmem:[%s7655_s1 + $0x68] sm:$0xff] }
 0x274   : > { %v4323_v15 = vadd.f32 %v5859_v35, %v4045_v9  ;;  %v4046_v12 = vadd.f32 %v5798_v22, %v7634_v31  ;;  %v5863_v47 = vpop.f32.mrb[132].mxu0 }
 0x275   : > { %v5864_v54 = vpop.f32.mrb[133].mxu0 }
 0x276   : > { %v4324_v37 = vadd.f32 %v5862_v3, %v4046_v12  ;;  %v5799_v34 = vpop.f32.mrb[132].mxu1  ;;  %4457 = vrot.lane.b32.xlu0 %v4323_v15, %s6266_s24  ;;  %v5865_v0 = vadd.f32 %v5864_v54, %v5863_v47  ;;  %v5866_v51 = vpop.f32.mrb[134].mxu0  ;;  %v4401_v14 = vadd.f32 1.0, %v4323_v15  ;;  %v4367_v12 = vsub.f32 %v4344_v40, %v7665_v46 }
 0x277   : > { %v5800_v7 = vpop.f32.mrb[133].mxu1  ;;  %v5867_v61 = vpop.f32.mrb[135].mxu0  ;;  %v4389_v54 = vmul.f32 %v7675_v49, %v4366_v27 }
 0x278   : > { %v5801_v31 = vadd.f32 %v5800_v7, %v5799_v34  ;;  %v5802_v50 = vpop.f32.mrb[134].mxu1  ;;  %4459 = vrot.lane.b32.xlu1 %v4324_v37, %s6266_s24  ;;  %v5868_v11 = vadd.f32 %v5867_v61, %v5866_v51  ;;  %v7743_v42 = vmul.f32 %v4401_v14, %v4385_v44  ;;  %v4402_v10 = vadd.f32 1.0, %v4324_v37  ;;  %v4345_v37 = vld [vmem:[%s7655_s1 + $0x70] sm:$0xff] }
 0x279   : > { %v5803_v33 = vpop.f32.mrb[135].mxu1  ;;  %v4390_v7 = vmul.f32 %v7675_v49, %v4367_v12  ;;  %v4368_v29 = vsub.f32 %v4345_v37, %v7665_v46 }
 0x27a   : > { %v4047_v55 = vadd.f32 %v5801_v31, %v7637_v45  ;;  %v5804_v19 = vadd.f32 %v5803_v33, %v5802_v50  ;;  %v7746_v62 = vmul.f32 %v4402_v10, %v4386_v43  ;;  %v4346_v31 = vld [vmem:[%s7655_s1 + $0x78] sm:$0xff] }
 0x27b   : > { %v4391_v25 = vmul.f32 %v7675_v49, %v4368_v29 }
 0x27c   : > { %v4325_v32 = vadd.f32 %v5865_v0, %v4047_v55  ;;  %v4048_v4 = vadd.f32 %v5804_v19, %v7640_v30  ;;  %v5869_v28 = vpop.f32.mrb[136].mxu0 }
 0x27d   : > { %v5870_v20 = vpop.f32.mrb[137].mxu0 }
 0x27e   : > { %v4326_v35 = vadd.f32 %v5868_v11, %v4048_v4  ;;  %v5805_v2 = vpop.f32.mrb[136].mxu1  ;;  %4461 = vrot.lane.b32.xlu0 %v4325_v32, %s6266_s24  ;;  %v5871_v8 = vadd.f32 %v5870_v20, %v5869_v28  ;;  %v5872_v45 = vpop.f32.mrb[138].mxu0  ;;  %v4403_v52 = vadd.f32 1.0, %v4325_v32  ;;  %v4369_v4 = vsub.f32 %v4346_v31, %v7665_v46 }
 0x27f   : > { %v5806_v18 = vpop.f32.mrb[137].mxu1  ;;  %v5873_v21 = vpop.f32.mrb[139].mxu0 }
 0x280   : > { %v5807_v30 = vadd.f32 %v5806_v18, %v5805_v2  ;;  %v5808_v23 = vpop.f32.mrb[138].mxu1  ;;  %4463 = vrot.lane.b32.xlu1 %v4326_v35, %s6266_s24  ;;  %v5874_v3 = vadd.f32 %v5873_v21, %v5872_v45  ;;  %v7757_v60 = vmul.f32 %v4403_v52, %v4387_v13  ;;  %v4404_v59 = vadd.f32 1.0, %v4326_v35 }
 0x281   : > { %v5809_v9 = vpop.f32.mrb[139].mxu1  ;;  %v4392_v2 = vmul.f32 %v7675_v49, %v4369_v4 }
 0x282   : > { %v4049_v22 = vadd.f32 %v5807_v30, %v7643_v63  ;;  %v5810_v26 = vadd.f32 %v5809_v9, %v5808_v23  ;;  %v7760_v15 = vmul.f32 %v4404_v59, %v4388_v39 }
 0x284   : > { %v4327_v47 = vadd.f32 %v5871_v8, %v4049_v22  ;;  %v4050_v44 = vadd.f32 %v5810_v26, %v7646_v48  ;;  %v5875_v53 = vpop.f32.mrb[140].mxu0 }
 0x285   : > { %v5876_v34 = vpop.f32.mrb[141].mxu0 }
 0x286   : > { %v4328_v0 = vadd.f32 %v5874_v3, %v4050_v44  ;;  %v5811_v51 = vpop.f32.mrb[140].mxu1  ;;  %4465 = vrot.lane.b32.xlu0 %v4327_v47, %s6266_s24  ;;  %v5877_v14 = vadd.f32 %v5876_v34, %v5875_v53  ;;  %v5878_v63 = vpop.f32.mrb[142].mxu0  ;;  %v4405_v43 = vadd.f32 1.0, %v4327_v47 }
 0x287   : > { %v5812_v61 = vpop.f32.mrb[141].mxu1  ;;  %v5879_v16 = vpop.f32.mrb[143].mxu0 }
 0x288   : > { %v5813_v48 = vadd.f32 %v5812_v61, %v5811_v51  ;;  %v5814_v50 = vpop.f32.mrb[142].mxu1  ;;  %4467 = vrot.lane.b32.xlu1 %v4328_v0, %s6266_s24  ;;  %v5880_v11 = vadd.f32 %v5879_v16, %v5878_v63  ;;  %v4421_v10 = vmul.f32 %v4405_v43, %v4389_v54  ;;  %v4406_v33 = vadd.f32 1.0, %v4328_v0 }
 0x289   : > { %v5815_v55 = vpop.f32.mrb[143].mxu1 }
 0x28a   : > { %v4051_v19 = vadd.f32 %v5813_v48, %v7661_v36  ;;  %v5816_v57 = vadd.f32 %v5815_v55, %v5814_v50  ;;  %v4422_v32 = vmul.f32 %v4406_v33, %v4390_v7 }
 0x28c   : > { %v4329_v28 = vadd.f32 %v5877_v14, %v4051_v19  ;;  %v4052_v13 = vadd.f32 %v5816_v57, %v7667_v1 }
 0x28e   : > { %v4330_v20 = vadd.f32 %v5880_v11, %v4052_v13  ;;  %4469 = vrot.lane.b32.xlu0 %v4329_v28, %s6266_s24  ;;  %v4407_v35 = vadd.f32 1.0, %v4329_v28 }
 0x290   : > { %4471 = vrot.lane.b32.xlu1 %v4330_v20, %s6266_s24  ;;  %v4423_v8 = vmul.f32 %v4407_v35, %v4391_v25  ;;  %v4408_v45 = vadd.f32 1.0, %v4330_v20 }
 0x292   : > { %v4424_v36 = vmul.f32 %v4408_v45, %v4392_v2 }
 0x2c8   : > { %v4442_v46 = vpop.permute.xlu0 %4441 }
 0x2c9   : > { %v4489_v1 = vadd.f32 %v4442_v46, %v7686_v5 }
 0x2cb   : > { %4506 = vst.msk [vmem:[%s7783_s21] sm:$0xff] %vm4505_vm5, %v4489_v1 }
 0x2cc   : > { %v4444_v49 = vpop.permute.xlu0 %4443 }
 0x2cd   : > { %v4490_v52 = vadd.f32 %v4444_v49, %v7690_v24 }
 0x2cf   : > { %4507 = vst.msk [vmem:[%s7783_s21 + $0x8] sm:$0xff] %vm4505_vm5, %v4490_v52 }
 0x2d0   : > { %v4446_v39 = vpop.permute.xlu1 %4445 }
 0x2d1   : > { %v4491_v18 = vadd.f32 %v4446_v39, %v7700_v56 }
 0x2d3   : > { %4508 = vst.msk [vmem:[%s7783_s21 + $0x10] sm:$0xff] %vm4505_vm5, %v4491_v18 }
 0x2d4   : > { %v4448_v21 = vpop.permute.xlu1 %4447 }
 0x2d5   : > { %v4492_v27 = vadd.f32 %v4448_v21, %v7704_v38 }
 0x2d7   : > { %4509 = vst.msk [vmem:[%s7783_s21 + $0x18] sm:$0xff] %vm4505_vm5, %v4492_v27 }
 0x2d8   : > { %v4450_v5 = vpop.permute.xlu0 %4449 }
 0x2d9   : > { %v4493_v40 = vadd.f32 %v4450_v5, %v7715_v41 }
 0x2da   : > { %v4452_v24 = vpop.permute.xlu1 %4451 }
 0x2db   : > { %4510 = vst.msk [vmem:[%s7783_s21 + $0x20] sm:$0xff] %vm4505_vm5, %v4493_v40  ;;  %v4494_v30 = vadd.f32 %v4452_v24, %v7718_v58 }
 0x2dd   : > { %4511 = vst.msk [vmem:[%s7783_s21 + $0x28] sm:$0xff] %vm4505_vm5, %v4494_v30 }
 0x2e0   : > { %v4454_v56 = vpop.permute.xlu0 %4453 }
 0x2e1   : > { %v4495_v23 = vadd.f32 %v4454_v56, %v7729_v17 }
 0x2e2   : > { %v4456_v38 = vpop.permute.xlu1 %4455 }
 0x2e3   : > { %4512 = vst.msk [vmem:[%s7783_s21 + $0x30] sm:$0xff] %vm4505_vm5, %v4495_v23  ;;  %v4496_v3 = vadd.f32 %v4456_v38, %v7732_v6 }
 0x2e5   : > { %4513 = vst.msk [vmem:[%s7783_s21 + $0x38] sm:$0xff] %vm4505_vm5, %v4496_v3 }
 0x2e8   : > { %v4458_v41 = vpop.permute.xlu0 %4457 }
 0x2e9   : > { %v4497_v59 = vadd.f32 %v4458_v41, %v7743_v42 }
 0x2ea   : > { %v4460_v58 = vpop.permute.xlu1 %4459 }
 0x2eb   : > { %4514 = vst.msk [vmem:[%s7783_s21 + $0x40] sm:$0xff] %vm4505_vm5, %v4497_v59  ;;  %v4498_v9 = vadd.f32 %v4460_v58, %v7746_v62 }
 0x2ed   : > { %4515 = vst.msk [vmem:[%s7783_s21 + $0x48] sm:$0xff] %vm4505_vm5, %v4498_v9 }
 0x2f0   : > { %v4462_v17 = vpop.permute.xlu0 %4461 }
 0x2f1   : > { %v4499_v22 = vadd.f32 %v4462_v17, %v7757_v60 }
 0x2f2   : > { %v4464_v6 = vpop.permute.xlu1 %4463 }
 0x2f3   : > { %4516 = vst.msk [vmem:[%s7783_s21 + $0x50] sm:$0xff] %vm4505_vm5, %v4499_v22  ;;  %v4500_v26 = vadd.f32 %v4464_v6, %v7760_v15 }
 0x2f5   : > { %4517 = vst.msk [vmem:[%s7783_s21 + $0x58] sm:$0xff] %vm4505_vm5, %v4500_v26 }
 0x2f8   : > { %v4466_v42 = vpop.permute.xlu0 %4465 }
 0x2f9   : > { %v4501_v12 = vadd.f32 %v4466_v42, %v4421_v10 }
 0x2fa   : > { %v4468_v47 = vpop.permute.xlu1 %4467 }
 0x2fb   : > { %4518 = vst.msk [vmem:[%s7783_s21 + $0x60] sm:$0xff] %vm4505_vm5, %v4501_v12  ;;  %v4502_v62 = vadd.f32 %v4468_v47, %v4422_v32 }
 0x2fd   : > { %4519 = vst.msk [vmem:[%s7783_s21 + $0x68] sm:$0xff] %vm4505_vm5, %v4502_v62 }
 0x300   : > { %v4470_v44 = vpop.permute.xlu0 %4469 }
 0x301   : > { %v4503_v53 = vadd.f32 %v4470_v44, %v4423_v8 }
 0x302   : > { %v4472_v54 = vpop.permute.xlu1 %4471 }
 0x303   : > { %4520 = vst.msk [vmem:[%s7783_s21 + $0x70] sm:$0xff] %vm4505_vm5, %v4503_v53  ;;  %v4504_v60 = vadd.f32 %v4472_v54, %v4424_v36 }
 0x305   : > { %4521 = vst.msk [vmem:[%s7783_s21 + $0x78] sm:$0xff] %vm4505_vm5, %v4504_v60 }
 0x306 PF: > { %s21_s27 = sadd.s32 1, %s6263_s27   ;;  %s7904_s10 = sld [smem:[#allocation9_spill]] }
 0x307   : > { %p18_p13 = scmp.ge.s32.totalorder %s21_s27, 6   ;;  %s7905_s16 = sld [smem:[#allocation8_spill]] }
 0x308   : > { %s7906_s3 = sld [smem:[#allocation6_spill]]  ;;  %s7907_s28 = sld [smem:[#allocation7_spill]] }
 0x309   : > { %s7908_s17 = smov %s6227_s18  ;;  %s7909_s18 = smov %s6436_s11 }
 0x30a   : > { %s7910_s19 = smov %s6235_s20  ;;  %s7912_s21 = smov %s6243_s22 }
 0x30b   : > { %s7914_s23 = smov %s6255_s25  ;;  %s7915_s24 = smov %s6259_s26 }
 0x30c   : > { %s7911_s20 = smov %s7904_s10  ;;  %20 = sbr.rel (!%p18_p13) target bundleno = 15 (0xf), region = 266 }
 0x30d   : > { %s7913_s22 = smov %s7905_s16 }
 0x30e   : > { %s7916_s25 = smov %s7906_s3  ;;  %s7917_s26 = smov %s7907_s28 }

</bundles_post_ra>
